<compile_context>
chip_gen: v5e
topology: v5e:2x2
jax: 0.10.0
libtpu: 0.0.40
codegen_flags: <defaults>
</compile_context>

<pallas_src>
import numpy as np

import jax
import jax.numpy as jnp
from jax.experimental import pallas as pl
from jax.experimental.pallas import tpu as pltpu

# ---------------- model hyper-parameters (small, deterministic) -------------
B = 16         # batch (molecules)
A = 8          # atoms per molecule
F = 32         # feature width
K = 16         # number of Gaussian RBFs
H = 16         # hidden width of the Atomwise output head
N_SPECIES = 10 # embedding table size
GAMMA = 10.0   # RBF width

BT = 8         # molecules per Pallas block -> grid=(B//BT,) >= 2 blocks

# On v5e/v6e set to jnp.bfloat16 for ~2x MXU throughput at scale (accumulation
# stays f32 via preferred_element_type; keep _ssp / exp in f32 regardless).
MXU_DTYPE = jnp.float32


def _ssp(x):
    # shifted softplus (2 transcendentals/elem; the EUP is the likely binding
    # unit at scale — keep an eye on this if BT is pushed up).
    return jnp.maximum(x, 0.0) + jnp.log1p(jnp.exp(-jnp.abs(x))) - jnp.log(2.0)


def _mm(a, b):
    return jnp.dot(a.astype(MXU_DTYPE), b.astype(MXU_DTYPE),
                   preferred_element_type=jnp.float32)


# ------------------------------- Pallas kernel ------------------------------
def atomistic_kernel(
    x_ref,      # (BT*A, F)      embedded atom features
    r_ref,      # (BT*A, 3)      positions
    w_ref,      # (6*F, F)       packed weight matrices
    v_ref,      # (8, F)         packed bias rows / mu / w_a2 / b_a2
    dsel_ref,   # (P, BT*A)      +-1 pair-difference selector (R[i]-R[j])
    ej_ref,     # (P, BT*A)      0/1 pair -> neighbor-j gather
    pool_ref,   # (BT*A, P)      0/1 neighbor pooling with i==j masked out
    gt_ref,     # (BT*A, BT)     0/1 atom -> molecule one-hot
    out_ref,    # (1, 1, BT)     per-molecule energies (batch on lanes)
):
    x0 = x_ref[...]                                         # (BT*A, F)
    r = r_ref[...]                                          # (BT*A, 3)

    # ---- unpack parameter slabs (static slices of VMEM-resident slabs) ----
    w_f1 = w_ref[0:K, :]
    w_f2 = w_ref[F:2 * F, :]
    w_in = w_ref[2 * F:3 * F, :]
    w_o1 = w_ref[3 * F:4 * F, :]
    w_o2 = w_ref[4 * F:5 * F, :]
    w_a1 = w_ref[5 * F:6 * F, 0:H]
    b_f1 = v_ref[0:1, :]
    b_f2 = v_ref[1:2, :]
    b_o1 = v_ref[2:3, :]
    b_o2 = v_ref[3:4, :]
    b_a1 = v_ref[4:5, 0:H]
    mu = v_ref[5:6, 0:K]
    w_a2 = v_ref[6:7, 0:H]
    b_a2 = v_ref[7:8, 0:1]

    # ---- pairwise distances: direct differences, pair index on sublanes ----
    diff = jnp.dot(dsel_ref[...], r, preferred_element_type=jnp.float32)  # (P, 3)
    d = jnp.sqrt(jnp.sum(diff * diff, axis=1, keepdims=True))             # (P, 1)

    # ---- Gaussian RBF, already in the pair-flattened layout ----
    rbf = jnp.exp(-GAMMA * (d - mu) ** 2)                                 # (P, K)

    # ---- filter-generating MLP ----
    w = _ssp(_mm(rbf, w_f1) + b_f1)
    w = _ssp(_mm(w, w_f2) + b_f2)                                         # (P, F)

    # ---- continuous-filter convolution (mask folded into pool matrix) ----
    xp = _mm(x0, w_in)                                                    # (BT*A, F)
    xj = _mm(ej_ref[...], xp)                                             # (P, F)
    m = _mm(pool_ref[...], w * xj)                                        # (BT*A, F)

    # ---- f2out MLP + residual ----
    h = _ssp(_mm(m, w_o1) + b_o1)
    x = x0 + _mm(h, w_o2) + b_o2                                          # (BT*A, F)

    # ---- Atomwise head: per-atom MLP, VPU reduce, molecule pooling ----
    ya = _ssp(_mm(x, w_a1) + b_a1)                                        # (BT*A, H)
    per_atom = jnp.sum(ya * w_a2, axis=1, keepdims=True)                  # (BT*A, 1)
    e = jnp.sum(gt_ref[...] * per_atom, axis=0, keepdims=True)            # (1, BT)
    out_ref[...] = (e + float(A) * b_a2)[None, :, :]                      # (1,1,BT)


# -------------------------- parameter / constant packing ---------------------
def _pack_params(p):
    w_slab = jnp.zeros((6 * F, F), jnp.float32)
    w_slab = w_slab.at[0:K, :].set(p["w_f1"])
    w_slab = w_slab.at[F:2 * F, :].set(p["w_f2"])
    w_slab = w_slab.at[2 * F:3 * F, :].set(p["w_in"])
    w_slab = w_slab.at[3 * F:4 * F, :].set(p["w_o1"])
    w_slab = w_slab.at[4 * F:5 * F, :].set(p["w_o2"])
    w_slab = w_slab.at[5 * F:6 * F, 0:H].set(p["w_a1"])

    v_slab = jnp.zeros((8, F), jnp.float32)
    v_slab = v_slab.at[0, :].set(p["b_f1"][0])
    v_slab = v_slab.at[1, :].set(p["b_f2"][0])
    v_slab = v_slab.at[2, :].set(p["b_o1"][0])
    v_slab = v_slab.at[3, :].set(p["b_o2"][0])
    v_slab = v_slab.at[4, 0:H].set(p["b_a1"][0])
    v_slab = v_slab.at[5, 0:K].set(p["mu"][0])
    v_slab = v_slab.at[6, 0:H].set(p["w_a2"][:, 0])
    v_slab = v_slab.at[7, 0:1].set(p["b_a2"][0])
    return w_slab, v_slab


def _structural_constants(bt, a):
    """Exact 0/1 (and +-1) selection matrices for pair gather / pooling."""
    n, p = bt * a, bt * a * a
    pair = np.arange(p)
    b_idx = pair // (a * a)
    i_idx = (pair // a) % a
    j_idx = pair % a
    e_i = np.zeros((p, n), np.float32)
    e_i[pair, b_idx * a + i_idx] = 1.0
    e_j = np.zeros((p, n), np.float32)
    e_j[pair, b_idx * a + j_idx] = 1.0
    d_sel = e_i - e_j                       # diff selector: R[i] - R[j]
    pool = e_i.T.copy()                     # (n, p): sum over j for each (b, i)
    pool[:, i_idx == j_idx] = 0.0           # self-interaction masked out
    g_t = np.zeros((n, bt), np.float32)
    g_t[np.arange(n), np.arange(n) // a] = 1.0
    return (jnp.asarray(d_sel), jnp.asarray(e_j),
            jnp.asarray(pool), jnp.asarray(g_t))


# ------------------------------- wrapper -------------------------------------
@jax.jit
def atomistic_forward(Z, R, params):
    """Returns {"energy": (B, 1)} like the SchNetPack Atomwise output dict."""
    b, a = Z.shape
    f = params["embedding"].shape[1]
    assert b % BT == 0
    x0 = params["embedding"][Z].reshape(b * a, f)       # embedding gather = glue
    r_flat = R.reshape(b * a, 3)

    w_slab, v_slab = _pack_params(params)
    d_sel, e_j, pool, g_t = _structural_constants(BT, a)
    n_blk = b // BT

    # Constant index_map -> slab DMA'd once and kept VMEM-resident across grid.
    def const_spec(arr):
        return pl.BlockSpec(arr.shape, lambda g: (0, 0))

    grid_spec = pltpu.PrefetchScalarGridSpec(
        num_scalar_prefetch=0,
        grid=(n_blk,),
        in_specs=[
            pl.BlockSpec((BT * a, f), lambda g: (g, 0)),
            pl.BlockSpec((BT * a, 3), lambda g: (g, 0)),
            const_spec(w_slab),
            const_spec(v_slab),
            const_spec(d_sel),
            const_spec(e_j),
            const_spec(pool),
            const_spec(g_t),
        ],
        out_specs=pl.BlockSpec((1, 1, BT), lambda g: (g, 0, 0)),
    )

    out = pl.pallas_call(
        atomistic_kernel,
        out_shape=jax.ShapeDtypeStruct((n_blk, 1, BT), jnp.float32),
        grid_spec=grid_spec,
        compiler_params=pltpu.CompilerParams(
            dimension_semantics=("parallel",)),
    )(x0, r_flat, w_slab, v_slab, d_sel, e_j, pool, g_t)

    return {"energy": out.reshape(b, 1)}


# --------------------------- pure-JAX reference ------------------------------
def reference_forward(Z, R, p):
    x0 = p["embedding"][Z]                                         # (B, A, F)

    def per_mol(x0b, Rb):
        diff = Rb[:, None, :] - Rb[None, :, :]
        d = jnp.sqrt(jnp.sum(diff * diff, axis=-1))
        rbf = jnp.exp(-GAMMA * (d[:, :, None] - p["mu"][0][None, None, :]) ** 2)
        w = _ssp(rbf @ p["w_f1"] + p["b_f1"])
        w = _ssp(w @ p["w_f2"] + p["b_f2"])                        # (A, A, F)
        xp = x0b @ p["w_in"]
        mask = 1.0 - jnp.eye(x0b.shape[0], dtype=jnp.float32)
        m = jnp.sum(w * xp[None, :, :] * mask[:, :, None], axis=1)
        h = _ssp(m @ p["w_o1"] + p["b_o1"])
        v = h @ p["w_o2"] + p["b_o2"]
        x = x0b + v
        ya = _ssp(x @ p["w_a1"] + p["b_a1"])
        y = ya @ p["w_a2"] + p["b_a2"]
        return jnp.sum(y, axis=0)                                  # (1,)

    e = jax.vmap(per_mol)(x0, R)                                   # (B, 1)
    return {"energy": e}


# ------------------------------- init / main ---------------------------------
def init_params(key):
    ks = jax.random.split(key, 12)

    def dense(k_, shape):
        fan_in = shape[0]
        return jax.random.normal(k_, shape, jnp.float32) / jnp.sqrt(float(fan_in))

    return {
        "embedding": jax.random.normal(ks[0], (N_SPECIES, F), jnp.float32) * 0.5,
        "w_f1": dense(ks[1], (K, F)), "b_f1": jnp.zeros((1, F), jnp.float32),
        "w_f2": dense(ks[2], (F, F)), "b_f2": jnp.zeros((1, F), jnp.float32),
        "w_in": dense(ks[3], (F, F)),
        "w_o1": dense(ks[4], (F, F)), "b_o1": jnp.zeros((1, F), jnp.float32),
        "w_o2": dense(ks[5], (F, F)), "b_o2": jnp.zeros((1, F), jnp.float32),
        "w_a1": dense(ks[6], (F, H)), "b_a1": jnp.zeros((1, H), jnp.float32),
        "w_a2": dense(ks[7], (H, 1)), "b_a2": jnp.zeros((1, 1), jnp.float32),
        "mu": jnp.linspace(0.0, 3.0, K, dtype=jnp.float32).reshape(1, K),
    }


if __name__ == "__main__":
    key = jax.random.PRNGKey(0)
    k_p, k_z, k_r = jax.random.split(key, 3)

    params = init_params(k_p)
    Z = jax.random.randint(k_z, (B, A), 1, N_SPECIES, dtype=jnp.int32)
    R = jax.random.normal(k_r, (B, A, 3), jnp.float32)

    outs = atomistic_forward(Z, R, params)
    energy = jax.block_until_ready(outs["energy"])

    ref = reference_forward(Z, R, params)["energy"]
    np.testing.assert_allclose(np.asarray(energy), np.asarray(ref),
                               rtol=2e-3, atol=2e-3)

    print("KERNEL_OK")
</pallas_src>

<mosaic_0001>
module attributes {stable_mosaic.version = 11 : i64} {
  func.func @atomistic_kernel(%arg0: i32, %arg1: memref<64x32xf32, #tpu.memory_space<vmem>>, %arg2: memref<64x3xf32, #tpu.memory_space<vmem>>, %arg3: memref<192x32xf32, #tpu.memory_space<vmem>>, %arg4: memref<8x32xf32, #tpu.memory_space<vmem>>, %arg5: memref<512x64xf32, #tpu.memory_space<vmem>>, %arg6: memref<512x64xf32, #tpu.memory_space<vmem>>, %arg7: memref<64x512xf32, #tpu.memory_space<vmem>>, %arg8: memref<64x8xf32, #tpu.memory_space<vmem>>, %arg9: memref<1x1x8xf32, #tpu.memory_space<vmem>>) attributes {dimension_semantics = [#tpu.dimension_semantics<parallel>], iteration_bounds = array<i64: 2>, scalar_prefetch = 0 : i64, scratch_operands = 0 : i64, tpu.core_type = #tpu.core_type<tc>, window_params = [{transform_indices = @transform_0, window_bounds = array<i64: 64, 32>}, {transform_indices = @transform_1, window_bounds = array<i64: 64, 3>}, {pipeline_mode = #tpu.pipeline_mode<synchronous>, transform_indices = @transform_2, window_bounds = array<i64: 192, 32>}, {pipeline_mode = #tpu.pipeline_mode<synchronous>, transform_indices = @transform_3, window_bounds = array<i64: 8, 32>}, {pipeline_mode = #tpu.pipeline_mode<synchronous>, transform_indices = @transform_4, window_bounds = array<i64: 512, 64>}, {pipeline_mode = #tpu.pipeline_mode<synchronous>, transform_indices = @transform_5, window_bounds = array<i64: 512, 64>}, {pipeline_mode = #tpu.pipeline_mode<synchronous>, transform_indices = @transform_6, window_bounds = array<i64: 64, 512>}, {pipeline_mode = #tpu.pipeline_mode<synchronous>, transform_indices = @transform_7, window_bounds = array<i64: 64, 8>}, {transform_indices = @transform_8, window_bounds = array<i64: 1, 1, 8>}]} {
    %c0 = arith.constant 0 : index
    %c0_0 = arith.constant 0 : index
    %0 = vector.load %arg1[%c0, %c0_0] : memref<64x32xf32, #tpu.memory_space<vmem>>, vector<64x32xf32>
    %c0_1 = arith.constant 0 : index
    %c0_2 = arith.constant 0 : index
    %1 = vector.load %arg2[%c0_1, %c0_2] : memref<64x3xf32, #tpu.memory_space<vmem>>, vector<64x3xf32>
    %c0_3 = arith.constant 0 : index
    %c0_4 = arith.constant 0 : index
    %2 = vector.load %arg3[%c0_3, %c0_4] : memref<192x32xf32, #tpu.memory_space<vmem>>, vector<16x32xf32>
    %c32 = arith.constant 32 : index
    %c0_5 = arith.constant 0 : index
    %3 = vector.load %arg3[%c32, %c0_5] : memref<192x32xf32, #tpu.memory_space<vmem>>, vector<32x32xf32>
    %c64 = arith.constant 64 : index
    %c0_6 = arith.constant 0 : index
    %4 = vector.load %arg3[%c64, %c0_6] : memref<192x32xf32, #tpu.memory_space<vmem>>, vector<32x32xf32>
    %c96 = arith.constant 96 : index
    %c0_7 = arith.constant 0 : index
    %5 = vector.load %arg3[%c96, %c0_7] : memref<192x32xf32, #tpu.memory_space<vmem>>, vector<32x32xf32>
    %c128 = arith.constant 128 : index
    %c0_8 = arith.constant 0 : index
    %6 = vector.load %arg3[%c128, %c0_8] : memref<192x32xf32, #tpu.memory_space<vmem>>, vector<32x32xf32>
    %c160 = arith.constant 160 : index
    %c0_9 = arith.constant 0 : index
    %7 = vector.load %arg3[%c160, %c0_9] : memref<192x32xf32, #tpu.memory_space<vmem>>, vector<32x16xf32>
    %c0_10 = arith.constant 0 : index
    %c0_11 = arith.constant 0 : index
    %8 = vector.load %arg4[%c0_10, %c0_11] : memref<8x32xf32, #tpu.memory_space<vmem>>, vector<1x32xf32>
    %c1 = arith.constant 1 : index
    %c0_12 = arith.constant 0 : index
    %9 = vector.load %arg4[%c1, %c0_12] : memref<8x32xf32, #tpu.memory_space<vmem>>, vector<1x32xf32>
    %c2 = arith.constant 2 : index
    %c0_13 = arith.constant 0 : index
    %10 = vector.load %arg4[%c2, %c0_13] : memref<8x32xf32, #tpu.memory_space<vmem>>, vector<1x32xf32>
    %c3 = arith.constant 3 : index
    %c0_14 = arith.constant 0 : index
    %11 = vector.load %arg4[%c3, %c0_14] : memref<8x32xf32, #tpu.memory_space<vmem>>, vector<1x32xf32>
    %c4 = arith.constant 4 : index
    %c0_15 = arith.constant 0 : index
    %12 = vector.load %arg4[%c4, %c0_15] : memref<8x32xf32, #tpu.memory_space<vmem>>, vector<1x16xf32>
    %c5 = arith.constant 5 : index
    %c0_16 = arith.constant 0 : index
    %13 = vector.load %arg4[%c5, %c0_16] : memref<8x32xf32, #tpu.memory_space<vmem>>, vector<1x16xf32>
    %c6 = arith.constant 6 : index
    %c0_17 = arith.constant 0 : index
    %14 = vector.load %arg4[%c6, %c0_17] : memref<8x32xf32, #tpu.memory_space<vmem>>, vector<1x16xf32>
    %c7 = arith.constant 7 : index
    %c0_18 = arith.constant 0 : index
    %15 = vector.load %arg4[%c7, %c0_18] : memref<8x32xf32, #tpu.memory_space<vmem>>, vector<1x1xf32>
    %c0_19 = arith.constant 0 : index
    %c0_20 = arith.constant 0 : index
    %16 = vector.load %arg5[%c0_19, %c0_20] : memref<512x64xf32, #tpu.memory_space<vmem>>, vector<512x64xf32>
    %cst = arith.constant dense<0.000000e+00> : vector<512x3xf32>
    %17 = tpu.matmul %16, %1, %cst {dimension_numbers = #tpu.dot_dimension_numbers<[1], [0], [0], [1], [0, 0, 1, 1], [], []>} : vector<512x64xf32>, vector<64x3xf32>, vector<512x3xf32> -> vector<512x3xf32>
    %18 = arith.mulf %17, %17 : vector<512x3xf32>
    %cst_21 = arith.constant dense<0.000000e+00> : vector<512xf32>
    %19 = vector.multi_reduction <add>, %18, %cst_21 [1] : vector<512x3xf32> to vector<512xf32>
    %20 = vector.shape_cast %19 : vector<512xf32> to vector<512x1xf32>
    %21 = math.sqrt %20 : vector<512x1xf32>
    %22 = vector.broadcast %21 : vector<512x1xf32> to vector<512x16xf32>
    %23 = vector.broadcast %13 : vector<1x16xf32> to vector<512x16xf32>
    %24 = arith.subf %22, %23 : vector<512x16xf32>
    %25 = arith.mulf %24, %24 : vector<512x16xf32>
    %cst_22 = arith.constant -1.000000e+01 : f32
    %26 = vector.broadcast %cst_22 : f32 to vector<512x16xf32>
    %27 = arith.mulf %26, %25 : vector<512x16xf32>
    %28 = math.exp %27 : vector<512x16xf32>
    %cst_23 = arith.constant dense<0.000000e+00> : vector<512x32xf32>
    %29 = tpu.matmul %28, %2, %cst_23 {dimension_numbers = #tpu.dot_dimension_numbers<[1], [0], [0], [1], [0, 0, 1, 1], [], []>} : vector<512x16xf32>, vector<16x32xf32>, vector<512x32xf32> -> vector<512x32xf32>
    %30 = vector.broadcast %8 : vector<1x32xf32> to vector<512x32xf32>
    %31 = arith.addf %29, %30 : vector<512x32xf32>
    %cst_24 = arith.constant 0.000000e+00 : f32
    %32 = vector.broadcast %cst_24 : f32 to vector<512x32xf32>
    %33 = arith.maximumf %31, %32 : vector<512x32xf32>
    %34 = math.absf %31 : vector<512x32xf32>
    %cst_25 = arith.constant 0.000000e+00 : f32
    %35 = vector.broadcast %cst_25 : f32 to vector<512x32xf32>
    %36 = arith.subf %35, %34 : vector<512x32xf32>
    %37 = math.exp %36 : vector<512x32xf32>
    %38 = math.log1p %37 : vector<512x32xf32>
    %39 = arith.addf %33, %38 : vector<512x32xf32>
    %cst_26 = arith.constant 2.000000e+00 : f32
    %40 = math.log %cst_26 : f32
    %41 = vector.broadcast %40 : f32 to vector<512x32xf32>
    %42 = arith.subf %39, %41 : vector<512x32xf32>
    %cst_27 = arith.constant dense<0.000000e+00> : vector<512x32xf32>
    %43 = tpu.matmul %42, %3, %cst_27 {dimension_numbers = #tpu.dot_dimension_numbers<[1], [0], [0], [1], [0, 0, 1, 1], [], []>} : vector<512x32xf32>, vector<32x32xf32>, vector<512x32xf32> -> vector<512x32xf32>
    %44 = vector.broadcast %9 : vector<1x32xf32> to vector<512x32xf32>
    %45 = arith.addf %43, %44 : vector<512x32xf32>
    %cst_28 = arith.constant 0.000000e+00 : f32
    %46 = vector.broadcast %cst_28 : f32 to vector<512x32xf32>
    %47 = arith.maximumf %45, %46 : vector<512x32xf32>
    %48 = math.absf %45 : vector<512x32xf32>
    %cst_29 = arith.constant 0.000000e+00 : f32
    %49 = vector.broadcast %cst_29 : f32 to vector<512x32xf32>
    %50 = arith.subf %49, %48 : vector<512x32xf32>
    %51 = math.exp %50 : vector<512x32xf32>
    %52 = math.log1p %51 : vector<512x32xf32>
    %53 = arith.addf %47, %52 : vector<512x32xf32>
    %cst_30 = arith.constant 2.000000e+00 : f32
    %54 = math.log %cst_30 : f32
    %55 = vector.broadcast %54 : f32 to vector<512x32xf32>
    %56 = arith.subf %53, %55 : vector<512x32xf32>
    %cst_31 = arith.constant dense<0.000000e+00> : vector<64x32xf32>
    %57 = tpu.matmul %0, %4, %cst_31 {dimension_numbers = #tpu.dot_dimension_numbers<[1], [0], [0], [1], [0, 0, 1, 1], [], []>} : vector<64x32xf32>, vector<32x32xf32>, vector<64x32xf32> -> vector<64x32xf32>
    %c0_32 = arith.constant 0 : index
    %c0_33 = arith.constant 0 : index
    %58 = vector.load %arg6[%c0_32, %c0_33] : memref<512x64xf32, #tpu.memory_space<vmem>>, vector<512x64xf32>
    %cst_34 = arith.constant dense<0.000000e+00> : vector<512x32xf32>
    %59 = tpu.matmul %58, %57, %cst_34 {dimension_numbers = #tpu.dot_dimension_numbers<[1], [0], [0], [1], [0, 0, 1, 1], [], []>} : vector<512x64xf32>, vector<64x32xf32>, vector<512x32xf32> -> vector<512x32xf32>
    %c0_35 = arith.constant 0 : index
    %c0_36 = arith.constant 0 : index
    %60 = vector.load %arg7[%c0_35, %c0_36] : memref<64x512xf32, #tpu.memory_space<vmem>>, vector<64x512xf32>
    %61 = arith.mulf %56, %59 : vector<512x32xf32>
    %cst_37 = arith.constant dense<0.000000e+00> : vector<64x32xf32>
    %62 = tpu.matmul %60, %61, %cst_37 {dimension_numbers = #tpu.dot_dimension_numbers<[1], [0], [0], [1], [0, 0, 1, 1], [], []>} : vector<64x512xf32>, vector<512x32xf32>, vector<64x32xf32> -> vector<64x32xf32>
    %cst_38 = arith.constant dense<0.000000e+00> : vector<64x32xf32>
    %63 = tpu.matmul %62, %5, %cst_38 {dimension_numbers = #tpu.dot_dimension_numbers<[1], [0], [0], [1], [0, 0, 1, 1], [], []>} : vector<64x32xf32>, vector<32x32xf32>, vector<64x32xf32> -> vector<64x32xf32>
    %64 = vector.broadcast %10 : vector<1x32xf32> to vector<64x32xf32>
    %65 = arith.addf %63, %64 : vector<64x32xf32>
    %cst_39 = arith.constant 0.000000e+00 : f32
    %66 = vector.broadcast %cst_39 : f32 to vector<64x32xf32>
    %67 = arith.maximumf %65, %66 : vector<64x32xf32>
    %68 = math.absf %65 : vector<64x32xf32>
    %cst_40 = arith.constant 0.000000e+00 : f32
    %69 = vector.broadcast %cst_40 : f32 to vector<64x32xf32>
    %70 = arith.subf %69, %68 : vector<64x32xf32>
    %71 = math.exp %70 : vector<64x32xf32>
    %72 = math.log1p %71 : vector<64x32xf32>
    %73 = arith.addf %67, %72 : vector<64x32xf32>
    %cst_41 = arith.constant 2.000000e+00 : f32
    %74 = math.log %cst_41 : f32
    %75 = vector.broadcast %74 : f32 to vector<64x32xf32>
    %76 = arith.subf %73, %75 : vector<64x32xf32>
    %cst_42 = arith.constant dense<0.000000e+00> : vector<64x32xf32>
    %77 = tpu.matmul %76, %6, %cst_42 {dimension_numbers = #tpu.dot_dimension_numbers<[1], [0], [0], [1], [0, 0, 1, 1], [], []>} : vector<64x32xf32>, vector<32x32xf32>, vector<64x32xf32> -> vector<64x32xf32>
    %78 = arith.addf %0, %77 : vector<64x32xf32>
    %79 = vector.broadcast %11 : vector<1x32xf32> to vector<64x32xf32>
    %80 = arith.addf %78, %79 : vector<64x32xf32>
    %cst_43 = arith.constant dense<0.000000e+00> : vector<64x16xf32>
    %81 = tpu.matmul %80, %7, %cst_43 {dimension_numbers = #tpu.dot_dimension_numbers<[1], [0], [0], [1], [0, 0, 1, 1], [], []>} : vector<64x32xf32>, vector<32x16xf32>, vector<64x16xf32> -> vector<64x16xf32>
    %82 = vector.broadcast %12 : vector<1x16xf32> to vector<64x16xf32>
    %83 = arith.addf %81, %82 : vector<64x16xf32>
    %cst_44 = arith.constant 0.000000e+00 : f32
    %84 = vector.broadcast %cst_44 : f32 to vector<64x16xf32>
    %85 = arith.maximumf %83, %84 : vector<64x16xf32>
    %86 = math.absf %83 : vector<64x16xf32>
    %cst_45 = arith.constant 0.000000e+00 : f32
    %87 = vector.broadcast %cst_45 : f32 to vector<64x16xf32>
    %88 = arith.subf %87, %86 : vector<64x16xf32>
    %89 = math.exp %88 : vector<64x16xf32>
    %90 = math.log1p %89 : vector<64x16xf32>
    %91 = arith.addf %85, %90 : vector<64x16xf32>
    %cst_46 = arith.constant 2.000000e+00 : f32
    %92 = math.log %cst_46 : f32
    %93 = vector.broadcast %92 : f32 to vector<64x16xf32>
    %94 = arith.subf %91, %93 : vector<64x16xf32>
    %95 = vector.broadcast %14 : vector<1x16xf32> to vector<64x16xf32>
    %96 = arith.mulf %94, %95 : vector<64x16xf32>
    %cst_47 = arith.constant dense<0.000000e+00> : vector<64xf32>
    %97 = vector.multi_reduction <add>, %96, %cst_47 [1] : vector<64x16xf32> to vector<64xf32>
    %98 = vector.shape_cast %97 : vector<64xf32> to vector<64x1xf32>
    %c0_48 = arith.constant 0 : index
    %c0_49 = arith.constant 0 : index
    %99 = vector.load %arg8[%c0_48, %c0_49] : memref<64x8xf32, #tpu.memory_space<vmem>>, vector<64x8xf32>
    %100 = vector.broadcast %98 : vector<64x1xf32> to vector<64x8xf32>
    %101 = arith.mulf %99, %100 : vector<64x8xf32>
    %cst_50 = arith.constant dense<0.000000e+00> : vector<8xf32>
    %102 = vector.multi_reduction <add>, %101, %cst_50 [0] : vector<64x8xf32> to vector<8xf32>
    %103 = vector.shape_cast %102 : vector<8xf32> to vector<1x8xf32>
    %cst_51 = arith.constant 8.000000e+00 : f32
    %104 = vector.broadcast %cst_51 : f32 to vector<1x1xf32>
    %105 = arith.mulf %104, %15 : vector<1x1xf32>
    %106 = vector.broadcast %105 : vector<1x1xf32> to vector<1x8xf32>
    %107 = arith.addf %103, %106 : vector<1x8xf32>
    %108 = vector.shape_cast %107 : vector<1x8xf32> to vector<1x1x8xf32>
    %c0_52 = arith.constant 0 : index
    %c0_53 = arith.constant 0 : index
    %c0_54 = arith.constant 0 : index
    %109 = vector.load %arg9[%c0_52, %c0_53, %c0_54] : memref<1x1x8xf32, #tpu.memory_space<vmem>>, vector<1x1x8xf32>
    tpu.vector_store %arg9[%c0_52, %c0_53, %c0_54], %108 {strides = array<i32>} : memref<1x1x8xf32, #tpu.memory_space<vmem>>, vector<1x1x8xf32>,
    return
  }
  func.func @transform_0(%arg0: i32) -> (i32, i32) {
    %c0_i32 = arith.constant 0 : i32
    %c0_i32_0 = arith.constant 0 : i32
    return %arg0, %c0_i32 : i32, i32
  }
  func.func @transform_1(%arg0: i32) -> (i32, i32) {
    %c0_i32 = arith.constant 0 : i32
    %c0_i32_0 = arith.constant 0 : i32
    return %arg0, %c0_i32 : i32, i32
  }
  func.func @transform_2(%arg0: i32) -> (i32, i32) {
    %c0_i32 = arith.constant 0 : i32
    %c0_i32_0 = arith.constant 0 : i32
    %c0_i32_1 = arith.constant 0 : i32
    return %c0_i32, %c0_i32_0 : i32, i32
  }
  func.func @transform_3(%arg0: i32) -> (i32, i32) {
    %c0_i32 = arith.constant 0 : i32
    %c0_i32_0 = arith.constant 0 : i32
    %c0_i32_1 = arith.constant 0 : i32
    return %c0_i32, %c0_i32_0 : i32, i32
  }
  func.func @transform_4(%arg0: i32) -> (i32, i32) {
    %c0_i32 = arith.constant 0 : i32
    %c0_i32_0 = arith.constant 0 : i32
    %c0_i32_1 = arith.constant 0 : i32
    return %c0_i32, %c0_i32_0 : i32, i32
  }
  func.func @transform_5(%arg0: i32) -> (i32, i32) {
    %c0_i32 = arith.constant 0 : i32
    %c0_i32_0 = arith.constant 0 : i32
    %c0_i32_1 = arith.constant 0 : i32
    return %c0_i32, %c0_i32_0 : i32, i32
  }
  func.func @transform_6(%arg0: i32) -> (i32, i32) {
    %c0_i32 = arith.constant 0 : i32
    %c0_i32_0 = arith.constant 0 : i32
    %c0_i32_1 = arith.constant 0 : i32
    return %c0_i32, %c0_i32_0 : i32, i32
  }
  func.func @transform_7(%arg0: i32) -> (i32, i32) {
    %c0_i32 = arith.constant 0 : i32
    %c0_i32_0 = arith.constant 0 : i32
    %c0_i32_1 = arith.constant 0 : i32
    return %c0_i32, %c0_i32_0 : i32, i32
  }
  func.func @transform_8(%arg0: i32) -> (i32, i32, i32) {
    %c0_i32 = arith.constant 0 : i32
    %c0_i32_0 = arith.constant 0 : i32
    %c0_i32_1 = arith.constant 0 : i32
    return %arg0, %c0_i32, %c0_i32_0 : i32, i32, i32
  }
}

</mosaic_0001>

<bundles_post_ra>
// kernel: atomistic_forward.1
= control target key start
LH: loop header
LB: loop body
LE: loop exit
PB: predicated region body
PF: predicated region fallthrough
CT: control target
= control target key end

     0   :  { %s7805_s27 = smov 0   ;;  %s11841_s0 = inlined_call_operand.vmem [shape: f32[128,32], index: 0, kind: input, shape index: {}]   ;;  %s11842_s1 = inlined_call_operand.vmem [shape: f32[128,3], index: 1, kind: input, shape index: {}]   ;;  %s11843_s2 = inlined_call_operand.vmem [shape: f32[192,32], index: 2, kind: input, shape index: {}]   ;;  %s11844_s3 = inlined_call_operand.vmem [shape: f32[8,32], index: 3, kind: input, shape index: {}]   ;;  %s11845_s4 = inlined_call_operand.vmem [shape: f32[512,64], index: 4, kind: input, shape index: {}]   ;;  %s11846_s5 = inlined_call_operand.vmem [shape: f32[512,64], index: 5, kind: input, shape index: {}]   ;;  %s11847_s6 = inlined_call_operand.vmem [shape: f32[64,512], index: 6, kind: input, shape index: {}]   ;;  %s11848_s7 = inlined_call_operand.vmem [shape: f32[64,8], index: 7, kind: input, shape index: {}]   ;;  %s11849_s8 = inlined_call_operand.vmem [shape: f32[2,1,8], index: 8, kind: output, shape index: {}]  }
   0x1 LB: > { %s7811_s28 = sadd.s32 4294967295, %s7757_s27   ;;  %p6441_p0 = scmp.ge.s32.totalorder %s7757_s27, 1  ;;  %s7757_s27 = sphi %s7805_s27, %s18_s27  }
   0x2   : > { %p274_p1 = scmp.lt.s32.totalorder %s7757_s27, 3 }
   0x4   : > { %p275_p2 = pnand %p6441_p0, %p274_p1 }
   0x6   : > { %278 = sbr.rel (%p275_p2) target bundleno = 2185 (0x889), region = 52 }
   0xb   : > { %s6442_s29 = sshll.u32 %s7811_s28, 3  ;;  %v372_v8 = vld [vmem:[%s11845_s4] sm:$0xff]  ;;  %vm436_vm0 = vcmask 523264   ;;  %v373_v9 = vld [vmem:[%s11845_s4 + $0x8] sm:$0xff]  ;;  %v374_v10 = vld [vmem:[%s11845_s4 + $0x10] sm:$0xff]  ;;  %vm902_vm1 = vcmask 23552  }
   0xc   : > { %p312_p3 = scmp.lt.s32.totalorder %s6442_s29, 15  ;;  %v375_v11 = vld [vmem:[%s11845_s4 + $0x18] sm:$0xff]  ;;  %v376_v12 = vld [vmem:[%s11845_s4 + $0x20] sm:$0xff]  ;;  %v377_v13 = vld [vmem:[%s11845_s4 + $0x28] sm:$0xff]  ;;  %vm3612_vm2 = vcmask 261120   ;;  %vm2185_vm7 = vcmask 130048  }
   0xd   : > { %v378_v14 = vld [vmem:[%s11845_s4 + $0x30] sm:$0xff]  ;;  %v379_v15 = vld [vmem:[%s11845_s4 + $0x38] sm:$0xff]  ;;  %v380_v16 = vld [vmem:[%s11845_s4 + $0x40] sm:$0xff]  ;;  %p323_p4 = scmp.lt.s32.totalorder %s7811_s28, 1 }
   0xe   : > { %s12166_s29 = smov (!%p312_p3, %s6442_s29), 15  ;;  %v381_v17 = vld [vmem:[%s11845_s4 + $0x48] sm:$0xff]  ;;  %v382_v18 = vld [vmem:[%s11845_s4 + $0x50] sm:$0xff]  ;;  %v383_v19 = vld [vmem:[%s11845_s4 + $0x58] sm:$0xff] }
   0xf   : > { %s6443_s30 = sshll.u32 %s12166_s29, 3  ;;  %v384_v20 = vld [vmem:[%s11845_s4 + $0x60] sm:$0xff]  ;;  %v385_v21 = vld [vmem:[%s11845_s4 + $0x68] sm:$0xff]  ;;  %v386_v22 = vld [vmem:[%s11845_s4 + $0x70] sm:$0xff]  ;;  %s12168_s28 = smov (!%p323_p4, %s7811_s28), 1 }
  0x10   : > { %s321_s11 = scalar_lea.vmem %s11842_s1, %s6443_s30  ;;  %v387_v23 = vld [vmem:[%s11845_s4 + $0x78] sm:$0xff]  ;;  %v388_v25 = vld [vmem:[%s11845_s4 + $0x80] sm:$0xff]  ;;  %v389_v29 = vld [vmem:[%s11845_s4 + $0x88] sm:$0xff]  ;;  %s7922_s24 = scalar_lea.vmem %s11841_s0, %s6443_s30 }
  0x11   : > { %v341_v0 = vld [vmem:[%s321_s11 + $0x38] sm:$0xff]  ;;  %v340_v1 = vld [vmem:[%s321_s11 + $0x30] sm:$0xff]  ;;  %v339_v2 = vld [vmem:[%s321_s11 + $0x28] sm:$0xff]  ;;  %s325_s22 = scalar_lea.vmem %s11849_s8, %s12168_s28 }
  0x12   : > { %637 = vmatpush.msra.mxu0 %v341_v0  ;;  %v338_v3 = vld [vmem:[%s321_s11 + $0x20] sm:$0xff]  ;;  %v337_v4 = vld [vmem:[%s321_s11 + $0x18] sm:$0xff]  ;;  %v336_v5 = vld [vmem:[%s321_s11 + $0x10] sm:$0xff] }
  0x13   : > { %v335_v6 = vld [vmem:[%s321_s11 + $0x8] sm:$0xff]  ;;  %v334_v7 = vld [vmem:[%s321_s11] sm:$0xff]  ;;  %v390_v33 = vld [vmem:[%s11845_s4 + $0x90] sm:$0xff] }
  0x14   : > { %638 = vmatpush.msra.mxu0 %v340_v1  ;;  %v391_v37 = vld [vmem:[%s11845_s4 + $0x98] sm:$0xff]  ;;  %v392_v42 = vld [vmem:[%s11845_s4 + $0xa0] sm:$0xff]  ;;  %v350_v44 = vld [vmem:[%s11843_s2 + $0x50] sm:$0xff] }
  0x15   : > { %v351_v40 = vld [vmem:[%s11843_s2 + $0x58] sm:$0xff]  ;;  %v349_v46 = vld [vmem:[%s11843_s2 + $0x48] sm:$0xff]  ;;  %v348_v47 = vld [vmem:[%s11843_s2 + $0x40] sm:$0xff] }
  0x16   : > { %639 = vmatpush.msra.mxu0 %v339_v2  ;;  %5074 = vmatpush.msra.mxu3 %v351_v40  ;;  %v326_v48 = vld [vmem:[%s7922_s24] sm:$0xff]  ;;  %v393_v50 = vld [vmem:[%s11845_s4 + $0xa8] sm:$0xff]  ;;  %v394_v55 = vld [vmem:[%s11845_s4 + $0xb0] sm:$0xff] }
  0x17   : > { %v327_v53 = vld [vmem:[%s7922_s24 + $0x8] sm:$0xff]  ;;  %v328_v58 = vld [vmem:[%s7922_s24 + $0x10] sm:$0xff]  ;;  %v395_v60 = vld [vmem:[%s11845_s4 + $0xb8] sm:$0xff] }
  0x18   : > { %640 = vmatpush.msra.mxu0 %v338_v3  ;;  %5075 = vmatpush.msra.mxu3 %v350_v44  ;;  %v329_v63 = vld [vmem:[%s7922_s24 + $0x18] sm:$0xff]  ;;  %v396_v1 = vld [vmem:[%s11845_s4 + $0xc0] sm:$0xff] }
  0x1a   : > { %641 = vmatpush.msra.mxu0 %v337_v4  ;;  %5076 = vmatpush.msra.mxu3 %v349_v46  ;;  %v330_v4 = vld [vmem:[%s7922_s24 + $0x20] sm:$0xff] }
  0x1c   : > { %642 = vmatpush.msra.mxu0 %v336_v5  ;;  %5077 = vmatpush.msra.mxu3 %v348_v47 }
  0x1d   : > { %6766 = vmatmul.msk.f32.vlgmr.msra.gmra.mxu3 %vm3612_vm2, %v326_v48 }
  0x1e   : > { %643 = vmatpush.msra.mxu0 %v335_v6  ;;  %v397_v6 = vld [vmem:[%s11845_s4 + $0xc8] sm:$0xff] }
  0x20   : > { %644 = vmatpush.msra.mxu0 %v334_v7 }
  0x21   : > { %6446 = vmatmul.msk.f32.vlgmr.msra.gmra.mxu0 %vm436_vm0, %v372_v8 }
  0x25   : > { %6767 = vmatmul.msk.f32.gmra.mxu3 %vm3612_vm2, %v327_v53 }
  0x29   : > { %6447 = vmatmul.msk.f32.gmra.mxu0 %vm436_vm0, %v373_v9  ;;  %v331_v9 = vld [vmem:[%s7922_s24 + $0x28] sm:$0xff] }
  0x2d   : > { %6768 = vmatmul.msk.f32.gmra.mxu3 %vm3612_vm2, %v328_v58  ;;  %v8023_v58 = vld [vmem:[%s11844_s3 + $0x5] ss:$0 sm:$0xff] }
  0x31   : > { %6448 = vmatmul.msk.f32.gmra.mxu0 %vm436_vm0, %v374_v10 }
  0x35   : > { %6769 = vmatmul.msk.f32.gmra.mxu3 %vm3612_vm2, %v329_v63 }
  0x39   : > { %6449 = vmatmul.msk.f32.gmra.mxu0 %vm436_vm0, %v375_v11  ;;  %v398_v11 = vld [vmem:[%s11845_s4 + $0xd0] sm:$0xff] }
  0x3d   : > { %6770 = vmatmul.msk.f32.gmra.mxu3 %vm3612_vm2, %v330_v4 }
  0x41   : > { %6450 = vmatmul.msk.f32.gmra.mxu0 %vm436_vm0, %v376_v12 }
  0x45   : > { %6771 = vmatmul.msk.f32.gmra.mxu3 %vm3612_vm2, %v331_v9 }
  0x49   : > { %6451 = vmatmul.msk.f32.gmra.mxu0 %vm436_vm0, %v377_v13 }
  0x51   : > { %6452 = vmatmul.msk.f32.gmra.mxu0 %vm436_vm0, %v378_v14  ;;  %v332_v14 = vld [vmem:[%s7922_s24 + $0x30] sm:$0xff] }
  0x52   : > { %6772 = vmatmul.msk.f32.gmra.mxu3 %vm3612_vm2, %v332_v14 }
  0x59   : > { %6453 = vmatmul.msk.f32.gmra.mxu0 %vm436_vm0, %v379_v15 }
  0x61   : > { %6454 = vmatmul.msk.f32.gmra.mxu0 %vm436_vm0, %v380_v16  ;;  %v399_v16 = vld [vmem:[%s11845_s4 + $0xd8] sm:$0xff] }
  0x69   : > { %6455 = vmatmul.msk.f32.gmra.mxu0 %vm436_vm0, %v381_v17 }
  0x71   : > { %6456 = vmatmul.msk.f32.gmra.mxu0 %vm436_vm0, %v382_v18 }
  0x79   : > { %6457 = vmatmul.msk.f32.gmra.mxu0 %vm436_vm0, %v383_v19  ;;  %v333_v19 = vld [vmem:[%s7922_s24 + $0x38] sm:$0xff] }
  0x7a   : > { %6773 = vmatmul.msk.f32.gmra.mxu3 %vm3612_vm2, %v333_v19 }
  0x81   : > { %6458 = vmatmul.msk.f32.gmra.mxu0 %vm436_vm0, %v384_v20 }
  0x89   : > { %6459 = vmatmul.msk.f32.gmra.mxu0 %vm436_vm0, %v385_v21  ;;  %v400_v21 = vld [vmem:[%s11845_s4 + $0xe0] sm:$0xff] }
  0x91   : > { %6460 = vmatmul.msk.f32.gmra.mxu0 %vm436_vm0, %v386_v22 }
  0x99   : > { %6461 = vmatmul.msk.f32.gmra.mxu0 %vm436_vm0, %v387_v23 }
  0x9e   : > { %v646_v24 = vpop.f32.mrf.mxu0 }
  0x9f   : > { %v838_v26 = vmul.f32 %v646_v24, %v646_v24 }
  0xa1   : > { %6462 = vmatmul.msk.f32.gmra.mxu0 %vm436_vm0, %v388_v25  ;;  %v903_v27 = vsel %vm902_vm1, %v838_v26, 0.0  ;;  %v401_v25 = vld [vmem:[%s11845_s4 + $0xe8] sm:$0xff] }
  0xa2   : > { %904 = vadd.xlane.f32.xlu0 %v903_v27 }
  0xa6   : > { %v649_v28 = vpop.f32.mrf.mxu0 }
  0xa7   : > { %v839_v30 = vmul.f32 %v649_v28, %v649_v28 }
  0xa9   : > { %6463 = vmatmul.msk.f32.gmra.mxu0 %vm436_vm0, %v389_v29  ;;  %v906_v31 = vsel %vm902_vm1, %v839_v30, 0.0  ;;  %v402_v29 = vld [vmem:[%s11845_s4 + $0xf0] sm:$0xff] }
  0xaa   : > { %907 = vadd.xlane.f32.xlu0 %v906_v31 }
  0xae   : > { %v652_v32 = vpop.f32.mrf.mxu0 }
  0xaf   : > { %v840_v34 = vmul.f32 %v652_v32, %v652_v32 }
  0xb1   : > { %6464 = vmatmul.msk.f32.gmra.mxu0 %vm436_vm0, %v390_v33  ;;  %v909_v35 = vsel %vm902_vm1, %v840_v34, 0.0  ;;  %v403_v34 = vld [vmem:[%s11845_s4 + $0xf8] sm:$0xff] }
  0xb2   : > { %910 = vadd.xlane.f32.xlu1 %v909_v35  ;;  %v343_v35 = vld [vmem:[%s11843_s2 + $0x8] sm:$0xff] }
  0xb3   : > { %2392 = vmatpush.msra.mxu1 %v343_v35 }
  0xb6   : > { %v655_v36 = vpop.f32.mrf.mxu0 }
  0xb7   : > { %v841_v38 = vmul.f32 %v655_v36, %v655_v36 }
  0xb9   : > { %6465 = vmatmul.msk.f32.gmra.mxu0 %vm436_vm0, %v391_v37  ;;  %v912_v39 = vsel %vm902_vm1, %v841_v38, 0.0  ;;  %v342_v37 = vld [vmem:[%s11843_s2] sm:$0xff] }
  0xba   : > { %913 = vadd.xlane.f32.xlu1 %v912_v39  ;;  %2393 = vmatpush.msra.mxu1 %v342_v37 }
  0xbe   : > { %v658_v41 = vpop.f32.mrf.mxu0 }
  0xbf   : > { %v842_v43 = vmul.f32 %v658_v41, %v658_v41 }
  0xc1   : > { %6466 = vmatmul.msk.f32.gmra.mxu0 %vm436_vm0, %v392_v42  ;;  %v915_v45 = vsel %vm902_vm1, %v842_v43, 0.0  ;;  %v404_v43 = vld [vmem:[%s11845_s4 + $0x100] sm:$0xff] }
  0xc2   : > { %916 = vadd.xlane.f32.xlu2 %v915_v45 }
  0xc6   : > { %v661_v49 = vpop.f32.mrf.mxu0 }
  0xc7   : > { %v843_v51 = vmul.f32 %v661_v49, %v661_v49 }
  0xc9   : > { %6467 = vmatmul.msk.f32.gmra.mxu0 %vm436_vm0, %v393_v50  ;;  %v918_v52 = vsel %vm902_vm1, %v843_v51, 0.0 }
  0xca   : > { %919 = vadd.xlane.f32.xlu2 %v918_v52 }
  0xce   : > { %v664_v54 = vpop.f32.mrf.mxu0 }
  0xcf   : > { %v844_v56 = vmul.f32 %v664_v54, %v664_v54  ;;  %v405_v54 = vld [vmem:[%s11845_s4 + $0x108] sm:$0xff] }
  0xd1   : > { %6468 = vmatmul.msk.f32.gmra.mxu0 %vm436_vm0, %v394_v55  ;;  %v921_v57 = vsel %vm902_vm1, %v844_v56, 0.0 }
  0xd2   : > { %922 = vadd.xlane.f32.xlu0 %v921_v57 }
  0xd6   : > { %v667_v59 = vpop.f32.mrf.mxu0 }
  0xd7   : > { %v845_v61 = vmul.f32 %v667_v59, %v667_v59 }
  0xd9   : > { %6469 = vmatmul.msk.f32.gmra.mxu0 %vm436_vm0, %v395_v60  ;;  %v924_v62 = vsel %vm902_vm1, %v845_v61, 0.0 }
  0xda   : > { %925 = vadd.xlane.f32.xlu1 %v924_v62 }
  0xde   : > { %v670_v0 = vpop.f32.mrf.mxu0 }
  0xdf   : > { %v846_v2 = vmul.f32 %v670_v0, %v670_v0 }
  0xe1   : > { %6470 = vmatmul.msk.f32.gmra.mxu0 %vm436_vm0, %v396_v1  ;;  %v927_v3 = vsel %vm902_vm1, %v846_v2, 0.0 }
  0xe2   : > { %928 = vadd.xlane.f32.xlu2 %v927_v3 }
  0xe6   : > { %v673_v5 = vpop.f32.mrf.mxu0 }
  0xe7   : > { %v847_v7 = vmul.f32 %v673_v5, %v673_v5 }
  0xe9   : > { %6471 = vmatmul.msk.f32.gmra.mxu0 %vm436_vm0, %v397_v6  ;;  %v930_v8 = vsel %vm902_vm1, %v847_v7, 0.0 }
  0xea   : > { %931 = vadd.xlane.f32.xlu0 %v930_v8  ;;  %v406_v8 = vld [vmem:[%s11845_s4 + $0x110] sm:$0xff] }
  0xee   : > { %v676_v10 = vpop.f32.mrf.mxu0 }
  0xef   : > { %v848_v12 = vmul.f32 %v676_v10, %v676_v10 }
  0xf1   : > { %6472 = vmatmul.msk.f32.gmra.mxu0 %vm436_vm0, %v398_v11  ;;  %v933_v13 = vsel %vm902_vm1, %v848_v12, 0.0 }
  0xf2   : > { %934 = vadd.xlane.f32.xlu1 %v933_v13 }
  0xf6   : > { %v679_v15 = vpop.f32.mrf.mxu0 }
  0xf7   : > { %v849_v17 = vmul.f32 %v679_v15, %v679_v15 }
  0xf9   : > { %6473 = vmatmul.msk.f32.gmra.mxu0 %vm436_vm0, %v399_v16  ;;  %v936_v18 = vsel %vm902_vm1, %v849_v17, 0.0 }
  0xfa   : > { %937 = vadd.xlane.f32.xlu2 %v936_v18 }
  0xfe   : > { %v682_v20 = vpop.f32.mrf.mxu0 }
  0xff   : > { %v850_v22 = vmul.f32 %v682_v20, %v682_v20 }
 0x101   : > { %6474 = vmatmul.msk.f32.gmra.mxu0 %vm436_vm0, %v400_v21  ;;  %v939_v23 = vsel %vm902_vm1, %v850_v22, 0.0 }
 0x102   : > { %940 = vadd.xlane.f32.xlu0 %v939_v23 }
 0x106   : > { %v685_v24 = vpop.f32.mrf.mxu0 }
 0x107   : > { %v851_v26 = vmul.f32 %v685_v24, %v685_v24 }
 0x109   : > { %6475 = vmatmul.msk.f32.gmra.mxu0 %vm436_vm0, %v401_v25  ;;  %v942_v27 = vsel %vm902_vm1, %v851_v26, 0.0 }
 0x10a   : > { %943 = vadd.xlane.f32.xlu1 %v942_v27  ;;  %v407_v27 = vld [vmem:[%s11845_s4 + $0x118] sm:$0xff] }
 0x10e   : > { %v688_v28 = vpop.f32.mrf.mxu0 }
 0x10f   : > { %v852_v30 = vmul.f32 %v688_v28, %v688_v28 }
 0x111   : > { %6476 = vmatmul.msk.f32.gmra.mxu0 %vm436_vm0, %v402_v29  ;;  %v945_v31 = vsel %vm902_vm1, %v852_v30, 0.0 }
 0x112   : > { %946 = vadd.xlane.f32.xlu2 %v945_v31 }
 0x115   : > { %v905_v32 = vpop.xlane.xlu0 %904 }
 0x116   : > { %6897 = vrsqrt.f32 %v905_v32  ;;  %v691_v33 = vpop.f32.mrf.mxu0  ;;  %vm1102_vm3 = vcmp.eq.f32.partialorder %v905_v32, inf  ;;  %v1105_v59 = vand.u32 2147483648, %v905_v32  ;;  %vm1104_vm4 = vcmp.eq.f32.partialorder %v905_v32, 0.0 }
 0x117   : > { %v853_v36 = vmul.f32 %v691_v33, %v691_v33 }
 0x119   : > { %6477 = vmatmul.msk.f32.gmra.mxu0 %vm436_vm0, %v403_v34  ;;  %v948_v38 = vsel %vm902_vm1, %v853_v36, 0.0 }
 0x11a   : > { %949 = vadd.xlane.f32.xlu0 %v948_v38 }
 0x11c   : > { %v6898_v39 = vpop.eup %6897 }
 0x11d   : > { %v1096_v40 = vmul.f32 %v6898_v39, %v905_v32  ;;  %v908_v41 = vpop.xlane.xlu0 %907 }
 0x11e   : > { %6899 = vrsqrt.f32 %v908_v41  ;;  %v694_v42 = vpop.f32.mrf.mxu0  ;;  %vm1114_vm5 = vcmp.eq.f32.partialorder %v908_v41, inf  ;;  %vm1116_vm6 = vcmp.eq.f32.partialorder %v908_v41, 0.0  ;;  %v1117_v13 = vand.u32 2147483648, %v908_v41 }
 0x11f   : > { %v1097_v44 = vmul.f32 %v6898_v39, %v1096_v40  ;;  %v854_v45 = vmul.f32 %v694_v42, %v694_v42 }
 0x121   : > { %v1098_v46 = vmul.f32 0.5, %v1097_v44  ;;  %6478 = vmatmul.msk.f32.gmra.mxu0 %vm436_vm0, %v404_v43  ;;  %v951_v47 = vsel %vm902_vm1, %v854_v45, 0.0 }
 0x122   : > { %952 = vadd.xlane.f32.xlu1 %v951_v47  ;;  %v408_v47 = vld [vmem:[%s11845_s4 + $0x120] sm:$0xff] }
 0x123   : > { %v1099_v48 = vsub.f32 1.5, %v1098_v46 }
 0x124   : > { %v6900_v49 = vpop.eup %6899 }
 0x125   : > { %v1100_v50 = vmul.f32 %v6898_v39, %v1099_v48  ;;  %v1108_v51 = vmul.f32 %v6900_v49, %v908_v41  ;;  %v8014_v52 = vpop.xlane.xlu1 %910 }
 0x126   : > { %6901 = vrsqrt.f32 %v8014_v52  ;;  %v697_v53 = vpop.f32.mrf.mxu0  ;;  %vm1126_vm8 = vcmp.eq.f32.partialorder %v8014_v52, inf  ;;  %vm1128_vm9 = vcmp.eq.f32.partialorder %v8014_v52, 0.0 }
 0x127   : > { %v1101_v55 = vmul.f32 %v1100_v50, %v905_v32  ;;  %v1109_v56 = vmul.f32 %v6900_v49, %v1108_v51  ;;  %v855_v57 = vmul.f32 %v697_v53, %v697_v53 }
 0x129   : > { %v1103_v60 = vsel %vm1102_vm3, %v905_v32, %v1101_v55  ;;  %v1110_v61 = vmul.f32 0.5, %v1109_v56  ;;  %6479 = vmatmul.msk.f32.gmra.mxu0 %vm436_vm0, %v405_v54  ;;  %v954_v62 = vsel %vm902_vm1, %v855_v57, 0.0  ;;  %v1129_v32 = vand.u32 2147483648, %v8014_v52 }
 0x12a   : > { %v1106_v63 = vsel %vm1104_vm4, %v1105_v59, %v1103_v60  ;;  %955 = vadd.xlane.f32.xlu2 %v954_v62 }
 0x12b   : > { %v1111_v0 = vsub.f32 1.5, %v1110_v61  ;;  %v1864_v1 = vsub.f32 %v1106_v63, %v8023_v58 }
 0x12c   : > { %v6902_v2 = vpop.eup %6901 }
 0x12d   : > { %v1112_v3 = vmul.f32 %v6900_v49, %v1111_v0  ;;  %v1120_v4 = vmul.f32 %v6902_v2, %v8014_v52  ;;  %v8029_v5 = vpop.xlane.xlu1 %913  ;;  %v1928_v6 = vmul.f32 %v1864_v1, %v1864_v1 }
 0x12e   : > { %6903 = vrsqrt.f32 %v8029_v5  ;;  %v700_v7 = vpop.f32.mrf.mxu0  ;;  %vm1138_vm10 = vcmp.eq.f32.partialorder %v8029_v5, inf  ;;  %vm1140_vm11 = vcmp.eq.f32.partialorder %v8029_v5, 0.0 }
 0x12f   : > { %v1113_v9 = vmul.f32 %v1112_v3, %v908_v41  ;;  %v1121_v10 = vmul.f32 %v6902_v2, %v1120_v4  ;;  %v856_v11 = vmul.f32 %v700_v7, %v700_v7  ;;  %v1992_v12 = vmul.f32 -10.0, %v1928_v6  ;;  %v409_v4 = vld [vmem:[%s11845_s4 + $0x128] sm:$0xff] }
 0x131   : > { %v1115_v14 = vsel %vm1114_vm5, %v908_v41, %v1113_v9  ;;  %v1122_v15 = vmul.f32 0.5, %v1121_v10  ;;  %6480 = vmatmul.msk.f32.gmra.mxu0 %vm436_vm0, %v406_v8  ;;  %v957_v16 = vsel %vm902_vm1, %v856_v11, 0.0  ;;  %v2056_v17 = vmul.f32 1.442695, %v1992_v12  ;;  %v8081_v10 = vpop.f32.mrf.mxu3 }
 0x132   : > { %v1118_v18 = vsel %vm1116_vm6, %v1117_v13, %v1115_v14  ;;  %958 = vadd.xlane.f32.xlu0 %v957_v16 }
 0x133   : > { %v1123_v19 = vsub.f32 1.5, %v1122_v15  ;;  %6905 = vpow2.f32 %v2056_v17  ;;  %v1865_v20 = vsub.f32 %v1118_v18, %v8023_v58 }
 0x134   : > { %v6904_v21 = vpop.eup %6903 }
 0x135   : > { %v1124_v22 = vmul.f32 %v6902_v2, %v1123_v19  ;;  %v1132_v23 = vmul.f32 %v6904_v21, %v8029_v5  ;;  %v8039_v24 = vpop.xlane.xlu2 %916  ;;  %v1929_v25 = vmul.f32 %v1865_v20, %v1865_v20 }
 0x136   : > { %6907 = vrsqrt.f32 %v8039_v24  ;;  %v703_v26 = vpop.f32.mrf.mxu0  ;;  %vm1150_vm12 = vcmp.eq.f32.partialorder %v8039_v24, inf  ;;  %vm1152_vm13 = vcmp.eq.f32.partialorder %v8039_v24, 0.0  ;;  %v1153_v9 = vand.u32 2147483648, %v8039_v24 }
 0x137   : > { %v1125_v28 = vmul.f32 %v1124_v22, %v8014_v52  ;;  %v1133_v29 = vmul.f32 %v6904_v21, %v1132_v23  ;;  %v857_v30 = vmul.f32 %v703_v26, %v703_v26  ;;  %v1993_v31 = vmul.f32 -10.0, %v1929_v25  ;;  %v410_v25 = vld [vmem:[%s11845_s4 + $0x130] sm:$0xff] }
 0x139   : > { %v6906_v33 = vpop.eup %6905  ;;  %v1127_v34 = vsel %vm1126_vm8, %v8014_v52, %v1125_v28  ;;  %v1134_v35 = vmul.f32 0.5, %v1133_v29  ;;  %6481 = vmatmul.msk.f32.gmra.mxu0 %vm436_vm0, %v407_v27  ;;  %v960_v36 = vsel %vm902_vm1, %v857_v30, 0.0  ;;  %v2058_v37 = vmul.f32 1.442695, %v1993_v31  ;;  %v8099_v31 = vpop.f32.mrf.mxu3 }
 0x13a   : > { %v1130_v38 = vsel %vm1128_vm9, %v1129_v32, %v1127_v34  ;;  %6510 = vmatmul.msk.f32.vlgmr.msra.gmra.mxu1 %vm2185_vm7, %v6906_v33  ;;  %961 = vadd.xlane.f32.xlu1 %v960_v36  ;;  %v1141_v52 = vand.u32 2147483648, %v8029_v5 }
 0x13b   : > { %v1135_v39 = vsub.f32 1.5, %v1134_v35  ;;  %6909 = vpow2.f32 %v2058_v37  ;;  %v1866_v40 = vsub.f32 %v1130_v38, %v8023_v58 }
 0x13c   : > { %v6908_v41 = vpop.eup %6907 }
 0x13d   : > { %v1136_v42 = vmul.f32 %v6904_v21, %v1135_v39  ;;  %v1144_v43 = vmul.f32 %v6908_v41, %v8039_v24  ;;  %v8055_v44 = vpop.xlane.xlu2 %919  ;;  %v1930_v45 = vmul.f32 %v1866_v40, %v1866_v40 }
 0x13e   : > { %6911 = vrsqrt.f32 %v8055_v44  ;;  %v706_v46 = vpop.f32.mrf.mxu0  ;;  %vm1162_vm14 = vcmp.eq.f32.partialorder %v8055_v44, inf  ;;  %vm1164_vm15 = vcmp.eq.f32.partialorder %v8055_v44, 0.0  ;;  %v1165_v30 = vand.u32 2147483648, %v8055_v44 }
 0x13f   : > { %v1137_v48 = vmul.f32 %v1136_v42, %v8029_v5  ;;  %v1145_v49 = vmul.f32 %v6908_v41, %v1144_v43  ;;  %v858_v50 = vmul.f32 %v706_v46, %v706_v46  ;;  %v1994_v51 = vmul.f32 -10.0, %v1930_v45  ;;  %v411_v46 = vld [vmem:[%s11845_s4 + $0x138] sm:$0xff] }
 0x141   : > { %v6910_v53 = vpop.eup %6909  ;;  %v1139_v54 = vsel %vm1138_vm10, %v8029_v5, %v1137_v48  ;;  %v1146_v55 = vmul.f32 0.5, %v1145_v49  ;;  %6482 = vmatmul.msk.f32.gmra.mxu0 %vm436_vm0, %v408_v47  ;;  %v963_v56 = vsel %vm902_vm1, %v858_v50, 0.0  ;;  %v2060_v57 = vmul.f32 1.442695, %v1994_v51 }
 0x142   : > { %v1142_v59 = vsel %vm1140_vm11, %v1141_v52, %v1139_v54  ;;  %6511 = vmatmul.msk.f32.gmra.mxu1 %vm2185_vm7, %v6910_v53  ;;  %964 = vadd.xlane.f32.xlu2 %v963_v56  ;;  %v8117_v52 = vpop.f32.mrf.mxu3 }
 0x143   : > { %v1147_v60 = vsub.f32 1.5, %v1146_v55  ;;  %6913 = vpow2.f32 %v2060_v57  ;;  %v1867_v61 = vsub.f32 %v1142_v59, %v8023_v58 }
 0x144   : > { %v6912_v62 = vpop.eup %6911 }
 0x145   : > { %v1148_v63 = vmul.f32 %v6908_v41, %v1147_v60  ;;  %v1156_v0 = vmul.f32 %v6912_v62, %v8055_v44  ;;  %v8071_v1 = vpop.xlane.xlu0 %922  ;;  %v1931_v2 = vmul.f32 %v1867_v61, %v1867_v61 }
 0x146   : > { %6915 = vrsqrt.f32 %v8071_v1  ;;  %v709_v3 = vpop.f32.mrf.mxu0  ;;  %vm1174_vm3 = vcmp.eq.f32.partialorder %v8071_v1, inf  ;;  %vm1176_vm4 = vcmp.eq.f32.partialorder %v8071_v1, 0.0  ;;  %v1177_v51 = vand.u32 2147483648, %v8071_v1 }
 0x147   : > { %v1149_v5 = vmul.f32 %v1148_v63, %v8039_v24  ;;  %v1157_v6 = vmul.f32 %v6912_v62, %v1156_v0  ;;  %v859_v7 = vmul.f32 %v709_v3, %v709_v3  ;;  %v1995_v8 = vmul.f32 -10.0, %v1931_v2 }
 0x149   : > { %v6914_v11 = vpop.eup %6913  ;;  %v1151_v12 = vsel %vm1150_vm12, %v8039_v24, %v1149_v5  ;;  %v1158_v13 = vmul.f32 0.5, %v1157_v6  ;;  %6483 = vmatmul.msk.f32.gmra.mxu0 %vm436_vm0, %v409_v4  ;;  %v966_v14 = vsel %vm902_vm1, %v859_v7, 0.0  ;;  %v2062_v15 = vmul.f32 1.442695, %v1995_v8  ;;  %v412_v4 = vld [vmem:[%s11845_s4 + $0x140] sm:$0xff] }
 0x14a   : > { %v1154_v16 = vsel %vm1152_vm13, %v1153_v9, %v1151_v12  ;;  %6512 = vmatmul.msk.f32.gmra.mxu1 %vm2185_vm7, %v6914_v11  ;;  %967 = vadd.xlane.f32.xlu0 %v966_v14  ;;  %v8135_v11 = vpop.f32.mrf.mxu3 }
 0x14b   : > { %v1159_v17 = vsub.f32 1.5, %v1158_v13  ;;  %6917 = vpow2.f32 %v2062_v15  ;;  %v1868_v18 = vsub.f32 %v1154_v16, %v8023_v58 }
 0x14c   : > { %v6916_v19 = vpop.eup %6915 }
 0x14d   : > { %v1160_v20 = vmul.f32 %v6912_v62, %v1159_v17  ;;  %v1168_v21 = vmul.f32 %v6916_v19, %v8071_v1  ;;  %v8089_v22 = vpop.xlane.xlu1 %925  ;;  %v1932_v23 = vmul.f32 %v1868_v18, %v1868_v18 }
 0x14e   : > { %6919 = vrsqrt.f32 %v8089_v22  ;;  %v712_v24 = vpop.f32.mrf.mxu0  ;;  %vm1186_vm5 = vcmp.eq.f32.partialorder %v8089_v22, inf  ;;  %vm1188_vm6 = vcmp.eq.f32.partialorder %v8089_v22, 0.0  ;;  %v1189_v9 = vand.u32 2147483648, %v8089_v22 }
 0x14f   : > { %v1161_v26 = vmul.f32 %v1160_v20, %v8055_v44  ;;  %v1169_v27 = vmul.f32 %v6916_v19, %v1168_v21  ;;  %v860_v28 = vmul.f32 %v712_v24, %v712_v24  ;;  %v1996_v29 = vmul.f32 -10.0, %v1932_v23 }
 0x151   : > { %v6918_v32 = vpop.eup %6917  ;;  %v1163_v33 = vsel %vm1162_vm14, %v8055_v44, %v1161_v26  ;;  %v1170_v34 = vmul.f32 0.5, %v1169_v27  ;;  %6484 = vmatmul.msk.f32.gmra.mxu0 %vm436_vm0, %v410_v25  ;;  %v969_v35 = vsel %vm902_vm1, %v860_v28, 0.0  ;;  %v2064_v36 = vmul.f32 1.442695, %v1996_v29  ;;  %v413_v26 = vld [vmem:[%s11845_s4 + $0x148] sm:$0xff] }
 0x152   : > { %v1166_v37 = vsel %vm1164_vm15, %v1165_v30, %v1163_v33  ;;  %6513 = vmatmul.msk.f32.gmra.mxu1 %vm2185_vm7, %v6918_v32  ;;  %970 = vadd.xlane.f32.xlu1 %v969_v35  ;;  %v8153_v33 = vpop.f32.mrf.mxu3 }
 0x153   : > { %v1171_v38 = vsub.f32 1.5, %v1170_v34  ;;  %6921 = vpow2.f32 %v2064_v36  ;;  %v1869_v39 = vsub.f32 %v1166_v37, %v8023_v58 }
 0x154   : > { %v6920_v40 = vpop.eup %6919 }
 0x155   : > { %v1172_v41 = vmul.f32 %v6916_v19, %v1171_v38  ;;  %v1180_v42 = vmul.f32 %v6920_v40, %v8089_v22  ;;  %v8107_v43 = vpop.xlane.xlu2 %928  ;;  %v1933_v44 = vmul.f32 %v1869_v39, %v1869_v39 }
 0x156   : > { %6923 = vrsqrt.f32 %v8107_v43  ;;  %v715_v45 = vpop.f32.mrf.mxu0  ;;  %vm1198_vm8 = vcmp.eq.f32.partialorder %v8107_v43, inf  ;;  %vm1200_vm9 = vcmp.eq.f32.partialorder %v8107_v43, 0.0  ;;  %v1201_v32 = vand.u32 2147483648, %v8107_v43 }
 0x157   : > { %v1173_v47 = vmul.f32 %v1172_v41, %v8071_v1  ;;  %v1181_v48 = vmul.f32 %v6920_v40, %v1180_v42  ;;  %v861_v49 = vmul.f32 %v715_v45, %v715_v45  ;;  %v1997_v50 = vmul.f32 -10.0, %v1933_v44 }
 0x159   : > { %v6922_v53 = vpop.eup %6921  ;;  %v1175_v54 = vsel %vm1174_vm3, %v8071_v1, %v1173_v47  ;;  %v1182_v55 = vmul.f32 0.5, %v1181_v48  ;;  %6485 = vmatmul.msk.f32.gmra.mxu0 %vm436_vm0, %v411_v46  ;;  %v972_v56 = vsel %vm902_vm1, %v861_v49, 0.0  ;;  %v2066_v57 = vmul.f32 1.442695, %v1997_v50  ;;  %v414_v48 = vld [vmem:[%s11845_s4 + $0x150] sm:$0xff] }
 0x15a   : > { %v1178_v59 = vsel %vm1176_vm4, %v1177_v51, %v1175_v54  ;;  %6514 = vmatmul.msk.f32.gmra.mxu1 %vm2185_vm7, %v6922_v53  ;;  %973 = vadd.xlane.f32.xlu2 %v972_v56 }
 0x15b   : > { %v1183_v60 = vsub.f32 1.5, %v1182_v55  ;;  %6925 = vpow2.f32 %v2066_v57  ;;  %v1870_v61 = vsub.f32 %v1178_v59, %v8023_v58  ;;  %v8171_v55 = vpop.f32.mrf.mxu3 }
 0x15c   : > { %v6924_v62 = vpop.eup %6923 }
 0x15d   : > { %v1184_v63 = vmul.f32 %v6920_v40, %v1183_v60  ;;  %v1192_v0 = vmul.f32 %v6924_v62, %v8107_v43  ;;  %v8125_v2 = vpop.xlane.xlu0 %931  ;;  %v1934_v1 = vmul.f32 %v1870_v61, %v1870_v61 }
 0x15e   : > { %6927 = vrsqrt.f32 %v8125_v2  ;;  %v718_v3 = vpop.f32.mrf.mxu0  ;;  %vm1210_vm10 = vcmp.eq.f32.partialorder %v8125_v2, inf  ;;  %vm1212_vm11 = vcmp.eq.f32.partialorder %v8125_v2, 0.0  ;;  %v1213_v54 = vand.u32 2147483648, %v8125_v2 }
 0x15f   : > { %v1185_v5 = vmul.f32 %v1184_v63, %v8089_v22  ;;  %v1193_v6 = vmul.f32 %v6924_v62, %v1192_v0  ;;  %v862_v7 = vmul.f32 %v718_v3, %v718_v3  ;;  %v1998_v8 = vmul.f32 -10.0, %v1934_v1 }
 0x161   : > { %v6926_v12 = vpop.eup %6925  ;;  %v1187_v13 = vsel %vm1186_vm5, %v8089_v22, %v1185_v5  ;;  %v1194_v14 = vmul.f32 0.5, %v1193_v6  ;;  %6486 = vmatmul.msk.f32.gmra.mxu0 %vm436_vm0, %v412_v4  ;;  %v975_v15 = vsel %vm902_vm1, %v862_v7, 0.0  ;;  %v2068_v16 = vmul.f32 1.442695, %v1998_v8  ;;  %v415_v7 = vld [vmem:[%s11845_s4 + $0x158] sm:$0xff] }
 0x162   : > { %v1190_v17 = vsel %vm1188_vm6, %v1189_v9, %v1187_v13  ;;  %6515 = vmatmul.msk.f32.gmra.mxu1 %vm2185_vm7, %v6926_v12  ;;  %976 = vadd.xlane.f32.xlu0 %v975_v15 }
 0x163   : > { %v1195_v18 = vsub.f32 1.5, %v1194_v14  ;;  %6929 = vpow2.f32 %v2068_v16  ;;  %v1871_v19 = vsub.f32 %v1190_v17, %v8023_v58  ;;  %v5097_v15 = vpop.f32.mrf.mxu3 }
 0x164   : > { %v6928_v20 = vpop.eup %6927 }
 0x165   : > { %v1196_v21 = vmul.f32 %v6924_v62, %v1195_v18  ;;  %v1204_v23 = vmul.f32 %v6928_v20, %v8125_v2  ;;  %v8143_v24 = vpop.xlane.xlu1 %934  ;;  %v1935_v22 = vmul.f32 %v1871_v19, %v1871_v19 }
 0x166   : > { %6931 = vrsqrt.f32 %v8143_v24  ;;  %v721_v25 = vpop.f32.mrf.mxu0  ;;  %vm1222_vm12 = vcmp.eq.f32.partialorder %v8143_v24, inf  ;;  %vm1224_vm13 = vcmp.eq.f32.partialorder %v8143_v24, 0.0  ;;  %v1225_v14 = vand.u32 2147483648, %v8143_v24 }
 0x167   : > { %v1197_v27 = vmul.f32 %v1196_v21, %v8107_v43  ;;  %v1205_v28 = vmul.f32 %v6928_v20, %v1204_v23  ;;  %v863_v29 = vmul.f32 %v721_v25, %v721_v25  ;;  %v1999_v30 = vmul.f32 -10.0, %v1935_v22 }
 0x169   : > { %v6930_v34 = vpop.eup %6929  ;;  %v1199_v35 = vsel %vm1198_vm8, %v8107_v43, %v1197_v27  ;;  %v1206_v36 = vmul.f32 0.5, %v1205_v28  ;;  %6487 = vmatmul.msk.f32.gmra.mxu0 %vm436_vm0, %v413_v26  ;;  %v978_v37 = vsel %vm902_vm1, %v863_v29, 0.0  ;;  %v2070_v38 = vmul.f32 1.442695, %v1999_v30  ;;  %v416_v30 = vld [vmem:[%s11845_s4 + $0x160] sm:$0xff] }
 0x16a   : > { %v1202_v39 = vsel %vm1200_vm9, %v1201_v32, %v1199_v35  ;;  %6516 = vmatmul.msk.f32.gmra.mxu1 %vm2185_vm7, %v6930_v34  ;;  %979 = vadd.xlane.f32.xlu1 %v978_v37 }
 0x16b   : > { %v1207_v40 = vsub.f32 1.5, %v1206_v36  ;;  %6933 = vpow2.f32 %v2070_v38  ;;  %v1872_v41 = vsub.f32 %v1202_v39, %v8023_v58  ;;  %v5100_v38 = vpop.f32.mrf.mxu3 }
 0x16c   : > { %v6932_v42 = vpop.eup %6931  ;;  %5367 = vmatpush.msrb.mxu3 %v5100_v38 }
 0x16d   : > { %v1208_v44 = vmul.f32 %v6928_v20, %v1207_v40  ;;  %v1216_v45 = vmul.f32 %v6932_v42, %v8143_v24  ;;  %v8161_v46 = vpop.xlane.xlu2 %937  ;;  %v1936_v43 = vmul.f32 %v1872_v41, %v1872_v41 }
 0x16e   : > { %6935 = vrsqrt.f32 %v8161_v46  ;;  %v724_v47 = vpop.f32.mrf.mxu0  ;;  %vm1234_vm14 = vcmp.eq.f32.partialorder %v8161_v46, inf  ;;  %vm1236_vm15 = vcmp.eq.f32.partialorder %v8161_v46, 0.0  ;;  %v1237_v37 = vand.u32 2147483648, %v8161_v46  ;;  %5368 = vmatpush.msrb.mxu3 %v5097_v15 }
 0x16f   : > { %v1209_v49 = vmul.f32 %v1208_v44, %v8125_v2  ;;  %v1217_v50 = vmul.f32 %v6932_v42, %v1216_v45  ;;  %v864_v51 = vmul.f32 %v724_v47, %v724_v47  ;;  %v2000_v53 = vmul.f32 -10.0, %v1936_v43 }
 0x170   : > { %5369 = vmatpush.msrb.mxu3 %v8171_v55 }
 0x171   : > { %v6934_v56 = vpop.eup %6933  ;;  %v1211_v57 = vsel %vm1210_vm10, %v8125_v2, %v1209_v49  ;;  %v1218_v59 = vmul.f32 0.5, %v1217_v50  ;;  %6488 = vmatmul.msk.f32.gmra.mxu0 %vm436_vm0, %v414_v48  ;;  %v981_v60 = vsel %vm902_vm1, %v864_v51, 0.0  ;;  %v2072_v61 = vmul.f32 1.442695, %v2000_v53 }
 0x172   : > { %v1214_v62 = vsel %vm1212_vm11, %v1213_v54, %v1211_v57  ;;  %6517 = vmatmul.msk.f32.gmra.mxu1 %vm2185_vm7, %v6934_v56  ;;  %982 = vadd.xlane.f32.xlu2 %v981_v60  ;;  %v417_v54 = vld [vmem:[%s11845_s4 + $0x168] sm:$0xff] }
 0x173   : > { %v1219_v63 = vsub.f32 1.5, %v1218_v59  ;;  %6937 = vpow2.f32 %v2072_v61  ;;  %v1873_v0 = vsub.f32 %v1214_v62, %v8023_v58  ;;  %5370 = vmatpush.msrb.mxu3 %v8153_v33 }
 0x174   : > { %v6936_v1 = vpop.eup %6935 }
 0x175   : > { %v1220_v3 = vmul.f32 %v6932_v42, %v1219_v63  ;;  %v1228_v4 = vmul.f32 %v6936_v1, %v8161_v46  ;;  %v8179_v5 = vpop.xlane.xlu0 %940  ;;  %v1937_v2 = vmul.f32 %v1873_v0, %v1873_v0  ;;  %5371 = vmatpush.msrb.mxu3 %v8135_v11 }
 0x176   : > { %6939 = vrsqrt.f32 %v8179_v5  ;;  %v727_v6 = vpop.f32.mrf.mxu0  ;;  %vm1246_vm3 = vcmp.eq.f32.partialorder %v8179_v5, inf  ;;  %vm1248_vm4 = vcmp.eq.f32.partialorder %v8179_v5, 0.0  ;;  %v1249_v55 = vand.u32 2147483648, %v8179_v5 }
 0x177   : > { %v1221_v8 = vmul.f32 %v1220_v3, %v8143_v24  ;;  %v1229_v9 = vmul.f32 %v6936_v1, %v1228_v4  ;;  %v865_v12 = vmul.f32 %v727_v6, %v727_v6  ;;  %v2001_v13 = vmul.f32 -10.0, %v1937_v2  ;;  %5372 = vmatpush.msrb.mxu3 %v8117_v52 }
 0x179   : > { %v6938_v16 = vpop.eup %6937  ;;  %v1223_v17 = vsel %vm1222_vm12, %v8143_v24, %v1221_v8  ;;  %v1230_v18 = vmul.f32 0.5, %v1229_v9  ;;  %6489 = vmatmul.msk.f32.gmra.mxu0 %vm436_vm0, %v415_v7  ;;  %v984_v19 = vsel %vm902_vm1, %v865_v12, 0.0  ;;  %v2074_v20 = vmul.f32 1.442695, %v2001_v13  ;;  %5373 = vmatpush.msrb.mxu3 %v8099_v31  ;;  %v418_v9 = vld [vmem:[%s11845_s4 + $0x170] sm:$0xff] }
 0x17a   : > { %v1226_v21 = vsel %vm1224_vm13, %v1225_v14, %v1223_v17  ;;  %6518 = vmatmul.msk.f32.gmra.mxu1 %vm2185_vm7, %v6938_v16  ;;  %985 = vadd.xlane.f32.xlu0 %v984_v19 }
 0x17b   : > { %v1231_v23 = vsub.f32 1.5, %v1230_v18  ;;  %6941 = vpow2.f32 %v2074_v20  ;;  %v1874_v22 = vsub.f32 %v1226_v21, %v8023_v58  ;;  %5374 = vmatpush.msrb.mxu3 %v8081_v10 }
 0x17c   : > { %v6940_v25 = vpop.eup %6939 }
 0x17d   : > { %v1232_v26 = vmul.f32 %v6936_v1, %v1231_v23  ;;  %v1240_v27 = vmul.f32 %v6940_v25, %v8179_v5  ;;  %v8195_v28 = vpop.xlane.xlu1 %943  ;;  %v1938_v24 = vmul.f32 %v1874_v22, %v1874_v22 }
 0x17e   : > { %6943 = vrsqrt.f32 %v8195_v28  ;;  %v730_v29 = vpop.f32.mrf.mxu0  ;;  %vm1258_vm5 = vcmp.eq.f32.partialorder %v8195_v28, inf  ;;  %vm1260_vm6 = vcmp.eq.f32.partialorder %v8195_v28, 0.0  ;;  %v1261_v31 = vand.u32 2147483648, %v8195_v28 }
 0x17f   : > { %v1233_v32 = vmul.f32 %v1232_v26, %v8161_v46  ;;  %v1241_v34 = vmul.f32 %v6940_v25, %v1240_v27  ;;  %v866_v35 = vmul.f32 %v730_v29, %v730_v29  ;;  %v2002_v36 = vmul.f32 -10.0, %v1938_v24  ;;  %v419_v24 = vld [vmem:[%s11845_s4 + $0x178] sm:$0xff] }
 0x181   : > { %v6942_v39 = vpop.eup %6941  ;;  %v1235_v40 = vsel %vm1234_vm14, %v8161_v46, %v1233_v32  ;;  %v1242_v41 = vmul.f32 0.5, %v1241_v34  ;;  %6490 = vmatmul.msk.f32.gmra.mxu0 %vm436_vm0, %v416_v30  ;;  %v987_v42 = vsel %vm902_vm1, %v866_v35, 0.0  ;;  %v2076_v44 = vmul.f32 1.442695, %v2002_v36 }
 0x182   : > { %v1238_v45 = vsel %vm1236_vm15, %v1237_v37, %v1235_v40  ;;  %6519 = vmatmul.msk.f32.gmra.mxu1 %vm2185_vm7, %v6942_v39  ;;  %988 = vadd.xlane.f32.xlu1 %v987_v42 }
 0x183   : > { %v1243_v43 = vsub.f32 1.5, %v1242_v41  ;;  %6945 = vpow2.f32 %v2076_v44  ;;  %v1875_v47 = vsub.f32 %v1238_v45, %v8023_v58 }
 0x184   : > { %v6944_v48 = vpop.eup %6943 }
 0x185   : > { %v1244_v49 = vmul.f32 %v6940_v25, %v1243_v43  ;;  %v1252_v46 = vmul.f32 %v6944_v48, %v8195_v28  ;;  %v8211_v50 = vpop.xlane.xlu2 %946  ;;  %v1939_v51 = vmul.f32 %v1875_v47, %v1875_v47 }
 0x186   : > { %6947 = vrsqrt.f32 %v8211_v50  ;;  %v733_v53 = vpop.f32.mrf.mxu0  ;;  %vm1270_vm8 = vcmp.eq.f32.partialorder %v8211_v50, inf  ;;  %vm1272_vm9 = vcmp.eq.f32.partialorder %v8211_v50, 0.0  ;;  %v1273_v35 = vand.u32 2147483648, %v8211_v50 }
 0x187   : > { %v1245_v56 = vmul.f32 %v1244_v49, %v8179_v5  ;;  %v1253_v57 = vmul.f32 %v6944_v48, %v1252_v46  ;;  %v867_v59 = vmul.f32 %v733_v53, %v733_v53  ;;  %v2003_v60 = vmul.f32 -10.0, %v1939_v51 }
 0x189   : > { %v6946_v61 = vpop.eup %6945  ;;  %v1247_v62 = vsel %vm1246_vm3, %v8179_v5, %v1245_v56  ;;  %v1254_v63 = vmul.f32 0.5, %v1253_v57  ;;  %6491 = vmatmul.msk.f32.gmra.mxu0 %vm436_vm0, %v417_v54  ;;  %v990_v0 = vsel %vm902_vm1, %v867_v59, 0.0  ;;  %v2078_v1 = vmul.f32 1.442695, %v2003_v60 }
 0x18a   : > { %v1250_v3 = vsel %vm1248_vm4, %v1249_v55, %v1247_v62  ;;  %6520 = vmatmul.msk.f32.gmra.mxu1 %vm2185_vm7, %v6946_v61  ;;  %991 = vadd.xlane.f32.xlu2 %v990_v0 }
 0x18b   : > { %v1255_v33 = vsub.f32 1.5, %v1254_v63  ;;  %6949 = vpow2.f32 %v2078_v1  ;;  %v1876_v4 = vsub.f32 %v1250_v3, %v8023_v58 }
 0x18c   : > { %v6948_v2 = vpop.eup %6947 }
 0x18d   : > { %v1256_v5 = vmul.f32 %v6944_v48, %v1255_v33  ;;  %v1264_v6 = vmul.f32 %v6948_v2, %v8211_v50  ;;  %v8231_v7 = vpop.xlane.xlu0 %949  ;;  %v1940_v8 = vmul.f32 %v1876_v4, %v1876_v4 }
 0x18e   : > { %6951 = vrsqrt.f32 %v8231_v7  ;;  %v736_v11 = vpop.f32.mrf.mxu0  ;;  %vm1282_vm10 = vcmp.eq.f32.partialorder %v8231_v7, inf  ;;  %vm1284_vm11 = vcmp.eq.f32.partialorder %v8231_v7, 0.0  ;;  %v1285_v57 = vand.u32 2147483648, %v8231_v7 }
 0x18f   : > { %v1257_v12 = vmul.f32 %v1256_v5, %v8195_v28  ;;  %v1265_v13 = vmul.f32 %v6948_v2, %v1264_v6  ;;  %v868_v52 = vmul.f32 %v736_v11, %v736_v11  ;;  %v2004_v14 = vmul.f32 -10.0, %v1940_v8 }
 0x191   : > { %v6950_v15 = vpop.eup %6949  ;;  %v1259_v16 = vsel %vm1258_vm5, %v8195_v28, %v1257_v12  ;;  %v1266_v17 = vmul.f32 0.5, %v1265_v13  ;;  %6492 = vmatmul.msk.f32.gmra.mxu0 %vm436_vm0, %v418_v9  ;;  %v993_v18 = vsel %vm902_vm1, %v868_v52, 0.0  ;;  %v2080_v19 = vmul.f32 1.442695, %v2004_v14 }
 0x192   : > { %v1262_v20 = vsel %vm1260_vm6, %v1261_v31, %v1259_v16  ;;  %6521 = vmatmul.msk.f32.gmra.mxu1 %vm2185_vm7, %v6950_v15  ;;  %994 = vadd.xlane.f32.xlu0 %v993_v18 }
 0x193   : > { %v1267_v10 = vsub.f32 1.5, %v1266_v17  ;;  %6953 = vpow2.f32 %v2080_v19  ;;  %v1877_v21 = vsub.f32 %v1262_v20, %v8023_v58 }
 0x194   : > { %v6952_v23 = vpop.eup %6951 }
 0x195   : > { %v1268_v22 = vmul.f32 %v6948_v2, %v1267_v10  ;;  %v1276_v25 = vmul.f32 %v6952_v23, %v8231_v7  ;;  %v8249_v26 = vpop.xlane.xlu1 %952  ;;  %v1941_v27 = vmul.f32 %v1877_v21, %v1877_v21 }
 0x196   : > { %6955 = vrsqrt.f32 %v8249_v26  ;;  %v739_v28 = vpop.f32.mrf.mxu0  ;;  %vm1294_vm12 = vcmp.eq.f32.partialorder %v8249_v26, inf  ;;  %vm1296_vm13 = vcmp.eq.f32.partialorder %v8249_v26, 0.0  ;;  %v1297_v13 = vand.u32 2147483648, %v8249_v26 }
 0x197   : > { %v1269_v29 = vmul.f32 %v1268_v22, %v8211_v50  ;;  %v1277_v30 = vmul.f32 %v6952_v23, %v1276_v25  ;;  %v869_v32 = vmul.f32 %v739_v28, %v739_v28  ;;  %v2005_v34 = vmul.f32 -10.0, %v1941_v27 }
 0x199   : > { %v6954_v36 = vpop.eup %6953  ;;  %v1271_v37 = vsel %vm1270_vm8, %v8211_v50, %v1269_v29  ;;  %v1278_v38 = vmul.f32 0.5, %v1277_v30  ;;  %6493 = vmatmul.msk.f32.gmra.mxu0 %vm436_vm0, %v419_v24  ;;  %v996_v39 = vsel %vm902_vm1, %v869_v32, 0.0  ;;  %v2082_v40 = vmul.f32 1.442695, %v2005_v34  ;;  %v420_v50 = vld [vmem:[%s11845_s4 + $0x180] sm:$0xff]  ;;  %v347_v32 = vld [vmem:[%s11843_s2 + $0x38] sm:$0xff] }
 0x19a   : > { %v1274_v41 = vsel %vm1272_vm9, %v1273_v35, %v1271_v37  ;;  %6522 = vmatmul.msk.f32.gmra.mxu1 %vm2185_vm7, %v6954_v36  ;;  %997 = vadd.xlane.f32.xlu1 %v996_v39 }
 0x19b   : > { %v1279_v42 = vsub.f32 1.5, %v1278_v38  ;;  %6957 = vpow2.f32 %v2082_v40  ;;  %v1878_v44 = vsub.f32 %v1274_v41, %v8023_v58  ;;  %3817 = vmatpush.msra.mxu2 %v347_v32  ;;  %v346_v40 = vld [vmem:[%s11843_s2 + $0x30] sm:$0xff] }
 0x19c   : > { %v6956_v45 = vpop.eup %6955 }
 0x19d   : > { %v1280_v43 = vmul.f32 %v6952_v23, %v1279_v42  ;;  %v1288_v47 = vmul.f32 %v6956_v45, %v8249_v26  ;;  %v8265_v48 = vpop.xlane.xlu2 %955  ;;  %v1942_v49 = vmul.f32 %v1878_v44, %v1878_v44  ;;  %3818 = vmatpush.msra.mxu2 %v346_v40  ;;  %v425_v40 = vld [vmem:[%s11845_s4 + $0x1a8] sm:$0xff] }
 0x19e   : > { %6959 = vrsqrt.f32 %v8265_v48  ;;  %v742_v46 = vpop.f32.mrf.mxu0  ;;  %vm1306_vm14 = vcmp.eq.f32.partialorder %v8265_v48, inf  ;;  %vm1308_vm15 = vcmp.eq.f32.partialorder %v8265_v48, 0.0  ;;  %v1309_v30 = vand.u32 2147483648, %v8265_v48 }
 0x19f   : > { %v1281_v51 = vmul.f32 %v1280_v43, %v8231_v7  ;;  %v1289_v53 = vmul.f32 %v6956_v45, %v1288_v47  ;;  %v870_v54 = vmul.f32 %v742_v46, %v742_v46  ;;  %v2006_v56 = vmul.f32 -10.0, %v1942_v49  ;;  %v345_v43 = vld [vmem:[%s11843_s2 + $0x28] sm:$0xff] }
 0x1a0   : > { %3819 = vmatpush.msra.mxu2 %v345_v43 }
 0x1a1   : > { %v6958_v59 = vpop.eup %6957  ;;  %v1283_v60 = vsel %vm1282_vm10, %v8231_v7, %v1281_v51  ;;  %v1290_v55 = vmul.f32 0.5, %v1289_v53  ;;  %v999_v61 = vsel %vm902_vm1, %v870_v54, 0.0  ;;  %v2084_v62 = vmul.f32 1.442695, %v2006_v56  ;;  %6494 = vmatmul.msk.f32.gmra.mxu0 %vm436_vm0, %v420_v50  ;;  %v421_v7 = vld [vmem:[%s11845_s4 + $0x188] sm:$0xff]  ;;  %v344_v50 = vld [vmem:[%s11843_s2 + $0x20] sm:$0xff] }
 0x1a2   : > { %v1286_v63 = vsel %vm1284_vm11, %v1285_v57, %v1283_v60  ;;  %6523 = vmatmul.msk.f32.gmra.mxu1 %vm2185_vm7, %v6958_v59  ;;  %1000 = vadd.xlane.f32.xlu2 %v999_v61  ;;  %v423_v51 = vld [vmem:[%s11845_s4 + $0x198] sm:$0xff] }
 0x1a3   : > { %v1291_v0 = vsub.f32 1.5, %v1290_v55  ;;  %6961 = vpow2.f32 %v2084_v62  ;;  %v1879_v1 = vsub.f32 %v1286_v63, %v8023_v58  ;;  %3820 = vmatpush.msra.mxu2 %v344_v50 }
 0x1a4   : > { %v6960_v3 = vpop.eup %6959 }
 0x1a5   : > { %v1292_v33 = vmul.f32 %v6956_v45, %v1291_v0  ;;  %v1300_v4 = vmul.f32 %v6960_v3, %v8265_v48  ;;  %v8281_v2 = vpop.xlane.xlu0 %958  ;;  %v1943_v5 = vmul.f32 %v1879_v1, %v1879_v1  ;;  %v8321_v45 = vld [vmem:[%s11844_s3] ss:$0 sm:$0xff] }
 0x1a6   : > { %6963 = vrsqrt.f32 %v8281_v2  ;;  %v745_v6 = vpop.f32.mrf.mxu0  ;;  %vm1318_vm3 = vcmp.eq.f32.partialorder %v8281_v2, inf  ;;  %vm1320_vm4 = vcmp.eq.f32.partialorder %v8281_v2, 0.0  ;;  %v1321_v60 = vand.u32 2147483648, %v8281_v2 }
 0x1a7   : > { %v1293_v8 = vmul.f32 %v1292_v33, %v8249_v26  ;;  %v1301_v11 = vmul.f32 %v6960_v3, %v1300_v4  ;;  %v871_v9 = vmul.f32 %v745_v6, %v745_v6  ;;  %v2007_v12 = vmul.f32 -10.0, %v1943_v5  ;;  %v8351_v5 = vld [vmem:[%s11844_s3 + $0x5] ss:$0 sm:$0xff] }
 0x1a9   : > { %v6962_v52 = vpop.eup %6961  ;;  %v1295_v14 = vsel %vm1294_vm12, %v8249_v26, %v1293_v8  ;;  %v1302_v31 = vmul.f32 0.5, %v1301_v11  ;;  %v1002_v15 = vsel %vm902_vm1, %v871_v9, 0.0  ;;  %v2086_v16 = vmul.f32 1.442695, %v2007_v12  ;;  %6495 = vmatmul.msk.f32.gmra.mxu0 %vm436_vm0, %v421_v7  ;;  %v422_v26 = vld [vmem:[%s11845_s4 + $0x190] sm:$0xff] }
 0x1aa   : > { %v1298_v17 = vsel %vm1296_vm13, %v1297_v13, %v1295_v14  ;;  %6524 = vmatmul.msk.f32.gmra.mxu1 %vm2185_vm7, %v6962_v52  ;;  %1003 = vadd.xlane.f32.xlu0 %v1002_v15  ;;  %v424_v14 = vld [vmem:[%s11845_s4 + $0x1a0] sm:$0xff] }
 0x1ab   : > { %v1303_v18 = vsub.f32 1.5, %v1302_v31  ;;  %6965 = vpow2.f32 %v2086_v16  ;;  %v1880_v19 = vsub.f32 %v1298_v17, %v8023_v58 }
 0x1ac   : > { %v6964_v20 = vpop.eup %6963 }
 0x1ad   : > { %v1304_v10 = vmul.f32 %v6960_v3, %v1303_v18  ;;  %v1312_v21 = vmul.f32 %v6964_v20, %v8281_v2  ;;  %v8297_v23 = vpop.xlane.xlu1 %961  ;;  %v1944_v22 = vmul.f32 %v1880_v19, %v1880_v19 }
 0x1ae   : > { %6967 = vrsqrt.f32 %v8297_v23  ;;  %v748_v25 = vpop.f32.mrf.mxu0  ;;  %vm1330_vm5 = vcmp.eq.f32.partialorder %v8297_v23, inf  ;;  %v1333_v18 = vand.u32 2147483648, %v8297_v23  ;;  %vm1332_vm6 = vcmp.eq.f32.partialorder %v8297_v23, 0.0 }
 0x1af   : > { %v1305_v27 = vmul.f32 %v1304_v10, %v8265_v48  ;;  %v1313_v28 = vmul.f32 %v6964_v20, %v1312_v21  ;;  %v872_v24 = vmul.f32 %v748_v25, %v748_v25  ;;  %v2008_v29 = vmul.f32 -10.0, %v1944_v22 }
 0x1b1   : > { %v6966_v34 = vpop.eup %6965  ;;  %v1307_v35 = vsel %vm1306_vm14, %v8265_v48, %v1305_v27  ;;  %v1314_v36 = vmul.f32 0.5, %v1313_v28  ;;  %v1005_v37 = vsel %vm902_vm1, %v872_v24, 0.0  ;;  %v2088_v38 = vmul.f32 1.442695, %v2008_v29  ;;  %6496 = vmatmul.msk.f32.gmra.mxu0 %vm436_vm0, %v422_v26 }
 0x1b2   : > { %v1310_v39 = vsel %vm1308_vm15, %v1309_v30, %v1307_v35  ;;  %6525 = vmatmul.msk.f32.gmra.mxu1 %vm2185_vm7, %v6966_v34  ;;  %1006 = vadd.xlane.f32.xlu1 %v1005_v37 }
 0x1b3   : > { %v1315_v41 = vsub.f32 1.5, %v1314_v36  ;;  %6969 = vpow2.f32 %v2088_v38  ;;  %v1881_v42 = vsub.f32 %v1310_v39, %v8023_v58 }
 0x1b4   : > { %v6968_v44 = vpop.eup %6967 }
 0x1b5   : > { %v1316_v47 = vmul.f32 %v6964_v20, %v1315_v41  ;;  %v1324_v48 = vmul.f32 %v6968_v44, %v8297_v23  ;;  %v8327_v49 = vpop.xlane.xlu2 %964  ;;  %v1945_v46 = vmul.f32 %v1881_v42, %v1881_v42 }
 0x1b6   : > { %6971 = vrsqrt.f32 %v8327_v49  ;;  %v751_v58 = vpop.f32.mrf.mxu0  ;;  %vm1342_vm8 = vcmp.eq.f32.partialorder %v8327_v49, inf  ;;  %v1345_v42 = vand.u32 2147483648, %v8327_v49  ;;  %vm1344_vm9 = vcmp.eq.f32.partialorder %v8327_v49, 0.0 }
 0x1b7   : > { %v1317_v53 = vmul.f32 %v1316_v47, %v8281_v2  ;;  %v1325_v54 = vmul.f32 %v6968_v44, %v1324_v48  ;;  %v873_v56 = vmul.f32 %v751_v58, %v751_v58  ;;  %v2395_v57 = vpop.f32.mrf.mxu1  ;;  %v2009_v59 = vmul.f32 -10.0, %v1945_v46 }
 0x1b8   : > { %v8341_v55 = vadd.f32 %v8321_v45, %v2395_v57 }
 0x1b9   : > { %v6970_v61 = vpop.eup %6969  ;;  %v1319_v62 = vsel %vm1318_vm3, %v8281_v2, %v1317_v53  ;;  %v1326_v63 = vmul.f32 0.5, %v1325_v54  ;;  %v1008_v0 = vsel %vm902_vm1, %v873_v56, 0.0  ;;  %v2090_v1 = vmul.f32 1.442695, %v2009_v59  ;;  %6497 = vmatmul.msk.f32.gmra.mxu0 %vm436_vm0, %v423_v51 }
 0x1ba   : > { %v1322_v3 = vsel %vm1320_vm4, %v1321_v60, %v1319_v62  ;;  %v2651_v33 = vand.u32 2147483647, %v8341_v55  ;;  %6526 = vmatmul.msk.f32.gmra.mxu1 %vm2185_vm7, %v6970_v61  ;;  %1009 = vadd.xlane.f32.xlu2 %v1008_v0  ;;  %v2587_v0 = vmax.f32 %v8341_v55, 0.0 }
 0x1bb   : > { %v1327_v4 = vsub.f32 1.5, %v1326_v63  ;;  %6973 = vpow2.f32 %v2090_v1  ;;  %v1882_v2 = vsub.f32 %v1322_v3, %v8351_v5 }
 0x1bc   : > { %v6972_v6 = vpop.eup %6971  ;;  %v2715_v7 = vsub.f32 0.0, %v2651_v33 }
 0x1bd   : > { %v1328_v8 = vmul.f32 %v6968_v44, %v1327_v4  ;;  %v1336_v11 = vmul.f32 %v6972_v6, %v8327_v49  ;;  %v8355_v9 = vpop.xlane.xlu0 %967  ;;  %v1946_v12 = vmul.f32 %v1882_v2, %v1882_v2 }
 0x1be   : > { %v2779_v13 = vmul.f32 1.442695, %v2715_v7  ;;  %6975 = vrsqrt.f32 %v8355_v9  ;;  %v754_v52 = vpop.f32.mrf.mxu0  ;;  %vm1354_vm10 = vcmp.eq.f32.partialorder %v8355_v9, inf  ;;  %vm1356_vm11 = vcmp.eq.f32.partialorder %v8355_v9, 0.0  ;;  %v426_v7 = vld [vmem:[%s11845_s4 + $0x1b0] sm:$0xff] }
 0x1bf   : > { %v1329_v31 = vmul.f32 %v1328_v8, %v8297_v23  ;;  %v1337_v15 = vmul.f32 %v6972_v6, %v1336_v11  ;;  %v874_v16 = vmul.f32 %v754_v52, %v754_v52  ;;  %v2398_v17 = vpop.f32.mrf.mxu1  ;;  %v2010_v20 = vmul.f32 -10.0, %v1946_v12 }
 0x1c0   : > { %6977 = vpow2.f32 %v2779_v13  ;;  %v8365_v19 = vadd.f32 %v8321_v45, %v2398_v17 }
 0x1c1   : > { %v6974_v10 = vpop.eup %6973  ;;  %v1331_v21 = vsel %vm1330_vm5, %v8297_v23, %v1329_v31  ;;  %v1338_v22 = vmul.f32 0.5, %v1337_v15  ;;  %v1011_v25 = vsel %vm902_vm1, %v874_v16, 0.0  ;;  %6498 = vmatmul.msk.f32.gmra.mxu0 %vm436_vm0, %v424_v14  ;;  %v2092_v28 = vmul.f32 1.442695, %v2010_v20 }
 0x1c2   : > { %v1334_v26 = vsel %vm1332_vm6, %v1333_v18, %v1331_v21  ;;  %v2652_v27 = vand.u32 2147483647, %v8365_v19  ;;  %6527 = vmatmul.msk.f32.gmra.mxu1 %vm2185_vm7, %v6974_v10  ;;  %1012 = vadd.xlane.f32.xlu0 %v1011_v25  ;;  %v1357_v18 = vand.u32 2147483648, %v8355_v9 }
 0x1c3   : > { %v1339_v24 = vsub.f32 1.5, %v1338_v22  ;;  %v1883_v29 = vsub.f32 %v1334_v26, %v8351_v5  ;;  %6979 = vpow2.f32 %v2092_v28 }
 0x1c4   : > { %v6976_v30 = vpop.eup %6975  ;;  %v2716_v32 = vsub.f32 0.0, %v2652_v27 }
 0x1c5   : > { %v1340_v34 = vmul.f32 %v6972_v6, %v1339_v24  ;;  %v1348_v23 = vmul.f32 %v6976_v30, %v8355_v9  ;;  %v8375_v35 = vpop.xlane.xlu1 %970  ;;  %v1947_v36 = vmul.f32 %v1883_v29, %v1883_v29 }
 0x1c6   : > { %v8377_v37 = vpop.eup %6977  ;;  %v2781_v38 = vmul.f32 1.442695, %v2716_v32  ;;  %6981 = vrsqrt.f32 %v8375_v35  ;;  %v757_v39 = vpop.f32.mrf.mxu0  ;;  %vm1366_vm13 = vcmp.eq.f32.partialorder %v8375_v35, inf  ;;  %vm1368_vm15 = vcmp.eq.f32.partialorder %v8375_v35, 0.0 }
 0x1c7   : > { %v1341_v41 = vmul.f32 %v1340_v34, %v8327_v49  ;;  %v1349_v44 = vmul.f32 %v6976_v30, %v1348_v23  ;;  %v875_v43 = vmul.f32 %v757_v39, %v757_v39  ;;  %v2401_v47 = vpop.f32.mrf.mxu1  ;;  %v2011_v46 = vmul.f32 -10.0, %v1947_v36 }
 0x1c8   : > { %6983 = vpow2.f32 %v2781_v38  ;;  %v8387_v48 = vadd.f32 %v8321_v45, %v2401_v47  ;;  %v2907_v58 = vadd.f32 1.0, %v8377_v37  ;;  %v2910_v60 = vmul.f32 -0.5, %v8377_v37 }
 0x1c9   : > { %v1343_v50 = vsel %vm1342_vm8, %v8327_v49, %v1341_v41  ;;  %v1350_v51 = vmul.f32 0.5, %v1349_v44  ;;  %v1014_v53 = vsel %vm902_vm1, %v875_v43, 0.0  ;;  %6499 = vmatmul.msk.f32.gmra.mxu0 %vm436_vm0, %v425_v40  ;;  %v6980_v54 = vpop.eup %6979  ;;  %v2094_v59 = vmul.f32 1.442695, %v2011_v46 }
 0x1ca   : > { %v1346_v56 = vsel %vm1344_vm9, %v1345_v42, %v1343_v50  ;;  %v2653_v57 = vand.u32 2147483647, %v8387_v48  ;;  %1015 = vadd.xlane.f32.xlu1 %v1014_v53  ;;  %6528 = vmatmul.msk.f32.gmra.mxu1 %vm2185_vm7, %v6980_v54  ;;  %6985 = vlog2.f32 %v2907_v58  ;;  %v2911_v6 = vadd.f32 1.0, %v2910_v60  ;;  %v427_v42 = vld [vmem:[%s11845_s4 + $0x1b8] sm:$0xff] }
 0x1cb   : > { %v1351_v61 = vsub.f32 1.5, %v1350_v51  ;;  %6987 = vpow2.f32 %v2094_v59  ;;  %v1884_v49 = vsub.f32 %v1346_v56, %v8351_v5  ;;  %v2913_v13 = vand.u32 2147483647, %v8377_v37 }
 0x1cc   : > { %v6982_v62 = vpop.eup %6981  ;;  %v2717_v63 = vsub.f32 0.0, %v2653_v57  ;;  %v2912_v26 = vmul.f32 %v8377_v37, %v2911_v6  ;;  %v2588_v59 = vmax.f32 %v8365_v19, 0.0 }
 0x1cd   : > { %v1352_v1 = vmul.f32 %v6976_v30, %v1351_v61  ;;  %v1360_v3 = vmul.f32 %v6982_v62, %v8375_v35  ;;  %v8400_v33 = vpop.xlane.xlu2 %973  ;;  %v1948_v31 = vmul.f32 %v1884_v49, %v1884_v49  ;;  %vm2914_vm12 = vcmp.lt.f32.partialorder %v2913_v13, 0.0004427343  ;;  %v428_v13 = vld [vmem:[%s11845_s4 + $0x1c0] sm:$0xff] }
 0x1ce   : > { %v8402_v4 = vpop.eup %6983  ;;  %6989 = vrsqrt.f32 %v8400_v33  ;;  %v760_v2 = vpop.f32.mrf.mxu0  ;;  %v2783_v52 = vmul.f32 1.442695, %v2717_v63  ;;  %vm1378_vm3 = vcmp.eq.f32.partialorder %v8400_v33, inf  ;;  %vm1380_vm4 = vcmp.eq.f32.partialorder %v8400_v33, 0.0 }
 0x1cf   : > { %v1353_v55 = vmul.f32 %v1352_v1, %v8355_v9  ;;  %v1361_v8 = vmul.f32 %v6982_v62, %v1360_v3  ;;  %v876_v11 = vmul.f32 %v760_v2, %v760_v2  ;;  %v2404_v12 = vpop.f32.mrf.mxu1  ;;  %v2916_v15 = vadd.f32 1.0, %v8402_v4 }
 0x1d0   : > { %v8413_v14 = vadd.f32 %v8321_v45, %v2404_v12  ;;  %v6986_v16 = vpop.eup %6985  ;;  %v2919_v27 = vmul.f32 -0.5, %v8402_v4  ;;  %v2012_v24 = vmul.f32 -10.0, %v1948_v31  ;;  %v2922_v47 = vand.u32 2147483647, %v8402_v4 }
 0x1d1   : > { %v1355_v17 = vsel %vm1354_vm10, %v8355_v9, %v1353_v55  ;;  %v1362_v20 = vmul.f32 0.5, %v1361_v8  ;;  %v1017_v10 = vsel %vm902_vm1, %v876_v11, 0.0  ;;  %6500 = vmatmul.msk.f32.gmra.mxu0 %vm436_vm0, %v426_v7  ;;  %v6988_v21 = vpop.eup %6987  ;;  %v2909_v25 = vmul.f32 0.6931472, %v6986_v16 }
 0x1d2   : > { %v2654_v22 = vand.u32 2147483647, %v8413_v14  ;;  %1018 = vadd.xlane.f32.xlu2 %v1017_v10  ;;  %6529 = vmatmul.msk.f32.gmra.mxu1 %vm2185_vm7, %v6988_v21  ;;  %6991 = vlog2.f32 %v2916_v15  ;;  %v1358_v30 = vsel %vm1356_vm11, %v1357_v18, %v1355_v17  ;;  %v2096_v39 = vmul.f32 1.442695, %v2012_v24 }
 0x1d3   : > { %v1363_v28 = vsub.f32 1.5, %v1362_v20  ;;  %6993 = vpow2.f32 %v2783_v52  ;;  %v2915_v34 = vsel %vm2914_vm12, %v2912_v26, %v2909_v25  ;;  %v2920_v41 = vadd.f32 1.0, %v2919_v27 }
 0x1d4   : > { %v6990_v29 = vpop.eup %6989  ;;  %v2718_v32 = vsub.f32 0.0, %v2654_v22  ;;  %v3483_v37 = vadd.f32 %v2915_v34, %v2587_v0  ;;  %v1885_v46 = vsub.f32 %v1358_v30, %v8351_v5  ;;  %vm2923_vm14 = vcmp.lt.f32.partialorder %v2922_v47, 0.0004427343  ;;  %v5103_v34 = vld [vmem:[%s11846_s5] sm:$0xff] }
 0x1d5   : > { %v1364_v23 = vmul.f32 %v6982_v62, %v1363_v28  ;;  %v1372_v36 = vmul.f32 %v6990_v29, %v8400_v33  ;;  %v8429_v38 = vpop.xlane.xlu0 %976  ;;  %v2921_v62 = vmul.f32 %v8402_v4, %v2920_v41  ;;  %v1369_v4 = vand.u32 2147483648, %v8375_v35  ;;  %6774 = vmatmul.msk.f32.vlgmr.msrb.gmra.mxu3 %vm436_vm0, %v5103_v34 }
 0x1d6   : > { %6995 = vrsqrt.f32 %v8429_v38  ;;  %v763_v40 = vpop.f32.mrf.mxu0  ;;  %v2785_v50 = vmul.f32 1.442695, %v2718_v32  ;;  %v6574_v51 = vadd.f32 -0.6931472, %v3483_v37  ;;  %v1949_v49 = vmul.f32 %v1885_v46, %v1885_v46 }
 0x1d7   : > { %v1373_v9 = vmul.f32 %v6990_v29, %v1372_v36  ;;  %v877_v44 = vmul.f32 %v763_v40, %v763_v40  ;;  %v2407_v43 = vpop.f32.mrf.mxu1  ;;  %v1365_v58 = vmul.f32 %v1364_v23, %v8375_v35  ;;  %6997 = vpow2.f32 %v2096_v39 }
 0x1d8   : > { %v6992_v53 = vpop.eup %6991  ;;  %v8444_v60 = vadd.f32 %v8321_v45, %v2407_v43  ;;  %6638 = vmatmul.msk.f32.vlgmr.msra.gmra.mxu2 %vm3612_vm2, %v6574_v51  ;;  %6999 = vpow2.f32 %v2785_v50  ;;  %v2013_v7 = vmul.f32 -10.0, %v1949_v49  ;;  %vm1390_vm5 = vcmp.eq.f32.partialorder %v8429_v38, inf  ;;  %v429_v43 = vld [vmem:[%s11845_s4 + $0x1c8] sm:$0xff] }
 0x1d9   : > { %v1374_v54 = vmul.f32 0.5, %v1373_v9  ;;  %v1020_v56 = vsel %vm902_vm1, %v877_v44, 0.0  ;;  %6501 = vmatmul.msk.f32.gmra.mxu0 %vm436_vm0, %v427_v42  ;;  %v8440_v57 = vpop.eup %6993  ;;  %v2918_v61 = vmul.f32 0.6931472, %v6992_v53  ;;  %v1367_v1 = vsel %vm1366_vm13, %v8375_v35, %v1365_v58 }
 0x1da   : > { %1021 = vadd.xlane.f32.xlu0 %v1020_v56  ;;  %v2925_v55 = vadd.f32 1.0, %v8440_v57  ;;  %v2655_v11 = vand.u32 2147483647, %v8444_v60  ;;  %v1370_v17 = vsel %vm1368_vm15, %v1369_v4, %v1367_v1  ;;  %v2098_v20 = vmul.f32 1.442695, %v2013_v7 }
 0x1db   : > { %v1375_v63 = vsub.f32 1.5, %v1374_v54  ;;  %v2924_v3 = vsel %vm2923_vm14, %v2921_v62, %v2918_v61  ;;  %v2928_v10 = vmul.f32 -0.5, %v8440_v57  ;;  %v2589_v35 = vmax.f32 %v8387_v48, 0.0 }
 0x1dc   : > { %v6996_v0 = vpop.eup %6995  ;;  %v3484_v6 = vadd.f32 %v2924_v3, %v2588_v59  ;;  %v2719_v27 = vsub.f32 0.0, %v2655_v11  ;;  %v2931_v32 = vand.u32 2147483647, %v8440_v57  ;;  %v1393_v42 = vand.u32 2147483648, %v8429_v38 }
 0x1dd   : > { %v1384_v19 = vmul.f32 %v6996_v0, %v8429_v38  ;;  %v8451_v2 = vpop.xlane.xlu1 %979  ;;  %v1376_v8 = vmul.f32 %v6990_v29, %v1375_v63  ;;  %v6998_v52 = vpop.eup %6997  ;;  %v1886_v29 = vsub.f32 %v1370_v17, %v8351_v5  ;;  %v2929_v48 = vadd.f32 1.0, %v2928_v10 }
 0x1de   : > { %7001 = vrsqrt.f32 %v8451_v2  ;;  %v766_v12 = vpop.f32.mrf.mxu0  ;;  %6530 = vmatmul.msk.f32.gmra.mxu1 %vm2185_vm7, %v6998_v52  ;;  %v6575_v18 = vadd.f32 -0.6931472, %v3484_v6  ;;  %v8465_v25 = vpop.eup %6999  ;;  %v2787_v9 = vmul.f32 1.442695, %v2719_v27  ;;  %vm2932_vm6 = vcmp.lt.f32.partialorder %v2931_v32, 0.0004427343 }
 0x1df   : > { %v1385_v31 = vmul.f32 %v6996_v0, %v1384_v19  ;;  %v878_v15 = vmul.f32 %v766_v12, %v766_v12  ;;  %v2410_v16 = vpop.f32.mrf.mxu1  ;;  %7003 = vlog2.f32 %v2925_v55  ;;  %v1377_v26 = vmul.f32 %v1376_v8, %v8400_v33 }
 0x1e0   : > { %6639 = vmatmul.msk.f32.gmra.mxu2 %vm3612_vm2, %v6575_v18  ;;  %7005 = vpow2.f32 %v2098_v20  ;;  %v8472_v24 = vadd.f32 %v8321_v45, %v2410_v16  ;;  %v1950_v39 = vmul.f32 %v1886_v29, %v1886_v29  ;;  %v2934_v40 = vadd.f32 1.0, %v8465_v25 }
 0x1e1   : > { %v1386_v21 = vmul.f32 0.5, %v1385_v31  ;;  %v1023_v22 = vsel %vm902_vm1, %v878_v15, 0.0  ;;  %6502 = vmatmul.msk.f32.gmra.mxu0 %vm436_vm0, %v428_v13  ;;  %v1379_v41 = vsel %vm1378_vm3, %v8400_v33, %v1377_v26  ;;  %v2930_v59 = vmul.f32 %v8440_v57, %v2929_v48  ;;  %v5104_v48 = vld [vmem:[%s11846_s5 + $0x8] sm:$0xff] }
 0x1e2   : > { %1024 = vadd.xlane.f32.xlu1 %v1023_v22  ;;  %v2656_v50 = vand.u32 2147483647, %v8472_v24  ;;  %v2014_v61 = vmul.f32 -10.0, %v1950_v39  ;;  %vm1392_vm8 = vcmp.eq.f32.partialorder %v8429_v38, 0.0  ;;  %v2937_v57 = vmul.f32 -0.5, %v8465_v25  ;;  %6775 = vmatmul.msk.f32.gmra.mxu3 %vm436_vm0, %v5104_v48 }
 0x1e3   : > { %v1387_v28 = vsub.f32 1.5, %v1386_v21  ;;  %v2590_v8 = vmax.f32 %v8413_v14, 0.0  ;;  %v430_v14 = vld [vmem:[%s11845_s4 + $0x1d0] sm:$0xff]  ;;  %vm1402_vm9 = vcmp.eq.f32.partialorder %v8451_v2, inf  ;;  %vm1404_vm10 = vcmp.eq.f32.partialorder %v8451_v2, 0.0 }
 0x1e4   : > { %v7002_v30 = vpop.eup %7001  ;;  %v2100_v7 = vmul.f32 1.442695, %v2014_v61  ;;  %v2720_v11 = vsub.f32 0.0, %v2656_v50  ;;  %v2938_v17 = vadd.f32 1.0, %v2937_v57 }
 0x1e5   : > { %v1388_v23 = vmul.f32 %v6996_v0, %v1387_v28  ;;  %v1396_v36 = vmul.f32 %v7002_v30, %v8451_v2  ;;  %v8482_v37 = vpop.xlane.xlu2 %982  ;;  %v7004_v47 = vpop.eup %7003  ;;  %v1381_v0 = vand.u32 2147483648, %v8400_v33  ;;  %v2940_v33 = vand.u32 2147483647, %v8465_v25 }
 0x1e6   : > { %7007 = vrsqrt.f32 %v8482_v37  ;;  %v769_v44 = vpop.f32.mrf.mxu0  ;;  %v7006_v54 = vpop.eup %7005  ;;  %v2927_v56 = vmul.f32 0.6931472, %v7004_v47  ;;  %v2939_v39 = vmul.f32 %v8465_v25, %v2938_v17  ;;  %vm1414_vm11 = vcmp.eq.f32.partialorder %v8482_v37, inf }
 0x1e7   : > { %v1389_v46 = vmul.f32 %v1388_v23, %v8429_v38  ;;  %v1397_v58 = vmul.f32 %v7002_v30, %v1396_v36  ;;  %v879_v51 = vmul.f32 %v769_v44, %v769_v44  ;;  %v2413_v53 = vpop.f32.mrf.mxu1  ;;  %6531 = vmatmul.msk.f32.gmra.mxu1 %vm2185_vm7, %v7006_v54  ;;  %7009 = vlog2.f32 %v2934_v40 }
 0x1e8   : > { %v2933_v1 = vsel %vm2932_vm6, %v2930_v59, %v2927_v56  ;;  %v1382_v4 = vsel %vm1380_vm4, %v1381_v0, %v1379_v41  ;;  %7011 = vpow2.f32 %v2787_v9  ;;  %v2789_v36 = vmul.f32 1.442695, %v2720_v11  ;;  %v431_v0 = vld [vmem:[%s11845_s4 + $0x1d8] sm:$0xff] }
 0x1e9   : > { %v1391_v62 = vsel %vm1390_vm5, %v8429_v38, %v1389_v46  ;;  %v1398_v63 = vmul.f32 0.5, %v1397_v58  ;;  %v1026_v49 = vsel %vm902_vm1, %v879_v51, 0.0  ;;  %6503 = vmatmul.msk.f32.gmra.mxu0 %vm436_vm0, %v429_v43  ;;  %v3485_v6 = vadd.f32 %v2933_v1, %v2589_v35 }
 0x1ea   : > { %1027 = vadd.xlane.f32.xlu2 %v1026_v49  ;;  %v1394_v3 = vsel %vm1392_vm8, %v1393_v42, %v1391_v62  ;;  %v8511_v38 = vadd.f32 %v8321_v45, %v2413_v53  ;;  %7013 = vpow2.f32 %v2100_v7  ;;  %v1887_v22 = vsub.f32 %v1382_v4, %v8351_v5 }
 0x1eb   : > { %v1399_v19 = vsub.f32 1.5, %v1398_v63  ;;  %v6576_v52 = vadd.f32 -0.6931472, %v3485_v6  ;;  %v1888_v15 = vsub.f32 %v1394_v3, %v8351_v5  ;;  %v1405_v35 = vand.u32 2147483648, %v8451_v2 }
 0x1ec   : > { %v7008_v55 = vpop.eup %7007  ;;  %v2657_v29 = vand.u32 2147483647, %v8511_v38  ;;  %vm2941_vm12 = vcmp.lt.f32.partialorder %v2940_v33, 0.0004427343  ;;  %v1951_v40 = vmul.f32 %v1887_v22, %v1887_v22  ;;  %vm1416_vm13 = vcmp.eq.f32.partialorder %v8482_v37, 0.0 }
 0x1ed   : > { %v1400_v12 = vmul.f32 %v7002_v30, %v1399_v19  ;;  %v1408_v13 = vmul.f32 %v7008_v55, %v8482_v37  ;;  %v8513_v31 = vpop.xlane.xlu0 %985  ;;  %v7010_v18 = vpop.eup %7009  ;;  %6640 = vmatmul.msk.f32.gmra.mxu2 %vm3612_vm2, %v6576_v52  ;;  %v1952_v34 = vmul.f32 %v1888_v15, %v1888_v15  ;;  %v1417_v57 = vand.u32 2147483648, %v8482_v37 }
 0x1ee   : > { %v772_v16 = vpop.f32.mrf.mxu0  ;;  %7015 = vrsqrt.f32 %v8513_v31  ;;  %v2936_v30 = vmul.f32 0.6931472, %v7010_v18  ;;  %v8533_v32 = vpop.eup %7011  ;;  %v2721_v46 = vsub.f32 0.0, %v2657_v29  ;;  %v2015_v58 = vmul.f32 -10.0, %v1951_v40 }
 0x1ef   : > { %v1401_v20 = vmul.f32 %v1400_v12, %v8451_v2  ;;  %v1409_v10 = vmul.f32 %v7008_v55, %v1408_v13  ;;  %v2416_v21 = vpop.f32.mrf.mxu1  ;;  %v880_v26 = vmul.f32 %v772_v16, %v772_v16  ;;  %v2016_v51 = vmul.f32 -10.0, %v1952_v34 }
 0x1f0   : > { %v7014_v41 = vpop.eup %7013  ;;  %v2942_v9 = vsel %vm2941_vm12, %v2939_v39, %v2936_v30  ;;  %v2943_v56 = vadd.f32 1.0, %v8533_v32  ;;  %v8549_v61 = vadd.f32 %v8321_v45, %v2416_v21  ;;  %v2102_v63 = vmul.f32 1.442695, %v2015_v58 }
 0x1f1   : > { %v1403_v27 = vsel %vm1402_vm9, %v8451_v2, %v1401_v20  ;;  %v1410_v28 = vmul.f32 0.5, %v1409_v10  ;;  %6504 = vmatmul.msk.f32.gmra.mxu0 %vm436_vm0, %v430_v14  ;;  %v1029_v44 = vsel %vm902_vm1, %v880_v26, 0.0  ;;  %6532 = vmatmul.msk.f32.gmra.mxu1 %vm2185_vm7, %v7014_v41  ;;  %v3486_v25 = vadd.f32 %v2942_v9, %v2590_v8 }
 0x1f2   : > { %v1406_v23 = vsel %vm1404_vm10, %v1405_v35, %v1403_v27  ;;  %1030 = vadd.xlane.f32.xlu0 %v1029_v44  ;;  %v2791_v6 = vmul.f32 1.442695, %v2721_v46  ;;  %v2104_v8 = vmul.f32 1.442695, %v2016_v51  ;;  %v2591_v11 = vmax.f32 %v8444_v60, 0.0 }
 0x1f3   : > { %v1411_v2 = vsub.f32 1.5, %v1410_v28  ;;  %v1889_v42 = vsub.f32 %v1406_v23, %v8351_v5  ;;  %v6577_v62 = vadd.f32 -0.6931472, %v3486_v25  ;;  %v2658_v12 = vand.u32 2147483647, %v8549_v61 }
 0x1f4   : > { %v7016_v43 = vpop.eup %7015  ;;  %v2946_v13 = vmul.f32 -0.5, %v8533_v32  ;;  %v2592_v14 = vmax.f32 %v8472_v24, 0.0  ;;  %vm1426_vm14 = vcmp.eq.f32.partialorder %v8513_v31, inf  ;;  %v2949_v22 = vand.u32 2147483647, %v8533_v32 }
 0x1f5   : > { %v1412_v47 = vmul.f32 %v7008_v55, %v1411_v2  ;;  %v8542_v50 = vpop.xlane.xlu1 %988  ;;  %v1420_v53 = vmul.f32 %v7016_v43, %v8513_v31  ;;  %v1953_v1 = vmul.f32 %v1889_v42, %v1889_v42  ;;  %6641 = vmatmul.msk.f32.gmra.mxu2 %vm3612_vm2, %v6577_v62  ;;  %vm1428_vm15 = vcmp.eq.f32.partialorder %v8513_v31, 0.0  ;;  %v5106_v62 = vld [vmem:[%s11846_s5 + $0x18] sm:$0xff] }
 0x1f6   : > { %7017 = vrsqrt.f32 %v8542_v50  ;;  %v775_v54 = vpop.f32.mrf.mxu0  ;;  %v2947_v18 = vadd.f32 1.0, %v2946_v13  ;;  %v1429_v27 = vand.u32 2147483648, %v8513_v31  ;;  %vm2950_vm3 = vcmp.lt.f32.partialorder %v2949_v22, 0.0004427343 }
 0x1f7   : > { %v1413_v59 = vmul.f32 %v1412_v47, %v8482_v37  ;;  %v2419_v49 = vpop.f32.mrf.mxu1  ;;  %7019 = vpow2.f32 %v2789_v36  ;;  %v1421_v3 = vmul.f32 %v7016_v43, %v1420_v53  ;;  %v881_v7 = vmul.f32 %v775_v54, %v775_v54 }
 0x1f8   : > { %7021 = vpow2.f32 %v2102_v63  ;;  %v2017_v15 = vmul.f32 -10.0, %v1953_v1  ;;  %v2722_v36 = vsub.f32 0.0, %v2658_v12  ;;  %v8585_v2 = vadd.f32 %v8321_v45, %v2419_v49 }
 0x1f9   : > { %v1415_v19 = vsel %vm1414_vm11, %v8482_v37, %v1413_v59  ;;  %6505 = vmatmul.msk.f32.gmra.mxu0 %vm436_vm0, %v431_v0  ;;  %v1422_v4 = vmul.f32 0.5, %v1421_v3  ;;  %7023 = vlog2.f32 %v2943_v56  ;;  %v1032_v33 = vsel %vm902_vm1, %v881_v7, 0.0  ;;  %v5105_v37 = vld [vmem:[%s11846_s5 + $0x10] sm:$0xff] }
 0x1fa   : > { %v1418_v55 = vsel %vm1416_vm13, %v1417_v57, %v1415_v19  ;;  %7025 = vpow2.f32 %v2791_v6  ;;  %1033 = vadd.xlane.f32.xlu1 %v1032_v33  ;;  %6776 = vmatmul.msk.f32.gmra.mxu3 %vm436_vm0, %v5105_v37  ;;  %v2106_v48 = vmul.f32 1.442695, %v2017_v15  ;;  %v2948_v41 = vmul.f32 %v8533_v32, %v2947_v18  ;;  %v432_v32 = vld [vmem:[%s11845_s4 + $0x1e0] sm:$0xff] }
 0x1fb   : > { %v1890_v16 = vsub.f32 %v1418_v55, %v8351_v5  ;;  %v1423_v17 = vsub.f32 1.5, %v1422_v4  ;;  %v2593_v54 = vmax.f32 %v8511_v38, 0.0  ;;  %v2793_v56 = vmul.f32 1.442695, %v2722_v36 }
 0x1fc   : > { %v7018_v52 = vpop.eup %7017  ;;  %v2659_v57 = vand.u32 2147483647, %v8585_v2  ;;  %vm1438_vm4 = vcmp.eq.f32.partialorder %v8542_v50, inf  ;;  %v1441_v13 = vand.u32 2147483648, %v8542_v50  ;;  %vm1440_vm5 = vcmp.eq.f32.partialorder %v8542_v50, 0.0 }
 0x1fd   : > { %v1432_v60 = vmul.f32 %v7018_v52, %v8542_v50  ;;  %v8572_v20 = vpop.xlane.xlu2 %991  ;;  %v8575_v10 = vpop.eup %7019  ;;  %v1424_v21 = vmul.f32 %v7016_v43, %v1423_v17  ;;  %v1954_v34 = vmul.f32 %v1890_v16, %v1890_v16 }
 0x1fe   : > { %7027 = vrsqrt.f32 %v8572_v20  ;;  %v778_v35 = vpop.f32.mrf.mxu0  ;;  %v7022_v26 = vpop.eup %7021  ;;  %v2952_v44 = vadd.f32 1.0, %v8575_v10  ;;  %v2955_v58 = vmul.f32 -0.5, %v8575_v10  ;;  %v2958_v17 = vand.u32 2147483647, %v8575_v10 }
 0x1ff   : > { %7029 = vpow2.f32 %v2104_v8  ;;  %v1433_v28 = vmul.f32 %v7018_v52, %v1432_v60  ;;  %v2422_v29 = vpop.f32.mrf.mxu1  ;;  %v7024_v30 = vpop.eup %7023  ;;  %v1425_v23 = vmul.f32 %v1424_v21, %v8513_v31  ;;  %6533 = vmatmul.msk.f32.gmra.mxu1 %vm2185_vm7, %v7022_v26  ;;  %v882_v9 = vmul.f32 %v778_v35, %v778_v35 }
 0x200   : > { %v2945_v40 = vmul.f32 0.6931472, %v7024_v30  ;;  %v8592_v43 = vpop.eup %7025  ;;  %v2018_v53 = vmul.f32 -10.0, %v1954_v34  ;;  %7031 = vlog2.f32 %v2952_v44  ;;  %v8612_v19 = vadd.f32 %v8321_v45, %v2422_v29  ;;  %v433_v30 = vld [vmem:[%s11845_s4 + $0x1e8] sm:$0xff] }
 0x201   : > { %v1434_v39 = vmul.f32 0.5, %v1433_v28  ;;  %v1427_v42 = vsel %vm1426_vm14, %v8513_v31, %v1425_v23  ;;  %6506 = vmatmul.msk.f32.gmra.mxu0 %vm436_vm0, %v432_v32  ;;  %7033 = vpow2.f32 %v2106_v48  ;;  %v2956_v55 = vadd.f32 1.0, %v2955_v58 }
 0x202   : > { %v1430_v47 = vsel %vm1428_vm15, %v1429_v27, %v1427_v42  ;;  %v2951_v25 = vsel %vm2950_vm3, %v2948_v41, %v2945_v40  ;;  %6777 = vmatmul.msk.f32.gmra.mxu3 %vm436_vm0, %v5106_v62  ;;  %v1035_v4 = vsel %vm902_vm1, %v882_v9, 0.0  ;;  %v2108_v12 = vmul.f32 1.442695, %v2018_v53 }
 0x203   : > { %v1435_v46 = vsub.f32 1.5, %v1434_v39  ;;  %v3487_v59 = vadd.f32 %v2951_v25, %v2591_v11  ;;  %v1891_v63 = vsub.f32 %v1430_v47, %v8351_v5  ;;  %1036 = vadd.xlane.f32.xlu2 %v1035_v4  ;;  %v2723_v33 = vsub.f32 0.0, %v2659_v57 }
 0x204   : > { %v7028_v51 = vpop.eup %7027  ;;  %vm1450_vm6 = vcmp.eq.f32.partialorder %v8572_v20, inf  ;;  %v2660_v21 = vand.u32 2147483647, %v8612_v19  ;;  %v2957_v22 = vmul.f32 %v8575_v10, %v2956_v55  ;;  %v2961_v28 = vadd.f32 1.0, %v8592_v43  ;;  %v5108_v55 = vld [vmem:[%s11846_s5 + $0x28] sm:$0xff] }
 0x205   : > { %v7030_v31 = vpop.eup %7029  ;;  %v1436_v49 = vmul.f32 %v7018_v52, %v1435_v46  ;;  %v1444_v0 = vmul.f32 %v7028_v51, %v8572_v20  ;;  %v8607_v1 = vpop.xlane.xlu0 %994  ;;  %v6578_v3 = vadd.f32 -0.6931472, %v3487_v59  ;;  %v1955_v52 = vmul.f32 %v1891_v63, %v1891_v63 }
 0x206   : > { %v781_v8 = vpop.f32.mrf.mxu0  ;;  %7035 = vrsqrt.f32 %v8607_v1  ;;  %v7032_v37 = vpop.eup %7031  ;;  %v2964_v29 = vmul.f32 -0.5, %v8592_v43  ;;  %vm2959_vm8 = vcmp.lt.f32.partialorder %v2958_v17, 0.0004427343  ;;  %v2795_v23 = vmul.f32 1.442695, %v2723_v33 }
 0x207   : > { %v1437_v6 = vmul.f32 %v1436_v49, %v8542_v50  ;;  %v1445_v7 = vmul.f32 %v7028_v51, %v1444_v0  ;;  %v2425_v11 = vpop.f32.mrf.mxu1  ;;  %6642 = vmatmul.msk.f32.gmra.mxu2 %vm3612_vm2, %v6578_v3  ;;  %6534 = vmatmul.msk.f32.gmra.mxu1 %vm2185_vm7, %v7030_v31  ;;  %7037 = vpow2.f32 %v2793_v56  ;;  %v7034_v35 = vpop.eup %7033  ;;  %v2954_v26 = vmul.f32 0.6931472, %v7032_v37  ;;  %v434_v37 = vld [vmem:[%s11845_s4 + $0x1f0] sm:$0xff] }
 0x208   : > { %v883_v27 = vmul.f32 %v781_v8, %v781_v8  ;;  %7039 = vpow2.f32 %v2108_v12  ;;  %v2019_v48 = vmul.f32 -10.0, %v1955_v52  ;;  %vm1452_vm9 = vcmp.eq.f32.partialorder %v8572_v20, 0.0 }
 0x209   : > { %v1439_v15 = vsel %vm1438_vm4, %v8542_v50, %v1437_v6  ;;  %v1446_v16 = vmul.f32 0.5, %v1445_v7  ;;  %v5107_v50 = vld [vmem:[%s11846_s5 + $0x20] sm:$0xff]  ;;  %6507 = vmatmul.msk.f32.gmra.mxu0 %vm436_vm0, %v433_v30  ;;  %v2960_v36 = vsel %vm2959_vm8, %v2957_v22, %v2954_v26  ;;  %7041 = vlog2.f32 %v2961_v28 }
 0x20a   : > { %v1442_v60 = vsel %vm1440_vm5, %v1441_v13, %v1439_v15  ;;  %6778 = vmatmul.msk.f32.gmra.mxu3 %vm436_vm0, %v5107_v50  ;;  %v3488_v41 = vadd.f32 %v2960_v36, %v2592_v14  ;;  %v1453_v46 = vand.u32 2147483648, %v8572_v20  ;;  %v2724_v25 = vsub.f32 0.0, %v2660_v21 }
 0x20b   : > { %v1447_v18 = vsub.f32 1.5, %v1446_v16  ;;  %v1892_v39 = vsub.f32 %v1442_v60, %v8351_v5  ;;  %v2965_v58 = vadd.f32 1.0, %v2964_v29  ;;  %v1038_v32 = vsel %vm902_vm1, %v883_v27, 0.0 }
 0x20c   : > { %v7036_v10 = vpop.eup %7035  ;;  %v6579_v14 = vadd.f32 -0.6931472, %v3488_v41  ;;  %1039 = vadd.xlane.f32.xlu0 %v1038_v32  ;;  %v8656_v62 = vadd.f32 %v8321_v45, %v2425_v11  ;;  %v2967_v31 = vand.u32 2147483647, %v8592_v43  ;;  %v2594_v49 = vmax.f32 %v8549_v61, 0.0 }
 0x20d   : > { %v1448_v34 = vmul.f32 %v7028_v51, %v1447_v18  ;;  %v1456_v42 = vmul.f32 %v7036_v10, %v8607_v1  ;;  %v8643_v9 = vpop.xlane.xlu1 %997  ;;  %v8645_v47 = vpop.eup %7037  ;;  %v2110_v51 = vmul.f32 1.442695, %v2019_v48  ;;  %v1956_v0 = vmul.f32 %v1892_v39, %v1892_v39 }
 0x20e   : > { %v784_v56 = vpop.f32.mrf.mxu0  ;;  %7043 = vrsqrt.f32 %v8643_v9  ;;  %v7040_v63 = vpop.eup %7039  ;;  %vm1462_vm10 = vcmp.eq.f32.partialorder %v8607_v1, inf  ;;  %v2966_v7 = vmul.f32 %v8592_v43, %v2965_v58  ;;  %v2970_v12 = vadd.f32 1.0, %v8645_v47 }
 0x20f   : > { %v1449_v40 = vmul.f32 %v1448_v34, %v8572_v20  ;;  %v2428_v44 = vpop.f32.mrf.mxu1  ;;  %6535 = vmatmul.msk.f32.gmra.mxu1 %vm2185_vm7, %v7034_v35  ;;  %v1457_v53 = vmul.f32 %v7036_v10, %v1456_v42  ;;  %7045 = vpow2.f32 %v2795_v23  ;;  %6643 = vmatmul.msk.f32.gmra.mxu2 %vm3612_vm2, %v6579_v14  ;;  %v7042_v3 = vpop.eup %7041  ;;  %v884_v11 = vmul.f32 %v784_v56, %v784_v56 }
 0x210   : > { %v2963_v8 = vmul.f32 0.6931472, %v7042_v3  ;;  %7047 = vpow2.f32 %v2110_v51  ;;  %v2661_v13 = vand.u32 2147483647, %v8656_v62  ;;  %vm2968_vm11 = vcmp.lt.f32.partialorder %v2967_v31, 0.0004427343 }
 0x211   : > { %v1451_v24 = vsel %vm1450_vm6, %v8572_v20, %v1449_v40  ;;  %v1458_v57 = vmul.f32 0.5, %v1457_v53  ;;  %v2797_v20 = vmul.f32 1.442695, %v2724_v25  ;;  %v2973_v52 = vmul.f32 -0.5, %v8645_v47  ;;  %6508 = vmatmul.msk.f32.gmra.mxu0 %vm436_vm0, %v434_v37  ;;  %v435_v37 = vld [vmem:[%s11845_s4 + $0x1f8] sm:$0xff] }
 0x212   : > { %v1454_v59 = vsel %vm1452_vm9, %v1453_v46, %v1451_v24  ;;  %6779 = vmatmul.msk.f32.gmra.mxu3 %vm436_vm0, %v5108_v55  ;;  %v2020_v15 = vmul.f32 -10.0, %v1956_v0  ;;  %v2969_v43 = vsel %vm2968_vm11, %v2966_v7, %v2963_v8  ;;  %7049 = vlog2.f32 %v2970_v12 }
 0x213   : > { %v1893_v6 = vsub.f32 %v1454_v59, %v8351_v5  ;;  %v1459_v4 = vsub.f32 1.5, %v1458_v57  ;;  %vm1464_vm12 = vcmp.eq.f32.partialorder %v8607_v1, 0.0  ;;  %v3489_v21 = vadd.f32 %v2969_v43, %v2593_v54 }
 0x214   : > { %v7044_v60 = vpop.eup %7043  ;;  %v8684_v22 = vadd.f32 %v8321_v45, %v2428_v44  ;;  %v2974_v28 = vadd.f32 1.0, %v2973_v52  ;;  %v1041_v29 = vsel %vm902_vm1, %v884_v11, 0.0  ;;  %v1465_v50 = vand.u32 2147483648, %v8607_v1 }
 0x215   : > { %v1460_v16 = vmul.f32 %v7036_v10, %v1459_v4  ;;  %v8672_v17 = vpop.xlane.xlu2 %1000  ;;  %v1957_v18 = vmul.f32 %v1893_v6, %v1893_v6  ;;  %v8687_v35 = vpop.eup %7045  ;;  %v1468_v27 = vmul.f32 %v7044_v60, %v8643_v9  ;;  %v2725_v38 = vsub.f32 0.0, %v2661_v13  ;;  %1042 = vadd.xlane.f32.xlu1 %v1041_v29 }
 0x216   : > { %v6580_v54 = vadd.f32 -0.6931472, %v3489_v21  ;;  %7051 = vrsqrt.f32 %v8672_v17  ;;  %v2112_v45 = vmul.f32 1.442695, %v2020_v15  ;;  %v2976_v34 = vand.u32 2147483647, %v8645_v47  ;;  %v787_v10 = vpop.f32.mrf.mxu0  ;;  %v7048_v23 = vpop.eup %7047 }
 0x217   : > { %v8674_v33 = vpop.f32.mrf.mxu1  ;;  %6536 = vmatmul.msk.f32.gmra.mxu1 %vm2185_vm7, %v7040_v63  ;;  %v1461_v26 = vmul.f32 %v1460_v16, %v8607_v1  ;;  %v1469_v48 = vmul.f32 %v7044_v60, %v1468_v27  ;;  %v2595_v36 = vmax.f32 %v8585_v2, 0.0  ;;  %7053 = vpow2.f32 %v2797_v20  ;;  %v8752_v27 = vld [vmem:[%s11844_s3 + $0x5] ss:$0 sm:$0xff] }
 0x218   : > { %6644 = vmatmul.msk.f32.gmra.mxu2 %vm3612_vm2, %v6580_v54  ;;  %v2662_v40 = vand.u32 2147483647, %v8684_v22  ;;  %v7050_v41 = vpop.eup %7049  ;;  %v2021_v42 = vmul.f32 -10.0, %v1957_v18  ;;  %v2975_v25 = vmul.f32 %v8645_v47, %v2974_v28  ;;  %v885_v32 = vmul.f32 %v787_v10, %v787_v10 }
 0x219   : > { %v1463_v30 = vsel %vm1462_vm10, %v8607_v1, %v1461_v26  ;;  %v1470_v46 = vmul.f32 0.5, %v1469_v48  ;;  %v2972_v58 = vmul.f32 0.6931472, %v7050_v41  ;;  %v2979_v51 = vadd.f32 1.0, %v8687_v35  ;;  %6509 = vmatmul.msk.f32.gmra.mxu0 %vm436_vm0, %v435_v37 }
 0x21a   : > { %v1466_v39 = vsel %vm1464_vm12, %v1465_v50, %v1463_v30  ;;  %v2982_v24 = vmul.f32 -0.5, %v8687_v35  ;;  %7055 = vpow2.f32 %v2112_v45  ;;  %v2799_v1 = vmul.f32 1.442695, %v2725_v38 }
 0x21b   : > { %v1894_v44 = vsub.f32 %v1466_v39, %v8351_v5  ;;  %v1471_v14 = vsub.f32 1.5, %v1470_v46  ;;  %vm2977_vm13 = vcmp.lt.f32.partialorder %v2976_v34, 0.0004427343  ;;  %v5109_v5 = vld [vmem:[%s11846_s5 + $0x30] sm:$0xff]  ;;  %vm1474_vm14 = vcmp.eq.f32.partialorder %v8643_v9, inf }
 0x21c   : > { %v7052_v59 = vpop.eup %7051  ;;  %v2726_v47 = vsub.f32 0.0, %v2662_v40  ;;  %v2978_v31 = vsel %vm2977_vm13, %v2975_v25, %v2972_v58  ;;  %7057 = vlog2.f32 %v2979_v51  ;;  %6780 = vmatmul.msk.f32.gmra.mxu3 %vm436_vm0, %v5109_v5  ;;  %v2114_v63 = vmul.f32 1.442695, %v2021_v42 }
 0x21d   : > { %v8707_v53 = vpop.xlane.xlu0 %1003  ;;  %v1472_v0 = vmul.f32 %v7044_v60, %v1471_v14  ;;  %v3490_v57 = vadd.f32 %v2978_v31, %v2594_v49  ;;  %v1480_v3 = vmul.f32 %v7052_v59, %v8672_v17  ;;  %v8720_v6 = vpop.eup %7053  ;;  %v1958_v20 = vmul.f32 %v1894_v44, %v1894_v44  ;;  %v8730_v49 = vld [vmem:[%s11844_s3] ss:$0 sm:$0xff] }
 0x21e   : > { %v2983_v7 = vadd.f32 1.0, %v2982_v24  ;;  %v1044_v55 = vsel %vm902_vm1, %v885_v32, 0.0  ;;  %7059 = vrsqrt.f32 %v8707_v53  ;;  %vm1476_vm15 = vcmp.eq.f32.partialorder %v8643_v9, 0.0 }
 0x21f   : > { %v8709_v56 = vpop.f32.mrf.mxu1  ;;  %6537 = vmatmul.msk.f32.gmra.mxu1 %vm2185_vm7, %v7048_v23  ;;  %v1473_v4 = vmul.f32 %v1472_v0, %v8643_v9  ;;  %v6581_v8 = vadd.f32 -0.6931472, %v3490_v57  ;;  %v1481_v11 = vmul.f32 %v7052_v59, %v1480_v3  ;;  %1045 = vadd.xlane.f32.xlu2 %v1044_v55  ;;  %7061 = vpow2.f32 %v2799_v1 }
 0x220   : > { %v1477_v61 = vand.u32 2147483648, %v8643_v9  ;;  %v8734_v12 = vadd.f32 %v8730_v49, %v8674_v33  ;;  %v2985_v13 = vand.u32 2147483647, %v8687_v35  ;;  %v7056_v52 = vpop.eup %7055  ;;  %7063 = vpow2.f32 %v2114_v63 }
 0x221   : > { %v1475_v15 = vsel %vm1474_vm14, %v8643_v9, %v1473_v4  ;;  %v2801_v16 = vmul.f32 1.442695, %v2726_v47  ;;  %6645 = vmatmul.msk.f32.gmra.mxu2 %vm3612_vm2, %v6581_v8  ;;  %v1482_v43 = vmul.f32 0.5, %v1481_v11  ;;  %v2022_v18 = vmul.f32 -10.0, %v1958_v20  ;;  %v5110_v9 = vld [vmem:[%s11846_s5 + $0x38] sm:$0xff] }
 0x222   : > { %v7058_v60 = vpop.eup %7057  ;;  %v1478_v33 = vsel %vm1476_vm15, %v1477_v61, %v1475_v15  ;;  %v2984_v21 = vmul.f32 %v8687_v35, %v2983_v7  ;;  %v2988_v26 = vadd.f32 1.0, %v8720_v6  ;;  %v2991_v38 = vmul.f32 -0.5, %v8720_v6 }
 0x223   : > { %v1895_v28 = vsub.f32 %v1478_v33, %v8752_v27  ;;  %v1483_v29 = vsub.f32 1.5, %v1482_v43  ;;  %v2981_v50 = vmul.f32 0.6931472, %v7058_v60  ;;  %v2596_v45 = vmax.f32 %v8612_v19, 0.0 }
 0x224   : > { %v7060_v35 = vpop.eup %7059  ;;  %v2663_v30 = vand.u32 2147483647, %v8734_v12  ;;  %vm2986_vm3 = vcmp.lt.f32.partialorder %v2985_v13, 0.0004427343  ;;  %7065 = vlog2.f32 %v2988_v26  ;;  %6781 = vmatmul.msk.f32.gmra.mxu3 %vm436_vm0, %v5110_v9  ;;  %vm1486_vm4 = vcmp.eq.f32.partialorder %v8672_v17, inf }
 0x225   : > { %v8762_v48 = vpop.xlane.xlu1 %1006  ;;  %v1484_v34 = vmul.f32 %v7052_v59, %v1483_v29  ;;  %v2987_v10 = vsel %vm2986_vm3, %v2984_v21, %v2981_v50  ;;  %v1492_v23 = vmul.f32 %v7060_v35, %v8707_v53  ;;  %v8767_v39 = vpop.eup %7061  ;;  %v2116_v40 = vmul.f32 1.442695, %v2022_v18 }
 0x226   : > { %v1959_v19 = vmul.f32 %v1895_v28, %v1895_v28  ;;  %7067 = vpow2.f32 %v2801_v16  ;;  %v3491_v41 = vadd.f32 %v2987_v10, %v2595_v36  ;;  %v7064_v42 = vpop.eup %7063  ;;  %v2992_v25 = vadd.f32 1.0, %v2991_v38 }
 0x227   : > { %v2437_v54 = vpop.f32.mrf.mxu1  ;;  %6538 = vmatmul.msk.f32.gmra.mxu1 %vm2185_vm7, %v7056_v52  ;;  %v1485_v44 = vmul.f32 %v1484_v34, %v8672_v17  ;;  %v1493_v46 = vmul.f32 %v7060_v35, %v1492_v23  ;;  %7069 = vrsqrt.f32 %v8762_v48  ;;  %v1489_v58 = vand.u32 2147483648, %v8672_v17 }
 0x228   : > { %v2727_v32 = vsub.f32 0.0, %v2663_v30  ;;  %v6582_v51 = vadd.f32 -0.6931472, %v3491_v41  ;;  %v2994_v24 = vand.u32 2147483647, %v8720_v6  ;;  %vm1488_vm5 = vcmp.eq.f32.partialorder %v8672_v17, 0.0 }
 0x229   : > { %v1487_v1 = vsel %vm1486_vm4, %v8672_v17, %v1485_v44  ;;  %v1494_v2 = vmul.f32 0.5, %v1493_v46  ;;  %v8781_v36 = vadd.f32 %v8730_v49, %v8709_v56  ;;  %7071 = vpow2.f32 %v2116_v40  ;;  %v5111_v56 = vld [vmem:[%s11846_s5 + $0x40] sm:$0xff] }
 0x22a   : > { %v7066_v14 = vpop.eup %7065  ;;  %v2023_v5 = vmul.f32 -10.0, %v1959_v19  ;;  %v1490_v59 = vsel %vm1488_vm5, %v1489_v58, %v1487_v1  ;;  %6646 = vmatmul.msk.f32.gmra.mxu2 %vm3612_vm2, %v6582_v51  ;;  %v2997_v47 = vadd.f32 1.0, %v8767_v39  ;;  %v2993_v57 = vmul.f32 %v8720_v6, %v2992_v25 }
 0x22b   : > { %v1896_v31 = vsub.f32 %v1490_v59, %v8752_v27  ;;  %v1495_v63 = vsub.f32 1.5, %v1494_v2  ;;  %v2990_v0 = vmul.f32 0.6931472, %v7066_v14  ;;  %v2803_v20 = vmul.f32 1.442695, %v2727_v32 }
 0x22c   : > { %v8792_v3 = vpop.eup %7067  ;;  %vm2995_vm6 = vcmp.lt.f32.partialorder %v2994_v24, 0.0004427343  ;;  %7073 = vlog2.f32 %v2997_v47  ;;  %v3000_v7 = vmul.f32 -0.5, %v8767_v39  ;;  %6782 = vmatmul.msk.f32.gmra.mxu3 %vm436_vm0, %v5111_v56  ;;  %vm1498_vm8 = vcmp.eq.f32.partialorder %v8707_v53, inf }
 0x22d   : > { %v8796_v55 = vpop.xlane.xlu2 %1009  ;;  %v7070_v6 = vpop.eup %7069  ;;  %v1496_v4 = vmul.f32 %v7060_v35, %v1495_v63  ;;  %v2664_v8 = vand.u32 2147483647, %v8781_v36  ;;  %v2996_v11 = vsel %vm2995_vm6, %v2993_v57, %v2990_v0  ;;  %v2118_v61 = vmul.f32 1.442695, %v2023_v5 }
 0x22e   : > { %v3492_v13 = vadd.f32 %v2996_v11, %v2596_v45  ;;  %v1504_v52 = vmul.f32 %v7070_v6, %v8762_v48  ;;  %v8803_v15 = vadd.f32 %v8730_v49, %v2437_v54  ;;  %v1960_v16 = vmul.f32 %v1896_v31, %v1896_v31 }
 0x22f   : > { %v8787_v17 = vpop.f32.mrf.mxu1  ;;  %6539 = vmatmul.msk.f32.gmra.mxu1 %vm2185_vm7, %v7064_v42  ;;  %v1497_v43 = vmul.f32 %v1496_v4, %v8707_v53  ;;  %v3001_v37 = vadd.f32 1.0, %v3000_v7  ;;  %7075 = vrsqrt.f32 %v8796_v55  ;;  %v7072_v60 = vpop.eup %7071  ;;  %v1501_v18 = vand.u32 2147483648, %v8707_v53 }
 0x230   : > { %v6583_v33 = vadd.f32 -0.6931472, %v3492_v13  ;;  %v1505_v21 = vmul.f32 %v7070_v6, %v1504_v52  ;;  %v3003_v26 = vand.u32 2147483647, %v8767_v39  ;;  %7077 = vpow2.f32 %v2803_v20 }
 0x231   : > { %v1499_v28 = vsel %vm1498_vm8, %v8707_v53, %v1497_v43  ;;  %vm1500_vm9 = vcmp.eq.f32.partialorder %v8707_v53, 0.0  ;;  %v2728_v29 = vsub.f32 0.0, %v2664_v8  ;;  %7079 = vpow2.f32 %v2118_v61 }
 0x232   : > { %v7074_v50 = vpop.eup %7073  ;;  %v1502_v38 = vsel %vm1500_vm9, %v1501_v18, %v1499_v28  ;;  %6647 = vmatmul.msk.f32.gmra.mxu2 %vm3612_vm2, %v6583_v33  ;;  %v1506_v54 = vmul.f32 0.5, %v1505_v21  ;;  %v2665_v9 = vand.u32 2147483647, %v8803_v15  ;;  %v2024_v35 = vmul.f32 -10.0, %v1960_v16 }
 0x233   : > { %v1897_v45 = vsub.f32 %v1502_v38, %v8752_v27  ;;  %v2999_v30 = vmul.f32 0.6931472, %v7074_v50  ;;  %v3002_v34 = vmul.f32 %v8767_v39, %v3001_v37  ;;  %v2597_v10 = vmax.f32 %v8656_v62, 0.0  ;;  %v5112_v39 = vld [vmem:[%s11846_s5 + $0x48] sm:$0xff] }
 0x234   : > { %v1507_v23 = vsub.f32 1.5, %v1506_v54  ;;  %vm3004_vm10 = vcmp.lt.f32.partialorder %v3003_v26, 0.0004427343  ;;  %v3006_v53 = vadd.f32 1.0, %v8792_v3  ;;  %v2805_v42 = vmul.f32 1.442695, %v2728_v29  ;;  %6783 = vmatmul.msk.f32.gmra.mxu3 %vm436_vm0, %v5112_v39 }
 0x235   : > { %v7076_v19 = vpop.eup %7075  ;;  %v1961_v41 = vmul.f32 %v1897_v45, %v1897_v45  ;;  %v3005_v44 = vsel %vm3004_vm10, %v3002_v34, %v2999_v30  ;;  %v3009_v46 = vmul.f32 -0.5, %v8792_v3  ;;  %v8821_v25 = vpop.xlane.xlu0 %1012  ;;  %v2120_v24 = vmul.f32 1.442695, %v2024_v35 }
 0x236   : > { %v1508_v62 = vmul.f32 %v7070_v6, %v1507_v23  ;;  %v3493_v58 = vadd.f32 %v3005_v44, %v2597_v10  ;;  %v1516_v32 = vmul.f32 %v7076_v19, %v8796_v55  ;;  %7081 = vlog2.f32 %v3006_v53  ;;  %v8828_v51 = vpop.eup %7077 }
 0x237   : > { %6540 = vmatmul.msk.f32.gmra.mxu1 %vm2185_vm7, %v7072_v60  ;;  %v2443_v40 = vpop.f32.mrf.mxu1  ;;  %vm1510_vm11 = vcmp.eq.f32.partialorder %v8762_v48, inf  ;;  %vm1512_vm12 = vcmp.eq.f32.partialorder %v8762_v48, 0.0  ;;  %v2729_v1 = vsub.f32 0.0, %v2665_v9  ;;  %v7080_v2 = vpop.eup %7079  ;;  %7083 = vrsqrt.f32 %v8821_v25 }
 0x238   : > { %v1509_v14 = vmul.f32 %v1508_v62, %v8762_v48  ;;  %v6584_v5 = vadd.f32 -0.6931472, %v3493_v58  ;;  %v1517_v59 = vmul.f32 %v7076_v19, %v1516_v32  ;;  %7085 = vpow2.f32 %v2805_v42 }
 0x239   : > { %v1513_v47 = vand.u32 2147483648, %v8762_v48  ;;  %v8837_v31 = vadd.f32 %v8730_v49, %v8787_v17  ;;  %v3010_v63 = vadd.f32 1.0, %v3009_v46  ;;  %v2025_v0 = vmul.f32 -10.0, %v1961_v41 }
 0x23a   : > { %v1511_v57 = vsel %vm1510_vm11, %v8762_v48, %v1509_v14  ;;  %6648 = vmatmul.msk.f32.gmra.mxu2 %vm3612_vm2, %v6584_v5  ;;  %v1518_v56 = vmul.f32 0.5, %v1517_v59  ;;  %v3012_v20 = vand.u32 2147483647, %v8792_v3  ;;  %v2598_v7 = vmax.f32 %v8684_v22, 0.0  ;;  %v5113_v48 = vld [vmem:[%s11846_s5 + $0x50] sm:$0xff] }
 0x23b   : > { %7087 = vpow2.f32 %v2120_v24  ;;  %v1514_v6 = vsel %vm1512_vm12, %v1513_v47, %v1511_v57  ;;  %v3015_v4 = vadd.f32 1.0, %v8828_v51  ;;  %v2807_v11 = vmul.f32 1.442695, %v2729_v1  ;;  %v5114_v24 = vld [vmem:[%s11846_s5 + $0x58] sm:$0xff] }
 0x23c   : > { %v7082_v8 = vpop.eup %7081  ;;  %v1898_v17 = vsub.f32 %v1514_v6, %v8752_v27  ;;  %v1519_v61 = vsub.f32 1.5, %v1518_v56  ;;  %v3018_v13 = vmul.f32 -0.5, %v8828_v51  ;;  %vm1522_vm13 = vcmp.eq.f32.partialorder %v8796_v55, inf  ;;  %6784 = vmatmul.msk.f32.gmra.mxu3 %vm436_vm0, %v5113_v48 }
 0x23d   : > { %v8849_v52 = vpop.xlane.xlu1 %1015  ;;  %v3008_v22 = vmul.f32 0.6931472, %v7082_v8  ;;  %v3011_v16 = vmul.f32 %v8792_v3, %v3010_v63  ;;  %7089 = vlog2.f32 %v3015_v4  ;;  %v7084_v43 = vpop.eup %7083  ;;  %v2122_v37 = vmul.f32 1.442695, %v2025_v0 }
 0x23e   : > { %v1520_v60 = vmul.f32 %v7076_v19, %v1519_v61  ;;  %v2666_v18 = vand.u32 2147483647, %v8837_v31  ;;  %vm3013_vm14 = vcmp.lt.f32.partialorder %v3012_v20, 0.0004427343  ;;  %v8860_v21 = vpop.eup %7085  ;;  %v1962_v26 = vmul.f32 %v1898_v17, %v1898_v17 }
 0x23f   : > { %6541 = vmatmul.msk.f32.gmra.mxu1 %vm2185_vm7, %v7080_v2  ;;  %v8857_v33 = vpop.f32.mrf.mxu1  ;;  %v3014_v28 = vsel %vm3013_vm14, %v3011_v16, %v3008_v22  ;;  %v1528_v3 = vmul.f32 %v7084_v43, %v8821_v25  ;;  %7091 = vrsqrt.f32 %v8849_v52  ;;  %v8866_v38 = vadd.f32 %v8730_v49, %v2443_v40 }
 0x240   : > { %v1521_v29 = vmul.f32 %v1520_v60, %v8796_v55  ;;  %v3494_v50 = vadd.f32 %v3014_v28, %v2598_v7  ;;  %v3019_v54 = vadd.f32 1.0, %v3018_v13  ;;  %vm1524_vm15 = vcmp.eq.f32.partialorder %v8796_v55, 0.0  ;;  %v5115_v28 = vld [vmem:[%s11846_s5 + $0x60] sm:$0xff] }
 0x241   : > { %v7088_v9 = vpop.eup %7087  ;;  %v1525_v35 = vand.u32 2147483648, %v8796_v55  ;;  %v1529_v45 = vmul.f32 %v7084_v43, %v1528_v3  ;;  %v3021_v30 = vand.u32 2147483647, %v8828_v51  ;;  %7093 = vpow2.f32 %v2807_v11 }
 0x242   : > { %v1523_v34 = vsel %vm1522_vm13, %v8796_v55, %v1521_v29  ;;  %v2730_v10 = vsub.f32 0.0, %v2666_v18  ;;  %v6585_v23 = vadd.f32 -0.6931472, %v3494_v50  ;;  %7095 = vpow2.f32 %v2122_v37 }
 0x243   : > { %v7090_v53 = vpop.eup %7089  ;;  %v2026_v40 = vmul.f32 -10.0, %v1962_v26  ;;  %v1526_v19 = vsel %vm1524_vm15, %v1525_v35, %v1523_v34  ;;  %v1530_v41 = vmul.f32 0.5, %v1529_v45  ;;  %v2667_v44 = vand.u32 2147483647, %v8866_v38 }
 0x244   : > { %v1899_v42 = vsub.f32 %v1526_v19, %v8752_v27  ;;  %6649 = vmatmul.msk.f32.gmra.mxu2 %vm3612_vm2, %v6585_v23  ;;  %v3017_v46 = vmul.f32 0.6931472, %v7090_v53  ;;  %v3020_v39 = vmul.f32 %v8828_v51, %v3019_v54  ;;  %v2599_v55 = vmax.f32 %v8734_v12, 0.0  ;;  %6785 = vmatmul.msk.f32.gmra.mxu3 %vm436_vm0, %v5114_v24 }
 0x245   : > { %v7092_v62 = vpop.eup %7091  ;;  %v1531_v58 = vsub.f32 1.5, %v1530_v41  ;;  %vm3022_vm3 = vcmp.lt.f32.partialorder %v3021_v30, 0.0004427343  ;;  %v3024_v32 = vadd.f32 1.0, %v8860_v21  ;;  %v3027_v5 = vmul.f32 -0.5, %v8860_v21  ;;  %v8886_v51 = vpop.xlane.xlu2 %1018 }
 0x246   : > { %v1963_v1 = vmul.f32 %v1899_v42, %v1899_v42  ;;  %v3023_v2 = vsel %vm3022_vm3, %v3020_v39, %v3017_v46  ;;  %v1540_v14 = vmul.f32 %v7092_v62, %v8849_v52  ;;  %v2124_v59 = vmul.f32 1.442695, %v2026_v40 }
 0x247   : > { %6542 = vmatmul.msk.f32.gmra.mxu1 %vm2185_vm7, %v7088_v9  ;;  %v1532_v12 = vmul.f32 %v7084_v43, %v1531_v58  ;;  %v3495_v47 = vadd.f32 %v3023_v2, %v2599_v55  ;;  %7097 = vlog2.f32 %v3024_v32  ;;  %v8889_v63 = vpop.eup %7093  ;;  %v2600_v0 = vmax.f32 %v8781_v36, 0.0  ;;  %v8893_v20 = vpop.f32.mrf.mxu1 }
 0x248   : > { %v2809_v57 = vmul.f32 1.442695, %v2730_v10  ;;  %vm1534_vm4 = vcmp.eq.f32.partialorder %v8821_v25, inf  ;;  %v1541_v56 = vmul.f32 %v7092_v62, %v1540_v14  ;;  %v7096_v7 = vpop.eup %7095  ;;  %v2027_v6 = vmul.f32 -10.0, %v1963_v1 }
 0x249   : > { %v1533_v4 = vmul.f32 %v1532_v12, %v8821_v25  ;;  %v6586_v8 = vadd.f32 -0.6931472, %v3495_v47  ;;  %7099 = vrsqrt.f32 %v8886_v51  ;;  %v1537_v17 = vand.u32 2147483648, %v8821_v25 }
 0x24a   : > { %v2731_v11 = vsub.f32 0.0, %v2667_v44  ;;  %v1542_v61 = vmul.f32 0.5, %v1541_v56  ;;  %v3028_v13 = vadd.f32 1.0, %v3027_v5  ;;  %7101 = vpow2.f32 %v2124_v59 }
 0x24b   : > { %v1535_v36 = vsel %vm1534_vm4, %v8821_v25, %v1533_v4  ;;  %vm1536_vm5 = vcmp.eq.f32.partialorder %v8821_v25, 0.0  ;;  %v3030_v22 = vand.u32 2147483647, %v8860_v21  ;;  %7103 = vpow2.f32 %v2809_v57 }
 0x24c   : > { %v1538_v16 = vsel %vm1536_vm5, %v1537_v17, %v1535_v36  ;;  %6650 = vmatmul.msk.f32.gmra.mxu2 %vm3612_vm2, %v6586_v8  ;;  %v1543_v48 = vsub.f32 1.5, %v1542_v61  ;;  %v8904_v43 = vadd.f32 %v8730_v49, %v8857_v33  ;;  %v2126_v60 = vmul.f32 1.442695, %v2027_v6  ;;  %6786 = vmatmul.msk.f32.gmra.mxu3 %vm436_vm0, %v5115_v28 }
 0x24d   : > { %v7098_v37 = vpop.eup %7097  ;;  %v1900_v18 = vsub.f32 %v1538_v16, %v8752_v27  ;;  %v3033_v26 = vadd.f32 1.0, %v8889_v63  ;;  %v3036_v25 = vmul.f32 -0.5, %v8889_v63  ;;  %v2811_v3 = vmul.f32 1.442695, %v2731_v11  ;;  %v8916_v35 = vpop.xlane.xlu0 %1021 }
 0x24e   : > { %v1544_v29 = vmul.f32 %v7092_v62, %v1543_v48  ;;  %v3026_v50 = vmul.f32 0.6931472, %v7098_v37  ;;  %v3029_v33 = vmul.f32 %v8860_v21, %v3028_v13  ;;  %vm1546_vm6 = vcmp.eq.f32.partialorder %v8849_v52, inf }
 0x24f   : > { %6543 = vmatmul.msk.f32.gmra.mxu1 %vm2185_vm7, %v7096_v7  ;;  %v7100_v54 = vpop.eup %7099  ;;  %v1964_v9 = vmul.f32 %v1900_v18, %v1900_v18  ;;  %vm3031_vm8 = vcmp.lt.f32.partialorder %v3030_v22, 0.0004427343  ;;  %7105 = vlog2.f32 %v3033_v26  ;;  %v2668_v30 = vand.u32 2147483647, %v8904_v43  ;;  %v8927_v44 = vpop.f32.mrf.mxu1 }
 0x250   : > { %v1545_v45 = vmul.f32 %v1544_v29, %v8849_v52  ;;  %v3032_v34 = vsel %vm3031_vm8, %v3029_v33, %v3026_v50  ;;  %v1552_v10 = vmul.f32 %v7100_v54, %v8886_v51  ;;  %v7102_v23 = vpop.eup %7101  ;;  %7107 = vpow2.f32 %v2126_v60 }
 0x251   : > { %v1549_v21 = vand.u32 2147483648, %v8849_v52  ;;  %v3496_v53 = vadd.f32 %v3032_v34, %v2600_v0  ;;  %v3037_v40 = vadd.f32 1.0, %v3036_v25  ;;  %v8922_v19 = vpop.eup %7103  ;;  %vm1548_vm9 = vcmp.eq.f32.partialorder %v8849_v52, 0.0  ;;  %v5116_v0 = vld [vmem:[%s11846_s5 + $0x68] sm:$0xff] }
 0x252   : > { %v1547_v41 = vsel %vm1546_vm6, %v8849_v52, %v1545_v45  ;;  %v1553_v42 = vmul.f32 %v7100_v54, %v1552_v10  ;;  %7109 = vrsqrt.f32 %v8916_v35  ;;  %v2028_v46 = vmul.f32 -10.0, %v1964_v9 }
 0x253   : > { %v1550_v39 = vsel %vm1548_vm9, %v1549_v21, %v1547_v41  ;;  %v6587_v62 = vadd.f32 -0.6931472, %v3496_v53  ;;  %v3039_v55 = vand.u32 2147483647, %v8889_v63  ;;  %v2732_v32 = vsub.f32 0.0, %v2668_v30  ;;  %v5117_v21 = vld [vmem:[%s11846_s5 + $0x70] sm:$0xff] }
 0x254   : > { %v1901_v58 = vsub.f32 %v1550_v39, %v8752_v27  ;;  %v1554_v24 = vmul.f32 0.5, %v1553_v42  ;;  %7111 = vpow2.f32 %v2811_v3  ;;  %v8935_v52 = vadd.f32 %v8730_v49, %v8893_v20  ;;  %6787 = vmatmul.msk.f32.gmra.mxu3 %vm436_vm0, %v5116_v0 }
 0x255   : > { %v7106_v1 = vpop.eup %7105  ;;  %6651 = vmatmul.msk.f32.gmra.mxu2 %vm3612_vm2, %v6587_v62  ;;  %v3038_v2 = vmul.f32 %v8889_v63, %v3037_v40  ;;  %v3042_v14 = vadd.f32 1.0, %v8922_v19  ;;  %v3045_v47 = vmul.f32 -0.5, %v8922_v19  ;;  %v2601_v56 = vmax.f32 %v8803_v15, 0.0  ;;  %v8944_v20 = vpop.xlane.xlu1 %1024 }
 0x256   : > { %v1965_v5 = vmul.f32 %v1901_v58, %v1901_v58  ;;  %v1555_v59 = vsub.f32 1.5, %v1554_v24  ;;  %v3035_v12 = vmul.f32 0.6931472, %v7106_v1  ;;  %v7108_v57 = vpop.eup %7107  ;;  %v2128_v7 = vmul.f32 1.442695, %v2028_v46 }
 0x257   : > { %6544 = vmatmul.msk.f32.gmra.mxu1 %vm2185_vm7, %v7102_v23  ;;  %vm3040_vm10 = vcmp.lt.f32.partialorder %v3039_v55, 0.0004427343  ;;  %7113 = vlog2.f32 %v3042_v14  ;;  %v2813_v6 = vmul.f32 1.442695, %v2732_v32  ;;  %vm1558_vm11 = vcmp.eq.f32.partialorder %v8886_v51, inf }
 0x258   : > { %v7110_v63 = vpop.eup %7109  ;;  %v1556_v4 = vmul.f32 %v7100_v54, %v1555_v59  ;;  %v3041_v8 = vsel %vm3040_vm10, %v3038_v2, %v3035_v12  ;;  %v2029_v17 = vmul.f32 -10.0, %v1965_v5  ;;  %v2669_v11 = vand.u32 2147483647, %v8935_v52 }
 0x259   : > { %v3497_v61 = vadd.f32 %v3041_v8, %v2601_v56  ;;  %v1564_v13 = vmul.f32 %v7110_v63, %v8916_v35  ;;  %v1561_v36 = vand.u32 2147483648, %v8886_v51  ;;  %v3046_v22 = vadd.f32 1.0, %v3045_v47 }
 0x25a   : > { %v1557_v15 = vmul.f32 %v1556_v4, %v8886_v51  ;;  %7115 = vrsqrt.f32 %v8944_v20  ;;  %v8953_v16 = vpop.eup %7111  ;;  %v3048_v60 = vand.u32 2147483647, %v8922_v19  ;;  %v2602_v18 = vmax.f32 %v8837_v31, 0.0 }
 0x25b   : > { %7117 = vpow2.f32 %v2128_v7  ;;  %v6588_v48 = vadd.f32 -0.6931472, %v3497_v61  ;;  %v1565_v37 = vmul.f32 %v7110_v63, %v1564_v13  ;;  %vm1560_vm12 = vcmp.eq.f32.partialorder %v8886_v51, 0.0  ;;  %v8962_v25 = vpop.f32.mrf.mxu1  ;;  %v8985_v2 = vpop.f32.mrf.mxu2 }
 0x25c   : > { %v1559_v26 = vsel %vm1558_vm11, %v8886_v51, %v1557_v15  ;;  %v2130_v3 = vmul.f32 1.442695, %v2029_v17  ;;  %v2733_v50 = vsub.f32 0.0, %v2669_v11  ;;  %v3047_v9 = vmul.f32 %v8922_v19, %v3046_v22  ;;  %6788 = vmatmul.msk.f32.gmra.mxu3 %vm436_vm0, %v5117_v21 }
 0x25d   : > { %v7114_v28 = vpop.eup %7113  ;;  %v1562_v29 = vsel %vm1560_vm12, %v1561_v36, %v1559_v26  ;;  %6652 = vmatmul.msk.f32.gmra.mxu2 %vm3612_vm2, %v6588_v48  ;;  %v1566_v33 = vmul.f32 0.5, %v1565_v37  ;;  %v3051_v45 = vadd.f32 1.0, %v8953_v16  ;;  %7119 = vpow2.f32 %v2813_v6  ;;  %v8977_v46 = vpop.xlane.xlu2 %1027 }
 0x25e   : > { %v1902_v54 = vsub.f32 %v1562_v29, %v8752_v27  ;;  %v3044_v31 = vmul.f32 0.6931472, %v7114_v28  ;;  %vm3049_vm13 = vcmp.lt.f32.partialorder %v3048_v60, 0.0004427343  ;;  %v3054_v30 = vmul.f32 -0.5, %v8953_v16 }
 0x25f   : > { %6545 = vmatmul.msk.f32.gmra.mxu1 %vm2185_vm7, %v7108_v57  ;;  %v1567_v51 = vsub.f32 1.5, %v1566_v33  ;;  %7121 = vlog2.f32 %v3051_v45  ;;  %v8974_v19 = vadd.f32 %v8730_v49, %v8927_v44  ;;  %v2815_v62 = vmul.f32 1.442695, %v2733_v50  ;;  %v5118_v33 = vld [vmem:[%s11846_s5 + $0x78] sm:$0xff] }
 0x260   : > { %v7116_v34 = vpop.eup %7115  ;;  %v1966_v10 = vmul.f32 %v1902_v54, %v1902_v54  ;;  %v3050_v23 = vsel %vm3049_vm13, %v3047_v9, %v3044_v31  ;;  %7123 = vpow2.f32 %v2130_v3  ;;  %v3055_v24 = vadd.f32 1.0, %v3054_v30 }
 0x261   : > { %v7118_v53 = vpop.eup %7117  ;;  %v1568_v40 = vmul.f32 %v7110_v63, %v1567_v51  ;;  %v3498_v41 = vadd.f32 %v3050_v23, %v2602_v18  ;;  %v1576_v42 = vmul.f32 %v7116_v34, %v8944_v20  ;;  %vm1570_vm14 = vcmp.eq.f32.partialorder %v8916_v35, inf }
 0x262   : > { %v2030_v39 = vmul.f32 -10.0, %v1966_v10  ;;  %v1573_v44 = vand.u32 2147483648, %v8916_v35  ;;  %v3057_v1 = vand.u32 2147483647, %v8953_v16  ;;  %7125 = vrsqrt.f32 %v8977_v46 }
 0x263   : > { %v1569_v55 = vmul.f32 %v1568_v40, %v8916_v35  ;;  %v6589_v58 = vadd.f32 -0.6931472, %v3498_v41  ;;  %v1577_v32 = vmul.f32 %v7116_v34, %v1576_v42  ;;  %v8988_v14 = vpop.eup %7119  ;;  %vm1572_vm15 = vcmp.eq.f32.partialorder %v8916_v35, 0.0  ;;  %v9020_v9 = vpop.f32.mrf.mxu2 }
 0x264   : > { %v2670_v59 = vand.u32 2147483647, %v8974_v19  ;;  %v2132_v0 = vmul.f32 1.442695, %v2030_v39  ;;  %v8994_v56 = vpop.f32.mrf.mxu1  ;;  %v3056_v4 = vmul.f32 %v8953_v16, %v3055_v24  ;;  %v2603_v17 = vmax.f32 %v8866_v38, 0.0  ;;  %6789 = vmatmul.msk.f32.gmra.mxu3 %vm436_vm0, %v5118_v33 }
 0x265   : > { %v1571_v5 = vsel %vm1570_vm14, %v8916_v35, %v1569_v55  ;;  %6653 = vmatmul.msk.f32.gmra.mxu2 %vm3612_vm2, %v6589_v58  ;;  %v1578_v12 = vmul.f32 0.5, %v1577_v32  ;;  %v7122_v47 = vpop.eup %7121  ;;  %7127 = vpow2.f32 %v2815_v62  ;;  %vm3058_vm3 = vcmp.lt.f32.partialorder %v3057_v1, 0.0004427343  ;;  %v9003_v38 = vpop.xlane.xlu0 %1030 }
 0x266   : > { %v1574_v57 = vsel %vm1572_vm15, %v1573_v44, %v1571_v5  ;;  %v3053_v6 = vmul.f32 0.6931472, %v7122_v47  ;;  %v7124_v8 = vpop.eup %7123  ;;  %v3060_v35 = vadd.f32 1.0, %v8988_v14  ;;  %v2734_v61 = vsub.f32 0.0, %v2670_v59 }
 0x267   : > { %6546 = vmatmul.msk.f32.gmra.mxu1 %vm2185_vm7, %v7118_v53  ;;  %v1903_v7 = vsub.f32 %v1574_v57, %v8752_v27  ;;  %v1579_v63 = vsub.f32 1.5, %v1578_v12  ;;  %7129 = vpow2.f32 %v2132_v0  ;;  %v3063_v48 = vmul.f32 -0.5, %v8988_v14  ;;  %v5119_v12 = vld [vmem:[%s11846_s5 + $0x80] sm:$0xff] }
 0x268   : > { %v3059_v15 = vsel %vm3058_vm3, %v3056_v4, %v3053_v6  ;;  %v7126_v36 = vpop.eup %7125  ;;  %7131 = vlog2.f32 %v3060_v35  ;;  %vm1582_vm4 = vcmp.eq.f32.partialorder %v8944_v20, inf  ;;  %v1585_v18 = vand.u32 2147483648, %v8944_v20 }
 0x269   : > { %v1967_v11 = vmul.f32 %v1903_v7, %v1903_v7  ;;  %v1580_v13 = vmul.f32 %v7116_v34, %v1579_v63  ;;  %v3499_v22 = vadd.f32 %v3059_v15, %v2603_v17  ;;  %v1588_v16 = vmul.f32 %v7126_v36, %v8977_v46 }
 0x26a   : > { %v9009_v26 = vadd.f32 %v8730_v49, %v8962_v25  ;;  %v2817_v3 = vmul.f32 1.442695, %v2734_v61  ;;  %vm1584_vm5 = vcmp.eq.f32.partialorder %v8944_v20, 0.0  ;;  %v3064_v25 = vadd.f32 1.0, %v3063_v48 }
 0x26b   : > { %v2031_v37 = vmul.f32 -10.0, %v1967_v11  ;;  %v1581_v60 = vmul.f32 %v1580_v13, %v8944_v20  ;;  %v6590_v28 = vadd.f32 -0.6931472, %v3499_v22  ;;  %v1589_v50 = vmul.f32 %v7126_v36, %v1588_v16  ;;  %v9017_v54 = vpop.eup %7127 }
 0x26c   : > { %7133 = vrsqrt.f32 %v9003_v38  ;;  %v3066_v30 = vand.u32 2147483647, %v8988_v14  ;;  %v2671_v10 = vand.u32 2147483647, %v9009_v26  ;;  %v2604_v53 = vmax.f32 %v8904_v43, 0.0  ;;  %6790 = vmatmul.msk.f32.gmra.mxu3 %vm436_vm0, %v5119_v12 }
 0x26d   : > { %v1583_v29 = vsel %vm1582_vm4, %v8944_v20, %v1581_v60  ;;  %6654 = vmatmul.msk.f32.gmra.mxu2 %vm3612_vm2, %v6590_v28  ;;  %v2134_v45 = vmul.f32 1.442695, %v2031_v37  ;;  %v1590_v51 = vmul.f32 0.5, %v1589_v50  ;;  %v7130_v34 = vpop.eup %7129  ;;  %7135 = vpow2.f32 %v2817_v3  ;;  %v9046_v57 = vpop.xlane.xlu1 %1033 }
 0x26e   : > { %v1586_v31 = vsel %vm1584_vm5, %v1585_v18, %v1583_v29  ;;  %v9027_v23 = vpop.f32.mrf.mxu1  ;;  %v7132_v21 = vpop.eup %7131  ;;  %v3065_v39 = vmul.f32 %v8988_v14, %v3064_v25  ;;  %v3069_v62 = vadd.f32 1.0, %v9017_v54  ;;  %v3072_v55 = vmul.f32 -0.5, %v9017_v54 }
 0x26f   : > { %6547 = vmatmul.msk.f32.gmra.mxu1 %vm2185_vm7, %v7124_v8  ;;  %v1904_v20 = vsub.f32 %v1586_v31, %v8752_v27  ;;  %v1591_v41 = vsub.f32 1.5, %v1590_v51  ;;  %v3062_v42 = vmul.f32 0.6931472, %v7132_v21  ;;  %7137 = vpow2.f32 %v2134_v45 }
 0x270   : > { %vm3067_vm6 = vcmp.lt.f32.partialorder %v3066_v30, 0.0004427343  ;;  %v2735_v44 = vsub.f32 0.0, %v2671_v10  ;;  %7139 = vlog2.f32 %v3069_v62  ;;  %v9037_v5 = vadd.f32 %v8730_v49, %v8994_v56  ;;  %v9053_v11 = vpop.f32.mrf.mxu2 }
 0x271   : > { %v1968_v40 = vmul.f32 %v1904_v20, %v1904_v20  ;;  %v1592_v32 = vmul.f32 %v7126_v36, %v1591_v41  ;;  %v3068_v1 = vsel %vm3067_vm6, %v3065_v39, %v3062_v42  ;;  %vm1594_vm8 = vcmp.eq.f32.partialorder %v8977_v46, inf }
 0x272   : > { %v7134_v24 = vpop.eup %7133  ;;  %v3500_v14 = vadd.f32 %v3068_v1, %v2604_v53  ;;  %vm1596_vm9 = vcmp.eq.f32.partialorder %v8977_v46, 0.0  ;;  %v1597_v47 = vand.u32 2147483648, %v8977_v46  ;;  %v3073_v0 = vadd.f32 1.0, %v3072_v55 }
 0x273   : > { %v2032_v58 = vmul.f32 -10.0, %v1968_v40  ;;  %v1593_v43 = vmul.f32 %v1592_v32, %v8977_v46  ;;  %v1600_v59 = vmul.f32 %v7134_v24, %v9003_v38  ;;  %v9049_v56 = vpop.eup %7135  ;;  %v2819_v8 = vmul.f32 1.442695, %v2735_v44 }
 0x274   : > { %v6591_v6 = vadd.f32 -0.6931472, %v3500_v14  ;;  %v3075_v35 = vand.u32 2147483647, %v9017_v54  ;;  %v2672_v15 = vand.u32 2147483647, %v9037_v5  ;;  %7141 = vrsqrt.f32 %v9046_v57 }
 0x275   : > { %v2136_v7 = vmul.f32 1.442695, %v2032_v58  ;;  %v1595_v63 = vsel %vm1594_vm8, %v8977_v46, %v1593_v43  ;;  %v1601_v4 = vmul.f32 %v7134_v24, %v1600_v59  ;;  %v7138_v61 = vpop.eup %7137  ;;  %v3074_v46 = vmul.f32 %v9017_v54, %v3073_v0  ;;  %v9092_v59 = vpop.f32.mrf.mxu0 }
 0x276   : > { %v1598_v17 = vsel %vm1596_vm9, %v1597_v47, %v1595_v63  ;;  %6655 = vmatmul.msk.f32.gmra.mxu2 %vm3612_vm2, %v6591_v6  ;;  %v7140_v22 = vpop.eup %7139  ;;  %v2605_v18 = vmax.f32 %v8935_v52, 0.0  ;;  %vm3076_vm10 = vcmp.lt.f32.partialorder %v3075_v35, 0.0004427343  ;;  %v3078_v28 = vadd.f32 1.0, %v9049_v56  ;;  %v5120_v52 = vld [vmem:[%s11846_s5 + $0x88] sm:$0xff]  ;;  %v9073_v10 = vpop.xlane.xlu2 %1036 }
 0x277   : > { %6548 = vmatmul.msk.f32.gmra.mxu1 %vm2185_vm7, %v7130_v34  ;;  %v1905_v13 = vsub.f32 %v1598_v17, %v8752_v27  ;;  %v1602_v36 = vmul.f32 0.5, %v1601_v4  ;;  %7143 = vpow2.f32 %v2136_v7  ;;  %v3071_v16 = vmul.f32 0.6931472, %v7140_v22  ;;  %6791 = vmatmul.msk.f32.gmra.mxu3 %vm436_vm0, %v5120_v52  ;;  %v9110_v22 = vld [vmem:[%s11844_s3] ss:$0 sm:$0xff] }
 0x278   : > { %7145 = vpow2.f32 %v2819_v8  ;;  %v2736_v29 = vsub.f32 0.0, %v2672_v15  ;;  %v3081_v54 = vmul.f32 -0.5, %v9049_v56  ;;  %vm1606_vm11 = vcmp.eq.f32.partialorder %v9003_v38, inf  ;;  %v9081_v55 = vpop.f32.mrf.mxu2 }
 0x279   : > { %v1969_v37 = vmul.f32 %v1905_v13, %v1905_v13  ;;  %v1603_v60 = vsub.f32 1.5, %v1602_v36  ;;  %v3077_v33 = vsel %vm3076_vm10, %v3074_v46, %v3071_v16  ;;  %7147 = vlog2.f32 %v3078_v28  ;;  %v9117_v16 = vpop.f32.mrf.mxu3 }
 0x27a   : > { %v3501_v31 = vadd.f32 %v3077_v33, %v2605_v18  ;;  %v7142_v25 = vpop.eup %7141  ;;  %v1609_v51 = vand.u32 2147483648, %v9003_v38  ;;  %v2821_v53 = vmul.f32 1.442695, %v2736_v29  ;;  %vm1608_vm12 = vcmp.eq.f32.partialorder %v9003_v38, 0.0  ;;  %11881 = vst [vmem:[#allocation2_spill] sm:$0xff] %v9117_v16 }
 0x27b   : > { %v2033_v3 = vmul.f32 -10.0, %v1969_v37  ;;  %v1604_v50 = vmul.f32 %v7134_v24, %v1603_v60  ;;  %v1612_v34 = vmul.f32 %v7142_v25, %v9046_v57  ;;  %v3082_v62 = vadd.f32 1.0, %v3081_v54 }
 0x27c   : > { %v9060_v48 = vpop.f32.mrf.mxu1  ;;  %v6592_v30 = vadd.f32 -0.6931472, %v3501_v31  ;;  %v3084_v32 = vand.u32 2147483647, %v9049_v56  ;;  %v9088_v24 = vadd.f32 %v8730_v49, %v9027_v23  ;;  %v2606_v49 = vmax.f32 %v8974_v19, 0.0 }
 0x27d   : > { %v2138_v45 = vmul.f32 1.442695, %v2033_v3  ;;  %v1605_v20 = vmul.f32 %v1604_v50, %v9003_v38  ;;  %v7144_v21 = vpop.eup %7143  ;;  %v1613_v39 = vmul.f32 %v7142_v25, %v1612_v34  ;;  %v3083_v47 = vmul.f32 %v9049_v56, %v3082_v62  ;;  %v9134_v31 = vld [vmem:[%s11844_s3 + $0x5] ss:$0 sm:$0xff]  ;;  %v9144_v34 = vpop.f32.mrf.mxu0 }
 0x27e   : > { %v9078_v41 = vpop.eup %7145  ;;  %6656 = vmatmul.msk.f32.gmra.mxu2 %vm3612_vm2, %v6592_v30  ;;  %vm3085_vm13 = vcmp.lt.f32.partialorder %v3084_v32, 0.0004427343  ;;  %v2673_v63 = vand.u32 2147483647, %v9088_v24  ;;  %vm1618_vm14 = vcmp.eq.f32.partialorder %v9046_v57, inf  ;;  %vm1620_vm15 = vcmp.eq.f32.partialorder %v9046_v57, 0.0 }
 0x27f   : > { %6549 = vmatmul.msk.f32.gmra.mxu1 %vm2185_vm7, %v7138_v61  ;;  %v1607_v40 = vsel %vm1606_vm11, %v9003_v38, %v1605_v20  ;;  %7149 = vpow2.f32 %v2138_v45  ;;  %v1614_v38 = vmul.f32 0.5, %v1613_v39  ;;  %v7148_v1 = vpop.eup %7147  ;;  %v3087_v14 = vadd.f32 1.0, %v9078_v41  ;;  %v9100_v56 = vpop.xlane.xlu0 %1039 }
 0x280   : > { %v1610_v42 = vsel %vm1608_vm12, %v1609_v51, %v1607_v40  ;;  %7151 = vrsqrt.f32 %v9073_v10  ;;  %v3080_v12 = vmul.f32 0.6931472, %v7148_v1  ;;  %v3090_v0 = vmul.f32 -0.5, %v9078_v41 }
 0x281   : > { %v1906_v58 = vsub.f32 %v1610_v42, %v8752_v27  ;;  %7153 = vpow2.f32 %v2821_v53  ;;  %v1615_v27 = vsub.f32 1.5, %v1614_v38  ;;  %v1621_v19 = vand.u32 2147483648, %v9046_v57 }
 0x282   : > { %7155 = vlog2.f32 %v3087_v14  ;;  %v3086_v4 = vsel %vm3085_vm13, %v3083_v47, %v3080_v12  ;;  %v3091_v15 = vadd.f32 1.0, %v3090_v0  ;;  %v9114_v46 = vadd.f32 %v9110_v22, %v9060_v48 }
 0x283   : > { %v1970_v43 = vmul.f32 %v1906_v58, %v1906_v58  ;;  %v1616_v6 = vmul.f32 %v7142_v25, %v1615_v27  ;;  %v3502_v35 = vadd.f32 %v3086_v4, %v2606_v49  ;;  %v3093_v60 = vand.u32 2147483647, %v9078_v41 }
 0x284   : > { %v2467_v44 = vpop.f32.mrf.mxu1  ;;  %v2607_v48 = vmax.f32 %v9009_v26, 0.0  ;;  %v3092_v20 = vmul.f32 %v9078_v41, %v3091_v15  ;;  %v5121_v26 = vld [vmem:[%s11846_s5 + $0x90] sm:$0xff]  ;;  %v2674_v51 = vand.u32 2147483647, %v9114_v46  ;;  %vm1630_vm4 = vcmp.eq.f32.partialorder %v9073_v10, inf }
 0x285   : > { %v2034_v23 = vmul.f32 -10.0, %v1970_v43  ;;  %v7150_v7 = vpop.eup %7149  ;;  %v1617_v61 = vmul.f32 %v1616_v6, %v9046_v57  ;;  %v6593_v37 = vadd.f32 -0.6931472, %v3502_v35  ;;  %v9121_v3 = vadd.f32 %v9110_v22, %v2467_v44  ;;  %6792 = vmatmul.msk.f32.gmra.mxu3 %vm436_vm0, %v5121_v26 }
 0x286   : > { %v7152_v8 = vpop.eup %7151  ;;  %vm3094_vm3 = vcmp.lt.f32.partialorder %v3093_v60, 0.0004427343  ;;  %v2738_v12 = vsub.f32 0.0, %v2674_v51  ;;  %v1633_v49 = vand.u32 2147483648, %v9073_v10  ;;  %vm1632_vm5 = vcmp.eq.f32.partialorder %v9073_v10, 0.0 }
 0x287   : > { %6550 = vmatmul.msk.f32.gmra.mxu1 %vm2185_vm7, %v7144_v21  ;;  %v2140_v17 = vmul.f32 1.442695, %v2034_v23  ;;  %v1624_v13 = vmul.f32 %v7152_v8, %v9073_v10  ;;  %v9105_v36 = vpop.eup %7153  ;;  %v1619_v18 = vsel %vm1618_vm14, %v9046_v57, %v1617_v61  ;;  %6657 = vmatmul.msk.f32.gmra.mxu2 %vm3612_vm2, %v6593_v37  ;;  %v2737_v57 = vsub.f32 0.0, %v2673_v63  ;;  %v9157_v63 = vpop.f32.mrf.mxu3 }
 0x288   : > { %v7156_v50 = vpop.eup %7155  ;;  %v1622_v33 = vsel %vm1620_vm15, %v1621_v19, %v1619_v18  ;;  %v3096_v30 = vadd.f32 1.0, %v9105_v36  ;;  %v2675_v40 = vand.u32 2147483647, %v9121_v3  ;;  %v3099_v62 = vmul.f32 -0.5, %v9105_v36  ;;  %11882 = vst [vmem:[#allocation3_spill] sm:$0xff] %v9157_v63 }
 0x289   : > { %7157 = vpow2.f32 %v2140_v17  ;;  %v1625_v28 = vmul.f32 %v7152_v8, %v1624_v13  ;;  %v1907_v54 = vsub.f32 %v1622_v33, %v9134_v31  ;;  %v3089_v45 = vmul.f32 0.6931472, %v7156_v50 }
 0x28a   : > { %v9123_v29 = vpop.f32.mrf.mxu2  ;;  %7159 = vrsqrt.f32 %v9100_v56  ;;  %v2823_v44 = vmul.f32 1.442695, %v2737_v57  ;;  %v2739_v0 = vsub.f32 0.0, %v2675_v40  ;;  %v2825_v13 = vmul.f32 1.442695, %v2738_v12 }
 0x28b   : > { %v1626_v25 = vmul.f32 0.5, %v1625_v28  ;;  %v1971_v21 = vmul.f32 %v1907_v54, %v1907_v54  ;;  %v3095_v41 = vsel %vm3094_vm3, %v3092_v20, %v3089_v45  ;;  %7161 = vlog2.f32 %v3096_v30 }
 0x28c   : > { %v2470_v52 = vpop.f32.mrf.mxu1  ;;  %v3503_v39 = vadd.f32 %v3095_v41, %v2607_v48  ;;  %v2827_v37 = vmul.f32 1.442695, %v2739_v0  ;;  %v3102_v60 = vand.u32 2147483647, %v9105_v36  ;;  %v9170_v48 = vpop.f32.mrf.mxu0  ;;  %v2608_v33 = vmax.f32 %v9037_v5, 0.0 }
 0x28d   : > { %v1627_v53 = vsub.f32 1.5, %v1626_v25  ;;  %v2035_v32 = vmul.f32 -10.0, %v1971_v21  ;;  %v9150_v14 = vadd.f32 %v9110_v22, %v2470_v52  ;;  %vm1642_vm8 = vcmp.eq.f32.partialorder %v9100_v56, inf }
 0x28e   : > { %v6594_v1 = vadd.f32 -0.6931472, %v3503_v39  ;;  %vm3103_vm6 = vcmp.lt.f32.partialorder %v3102_v60, 0.0004427343  ;;  %v1645_v5 = vand.u32 2147483648, %v9100_v56  ;;  %vm1644_vm9 = vcmp.eq.f32.partialorder %v9100_v56, 0.0 }
 0x28f   : > { %6551 = vmatmul.msk.f32.gmra.mxu1 %vm2185_vm7, %v7150_v7  ;;  %v7158_v42 = vpop.eup %7157  ;;  %v1628_v38 = vmul.f32 %v7152_v8, %v1627_v53  ;;  %v2142_v27 = vmul.f32 1.442695, %v2035_v32  ;;  %v3100_v7 = vadd.f32 1.0, %v3099_v62  ;;  %v9163_v8 = vpop.xlane.xlu1 %1042  ;;  %v2676_v61 = vand.u32 2147483647, %v9150_v14 }
 0x290   : > { %v7160_v58 = vpop.eup %7159  ;;  %6658 = vmatmul.msk.f32.gmra.mxu2 %vm3612_vm2, %v6594_v1  ;;  %v9184_v39 = vpop.f32.mrf.mxu3  ;;  %vm1654_vm10 = vcmp.eq.f32.partialorder %v9163_v8, inf  ;;  %vm1656_vm11 = vcmp.eq.f32.partialorder %v9163_v8, 0.0 }
 0x291   : > { %v1636_v43 = vmul.f32 %v7160_v58, %v9100_v56  ;;  %v1629_v47 = vmul.f32 %v1628_v38, %v9073_v10  ;;  %7163 = vpow2.f32 %v2142_v27  ;;  %v7162_v19 = vpop.eup %7161  ;;  %v2740_v45 = vsub.f32 0.0, %v2676_v61  ;;  %11883 = vst [vmem:[#allocation4_spill] sm:$0xff] %v9184_v39 }
 0x292   : > { %v9161_v4 = vpop.f32.mrf.mxu2  ;;  %7165 = vpow2.f32 %v2823_v44  ;;  %v3098_v50 = vmul.f32 0.6931472, %v7162_v19  ;;  %v9191_v44 = vpop.xlane.xlu2 %1045  ;;  %v2609_v19 = vmax.f32 %v9088_v24, 0.0 }
 0x293   : > { %v1637_v23 = vmul.f32 %v7160_v58, %v1636_v43  ;;  %v1631_v6 = vsel %vm1630_vm4, %v9073_v10, %v1629_v47  ;;  %v3101_v10 = vmul.f32 %v9105_v36, %v3100_v7  ;;  %7167 = vrsqrt.f32 %v9163_v8  ;;  %v5122_v43 = vld [vmem:[%s11846_s5 + $0x98] sm:$0xff] }
 0x294   : > { %v1634_v17 = vsel %vm1632_vm5, %v1633_v49, %v1631_v6  ;;  %v2473_v18 = vpop.f32.mrf.mxu1  ;;  %7169 = vpow2.f32 %v2825_v13  ;;  %v2829_v41 = vmul.f32 1.442695, %v2740_v45  ;;  %v9199_v12 = vpop.f32.mrf.mxu0  ;;  %6793 = vmatmul.msk.f32.gmra.mxu3 %vm436_vm0, %v5122_v43  ;;  %vm1666_vm15 = vcmp.eq.f32.partialorder %v9191_v44, inf }
 0x295   : > { %v1638_v35 = vmul.f32 0.5, %v1637_v23  ;;  %v1908_v15 = vsub.f32 %v1634_v17, %v9134_v31  ;;  %v3104_v20 = vsel %vm3103_vm6, %v3101_v10, %v3098_v50  ;;  %7171 = vpow2.f32 %v2827_v37 }
 0x296   : > { %v3504_v57 = vadd.f32 %v3104_v20, %v2608_v33  ;;  %v5123_v33 = vld [vmem:[%s11846_s5 + $0xa0] sm:$0xff]  ;;  %vm1668_vm3 = vcmp.eq.f32.partialorder %v9191_v44, 0.0 }
 0x297   : > { %6552 = vmatmul.msk.f32.gmra.mxu1 %vm2185_vm7, %v7158_v42  ;;  %v1639_v28 = vsub.f32 1.5, %v1638_v35  ;;  %v1972_v54 = vmul.f32 %v1908_v15, %v1908_v15  ;;  %v7164_v52 = vpop.eup %7163  ;;  %v9182_v42 = vadd.f32 %v9110_v22, %v2473_v18  ;;  %v886_v35 = vmul.f32 %v9092_v59, %v9092_v59 }
 0x298   : > { %v9173_v51 = vpop.eup %7165  ;;  %v6595_v21 = vadd.f32 -0.6931472, %v3504_v57  ;;  %v9225_v20 = vpop.f32.mrf.mxu3 }
 0x299   : > { %v1640_v25 = vmul.f32 %v7160_v58, %v1639_v28  ;;  %v2036_v26 = vmul.f32 -10.0, %v1972_v54  ;;  %v7168_v53 = vpop.eup %7167  ;;  %v3105_v58 = vadd.f32 1.0, %v9173_v51  ;;  %v2677_v49 = vand.u32 2147483647, %v9182_v42  ;;  %11884 = vst [vmem:[#allocation5_spill] sm:$0xff] %v9225_v20 }
 0x29a   : > { %6659 = vmatmul.msk.f32.gmra.mxu2 %vm3612_vm2, %v6595_v21  ;;  %v9193_v1 = vpop.eup %7169  ;;  %v3108_v23 = vmul.f32 -0.5, %v9173_v51  ;;  %v3111_v59 = vand.u32 2147483647, %v9173_v51  ;;  %v1047_v54 = vsel %vm902_vm1, %v886_v35, 0.0 }
 0x29b   : > { %v1641_v36 = vmul.f32 %v1640_v25, %v9100_v56  ;;  %v2144_v30 = vmul.f32 1.442695, %v2036_v26  ;;  %v9188_v32 = vpop.f32.mrf.mxu2  ;;  %v9201_v47 = vpop.eup %7171  ;;  %v2741_v17 = vsub.f32 0.0, %v2677_v49  ;;  %v3114_v45 = vadd.f32 1.0, %v9193_v1  ;;  %1048 = vadd.xlane.f32.xlu0 %v1047_v54 }
 0x29c   : > { %v2476_v27 = vpop.f32.mrf.mxu1  ;;  %v3123_v13 = vadd.f32 1.0, %v9201_v47  ;;  %v3126_v37 = vmul.f32 -0.5, %v9201_v47  ;;  %v3109_v28 = vadd.f32 1.0, %v3108_v23  ;;  %v3129_v50 = vand.u32 2147483647, %v9201_v47  ;;  %6794 = vmatmul.msk.f32.gmra.mxu3 %vm436_vm0, %v5123_v33 }
 0x29d   : > { %v1643_v40 = vsel %vm1642_vm8, %v9100_v56, %v1641_v36  ;;  %7173 = vpow2.f32 %v2144_v30  ;;  %v1648_v56 = vmul.f32 %v7168_v53, %v9163_v8  ;;  %v2831_v18 = vmul.f32 1.442695, %v2741_v17  ;;  %v9231_v36 = vpop.f32.mrf.mxu0 }
 0x29e   : > { %v1646_v62 = vsel %vm1644_vm9, %v1645_v5, %v1643_v40  ;;  %7175 = vpow2.f32 %v2829_v41  ;;  %v9222_v25 = vadd.f32 %v9110_v22, %v2476_v27  ;;  %v3110_v21 = vmul.f32 %v9173_v51, %v3109_v28 }
 0x29f   : > { %6553 = vmatmul.msk.f32.gmra.mxu1 %vm2185_vm7, %v7164_v52  ;;  %v1909_v38 = vsub.f32 %v1646_v62, %v9134_v31  ;;  %v1649_v7 = vmul.f32 %v7168_v53, %v1648_v56  ;;  %7177 = vlog2.f32 %v3105_v58  ;;  %vm3112_vm12 = vcmp.lt.f32.partialorder %v3111_v59, 0.0004427343 }
 0x2a0   : > { %7179 = vrsqrt.f32 %v9191_v44  ;;  %v2678_v40 = vand.u32 2147483647, %v9222_v25  ;;  %v3117_v43 = vmul.f32 -0.5, %v9193_v1  ;;  %v3120_v17 = vand.u32 2147483647, %v9193_v1 }
 0x2a1   : > { %v1973_v0 = vmul.f32 %v1909_v38, %v1909_v38  ;;  %v1650_v15 = vmul.f32 0.5, %v1649_v7  ;;  %v1657_v38 = vand.u32 2147483648, %v9163_v8  ;;  %v3127_v28 = vadd.f32 1.0, %v3126_v37 }
 0x2a2   : > { %v2742_v49 = vsub.f32 0.0, %v2678_v40  ;;  %vm9255_vm13 = vcmp.lt.f32.partialorder %v3129_v50, 0.0004427343  ;;  %vm3121_vm14 = vcmp.lt.f32.partialorder %v3120_v17, 0.0004427343 }
 0x2a3   : > { %v2037_v6 = vmul.f32 -10.0, %v1973_v0  ;;  %v7174_v61 = vpop.eup %7173  ;;  %v1651_v10 = vsub.f32 1.5, %v1650_v15 }
 0x2a4   : > { %v9218_v24 = vpop.eup %7175  ;;  %v9229_v57 = vpop.f32.mrf.mxu2 }
 0x2a5   : > { %v2146_v60 = vmul.f32 1.442695, %v2037_v6  ;;  %v7178_v52 = vpop.eup %7177  ;;  %v1652_v26 = vmul.f32 %v7168_v53, %v1651_v10  ;;  %v2479_v41 = vpop.f32.mrf.mxu1  ;;  %v3132_v58 = vadd.f32 1.0, %v9218_v24  ;;  %v3118_v6 = vadd.f32 1.0, %v3117_v43 }
 0x2a6   : > { %v7180_v30 = vpop.eup %7179  ;;  %v3107_v5 = vmul.f32 0.6931472, %v7178_v52 }
 0x2a7   : > { %6554 = vmatmul.msk.f32.gmra.mxu1 %vm2185_vm7, %v7174_v61  ;;  %7181 = vpow2.f32 %v2146_v60  ;;  %v1653_v53 = vmul.f32 %v1652_v26, %v9163_v8  ;;  %v1660_v62 = vmul.f32 %v7180_v30, %v9191_v44  ;;  %v887_v60 = vmul.f32 %v9144_v34, %v9144_v34 }
 0x2a8   : > { %7183 = vlog2.f32 %v3123_v13  ;;  %v3113_v56 = vsel %vm3112_vm12, %v3110_v21, %v3107_v5  ;;  %v2833_v34 = vmul.f32 1.442695, %v2742_v49  ;;  %v3135_v26 = vmul.f32 -0.5, %v9218_v24  ;;  %v9265_v21 = vpop.f32.mrf.mxu3 }
 0x2a9   : > { %7185 = vpow2.f32 %v2831_v18  ;;  %v1655_v51 = vsel %vm1654_vm10, %v9163_v8, %v1653_v53  ;;  %v3505_v27 = vadd.f32 %v3113_v56, %v2609_v19  ;;  %v1661_v0 = vmul.f32 %v7180_v30, %v1660_v62  ;;  %11887 = vst [vmem:[#allocation6_spill] sm:$0xff] %v9265_v21  ;;  %v5124_v53 = vld [vmem:[%s11846_s5 + $0xa8] sm:$0xff] }
 0x2aa   : > { %7187 = vlog2.f32 %v3114_v45  ;;  %v1658_v7 = vsel %vm1656_vm11, %v1657_v38, %v1655_v51  ;;  %v2610_v18 = vmax.f32 %v9114_v46, 0.0  ;;  %v2611_v8 = vmax.f32 %v9121_v3, 0.0  ;;  %v9260_v45 = vpop.f32.mrf.mxu0  ;;  %6795 = vmatmul.msk.f32.gmra.mxu3 %vm436_vm0, %v5124_v53 }
 0x2ab   : > { %v1910_v61 = vsub.f32 %v1658_v7, %v9134_v31  ;;  %v6596_v13 = vadd.f32 -0.6931472, %v3505_v27  ;;  %v1662_v15 = vmul.f32 0.5, %v1661_v0  ;;  %7189 = vlog2.f32 %v3132_v58 }
 0x2ac   : > { %v3119_v3 = vmul.f32 %v9193_v1, %v3118_v6  ;;  %v1050_v50 = vsel %vm902_vm1, %v887_v60, 0.0  ;;  %v3128_v62 = vmul.f32 %v9201_v47, %v3127_v28  ;;  %v9275_v1 = vadd.f32 %v9110_v22, %v2479_v41 }
 0x2ad   : > { %v7182_v23 = vpop.eup %7181  ;;  %v1974_v33 = vmul.f32 %v1910_v61, %v1910_v61  ;;  %6660 = vmatmul.msk.f32.gmra.mxu2 %vm3612_vm2, %v6596_v13  ;;  %v1663_v54 = vsub.f32 1.5, %v1662_v15  ;;  %v9267_v40 = vpop.f32.mrf.mxu2  ;;  %1051 = vadd.xlane.f32.xlu1 %v1050_v50  ;;  %7191 = vpow2.f32 %v2833_v34  ;;  %v1669_v47 = vand.u32 2147483648, %v9191_v44 }
 0x2ae   : > { %v7184_v35 = vpop.eup %7183  ;;  %v2679_v49 = vand.u32 2147483647, %v9275_v1  ;;  %v3136_v41 = vadd.f32 1.0, %v3135_v26  ;;  %v3138_v7 = vand.u32 2147483647, %v9218_v24 }
 0x2af   : > { %6555 = vmatmul.msk.f32.gmra.mxu1 %vm2185_vm7, %v7182_v23  ;;  %v9251_v19 = vpop.eup %7185  ;;  %v3125_v52 = vmul.f32 0.6931472, %v7184_v35  ;;  %v2038_v37 = vmul.f32 -10.0, %v1974_v33  ;;  %v1664_v5 = vmul.f32 %v7180_v30, %v1663_v54  ;;  %v2482_v30 = vpop.f32.mrf.mxu1  ;;  %v888_v35 = vmul.f32 %v9170_v48, %v9170_v48 }
 0x2b0   : > { %v7188_v10 = vpop.eup %7187  ;;  %v3141_v58 = vadd.f32 1.0, %v9251_v19  ;;  %v9295_v33 = vpop.f32.mrf.mxu3  ;;  %vm9302_vm4 = vcmp.lt.f32.partialorder %v3138_v7, 0.0004427343  ;;  %v891_v7 = vmul.f32 %v9260_v45, %v9260_v45 }
 0x2b1   : > { %v3116_v46 = vmul.f32 0.6931472, %v7188_v10  ;;  %v2148_v56 = vmul.f32 1.442695, %v2038_v37  ;;  %v1665_v43 = vmul.f32 %v1664_v5, %v9191_v44  ;;  %v7190_v27 = vpop.eup %7189  ;;  %v3131_v0 = vsel %vm9255_vm13, %v3128_v62, %v3125_v52  ;;  %11888 = vst [vmem:[#allocation7_spill] sm:$0xff] %v9295_v33 }
 0x2b2   : > { %v3134_v61 = vmul.f32 0.6931472, %v7190_v27  ;;  %v808_v15 = vpop.f32.mrf.mxu0  ;;  %v3507_v60 = vadd.f32 %v3131_v0, %v2611_v8  ;;  %v3137_v10 = vmul.f32 %v9218_v24, %v3136_v41  ;;  %v3144_v8 = vmul.f32 -0.5, %v9251_v19 }
 0x2b3   : > { %v3122_v38 = vsel %vm3121_vm14, %v3119_v3, %v3116_v46  ;;  %7193 = vpow2.f32 %v2148_v56  ;;  %v1667_v23 = vsel %vm1666_vm15, %v9191_v44, %v1665_v43  ;;  %v9291_v28 = vpop.eup %7191  ;;  %v2612_v44 = vmax.f32 %v9150_v14, 0.0 }
 0x2b4   : > { %v3506_v51 = vadd.f32 %v3122_v38, %v2610_v18  ;;  %v1670_v6 = vsel %vm1668_vm3, %v1669_v47, %v1667_v23  ;;  %7195 = vlog2.f32 %v3141_v58  ;;  %v2743_v18 = vsub.f32 0.0, %v2679_v49  ;;  %v9324_v58 = vld [vmem:[%s11844_s3 + $0x1] ss:$0 sm:$0xff]  ;;  %v5126_v23 = vld [vmem:[%s11846_s5 + $0xb8] sm:$0xff] }
 0x2b5   : > { %v1911_v13 = vsub.f32 %v1670_v6, %v9134_v31  ;;  %v9297_v54 = vpop.f32.mrf.mxu2  ;;  %v5125_v31 = vld [vmem:[%s11846_s5 + $0xb0] sm:$0xff]  ;;  %v1053_v14 = vsel %vm902_vm1, %v888_v35, 0.0  ;;  %v3140_v26 = vsel %vm9302_vm4, %v3137_v10, %v3134_v61  ;;  %v9311_v3 = vadd.f32 %v9110_v22, %v2482_v30 }
 0x2b6   : > { %v6597_v17 = vadd.f32 -0.6931472, %v3506_v51  ;;  %v2835_v34 = vmul.f32 1.442695, %v2743_v18  ;;  %1054 = vadd.xlane.f32.xlu2 %v1053_v14  ;;  %v889_v37 = vmul.f32 %v9199_v12, %v9199_v12  ;;  %6796 = vmatmul.msk.f32.gmra.mxu3 %vm436_vm0, %v5125_v31  ;;  %v6598_v5 = vadd.f32 -0.6931472, %v3507_v60 }
 0x2b7   : > { %v1975_v59 = vmul.f32 %v1911_v13, %v1911_v13  ;;  %v2485_v52 = vpop.f32.mrf.mxu1  ;;  %v3150_v50 = vadd.f32 1.0, %v9291_v28  ;;  %v3508_v30 = vadd.f32 %v3140_v26, %v2612_v44  ;;  %v3145_v56 = vadd.f32 1.0, %v3144_v8 }
 0x2b8   : > { %6661 = vmatmul.msk.f32.gmra.mxu2 %vm3612_vm2, %v6597_v17  ;;  %7197 = vpow2.f32 %v2835_v34  ;;  %v9318_v53 = vadd.f32 %v9110_v22, %v2485_v52  ;;  %v1056_v12 = vsel %vm902_vm1, %v889_v37, 0.0  ;;  %v2680_v43 = vand.u32 2147483647, %v9311_v3  ;;  %v9342_v17 = vpop.f32.mrf.mxu3 }
 0x2b9   : > { %v7194_v24 = vpop.eup %7193  ;;  %v2039_v46 = vmul.f32 -10.0, %v1975_v59  ;;  %1057 = vadd.xlane.f32.xlu0 %v1056_v12  ;;  %v3147_v51 = vand.u32 2147483647, %v9251_v19  ;;  %v890_v0 = vmul.f32 %v9231_v36, %v9231_v36  ;;  %v9340_v6 = vadd.f32 %v9324_v58, %v8985_v2  ;;  %11892 = vst [vmem:[#allocation9_spill] sm:$0xff] %v9342_v17 }
 0x2ba   : > { %6556 = vmatmul.msk.f32.gmra.mxu1 %vm2185_vm7, %v7194_v24  ;;  %v7196_v62 = vpop.eup %7195  ;;  %v2681_v27 = vand.u32 2147483647, %v9318_v53  ;;  %v811_v47 = vpop.f32.mrf.mxu0  ;;  %v2744_v41 = vsub.f32 0.0, %v2680_v43  ;;  %v3146_v13 = vmul.f32 %v9251_v19, %v3145_v56  ;;  %v1062_v44 = vsel %vm902_vm1, %v891_v7, 0.0 }
 0x2bb   : > { %v2150_v38 = vmul.f32 1.442695, %v2039_v46  ;;  %v3143_v49 = vmul.f32 0.6931472, %v7196_v62  ;;  %11891 = vst [vmem:[#allocation8_spill] sm:$0xff] %v9340_v6  ;;  %v1059_v35 = vsel %vm902_vm1, %v890_v0, 0.0  ;;  %v892_v45 = vmul.f32 %v808_v15, %v808_v15 }
 0x2bc   : > { %v2837_v60 = vmul.f32 1.442695, %v2744_v41  ;;  %1060 = vadd.xlane.f32.xlu1 %v1059_v35  ;;  %vm9351_vm5 = vcmp.lt.f32.partialorder %v3147_v51, 0.0004427343  ;;  %v3153_v2 = vmul.f32 -0.5, %v9291_v28  ;;  %v2745_v59 = vsub.f32 0.0, %v2681_v27 }
 0x2bd   : > { %7199 = vpow2.f32 %v2150_v38  ;;  %v9344_v36 = vpop.f32.mrf.mxu2  ;;  %v6599_v31 = vadd.f32 -0.6931472, %v3508_v30  ;;  %v3149_v19 = vsel %vm9351_vm5, %v3146_v13, %v3143_v49  ;;  %v4078_v15 = vand.u32 2147483647, %v9340_v6  ;;  %v5127_v38 = vld [vmem:[%s11846_s5 + $0xc0] sm:$0xff] }
 0x2be   : > { %7201 = vlog2.f32 %v3150_v50  ;;  %v9347_v61 = vpop.eup %7197  ;;  %6797 = vmatmul.msk.f32.gmra.mxu3 %vm436_vm0, %v5126_v23  ;;  %1063 = vadd.xlane.f32.xlu2 %v1062_v44  ;;  %v2613_v34 = vmax.f32 %v9182_v42, 0.0  ;;  %v9364_v52 = vadd.f32 %v9324_v58, %v9020_v9  ;;  %v1065_v26 = vsel %vm902_vm1, %v892_v45, 0.0 }
 0x2bf   : > { %v2488_v18 = vpop.f32.mrf.mxu1  ;;  %v3159_v48 = vadd.f32 1.0, %v9347_v61  ;;  %7203 = vpow2.f32 %v2837_v60  ;;  %v893_v46 = vmul.f32 %v811_v47, %v811_v47  ;;  %v3156_v50 = vand.u32 2147483647, %v9291_v28 }
 0x2c0   : > { %6662 = vmatmul.msk.f32.gmra.mxu2 %vm3612_vm2, %v6598_v5  ;;  %11895 = vst [vmem:[#allocation10_spill] sm:$0xff] %v9364_v52  ;;  %v9367_v24 = vadd.f32 %v9110_v22, %v2488_v18  ;;  %v3509_v37 = vadd.f32 %v3149_v19, %v2613_v34  ;;  %v3154_v5 = vadd.f32 1.0, %v3153_v2  ;;  %v2839_v62 = vmul.f32 1.442695, %v2745_v59  ;;  %v9378_v43 = vpop.f32.mrf.mxu3 }
 0x2c1   : > { %1066 = vadd.xlane.f32.xlu0 %v1065_v26  ;;  %7205 = vlog2.f32 %v3159_v48  ;;  %v1068_v12 = vsel %vm902_vm1, %v893_v46, 0.0  ;;  %v4142_v0 = vsub.f32 0.0, %v4078_v15  ;;  %v9386_v47 = vadd.f32 %v9324_v58, %v9053_v11 }
 0x2c2   : > { %v814_v42 = vpop.f32.mrf.mxu0  ;;  %v2682_v9 = vand.u32 2147483647, %v9367_v24  ;;  %v4079_v7 = vand.u32 2147483647, %v9364_v52  ;;  %v3155_v35 = vmul.f32 %v9291_v28, %v3154_v5  ;;  %v3162_v13 = vmul.f32 -0.5, %v9347_v61 }
 0x2c3   : > { %v7200_v8 = vpop.eup %7199  ;;  %v894_v30 = vmul.f32 %v814_v42, %v814_v42  ;;  %7207 = vpow2.f32 %v2839_v62  ;;  %v6600_v60 = vadd.f32 -0.6931472, %v3509_v37  ;;  %vm3157_vm6 = vcmp.lt.f32.partialorder %v3156_v50, 0.0004427343 }
 0x2c4   : > { %v7202_v14 = vpop.eup %7201  ;;  %6557 = vmatmul.msk.f32.gmra.mxu1 %vm2185_vm7, %v7200_v8  ;;  %v2746_v49 = vsub.f32 0.0, %v2682_v9  ;;  %1069 = vadd.xlane.f32.xlu1 %v1068_v12  ;;  %v4080_v2 = vand.u32 2147483647, %v9386_v47  ;;  %v9400_v28 = vadd.f32 %v9324_v58, %v9081_v55  ;;  %v9404_v59 = vadd.f32 %v9324_v58, %v9123_v29  ;;  %v5128_v55 = vld [vmem:[%s11846_s5 + $0xc8] sm:$0xff] }
 0x2c5   : > { %v3152_v56 = vmul.f32 0.6931472, %v7202_v14  ;;  %v9382_v27 = vpop.eup %7203  ;;  %v1071_v23 = vsel %vm902_vm1, %v894_v30, 0.0  ;;  %v4206_v19 = vmul.f32 1.442695, %v4142_v0  ;;  %v4143_v48 = vsub.f32 0.0, %v4079_v7 }
 0x2c6   : > { %6798 = vmatmul.msk.f32.gmra.mxu3 %vm436_vm0, %v5127_v38  ;;  %1072 = vadd.xlane.f32.xlu2 %v1071_v23  ;;  %v3168_v11 = vadd.f32 1.0, %v9382_v27  ;;  %v2841_v44 = vmul.f32 1.442695, %v2746_v49  ;;  %11896 = vst [vmem:[#allocation11_spill] sm:$0xff] %v9404_v59  ;;  %v3163_v8 = vadd.f32 1.0, %v3162_v13  ;;  %v9409_v34 = vadd.f32 %v9324_v58, %v9161_v4 }
 0x2c7   : > { %v9380_v51 = vpop.f32.mrf.mxu2  ;;  %v2491_v41 = vpop.f32.mrf.mxu1  ;;  %v3158_v18 = vsel %vm3157_vm6, %v3155_v35, %v3152_v56  ;;  %v3165_v26 = vand.u32 2147483647, %v9347_v61  ;;  %v4144_v50 = vsub.f32 0.0, %v4080_v2  ;;  %v4081_v62 = vand.u32 2147483647, %v9400_v28 }
 0x2c8   : > { %6663 = vmatmul.msk.f32.gmra.mxu2 %vm3612_vm2, %v6599_v31  ;;  %v9395_v45 = vadd.f32 %v9110_v22, %v2491_v41  ;;  %v7206_v10 = vpop.eup %7205  ;;  %v2614_v31 = vmax.f32 %v9222_v25, 0.0  ;;  %11897 = vst [vmem:[#allocation12_spill] sm:$0xff] %v9409_v34  ;;  %7209 = vlog2.f32 %v3168_v11  ;;  %v9419_v37 = vpop.f32.mrf.mxu3  ;;  %v4082_v42 = vand.u32 2147483647, %v9404_v59 }
 0x2c9   : > { %v9416_v29 = vpop.eup %7207  ;;  %v3161_v25 = vmul.f32 0.6931472, %v7206_v10  ;;  %7211 = vpow2.f32 %v2841_v44  ;;  %v3171_v9 = vmul.f32 -0.5, %v9382_v27  ;;  %v3164_v12 = vmul.f32 %v9347_v61, %v3163_v8 }
 0x2ca   : > { %v817_v15 = vpop.f32.mrf.mxu0  ;;  %v3510_v14 = vadd.f32 %v3158_v18, %v2614_v31  ;;  %v2683_v46 = vand.u32 2147483647, %v9395_v45  ;;  %vm9432_vm8 = vcmp.lt.f32.partialorder %v3165_v26, 0.0004427343  ;;  %v3177_v23 = vadd.f32 1.0, %v9416_v29 }
 0x2cb   : > { %v895_v5 = vmul.f32 %v817_v15, %v817_v15  ;;  %v4083_v7 = vand.u32 2147483647, %v9409_v34  ;;  %v9440_v61 = vadd.f32 %v9324_v58, %v9188_v32  ;;  %v3167_v35 = vsel %vm9432_vm8, %v3164_v12, %v3161_v25 }
 0x2cc   : > { %v2747_v30 = vsub.f32 0.0, %v2683_v46  ;;  %v6601_v49 = vadd.f32 -0.6931472, %v3510_v14  ;;  %v4210_v11 = vmul.f32 1.442695, %v4144_v50  ;;  %v2615_v18 = vmax.f32 %v9275_v1, 0.0 }
 0x2cd   : > { %v1074_v0 = vsel %vm902_vm1, %v895_v5, 0.0  ;;  %v3172_v44 = vadd.f32 1.0, %v3171_v9  ;;  %7213 = vpow2.f32 %v4206_v19  ;;  %v4145_v2 = vsub.f32 0.0, %v4081_v62  ;;  %v5129_v1 = vld [vmem:[%s11846_s5 + $0xd0] sm:$0xff] }
 0x2ce   : > { %6799 = vmatmul.msk.f32.gmra.mxu3 %vm436_vm0, %v5128_v55  ;;  %1075 = vadd.xlane.f32.xlu0 %v1074_v0  ;;  %v7210_v13 = vpop.eup %7209  ;;  %v2843_v31 = vmul.f32 1.442695, %v2747_v30  ;;  %v4146_v14 = vsub.f32 0.0, %v4082_v42  ;;  %v3511_v32 = vadd.f32 %v3167_v35, %v2615_v18  ;;  %v3174_v26 = vand.u32 2147483647, %v9382_v27 }
 0x2cf   : > { %v9421_v4 = vpop.f32.mrf.mxu2  ;;  %v2494_v38 = vpop.f32.mrf.mxu1  ;;  %7215 = vlog2.f32 %v3177_v23  ;;  %v4084_v55 = vand.u32 2147483647, %v9440_v61  ;;  %v3170_v19 = vmul.f32 0.6931472, %v7210_v13  ;;  %v9460_v50 = vadd.f32 %v9324_v58, %v9229_v57 }
 0x2d0   : > { %6664 = vmatmul.msk.f32.gmra.mxu2 %vm3612_vm2, %v6600_v60  ;;  %v9429_v56 = vadd.f32 %v9110_v22, %v2494_v38  ;;  %v4208_v60 = vmul.f32 1.442695, %v4143_v48  ;;  %v9445_v10 = vpop.eup %7211  ;;  %v4147_v48 = vsub.f32 0.0, %v4083_v7  ;;  %v9454_v25 = vpop.f32.mrf.mxu3  ;;  %v3173_v62 = vmul.f32 %v9382_v27, %v3172_v44 }
 0x2d1   : > { %v3180_v42 = vmul.f32 -0.5, %v9416_v29  ;;  %v3186_v9 = vadd.f32 1.0, %v9445_v10  ;;  %7217 = vpow2.f32 %v2843_v31  ;;  %v6602_v57 = vadd.f32 -0.6931472, %v3511_v32 }
 0x2d2   : > { %v2684_v8 = vand.u32 2147483647, %v9429_v56  ;;  %v820_v15 = vpop.f32.mrf.mxu0  ;;  %7219 = vpow2.f32 %v4208_v60  ;;  %vm9470_vm9 = vcmp.lt.f32.partialorder %v3174_v26, 0.0004427343  ;;  %v4214_v23 = vmul.f32 1.442695, %v4146_v14 }
 0x2d3   : > { %v896_v5 = vmul.f32 %v820_v15, %v820_v15  ;;  %v9474_v27 = vpop.eup %7213  ;;  %7221 = vpow2.f32 %v4210_v11  ;;  %v4216_v7 = vmul.f32 1.442695, %v4147_v48  ;;  %v3176_v35 = vsel %vm9470_vm9, %v3173_v62, %v3170_v19 }
 0x2d4   : > { %v2748_v12 = vsub.f32 0.0, %v2684_v8  ;;  %11902 = vst [vmem:[#allocation13_spill] sm:$0xff] %v9474_v27  ;;  %v4148_v18 = vsub.f32 0.0, %v4084_v55  ;;  %v4085_v44 = vand.u32 2147483647, %v9460_v50  ;;  %v2616_v60 = vmax.f32 %v9311_v3, 0.0 }
 0x2d5   : > { %v1077_v0 = vsel %vm902_vm1, %v896_v5, 0.0  ;;  %v7216_v13 = vpop.eup %7215  ;;  %v9483_v31 = vadd.f32 %v9324_v58, %v9267_v40  ;;  %v3181_v8 = vadd.f32 1.0, %v3180_v42  ;;  %7223 = vlog2.f32 %v3186_v9  ;;  %v5130_v3 = vld [vmem:[%s11846_s5 + $0xd8] sm:$0xff] }
 0x2d6   : > { %6800 = vmatmul.msk.f32.gmra.mxu3 %vm436_vm0, %v5129_v1  ;;  %1078 = vadd.xlane.f32.xlu1 %v1077_v0  ;;  %v2845_v11 = vmul.f32 1.442695, %v2748_v12  ;;  %v3512_v14 = vadd.f32 %v3176_v35, %v2616_v60  ;;  %v3183_v32 = vand.u32 2147483647, %v9416_v29  ;;  %v3179_v1 = vmul.f32 0.6931472, %v7216_v13 }
 0x2d7   : > { %v2497_v38 = vpop.f32.mrf.mxu1  ;;  %v9490_v26 = vpop.eup %7217  ;;  %v4218_v5 = vmul.f32 1.442695, %v4148_v18  ;;  %v3189_v62 = vmul.f32 -0.5, %v9445_v10  ;;  %v4149_v12 = vsub.f32 0.0, %v4085_v44  ;;  %v4086_v0 = vand.u32 2147483647, %v9483_v31 }
 0x2d8   : > { %6665 = vmatmul.msk.f32.gmra.mxu2 %vm3612_vm2, %v6601_v49  ;;  %v9456_v46 = vpop.f32.mrf.mxu2  ;;  %v9467_v30 = vadd.f32 %v9110_v22, %v2497_v38  ;;  %v4212_v49 = vmul.f32 1.442695, %v4145_v2  ;;  %v9492_v40 = vpop.f32.mrf.mxu3  ;;  %vm9502_vm10 = vcmp.lt.f32.partialorder %v3183_v32, 0.0004427343  ;;  %v9512_v13 = vadd.f32 %v9324_v58, %v9297_v54 }
 0x2d9   : > { %v9494_v19 = vpop.eup %7219  ;;  %v3192_v18 = vand.u32 2147483647, %v9445_v10  ;;  %v4150_v41 = vsub.f32 0.0, %v4086_v0 }
 0x2da   : > { %v2685_v2 = vand.u32 2147483647, %v9467_v30  ;;  %v823_v15 = vpop.f32.mrf.mxu0  ;;  %7225 = vpow2.f32 %v4212_v49  ;;  %11903 = vst [vmem:[#allocation14_spill] sm:$0xff] %v9494_v19  ;;  %v9497_v38 = vpop.eup %7221  ;;  %v3182_v49 = vmul.f32 %v9416_v29, %v3181_v8  ;;  %v3190_v8 = vadd.f32 1.0, %v3189_v62 }
 0x2db   : > { %7227 = vpow2.f32 %v4214_v23  ;;  %v897_v55 = vmul.f32 %v823_v15, %v823_v15  ;;  %11904 = vst [vmem:[#allocation15_spill] sm:$0xff] %v9497_v38  ;;  %v3195_v23 = vadd.f32 1.0, %v9490_v26  ;;  %v7224_v35 = vpop.eup %7223  ;;  %vm9536_vm11 = vcmp.lt.f32.partialorder %v3192_v18, 0.0004427343 }
 0x2dc   : > { %7229 = vpow2.f32 %v4216_v7  ;;  %v2749_v42 = vsub.f32 0.0, %v2685_v2  ;;  %v3185_v29 = vsel %vm9502_vm10, %v3182_v49, %v3179_v1  ;;  %v2617_v2 = vmax.f32 %v9318_v53, 0.0  ;;  %v5131_v53 = vld [vmem:[%s11846_s5 + $0xe0] sm:$0xff] }
 0x2dd   : > { %7231 = vpow2.f32 %v2845_v11  ;;  %v1080_v44 = vsel %vm902_vm1, %v897_v55, 0.0  ;;  %v4220_v49 = vmul.f32 1.442695, %v4149_v12 }
 0x2de   : > { %6801 = vmatmul.msk.f32.gmra.mxu3 %vm436_vm0, %v5130_v3  ;;  %v2847_v11 = vmul.f32 1.442695, %v2749_v42  ;;  %1081 = vadd.xlane.f32.xlu2 %v1080_v44  ;;  %7233 = vpow2.f32 %v4218_v5  ;;  %v3513_v1 = vadd.f32 %v3185_v29, %v2617_v2  ;;  %v4087_v5 = vand.u32 2147483647, %v9512_v13 }
 0x2df   : > { %v2500_v9 = vpop.f32.mrf.mxu1  ;;  %7235 = vlog2.f32 %v3195_v23  ;;  %v3191_v29 = vmul.f32 %v9445_v10, %v3190_v8  ;;  %v3201_v23 = vand.u32 2147483647, %v9490_v26 }
 0x2e0   : > { %6666 = vmatmul.msk.f32.gmra.mxu2 %vm3612_vm2, %v6602_v57  ;;  %v3864_v48 = vpop.f32.mrf.mxu2  ;;  %v6603_v57 = vadd.f32 -0.6931472, %v3512_v14  ;;  %v9508_v7 = vadd.f32 %v9110_v22, %v2500_v9  ;;  %v9518_v60 = vpop.eup %7225  ;;  %v3188_v9 = vmul.f32 0.6931472, %v7224_v35  ;;  %7237 = vpow2.f32 %v2847_v11 }
 0x2e1   : > { %11907 = vst [vmem:[#allocation16_spill] sm:$0xff] %v9518_v60  ;;  %v9522_v14 = vpop.eup %7227  ;;  %v6604_v0 = vadd.f32 -0.6931472, %v3513_v1  ;;  %v9554_v11 = vadd.f32 %v9324_v58, %v3864_v48  ;;  %v4151_v42 = vsub.f32 0.0, %v4087_v5  ;;  %v9564_v1 = vmul.f32 1.442695, %v4150_v41 }
 0x2e2   : > { %v2686_v15 = vand.u32 2147483647, %v9508_v7  ;;  %11908 = vst [vmem:[#allocation17_spill] sm:$0xff] %v9522_v14  ;;  %v826_v32 = vpop.f32.mrf.mxu0  ;;  %v9525_v3 = vpop.eup %7229  ;;  %v3194_v18 = vsel %vm9536_vm11, %v3191_v29, %v3188_v9  ;;  %vm9603_vm12 = vcmp.lt.f32.partialorder %v3201_v23, 0.0004427343 }
 0x2e3   : > { %v9531_v62 = vpop.eup %7231  ;;  %v898_v10 = vmul.f32 %v826_v32, %v826_v32 }
 0x2e4   : > { %v2750_v55 = vsub.f32 0.0, %v2686_v15  ;;  %v9541_v15 = vpop.f32.mrf.mxu3  ;;  %v3204_v8 = vadd.f32 1.0, %v9531_v62  ;;  %v3210_v23 = vand.u32 2147483647, %v9531_v62 }
 0x2e6   : > { %v2849_v2 = vmul.f32 1.442695, %v2750_v55  ;;  %6802 = vmatmul.msk.f32.gmra.mxu3 %vm436_vm0, %v5131_v53  ;;  %v9556_v55 = vpop.eup %7233  ;;  %v9561_v53 = vadd.f32 %v9324_v58, %v9380_v51  ;;  %v4092_v51 = vand.u32 2147483647, %v9554_v11  ;;  %vm9634_vm13 = vcmp.lt.f32.partialorder %v3210_v23, 0.0004427343 }
 0x2e7   : > { %v2503_v35 = vpop.f32.mrf.mxu1 }
 0x2e8   : > { %6667 = vmatmul.msk.f32.gmra.mxu2 %vm3612_vm2, %v6603_v57  ;;  %v3867_v44 = vpop.f32.mrf.mxu2  ;;  %v3198_v57 = vmul.f32 -0.5, %v9490_v26  ;;  %v9548_v12 = vadd.f32 %v9110_v22, %v2503_v35  ;;  %7239 = vpow2.f32 %v2849_v2  ;;  %v7236_v22 = vpop.eup %7235 }
 0x2e9   : > { %v9544_v54 = vadd.f32 %v9324_v58, %v3867_v44  ;;  %v2618_v44 = vmax.f32 %v9367_v24, 0.0  ;;  %v1083_v24 = vsel %vm902_vm1, %v898_v10, 0.0  ;;  %v9570_v16 = vpop.eup %7237  ;;  %7241 = vlog2.f32 %v3204_v8 }
 0x2ea   : > { %v3199_v9 = vadd.f32 1.0, %v3198_v57  ;;  %v2687_v29 = vand.u32 2147483647, %v9548_v12  ;;  %v829_v35 = vpop.f32.mrf.mxu0  ;;  %v5132_v57 = vld [vmem:[%s11846_s5 + $0xe8] sm:$0xff]  ;;  %1084 = vadd.xlane.f32.xlu0 %v1083_v24  ;;  %7243 = vpow2.f32 %v4220_v49  ;;  %v4089_v10 = vand.u32 2147483647, %v9561_v53 }
 0x2eb   : > { %v3514_v48 = vadd.f32 %v3194_v18, %v2618_v44  ;;  %v4093_v5 = vand.u32 2147483647, %v9544_v54  ;;  %v899_v2 = vmul.f32 %v829_v35, %v829_v35  ;;  %v9577_v18 = vmul.f32 1.442695, %v4151_v42 }
 0x2ec   : > { %v2751_v41 = vsub.f32 0.0, %v2687_v29  ;;  %v3197_v44 = vmul.f32 0.6931472, %v7236_v22  ;;  %v3200_v32 = vmul.f32 %v9490_v26, %v3199_v9  ;;  %v3207_v24 = vmul.f32 -0.5, %v9531_v62  ;;  %v9594_v26 = vld [vmem:[%s11844_s3] ss:$0 sm:$0xff] }
 0x2ed   : > { %v1086_v63 = vsel %vm902_vm1, %v899_v2, 0.0  ;;  %v3213_v42 = vadd.f32 1.0, %v9570_v16  ;;  %v4157_v49 = vsub.f32 0.0, %v4093_v5  ;;  %v9601_v22 = vadd.f32 %v9324_v58, %v9344_v36 }
 0x2ee   : > { %v2851_v8 = vmul.f32 1.442695, %v2751_v41  ;;  %v9586_v52 = vpop.eup %7239  ;;  %6803 = vmatmul.msk.f32.gmra.mxu3 %vm436_vm0, %v5132_v57  ;;  %1087 = vadd.xlane.f32.xlu1 %v1086_v63  ;;  %v6605_v9 = vadd.f32 -0.6931472, %v3514_v48  ;;  %v4156_v5 = vsub.f32 0.0, %v4092_v51  ;;  %v4153_v41 = vsub.f32 0.0, %v4089_v10  ;;  %v9613_v63 = vpop.f32.mrf.mxu3 }
 0x2ef   : > { %v2506_v29 = vpop.f32.mrf.mxu1  ;;  %v3203_v57 = vsel %vm9603_vm12, %v3200_v32, %v3197_v44  ;;  %v9611_v2 = vadd.f32 %v9324_v58, %v9456_v46  ;;  %v2619_v36 = vmax.f32 %v9395_v45, 0.0  ;;  %v3222_v51 = vadd.f32 1.0, %v9586_v52  ;;  %v5133_v45 = vld [vmem:[%s11846_s5 + $0xf0] sm:$0xff] }
 0x2f0   : > { %6668 = vmatmul.msk.f32.gmra.mxu2 %vm3612_vm2, %v6604_v0  ;;  %v9583_v0 = vadd.f32 %v9324_v58, %v9421_v4  ;;  %v9597_v4 = vadd.f32 %v9594_v26, %v2506_v29  ;;  %7245 = vpow2.f32 %v2851_v8  ;;  %v7242_v29 = vpop.eup %7241  ;;  %v3208_v35 = vadd.f32 1.0, %v3207_v24  ;;  %v3870_v60 = vpop.f32.mrf.mxu2 }
 0x2f1   : > { %v9619_v10 = vpop.eup %7243  ;;  %7247 = vlog2.f32 %v3213_v42  ;;  %v4236_v32 = vmul.f32 1.442695, %v4157_v49  ;;  %v4088_v8 = vand.u32 2147483647, %v9601_v22  ;;  %v3515_v6 = vadd.f32 %v3203_v57, %v2619_v36 }
 0x2f2   : > { %v4090_v48 = vand.u32 2147483647, %v9583_v0  ;;  %v2688_v46 = vand.u32 2147483647, %v9597_v4  ;;  %v832_v44 = vpop.f32.mrf.mxu0  ;;  %v4234_v27 = vmul.f32 1.442695, %v4156_v5  ;;  %7249 = vlog2.f32 %v3222_v51 }
 0x2f3   : > { %v900_v39 = vmul.f32 %v832_v44, %v832_v44  ;;  %v3206_v20 = vmul.f32 0.6931472, %v7242_v29  ;;  %v4091_v24 = vand.u32 2147483647, %v9611_v2  ;;  %v4228_v49 = vmul.f32 1.442695, %v4153_v41 }
 0x2f4   : > { %v2752_v42 = vsub.f32 0.0, %v2688_v46  ;;  %v3216_v21 = vmul.f32 -0.5, %v9570_v16  ;;  %v3209_v36 = vmul.f32 %v9531_v62, %v3208_v35  ;;  %7251 = vpow2.f32 %v4236_v32 }
 0x2f5   : > { %v1089_v5 = vsel %vm902_vm1, %v900_v39, 0.0  ;;  %v6606_v41 = vadd.f32 -0.6931472, %v3515_v6  ;;  %7253 = vpow2.f32 %v4234_v27  ;;  %v2620_v46 = vmax.f32 %v9429_v56, 0.0 }
 0x2f6   : > { %v9631_v57 = vpop.eup %7245  ;;  %6804 = vmatmul.msk.f32.gmra.mxu3 %vm436_vm0, %v5133_v45  ;;  %1090 = vadd.xlane.f32.xlu2 %v1089_v5  ;;  %v2853_v29 = vmul.f32 1.442695, %v2752_v42  ;;  %v3212_v62 = vsel %vm9634_vm13, %v3209_v36, %v3206_v20  ;;  %v3225_v23 = vmul.f32 -0.5, %v9586_v52  ;;  %v3217_v35 = vadd.f32 1.0, %v3216_v21  ;;  %v9651_v56 = vpop.f32.mrf.mxu3  ;;  %v5134_v5 = vld [vmem:[%s11846_s5 + $0xf8] sm:$0xff] }
 0x2f7   : > { %v2509_v33 = vpop.f32.mrf.mxu1  ;;  %v7248_v39 = vpop.eup %7247  ;;  %v3231_v32 = vadd.f32 1.0, %v9631_v57  ;;  %v3219_v45 = vand.u32 2147483647, %v9570_v16  ;;  %v3516_v20 = vadd.f32 %v3212_v62, %v2620_v46  ;;  %v4152_v36 = vsub.f32 0.0, %v4088_v8 }
 0x2f8   : > { %6669 = vmatmul.msk.f32.gmra.mxu2 %vm3612_vm2, %v6605_v9  ;;  %v4154_v9 = vsub.f32 0.0, %v4090_v48  ;;  %v9640_v51 = vadd.f32 %v9594_v26, %v2509_v33  ;;  %v4155_v48 = vsub.f32 0.0, %v4091_v24  ;;  %7255 = vpow2.f32 %v2853_v29  ;;  %v7250_v42 = vpop.eup %7249 }
 0x2f9   : > { %7257 = vpow2.f32 %v9564_v1  ;;  %v3215_v24 = vmul.f32 0.6931472, %v7248_v39  ;;  %v3226_v44 = vadd.f32 1.0, %v3225_v23  ;;  %v3218_v19 = vmul.f32 %v9570_v16, %v3217_v35 }
 0x2fa   : > { %v2689_v6 = vand.u32 2147483647, %v9640_v51  ;;  %v4230_v27 = vmul.f32 1.442695, %v4154_v9  ;;  %7259 = vpow2.f32 %v9577_v18  ;;  %v9658_v1 = vpop.eup %7251  ;;  %v4232_v9 = vmul.f32 1.442695, %v4155_v48 }
 0x2fb   : > { %7261 = vpow2.f32 %v4228_v49  ;;  %v9660_v29 = vpop.eup %7253  ;;  %v3228_v18 = vand.u32 2147483647, %v9586_v52  ;;  %vm9664_vm14 = vcmp.lt.f32.partialorder %v3219_v45, 0.0004427343  ;;  %v3224_v62 = vmul.f32 0.6931472, %v7250_v42 }
 0x2fc   : > { %v2753_v21 = vsub.f32 0.0, %v2689_v6  ;;  %7263 = vlog2.f32 %v3231_v32  ;;  %v6607_v48 = vadd.f32 -0.6931472, %v3516_v20  ;;  %v3221_v16 = vsel %vm9664_vm14, %v3218_v19, %v3215_v24 }
 0x2fd   : > { %7265 = vpow2.f32 %v4230_v27  ;;  %v4469_v23 = vadd.f32 1.0, %v9658_v1  ;;  %v2621_v32 = vmax.f32 %v9467_v30, 0.0  ;;  %v3227_v6 = vmul.f32 %v9586_v52, %v3226_v44 }
 0x2fe   : > { %v2855_v39 = vmul.f32 1.442695, %v2753_v21  ;;  %6805 = vmatmul.msk.f32.gmra.mxu3 %vm436_vm0, %v5134_v5  ;;  %v9672_v49 = vpop.eup %7255  ;;  %v3234_v27 = vmul.f32 -0.5, %v9631_v57  ;;  %v4460_v45 = vadd.f32 1.0, %v9660_v29  ;;  %v9685_v21 = vmul.f32 1.442695, %v4152_v36 }
 0x2ff   : > { %v9677_v35 = vpop.eup %7257  ;;  %vm9687_vm15 = vcmp.lt.f32.partialorder %v3228_v18, 0.0004427343  ;;  %v3517_v30 = vadd.f32 %v3221_v16, %v2621_v32  ;;  %v3240_v5 = vadd.f32 1.0, %v9672_v49  ;;  %v4472_v44 = vmul.f32 -0.5, %v9658_v1 }
 0x300   : > { %6670 = vmatmul.msk.f32.gmra.mxu2 %vm3612_vm2, %v6606_v41  ;;  %v2512_v41 = vpop.f32.mrf.mxu1  ;;  %7267 = vpow2.f32 %v2855_v39  ;;  %v9683_v42 = vpop.eup %7259  ;;  %v3230_v52 = vsel %vm9687_vm15, %v3227_v6, %v3224_v62  ;;  %v4028_v62 = vmax.f32 %v9554_v11, 0.0  ;;  %v3235_v16 = vadd.f32 1.0, %v3234_v27 }
 0x301   : > { %v9670_v8 = vadd.f32 %v9594_v26, %v2512_v41  ;;  %7269 = vpow2.f32 %v4232_v9  ;;  %v9692_v24 = vpop.eup %7261  ;;  %v2622_v9 = vmax.f32 %v9508_v7, 0.0  ;;  %v5135_v41 = vld [vmem:[%s11846_s5 + $0x100] sm:$0xff]  ;;  %v3237_v32 = vand.u32 2147483647, %v9631_v57  ;;  %v9708_v6 = vpop.f32.mrf.mxu3 }
 0x302   : > { %v7264_v39 = vpop.eup %7263  ;;  %7271 = vlog2.f32 %v4469_v23  ;;  %v6608_v36 = vadd.f32 -0.6931472, %v3517_v30  ;;  %v4473_v11 = vadd.f32 1.0, %v4472_v44  ;;  %v4475_v17 = vand.u32 2147483647, %v9658_v1 }
 0x303   : > { %v2690_v20 = vand.u32 2147483647, %v9670_v8  ;;  %v9704_v46 = vpop.eup %7265  ;;  %7273 = vlog2.f32 %v4460_v45  ;;  %v3518_v7 = vadd.f32 %v3230_v52, %v2622_v9  ;;  %v3233_v38 = vmul.f32 0.6931472, %v7264_v39 }
 0x304   : > { %7275 = vlog2.f32 %v3240_v5  ;;  %v2623_v9 = vmax.f32 %v9548_v12, 0.0  ;;  %v3236_v30 = vmul.f32 %v9631_v57, %v3235_v16  ;;  %vm9724_vm3 = vcmp.lt.f32.partialorder %v3237_v32, 0.0004427343 }
 0x305   : > { %v2754_v18 = vsub.f32 0.0, %v2690_v20  ;;  %v4463_v20 = vmul.f32 -0.5, %v9660_v29  ;;  %v4466_v5 = vand.u32 2147483647, %v9660_v29  ;;  %v3246_v34 = vand.u32 2147483647, %v9672_v49 }
 0x306   : > { %v9710_v19 = vpop.eup %7267  ;;  %6806 = vmatmul.msk.f32.gmra.mxu3 %vm436_vm0, %v5135_v41  ;;  %v3243_v41 = vmul.f32 -0.5, %v9672_v49  ;;  %v4474_v57 = vmul.f32 %v9658_v1, %v4473_v11  ;;  %vm4476_vm4 = vcmp.lt.f32.partialorder %v4475_v17, 0.0004427343 }
 0x307   : > { %v2857_v23 = vmul.f32 1.442695, %v2754_v18  ;;  %v9715_v27 = vpop.eup %7269  ;;  %v3249_v45 = vadd.f32 1.0, %v9710_v19  ;;  %v4464_v52 = vadd.f32 1.0, %v4463_v20  ;;  %v6609_v18 = vadd.f32 -0.6931472, %v3518_v7 }
 0x308   : > { %6671 = vmatmul.msk.f32.gmra.mxu2 %vm3612_vm2, %v6607_v48  ;;  %v4029_v48 = vmax.f32 %v9544_v54, 0.0  ;;  %v2515_v33 = vpop.f32.mrf.mxu1  ;;  %v7272_v44 = vpop.eup %7271  ;;  %vm4467_vm5 = vcmp.lt.f32.partialorder %v4466_v5, 0.0004427343  ;;  %v3244_v1 = vadd.f32 1.0, %v3243_v41  ;;  %v3252_v17 = vmul.f32 -0.5, %v9710_v19 }
 0x309   : > { %v9720_v54 = vadd.f32 %v9594_v26, %v2515_v33  ;;  %7277 = vpow2.f32 %v2857_v23  ;;  %v7274_v20 = vpop.eup %7273  ;;  %v3239_v33 = vsel %vm9724_vm3, %v3236_v30, %v3233_v38  ;;  %v4471_v12 = vmul.f32 0.6931472, %v7272_v44  ;;  %v5136_v23 = vld [vmem:[%s11846_s5 + $0x108] sm:$0xff]  ;;  %v5421_v44 = vpop.f32.mrf.mxu3 }
 0x30a   : > { %7279 = vlog2.f32 %v3249_v45  ;;  %v4462_v32 = vmul.f32 0.6931472, %v7274_v20  ;;  %v4465_v7 = vmul.f32 %v9660_v29, %v4464_v52  ;;  %v7276_v14 = vpop.eup %7275  ;;  %v4451_v30 = vadd.f32 1.0, %v9715_v27  ;;  %v9749_v41 = vpop.f32.mrf.mxu2 }
 0x30b   : > { %v2691_v16 = vand.u32 2147483647, %v9720_v54  ;;  %v4477_v59 = vsel %vm4476_vm4, %v4474_v57, %v4471_v12  ;;  %v4454_v45 = vmul.f32 -0.5, %v9715_v27  ;;  %v3242_v5 = vmul.f32 0.6931472, %v7276_v14 }
 0x30c   : > { %v4925_v11 = vadd.f32 %v4477_v59, %v4029_v48  ;;  %v4468_v39 = vsel %vm4467_vm5, %v4465_v7, %v4462_v32  ;;  %7281 = vlog2.f32 %v4451_v30  ;;  %v4026_v59 = vmax.f32 %v9583_v0, 0.0 }
 0x30d   : > { %v2755_v38 = vsub.f32 0.0, %v2691_v16  ;;  %v4924_v29 = vadd.f32 %v4468_v39, %v4028_v62  ;;  %7283 = vpow2.f32 %v9685_v21  ;;  %v4027_v48 = vmax.f32 %v9611_v2, 0.0 }
 0x30e   : > { %6807 = vmatmul.msk.f32.gmra.mxu3 %vm436_vm0, %v5136_v23  ;;  %v6717_v20 = vadd.f32 -0.6931472, %v4925_v11  ;;  %v9753_v57 = vadd.f32 %v9324_v58, %v3870_v60  ;;  %v3245_v16 = vmul.f32 %v9672_v49, %v3244_v1  ;;  %v4455_v21 = vadd.f32 1.0, %v4454_v45 }
 0x30f   : > { %v9744_v52 = vpop.eup %7277  ;;  %v2859_v12 = vmul.f32 1.442695, %v2755_v38  ;;  %vm9756_vm6 = vcmp.lt.f32.partialorder %v3246_v34, 0.0004427343  ;;  %v3253_v23 = vadd.f32 1.0, %v3252_v17  ;;  %v2624_v38 = vmax.f32 %v9597_v4, 0.0 }
 0x310   : > { %6672 = vmatmul.msk.f32.gmra.mxu2 %vm3612_vm2, %v6608_v36  ;;  %v3519_v36 = vadd.f32 %v3239_v33, %v2623_v9  ;;  %v3258_v9 = vadd.f32 1.0, %v9744_v52  ;;  %v6716_v33 = vadd.f32 -0.6931472, %v4924_v29  ;;  %v7280_v62 = vpop.eup %7279  ;;  %11921 = vst [vmem:[#allocation18_spill] sm:$0xff] %v9753_v57  ;;  %v5615_v32 = vmul.f32 %v6717_v20, %v5421_v44 }
 0x311   : > { %v3248_v2 = vsel %vm9756_vm6, %v3245_v16, %v3242_v5  ;;  %v4457_v60 = vand.u32 2147483647, %v9715_v27  ;;  %v3251_v34 = vmul.f32 0.6931472, %v7280_v62  ;;  %v3255_v30 = vand.u32 2147483647, %v9710_v19 }
 0x312   : > { %v6610_v14 = vadd.f32 -0.6931472, %v3519_v36  ;;  %7285 = vlog2.f32 %v3258_v9  ;;  %5664 = vmatpush.msrb.mxu1 %v5615_v32  ;;  %v5614_v58 = vmul.f32 %v6716_v33, %v9708_v6  ;;  %v7282_v49 = vpop.eup %7281  ;;  %v4442_v1 = vadd.f32 1.0, %v9704_v46  ;;  %v2518_v33 = vpop.f32.mrf.mxu1 }
 0x313   : > { %7287 = vpow2.f32 %v2859_v12  ;;  %v9768_v11 = vpop.eup %7283  ;;  %v4453_v39 = vmul.f32 0.6931472, %v7282_v49  ;;  %v4445_v45 = vmul.f32 -0.5, %v9704_v46  ;;  %v4433_v6 = vadd.f32 1.0, %v9692_v24  ;;  %v9788_v7 = vpop.f32.mrf.mxu2 }
 0x314   : > { %5665 = vmatpush.msrb.mxu1 %v5614_v58  ;;  %v3520_v36 = vadd.f32 %v3248_v2, %v2624_v38  ;;  %v3254_v17 = vmul.f32 %v9710_v19, %v3253_v23  ;;  %vm4458_vm8 = vcmp.lt.f32.partialorder %v4457_v60, 0.0004427343  ;;  %7289 = vlog2.f32 %v4442_v1 }
 0x315   : > { %v3261_v4 = vmul.f32 -0.5, %v9744_v52  ;;  %7291 = vlog2.f32 %v4433_v6  ;;  %v4436_v29 = vmul.f32 -0.5, %v9692_v24  ;;  %vm9776_vm9 = vcmp.lt.f32.partialorder %v3255_v30, 0.0004427343 }
 0x316   : > { %v4446_v9 = vadd.f32 1.0, %v4445_v45  ;;  %v2625_v19 = vmax.f32 %v9640_v51, 0.0  ;;  %v3257_v16 = vsel %vm9776_vm9, %v3254_v17, %v3251_v34  ;;  %v2626_v32 = vmax.f32 %v9670_v8, 0.0  ;;  %v5137_v17 = vld [vmem:[%s11846_s5 + $0x110] sm:$0xff] }
 0x317   : > { %v4437_v58 = vadd.f32 1.0, %v4436_v29  ;;  %v6611_v60 = vadd.f32 -0.6931472, %v3520_v36  ;;  %v3262_v49 = vadd.f32 1.0, %v3261_v4  ;;  %v4439_v51 = vand.u32 2147483647, %v9692_v24  ;;  %v9804_v36 = vpop.xlane.xlu0 %1048  ;;  %6808 = vmatmul.msk.f32.gmra.mxu3 %vm436_vm0, %v5137_v17 }
 0x318   : > { %6673 = vmatmul.msk.f32.gmra.mxu2 %vm3612_vm2, %v6609_v18  ;;  %v4456_v18 = vmul.f32 %v9715_v27, %v4455_v21  ;;  %v7286_v5 = vpop.eup %7285  ;;  %v3264_v27 = vand.u32 2147483647, %v9744_v52  ;;  %v4448_v21 = vand.u32 2147483647, %v9704_v46  ;;  %v9795_v38 = vadd.f32 %v9594_v26, %v2518_v33 }
 0x319   : > { %v9781_v62 = vpop.eup %7287  ;;  %v3521_v34 = vadd.f32 %v3257_v16, %v2625_v19  ;;  %v3260_v30 = vmul.f32 0.6931472, %v7286_v5  ;;  %vm4440_vm12 = vcmp.lt.f32.partialorder %v4439_v51, 0.0004427343  ;;  %v835_v5 = vpop.f32.mrf.mxu0  ;;  %v4421_v17 = vand.u32 2147483647, %v9683_v42 }
 0x31a   : > { %v4459_v44 = vsel %vm4458_vm8, %v4456_v18, %v4453_v39  ;;  %v3267_v23 = vadd.f32 1.0, %v9781_v62  ;;  %v7290_v8 = vpop.eup %7289  ;;  %vm9797_vm10 = vcmp.lt.f32.partialorder %v3264_v27, 0.0004427343  ;;  %v4447_v39 = vmul.f32 %v9704_v46, %v4446_v9 }
 0x31b   : > { %v4923_v12 = vadd.f32 %v4459_v44, %v4027_v48  ;;  %v4424_v48 = vadd.f32 1.0, %v9768_v11  ;;  %v7292_v18 = vpop.eup %7291  ;;  %v4444_v6 = vmul.f32 0.6931472, %v7290_v8  ;;  %vm4449_vm11 = vcmp.lt.f32.partialorder %v4448_v21, 0.0004427343 }
 0x31c   : > { %7293 = vlog2.f32 %v3267_v23  ;;  %v4435_v4 = vmul.f32 0.6931472, %v7292_v18  ;;  %v4438_v44 = vmul.f32 %v9692_v24, %v4437_v58  ;;  %v3263_v46 = vmul.f32 %v9744_v52, %v3262_v49 }
 0x31d   : > { %v6715_v2 = vadd.f32 -0.6931472, %v4923_v12  ;;  %7295 = vlog2.f32 %v4424_v48  ;;  %v4450_v29 = vsel %vm4449_vm11, %v4447_v39, %v4444_v6  ;;  %v2692_v12 = vand.u32 2147483647, %v9795_v38 }
 0x31e   : > { %v4922_v20 = vadd.f32 %v4450_v29, %v4026_v59  ;;  %v4441_v27 = vsel %vm4440_vm12, %v4438_v44, %v4435_v4  ;;  %7297 = vrsqrt.f32 %v9804_v36  ;;  %v3266_v24 = vsel %vm9797_vm10, %v3263_v46, %v3260_v30 }
 0x31f   : > { %v5613_v45 = vmul.f32 %v6715_v2, %v9651_v56  ;;  %v3270_v56 = vmul.f32 -0.5, %v9781_v62  ;;  %v3273_v9 = vand.u32 2147483647, %v9781_v62  ;;  %v11928_v52 = vmax.f32 %v9561_v53, 0.0  ;;  %v9828_v53 = vpop.f32.mrf.mxu2 }
 0x320   : > { %6674 = vmatmul.msk.f32.gmra.mxu2 %vm3612_vm2, %v6610_v14  ;;  %v4427_v14 = vmul.f32 -0.5, %v9768_v11  ;;  %v6714_v16 = vadd.f32 -0.6931472, %v4922_v20  ;;  %v4430_v21 = vand.u32 2147483647, %v9768_v11  ;;  %v2756_v23 = vsub.f32 0.0, %v2692_v12 }
 0x321   : > { %5666 = vmatpush.msrb.mxu1 %v5613_v45  ;;  %v4921_v33 = vadd.f32 %v4441_v27, %v11928_v52  ;;  %v9823_v0 = vmul.f32 %v835_v5, %v835_v5  ;;  %v6612_v2 = vadd.f32 -0.6931472, %v3521_v34  ;;  %v2627_v58 = vmax.f32 %v9720_v54, 0.0 }
 0x322   : > { %v4428_v19 = vadd.f32 1.0, %v4427_v14  ;;  %v7294_v59 = vpop.eup %7293  ;;  %v4415_v49 = vadd.f32 1.0, %v9683_v42  ;;  %v3522_v8 = vadd.f32 %v3266_v24, %v2626_v32  ;;  %v5612_v30 = vmul.f32 %v6714_v16, %v9613_v63 }
 0x323   : > { %v6713_v48 = vadd.f32 -0.6931472, %v4921_v33  ;;  %v7296_v51 = vpop.eup %7295  ;;  %v2861_v1 = vmul.f32 1.442695, %v2756_v23  ;;  %v4418_v39 = vmul.f32 -0.5, %v9683_v42  ;;  %v3271_v18 = vadd.f32 1.0, %v3270_v56 }
 0x324   : > { %v4426_v45 = vmul.f32 0.6931472, %v7296_v51  ;;  %v4429_v34 = vmul.f32 %v9768_v11, %v4428_v19  ;;  %7299 = vlog2.f32 %v4415_v49  ;;  %v7298_v54 = vpop.eup %7297  ;;  %vm9833_vm13 = vcmp.lt.f32.partialorder %v3273_v9, 0.0004427343  ;;  %5667 = vmatpush.msrb.mxu1 %v5612_v30  ;;  %v9862_v30 = vpop.f32.mrf.mxu3  ;;  %v9908_v33 = vld [vmem:[%s11844_s3 + $0x5] ss:$0 sm:$0xff] }
 0x325   : > { %v5611_v32 = vmul.f32 %v6713_v48, %v9541_v15  ;;  %vm4431_vm14 = vcmp.lt.f32.partialorder %v4430_v21, 0.0004427343  ;;  %7301 = vpow2.f32 %v2861_v1  ;;  %v1672_v14 = vmul.f32 %v7298_v54, %v9804_v36  ;;  %11934 = vst [vmem:[#allocation19_spill] sm:$0xff] %v9862_v30 }
 0x326   : > { %v4432_v63 = vsel %vm4431_vm14, %v4429_v34, %v4426_v45  ;;  %v9840_v4 = vadd.f32 -0.6931472, %v3522_v8  ;;  %v11931_v11 = vmax.f32 %v9601_v22, 0.0  ;;  %v4419_v46 = vadd.f32 1.0, %v4418_v39 }
 0x327   : > { %5668 = vmatpush.msrb.mxu1 %v5611_v32  ;;  %v4406_v56 = vadd.f32 1.0, %v9677_v35  ;;  %v3272_v29 = vmul.f32 %v9781_v62, %v3271_v18  ;;  %v1673_v15 = vmul.f32 %v7298_v54, %v1672_v14  ;;  %v4409_v5 = vmul.f32 -0.5, %v9677_v35  ;;  %v9864_v1 = vpop.f32.mrf.mxu2 }
 0x328   : > { %6675 = vmatmul.msk.f32.gmra.mxu2 %vm3612_vm2, %v6611_v60  ;;  %v3269_v60 = vmul.f32 0.6931472, %v7294_v59  ;;  %v4920_v44 = vadd.f32 %v4432_v63, %v11931_v11  ;;  %v4412_v20 = vand.u32 2147483647, %v9677_v35  ;;  %vm1678_vm15 = vcmp.eq.f32.partialorder %v9804_v36, inf }
 0x329   : > { %7303 = vlog2.f32 %v4406_v56  ;;  %v4397_v12 = vadd.f32 1.0, %v9619_v10  ;;  %v4400_v24 = vmul.f32 -0.5, %v9619_v10  ;;  %v1674_v52 = vmul.f32 0.5, %v1673_v15 }
 0x32a   : > { %v6712_v27 = vadd.f32 -0.6931472, %v4920_v44  ;;  %v7300_v22 = vpop.eup %7299  ;;  %v3275_v9 = vsel %vm9833_vm13, %v3272_v29, %v3269_v60  ;;  %vm1680_vm3 = vcmp.eq.f32.partialorder %v9804_v36, 0.0  ;;  %v1681_v62 = vand.u32 2147483648, %v9804_v36  ;;  %v2521_v29 = vpop.f32.mrf.mxu1 }
 0x32b   : > { %vm9855_vm4 = vcmp.lt.f32.partialorder %v4421_v17, 0.0004427343  ;;  %v7302_v19 = vpop.eup %7301  ;;  %v4417_v21 = vmul.f32 0.6931472, %v7300_v22  ;;  %v4420_v23 = vmul.f32 %v9683_v42, %v4419_v46  ;;  %7305 = vlog2.f32 %v4397_v12 }
 0x32c   : > { %v5610_v16 = vmul.f32 %v6712_v27, %v9492_v40  ;;  %v3276_v59 = vadd.f32 1.0, %v7302_v19  ;;  %v3279_v48 = vmul.f32 -0.5, %v7302_v19  ;;  %v1675_v49 = vsub.f32 1.5, %v1674_v52  ;;  %v9921_v39 = vpop.f32.mrf.mxu3 }
 0x32d   : > { %v4410_v51 = vadd.f32 1.0, %v4409_v5  ;;  %v3523_v8 = vadd.f32 %v3275_v9, %v2627_v58  ;;  %vm9868_vm5 = vcmp.lt.f32.partialorder %v4412_v20, 0.0004427343  ;;  %v4401_v40 = vadd.f32 1.0, %v4400_v24  ;;  %v9891_v20 = vpop.xlane.xlu1 %1051  ;;  %11942 = vst [vmem:[#allocation20_spill] sm:$0xff] %v9921_v39 }
 0x32e   : > { %5669 = vmatpush.msrb.mxu1 %v5610_v16  ;;  %7307 = vlog2.f32 %v3276_v59  ;;  %v3280_v42 = vadd.f32 1.0, %v3279_v48  ;;  %v3282_v18 = vand.u32 2147483647, %v7302_v19  ;;  %v1676_v45 = vmul.f32 %v7298_v54, %v1675_v49 }
 0x32f   : > { %v7304_v34 = vpop.eup %7303  ;;  %v11937_v58 = vmax.f32 %v9512_v13, 0.0  ;;  %v4403_v32 = vand.u32 2147483647, %v9619_v10  ;;  %v1092_v60 = vsel %vm902_vm1, %v9823_v0, 0.0  ;;  %v4388_v63 = vadd.f32 1.0, %v9556_v55 }
 0x330   : > { %6676 = vmatmul.msk.f32.gmra.mxu2 %vm3612_vm2, %v6612_v2  ;;  %v4423_v2 = vsel %vm9855_vm4, %v4420_v23, %v4417_v21  ;;  %v1677_v14 = vmul.f32 %v1676_v45, %v9804_v36  ;;  %v4408_v17 = vmul.f32 0.6931472, %v7304_v34  ;;  %v4411_v11 = vmul.f32 %v9677_v35, %v4410_v51  ;;  %1093 = vadd.xlane.f32.xlu0 %v1092_v60 }
 0x331   : > { %v4919_v6 = vadd.f32 %v4423_v2, %v11937_v58  ;;  %v4391_v44 = vmul.f32 -0.5, %v9556_v55  ;;  %v7306_v54 = vpop.eup %7305  ;;  %v3281_v46 = vmul.f32 %v7302_v19, %v3280_v42  ;;  %v4402_v13 = vmul.f32 %v9619_v10, %v4401_v40  ;;  %v5138_v10 = vld [vmem:[%s11846_s5 + $0x118] sm:$0xff]  ;;  %v9923_v40 = vpop.f32.mrf.mxu2 }
 0x332   : > { %7309 = vlog2.f32 %v4388_v63  ;;  %v1679_v0 = vsel %vm1678_vm15, %v9804_v36, %v1677_v14  ;;  %v4414_v15 = vsel %vm9868_vm5, %v4411_v11, %v4408_v17  ;;  %v4399_v5 = vmul.f32 0.6931472, %v7306_v54  ;;  %6809 = vmatmul.msk.f32.gmra.mxu3 %vm436_vm0, %v5138_v10 }
 0x333   : > { %v6711_v56 = vadd.f32 -0.6931472, %v4919_v6  ;;  %vm9887_vm1 = vcmp.lt.f32.partialorder %v4403_v32, 0.0004427343  ;;  %v1682_v27 = vsel %vm1680_vm3, %v1681_v62, %v1679_v0  ;;  %v11940_v24 = vmax.f32 %v9483_v31, 0.0 }
 0x334   : > { %v4394_v9 = vand.u32 2147483647, %v9556_v55  ;;  %v7308_v52 = vpop.eup %7307  ;;  %v4405_v36 = vsel %vm9887_vm1, %v4402_v13, %v4399_v5  ;;  %v4392_v62 = vadd.f32 1.0, %v4391_v44  ;;  %v11941_v16 = vmax.f32 %v9460_v50, 0.0 }
 0x335   : > { %v5609_v12 = vmul.f32 %v6711_v56, %v9454_v25  ;;  %v4918_v22 = vadd.f32 %v4414_v15, %v11940_v24  ;;  %v9914_v25 = vadd.f32 %v9594_v26, %v2521_v29  ;;  %v3278_v31 = vmul.f32 0.6931472, %v7308_v52  ;;  %v11945_v56 = vld [vmem:[#allocation17_spill] sm:$0xff]  ;;  %v11946_v29 = vld [vmem:[#allocation12_spill] sm:$0xff] }
 0x336   : > { %v4917_v21 = vadd.f32 %v4405_v36, %v11941_v16  ;;  %7311 = vrsqrt.f32 %v9891_v20  ;;  %v6614_v23 = vadd.f32 -0.6931472, %v3523_v8  ;;  %vm3283_vm6 = vcmp.lt.f32.partialorder %v3282_v18, 0.0004427343 }
 0x337   : > { %5670 = vmatpush.msrb.mxu1 %v5609_v12  ;;  %v6710_v19 = vadd.f32 -0.6931472, %v4918_v22  ;;  %v2693_v48 = vand.u32 2147483647, %v9914_v25  ;;  %v2628_v51 = vmax.f32 %v9795_v38, 0.0  ;;  %v3284_v2 = vsel %vm3283_vm6, %v3281_v46, %v3278_v31 }
 0x338   : > { %6677 = vmatmul.msk.f32.gmra.mxu2 %vm3612_vm2, %v9840_v4  ;;  %v1912_v4 = vsub.f32 %v1682_v27, %v9908_v33  ;;  %v7310_v49 = vpop.eup %7309  ;;  %v6709_v45 = vadd.f32 -0.6931472, %v4917_v21  ;;  %v4393_v58 = vmul.f32 %v9556_v55, %v4392_v62  ;;  %vm4395_vm8 = vcmp.lt.f32.partialorder %v4394_v9, 0.0004427343  ;;  %v11948_v9 = vld [vmem:[#allocation16_spill] sm:$0xff] }
 0x339   : > { %v5608_v42 = vmul.f32 %v6710_v19, %v9419_v37  ;;  %v4390_v34 = vmul.f32 0.6931472, %v7310_v49  ;;  %v2757_v8 = vsub.f32 0.0, %v2693_v48  ;;  %v3524_v18 = vadd.f32 %v3284_v2, %v2628_v51  ;;  %v9948_v19 = vpop.f32.mrf.mxu3  ;;  %v9950_v16 = vpop.f32.mrf.mxu2 }
 0x33a   : > { %v1976_v59 = vmul.f32 %v1912_v4, %v1912_v4  ;;  %v5607_v6 = vmul.f32 %v6709_v45, %v9378_v43  ;;  %v4379_v38 = vadd.f32 1.0, %v9525_v3  ;;  %v4382_v14 = vmul.f32 -0.5, %v9525_v3  ;;  %v11944_v43 = vld [vmem:[#allocation11_spill] sm:$0xff] }
 0x33b   : > { %5671 = vmatpush.msrb.mxu1 %v5608_v42  ;;  %v4396_v60 = vsel %vm4395_vm8, %v4393_v58, %v4390_v34  ;;  %v2863_v63 = vmul.f32 1.442695, %v2757_v8  ;;  %v4016_v17 = vmax.f32 %v9386_v47, 0.0  ;;  %v4017_v55 = vmax.f32 %v9400_v28, 0.0  ;;  %11949 = vst [vmem:[#allocation11_spill] sm:$0xff] %v9948_v19  ;;  %v11961_v58 = vld [vmem:[#allocation6_spill] sm:$0xff] }
 0x33c   : > { %v2040_v50 = vmul.f32 -10.0, %v1976_v59  ;;  %v7312_v37 = vpop.eup %7311  ;;  %v11943_v11 = vmax.f32 %v9440_v61, 0.0  ;;  %7313 = vlog2.f32 %v4379_v38  ;;  %v4018_v54 = vmax.f32 %v11944_v43, 0.0  ;;  %v11947_v61 = vld [vmem:[#allocation9_spill] sm:$0xff]  ;;  %v11950_v59 = vld [vmem:[#allocation15_spill] sm:$0xff] }
 0x33d   : > { %5672 = vmatpush.msrb.mxu1 %v5607_v6  ;;  %v1684_v46 = vmul.f32 %v7312_v37, %v9891_v20  ;;  %v4370_v13 = vadd.f32 1.0, %v11945_v56  ;;  %v4019_v0 = vmax.f32 %v11946_v29, 0.0  ;;  %v4094_v15 = vand.u32 2147483647, %v9753_v57 }
 0x33e   : > { %v2152_v32 = vmul.f32 1.442695, %v2040_v50  ;;  %v4916_v44 = vadd.f32 %v4396_v60, %v11943_v11  ;;  %v6615_v35 = vadd.f32 -0.6931472, %v3524_v18  ;;  %v4383_v27 = vadd.f32 1.0, %v4382_v14 }
 0x33f   : > { %v1685_v10 = vmul.f32 %v7312_v37, %v1684_v46  ;;  %vm1690_vm9 = vcmp.eq.f32.partialorder %v9891_v20, inf  ;;  %v4385_v24 = vand.u32 2147483647, %v9525_v3  ;;  %v4373_v22 = vmul.f32 -0.5, %v11945_v56 }
 0x340   : > { %6678 = vmatmul.msk.f32.gmra.mxu2 %vm3612_vm2, %v6614_v23  ;;  %7315 = vpow2.f32 %v2152_v32  ;;  %v6708_v5 = vadd.f32 -0.6931472, %v4916_v44  ;;  %v4361_v52 = vadd.f32 1.0, %v11948_v9  ;;  %vm1692_vm10 = vcmp.eq.f32.partialorder %v9891_v20, 0.0  ;;  %v2524_v44 = vpop.f32.mrf.mxu1 }
 0x341   : > { %7317 = vpow2.f32 %v2863_v63  ;;  %v1686_v4 = vmul.f32 0.5, %v1685_v10  ;;  %v4376_v36 = vand.u32 2147483647, %v11945_v56  ;;  %v4364_v62 = vmul.f32 -0.5, %v11948_v9 }
 0x342   : > { %7319 = vlog2.f32 %v4370_v13  ;;  %v5606_v12 = vmul.f32 %v6708_v5, %v11947_v61  ;;  %v7314_v31 = vpop.eup %7313  ;;  %v4374_v21 = vadd.f32 1.0, %v4373_v22  ;;  %v4367_v23 = vand.u32 2147483647, %v11948_v9 }
 0x343   : > { %7321 = vlog2.f32 %v4361_v52  ;;  %v4352_v48 = vadd.f32 1.0, %v11950_v59  ;;  %v1687_v51 = vsub.f32 1.5, %v1686_v4  ;;  %v1693_v2 = vand.u32 2147483648, %v9891_v20 }
 0x344   : > { %5673 = vmatpush.msrb.mxu1 %v5606_v12  ;;  %v4381_v42 = vmul.f32 0.6931472, %v7314_v31  ;;  %v4365_v45 = vadd.f32 1.0, %v4364_v62  ;;  %v4384_v34 = vmul.f32 %v9525_v3, %v4383_v27  ;;  %vm9957_vm11 = vcmp.lt.f32.partialorder %v4385_v24, 0.0004427343  ;;  %v5139_v62 = vld [vmem:[%s11846_s5 + $0x120] sm:$0xff] }
 0x345   : > { %7323 = vlog2.f32 %v4352_v48  ;;  %v4355_v8 = vmul.f32 -0.5, %v11950_v59  ;;  %v1688_v32 = vmul.f32 %v7312_v37, %v1687_v51  ;;  %vm9963_vm12 = vcmp.lt.f32.partialorder %v4376_v36, 0.0004427343  ;;  %v9991_v36 = vpop.xlane.xlu2 %1054  ;;  %6810 = vmatmul.msk.f32.gmra.mxu3 %vm436_vm0, %v5139_v62  ;;  %v10009_v51 = vpop.f32.mrf.mxu2  ;;  %v10051_v62 = vld [vmem:[%s11844_s3] ss:$0 sm:$0xff] }
 0x346   : > { %v7316_v49 = vpop.eup %7315  ;;  %v4387_v3 = vsel %vm9957_vm11, %v4384_v34, %v4381_v42  ;;  %v4375_v14 = vmul.f32 %v11945_v56, %v4374_v21  ;;  %vm9970_vm13 = vcmp.lt.f32.partialorder %v4367_v23, 0.0004427343  ;;  %v4366_v37 = vmul.f32 %v11948_v9, %v4365_v45  ;;  %v11959_v21 = vld [vmem:[#allocation7_spill] sm:$0xff]  ;;  %v10014_v42 = vld [vmem:[%s11844_s3 + $0x1] ss:$0 sm:$0xff] }
 0x347   : > { %v7318_v50 = vpop.eup %7317  ;;  %6558 = vmatmul.msk.f32.gmra.mxu1 %vm2185_vm7, %v7316_v49  ;;  %v1689_v13 = vmul.f32 %v1688_v32, %v9891_v20  ;;  %v4915_v5 = vadd.f32 %v4387_v3, %v4019_v0  ;;  %v4356_v10 = vadd.f32 1.0, %v4355_v8  ;;  %v4358_v27 = vand.u32 2147483647, %v11950_v59  ;;  %v10007_v49 = vpop.f32.mrf.mxu3 }
 0x348   : > { %6679 = vmatmul.msk.f32.gmra.mxu2 %vm3612_vm2, %v6615_v35  ;;  %v7320_v18 = vpop.eup %7319  ;;  %v3285_v6 = vadd.f32 1.0, %v7318_v50  ;;  %v3288_v38 = vmul.f32 -0.5, %v7318_v50  ;;  %v3291_v46 = vand.u32 2147483647, %v7318_v50  ;;  %v10004_v48 = vadd.f32 %v9594_v26, %v2524_v44  ;;  %11960 = vst [vmem:[#allocation17_spill] sm:$0xff] %v10007_v49  ;;  %v2527_v44 = vpop.f32.mrf.mxu1 }
 0x349   : > { %v4372_v63 = vmul.f32 0.6931472, %v7320_v18  ;;  %v7322_v29 = vpop.eup %7321  ;;  %v1691_v61 = vsel %vm1690_vm9, %v9891_v20, %v1689_v13  ;;  %v6707_v0 = vadd.f32 -0.6931472, %v4915_v5  ;;  %v4357_v52 = vmul.f32 %v11950_v59, %v4356_v10 }
 0x34a   : > { %7325 = vlog2.f32 %v3285_v6  ;;  %v3289_v56 = vadd.f32 1.0, %v3288_v38  ;;  %v4363_v24 = vmul.f32 0.6931472, %v7322_v29  ;;  %v1694_v9 = vsel %vm1692_vm10, %v1693_v2, %v1691_v61 }
 0x34b   : > { %v4378_v35 = vsel %vm9963_vm12, %v4375_v14, %v4372_v63  ;;  %v7324_v22 = vpop.eup %7323  ;;  %vm9987_vm14 = vcmp.lt.f32.partialorder %v4358_v27, 0.0004427343  ;;  %v1913_v43 = vsub.f32 %v1694_v9, %v9908_v33  ;;  %v5605_v23 = vmul.f32 %v6707_v0, %v11959_v21  ;;  %v11963_v14 = vld [vmem:[#allocation14_spill] sm:$0xff]  ;;  %v10036_v9 = vpop.xlane.xlu0 %1057  ;;  %v5140_v0 = vld [vmem:[%s11846_s5 + $0x128] sm:$0xff] }
 0x34c   : > { %v4914_v12 = vadd.f32 %v4378_v35, %v4018_v54  ;;  %v4369_v20 = vsel %vm9970_vm13, %v4366_v37, %v4363_v24  ;;  %v4354_v31 = vmul.f32 0.6931472, %v7324_v22  ;;  %7327 = vrsqrt.f32 %v9991_v36  ;;  %v11965_v24 = vld [vmem:[#allocation13_spill] sm:$0xff]  ;;  %v11967_v21 = vld [vmem:[#allocation10_spill] sm:$0xff] }
 0x34d   : > { %v4913_v59 = vadd.f32 %v4369_v20, %v4017_v55  ;;  %v10018_v45 = vadd.f32 %v10014_v42, %v9828_v53  ;;  %v3290_v28 = vmul.f32 %v7318_v50, %v3289_v56  ;;  %v1977_v55 = vmul.f32 %v1913_v43, %v1913_v43  ;;  %5674 = vmatpush.msrb.mxu1 %v5605_v23  ;;  %v11962_v50 = vld [vmem:[#allocation5_spill] sm:$0xff]  ;;  %v10058_v20 = vpop.f32.mrf.mxu2 }
 0x34e   : > { %v6706_v54 = vadd.f32 -0.6931472, %v4914_v12  ;;  %v4360_v26 = vsel %vm9987_vm14, %v4357_v52, %v4354_v31  ;;  %v2629_v38 = vmax.f32 %v9914_v25, 0.0  ;;  %vm3292_vm15 = vcmp.lt.f32.partialorder %v3291_v46, 0.0004427343  ;;  %v11964_v25 = vld [vmem:[#allocation4_spill] sm:$0xff]  ;;  %6811 = vmatmul.msk.f32.gmra.mxu3 %vm436_vm0, %v5140_v0 }
 0x34f   : > { %v6705_v18 = vadd.f32 -0.6931472, %v4913_v59  ;;  %v4912_v6 = vadd.f32 %v4360_v26, %v4016_v17  ;;  %v2041_v32 = vmul.f32 -10.0, %v1977_v55  ;;  %v2694_v53 = vand.u32 2147483647, %v10004_v48 }
 0x350   : > { %v7326_v2 = vpop.eup %7325  ;;  %v5604_v8 = vmul.f32 %v6706_v54, %v11961_v58  ;;  %v4343_v11 = vadd.f32 1.0, %v11963_v14  ;;  %v4346_v47 = vmul.f32 -0.5, %v11963_v14  ;;  %v4158_v27 = vsub.f32 0.0, %v4094_v15  ;;  %v10056_v54 = vpop.f32.mrf.mxu3 }
 0x351   : > { %v3287_v34 = vmul.f32 0.6931472, %v7326_v2  ;;  %v5603_v3 = vmul.f32 %v6705_v18, %v11962_v50  ;;  %v6704_v63 = vadd.f32 -0.6931472, %v4912_v6  ;;  %v2154_v37 = vmul.f32 1.442695, %v2041_v32 }
 0x352   : > { %5675 = vmatpush.msrb.mxu1 %v5604_v8  ;;  %v2758_v29 = vsub.f32 0.0, %v2694_v53  ;;  %v7328_v17 = vpop.eup %7327  ;;  %7329 = vlog2.f32 %v4343_v11  ;;  %v4097_v56 = vand.u32 2147483647, %v10018_v45  ;;  %v4347_v12 = vadd.f32 1.0, %v4346_v47 }
 0x353   : > { %v3293_v60 = vsel %vm3292_vm15, %v3290_v28, %v3287_v34  ;;  %v5602_v46 = vmul.f32 %v6704_v63, %v11964_v25  ;;  %7331 = vpow2.f32 %v2154_v37  ;;  %v1696_v10 = vmul.f32 %v7328_v17, %v9991_v36 }
 0x354   : > { %v3525_v13 = vadd.f32 %v3293_v60, %v2629_v38  ;;  %5676 = vmatpush.msrb.mxu1 %v5603_v3  ;;  %v2865_v35 = vmul.f32 1.442695, %v2758_v29  ;;  %v4334_v22 = vadd.f32 1.0, %v11965_v24  ;;  %v10044_v52 = vadd.f32 %v10014_v42, %v9864_v1  ;;  %v11966_v1 = vld [vmem:[#allocation8_spill] sm:$0xff] }
 0x355   : > { %v1697_v61 = vmul.f32 %v7328_v17, %v1696_v10  ;;  %v4349_v15 = vand.u32 2147483647, %v11963_v14  ;;  %v4337_v4 = vmul.f32 -0.5, %v11965_v24  ;;  %v10054_v43 = vadd.f32 %v10051_v62, %v2527_v44 }
 0x356   : > { %v6616_v5 = vadd.f32 -0.6931472, %v3525_v13  ;;  %5677 = vmatpush.msrb.mxu1 %v5602_v46  ;;  %7333 = vpow2.f32 %v2865_v35  ;;  %v4014_v31 = vmax.f32 %v11966_v1, 0.0  ;;  %v4015_v23 = vmax.f32 %v11967_v21, 0.0 }
 0x357   : > { %v1698_v59 = vmul.f32 0.5, %v1697_v61  ;;  %7335 = vlog2.f32 %v4334_v22  ;;  %v10063_v28 = vmul.f32 1.442695, %v4158_v27  ;;  %v10067_v55 = vadd.f32 %v10014_v42, %v9749_v41  ;;  %v2530_v41 = vpop.f32.mrf.mxu1  ;;  %v11969_v22 = vld [vmem:[#allocation3_spill] sm:$0xff] }
 0x358   : > { %6680 = vmatmul.msk.f32.gmra.mxu2 %vm3612_vm2, %v6616_v5  ;;  %v7330_v2 = vpop.eup %7329  ;;  %v4161_v26 = vsub.f32 0.0, %v4097_v56  ;;  %7337 = vrsqrt.f32 %v10036_v9  ;;  %v4348_v18 = vmul.f32 %v11963_v14, %v4347_v12  ;;  %v2695_v6 = vand.u32 2147483647, %v10054_v43  ;;  %v10091_v56 = vpop.xlane.xlu1 %1060 }
 0x359   : > { %11968 = vst [vmem:[#allocation12_spill] sm:$0xff] %v10067_v55  ;;  %v7332_v34 = vpop.eup %7331  ;;  %v1699_v58 = vsub.f32 1.5, %v1698_v59  ;;  %v4345_v8 = vmul.f32 0.6931472, %v7330_v2  ;;  %v4098_v38 = vand.u32 2147483647, %v10044_v52  ;;  %v10075_v32 = vadd.f32 %v10014_v42, %v9923_v40  ;;  %v10097_v0 = vpop.f32.mrf.mxu3 }
 0x35a   : > { %vm4350_vm3 = vcmp.lt.f32.partialorder %v4349_v15, 0.0004427343  ;;  %v4338_v53 = vadd.f32 1.0, %v4337_v4  ;;  %6559 = vmatmul.msk.f32.gmra.mxu1 %vm2185_vm7, %v7332_v34  ;;  %vm1702_vm4 = vcmp.eq.f32.partialorder %v9991_v36, inf  ;;  %v2759_v63 = vsub.f32 0.0, %v2695_v6  ;;  %v10099_v15 = vpop.f32.mrf.mxu2  ;;  %v5141_v4 = vld [vmem:[%s11846_s5 + $0x130] sm:$0xff] }
 0x35b   : > { %v1700_v50 = vmul.f32 %v7328_v17, %v1699_v58  ;;  %v4351_v3 = vsel %vm4350_vm3, %v4348_v18, %v4345_v8  ;;  %vm1704_vm5 = vcmp.eq.f32.partialorder %v9991_v36, 0.0  ;;  %v4340_v44 = vand.u32 2147483647, %v11965_v24  ;;  %6812 = vmatmul.msk.f32.gmra.mxu3 %vm436_vm0, %v5141_v4 }
 0x35c   : > { %v7334_v60 = vpop.eup %7333  ;;  %v4911_v11 = vadd.f32 %v4351_v3, %v4015_v23  ;;  %v1705_v29 = vand.u32 2147483648, %v9991_v36  ;;  %v2867_v47 = vmul.f32 1.442695, %v2759_v63  ;;  %v4339_v46 = vmul.f32 %v11965_v24, %v4338_v53 }
 0x35d   : > { %v3294_v14 = vadd.f32 1.0, %v7334_v60  ;;  %v7336_v13 = vpop.eup %7335  ;;  %v3297_v40 = vmul.f32 -0.5, %v7334_v60  ;;  %v1701_v37 = vmul.f32 %v1700_v50, %v9991_v36  ;;  %v10085_v5 = vadd.f32 %v10051_v62, %v2530_v41 }
 0x35e   : > { %v7338_v25 = vpop.eup %7337  ;;  %v6703_v17 = vadd.f32 -0.6931472, %v4911_v11  ;;  %v4336_v10 = vmul.f32 0.6931472, %v7336_v13  ;;  %v4099_v61 = vand.u32 2147483647, %v10075_v32 }
 0x35f   : > { %7339 = vlog2.f32 %v3294_v14  ;;  %v1703_v35 = vsel %vm1702_vm4, %v9991_v36, %v1701_v37  ;;  %v1708_v27 = vmul.f32 %v7338_v25, %v10036_v9  ;;  %vm4341_vm1 = vcmp.lt.f32.partialorder %v4340_v44, 0.0004427343  ;;  %v2533_v14 = vpop.f32.mrf.mxu1  ;;  %v11970_v37 = vld [vmem:[#allocation2_spill] sm:$0xff] }
 0x360   : > { %7341 = vpow2.f32 %v2867_v47  ;;  %v1706_v12 = vsel %vm1704_vm5, %v1705_v29, %v1703_v35  ;;  %v5601_v24 = vmul.f32 %v6703_v17, %v11969_v22  ;;  %v3298_v1 = vadd.f32 1.0, %v3297_v40 }
 0x361   : > { %v1914_v21 = vsub.f32 %v1706_v12, %v9908_v33  ;;  %v4342_v23 = vsel %vm4341_vm1, %v4339_v46, %v4336_v10  ;;  %v1709_v59 = vmul.f32 %v7338_v25, %v1708_v27  ;;  %v3300_v36 = vand.u32 2147483647, %v7334_v60  ;;  %v10118_v12 = vpop.xlane.xlu2 %1063 }
 0x362   : > { %5678 = vmatpush.msrb.mxu1 %v5601_v24  ;;  %v4910_v2 = vadd.f32 %v4342_v23, %v4014_v31  ;;  %v2696_v34 = vand.u32 2147483647, %v10085_v5  ;;  %7343 = vrsqrt.f32 %v10091_v56  ;;  %v4244_v58 = vmul.f32 1.442695, %v4161_v26  ;;  %v10123_v4 = vpop.f32.mrf.mxu2 }
 0x363   : > { %v4162_v8 = vsub.f32 0.0, %v4098_v38  ;;  %v1978_v18 = vmul.f32 %v1914_v21, %v1914_v21  ;;  %v1710_v6 = vmul.f32 0.5, %v1709_v59  ;;  %v4163_v41 = vsub.f32 0.0, %v4099_v61 }
 0x364   : > { %v2630_v50 = vmax.f32 %v10004_v48, 0.0  ;;  %v6702_v3 = vadd.f32 -0.6931472, %v4910_v2  ;;  %v2760_v63 = vsub.f32 0.0, %v2696_v34  ;;  %v3299_v13 = vmul.f32 %v7334_v60, %v3298_v1  ;;  %v5142_v1 = vld [vmem:[%s11846_s5 + $0x138] sm:$0xff] }
 0x365   : > { %v7340_v53 = vpop.eup %7339  ;;  %v2042_v40 = vmul.f32 -10.0, %v1978_v18  ;;  %v1711_v31 = vsub.f32 1.5, %v1710_v6  ;;  %vm3301_vm6 = vcmp.lt.f32.partialorder %v3300_v36, 0.0004427343  ;;  %v10112_v48 = vadd.f32 %v10014_v42, %v9950_v16  ;;  %v10121_v16 = vpop.f32.mrf.mxu3  ;;  %6813 = vmatmul.msk.f32.gmra.mxu3 %vm436_vm0, %v5142_v1 }
 0x366   : > { %v7342_v11 = vpop.eup %7341  ;;  %v3296_v44 = vmul.f32 0.6931472, %v7340_v53  ;;  %v5600_v29 = vmul.f32 %v6702_v3, %v11970_v37  ;;  %v2869_v35 = vmul.f32 1.442695, %v2760_v63  ;;  %vm1714_vm8 = vcmp.eq.f32.partialorder %v10036_v9, inf }
 0x367   : > { %v3303_v47 = vadd.f32 1.0, %v7342_v11  ;;  %v3306_v26 = vmul.f32 -0.5, %v7342_v11  ;;  %v2156_v17 = vmul.f32 1.442695, %v2042_v40  ;;  %v1712_v46 = vmul.f32 %v7338_v25, %v1711_v31 }
 0x368   : > { %v3302_v38 = vsel %vm3301_vm6, %v3299_v13, %v3296_v44  ;;  %v7344_v10 = vpop.eup %7343  ;;  %5679 = vmatpush.msrb.mxu1 %v5600_v29  ;;  %vm1716_vm9 = vcmp.eq.f32.partialorder %v10036_v9, 0.0  ;;  %v1717_v24 = vand.u32 2147483648, %v10036_v9  ;;  %v10130_v59 = vadd.f32 %v10051_v62, %v2533_v14 }
 0x369   : > { %v3526_v27 = vadd.f32 %v3302_v38, %v2630_v50  ;;  %7345 = vlog2.f32 %v3303_v47  ;;  %v1713_v60 = vmul.f32 %v1712_v46, %v10036_v9  ;;  %v1720_v61 = vmul.f32 %v7344_v10, %v10091_v56 }
 0x36a   : > { %7347 = vpow2.f32 %v2156_v17  ;;  %v3307_v22 = vadd.f32 1.0, %v3306_v26  ;;  %v4100_v36 = vand.u32 2147483647, %v10112_v48  ;;  %v10137_v2 = vadd.f32 %v10014_v42, %v10009_v51  ;;  %v2536_v51 = vpop.f32.mrf.mxu1 }
 0x36b   : > { %v6617_v25 = vadd.f32 -0.6931472, %v3526_v27  ;;  %7349 = vpow2.f32 %v2869_v35  ;;  %v1715_v21 = vsel %vm1714_vm8, %v10036_v9, %v1713_v60  ;;  %v1721_v23 = vmul.f32 %v7344_v10, %v1720_v61 }
 0x36c   : > { %7351 = vrsqrt.f32 %v10118_v12  ;;  %v3309_v34 = vand.u32 2147483647, %v7342_v11  ;;  %v1718_v18 = vsel %vm1716_vm9, %v1717_v24, %v1715_v21  ;;  %v2697_v50 = vand.u32 2147483647, %v10130_v59  ;;  %v10166_v21 = vpop.f32.mrf.mxu2 }
 0x36d   : > { %6681 = vmatmul.msk.f32.gmra.mxu2 %vm3612_vm2, %v6617_v25  ;;  %7353 = vpow2.f32 %v10063_v28  ;;  %v1915_v6 = vsub.f32 %v1718_v18, %v9908_v33  ;;  %v1722_v53 = vmul.f32 0.5, %v1721_v23  ;;  %v4246_v63 = vmul.f32 1.442695, %v4162_v8 }
 0x36e   : > { %7355 = vpow2.f32 %v4244_v58  ;;  %v4248_v14 = vmul.f32 1.442695, %v4163_v41  ;;  %v3308_v44 = vmul.f32 %v7342_v11, %v3307_v22  ;;  %v2761_v37 = vsub.f32 0.0, %v2697_v50  ;;  %v10158_v22 = vpop.xlane.xlu0 %1066 }
 0x36f   : > { %v7346_v3 = vpop.eup %7345  ;;  %v1979_v31 = vmul.f32 %v1915_v6, %v1915_v6  ;;  %v1723_v9 = vsub.f32 1.5, %v1722_v53  ;;  %v4164_v47 = vsub.f32 0.0, %v4100_v36  ;;  %v4101_v28 = vand.u32 2147483647, %v10137_v2 }
 0x370   : > { %v7348_v13 = vpop.eup %7347  ;;  %v3305_v40 = vmul.f32 0.6931472, %v7346_v3  ;;  %v2631_v26 = vmax.f32 %v10054_v43, 0.0  ;;  %vm3310_vm10 = vcmp.lt.f32.partialorder %v3309_v34, 0.0004427343  ;;  %v10149_v11 = vadd.f32 %v10051_v62, %v2536_v51 }
 0x371   : > { %v7350_v29 = vpop.eup %7349  ;;  %6560 = vmatmul.msk.f32.gmra.mxu1 %vm2185_vm7, %v7348_v13  ;;  %v2043_v8 = vmul.f32 -10.0, %v1979_v31  ;;  %v1724_v35 = vmul.f32 %v7344_v10, %v1723_v9  ;;  %v2871_v27 = vmul.f32 1.442695, %v2761_v37  ;;  %v10155_v43 = vadd.f32 %v10014_v42, %v10058_v20  ;;  %v10164_v10 = vpop.f32.mrf.mxu3  ;;  %v5143_v20 = vld [vmem:[%s11846_s5 + $0x140] sm:$0xff] }
 0x372   : > { %v7352_v38 = vpop.eup %7351  ;;  %v3311_v58 = vsel %vm3310_vm10, %v3308_v44, %v3305_v40  ;;  %v3312_v41 = vadd.f32 1.0, %v7350_v29  ;;  %v3315_v46 = vmul.f32 -0.5, %v7350_v29  ;;  %vm1726_vm11 = vcmp.eq.f32.partialorder %v10091_v56, inf  ;;  %6814 = vmatmul.msk.f32.gmra.mxu3 %vm436_vm0, %v5143_v20 }
 0x373   : > { %v3527_v17 = vadd.f32 %v3311_v58, %v2631_v26  ;;  %v10151_v60 = vpop.eup %7353  ;;  %v2158_v61 = vmul.f32 1.442695, %v2043_v8  ;;  %v1732_v25 = vmul.f32 %v7352_v38, %v10118_v12  ;;  %v1725_v1 = vmul.f32 %v1724_v35, %v10091_v56 }
 0x374   : > { %7357 = vlog2.f32 %v3312_v41  ;;  %v10160_v24 = vpop.eup %7355  ;;  %vm1728_vm12 = vcmp.eq.f32.partialorder %v10091_v56, 0.0  ;;  %v1729_v23 = vand.u32 2147483648, %v10091_v56  ;;  %v3316_v34 = vadd.f32 1.0, %v3315_v46 }
 0x375   : > { %v6618_v62 = vadd.f32 -0.6931472, %v3527_v17  ;;  %7359 = vpow2.f32 %v2871_v27  ;;  %v1733_v36 = vmul.f32 %v7352_v38, %v1732_v25  ;;  %v1727_v18 = vsel %vm1726_vm11, %v10091_v56, %v1725_v1 }
 0x376   : > { %7361 = vpow2.f32 %v2158_v61  ;;  %v2698_v6 = vand.u32 2147483647, %v10149_v11  ;;  %v3318_v53 = vand.u32 2147483647, %v7350_v29  ;;  %v1730_v50 = vsel %vm1728_vm12, %v1729_v23, %v1727_v18 }
 0x377   : > { %7363 = vrsqrt.f32 %v10158_v22  ;;  %6682 = vmatmul.msk.f32.gmra.mxu2 %vm3612_vm2, %v6618_v62  ;;  %v1734_v3 = vmul.f32 0.5, %v1733_v36  ;;  %v10180_v44 = vadd.f32 %v10014_v42, %v9788_v7  ;;  %v1916_v51 = vsub.f32 %v1730_v50, %v9908_v33 }
 0x378   : > { %7365 = vpow2.f32 %v4246_v63  ;;  %v2762_v13 = vsub.f32 0.0, %v2698_v6  ;;  %v4250_v56 = vmul.f32 1.442695, %v4164_v47  ;;  %v4165_v31 = vsub.f32 0.0, %v4101_v28  ;;  %v10192_v28 = vpop.xlane.xlu1 %1069 }
 0x379   : > { %7367 = vpow2.f32 %v4248_v14  ;;  %v4102_v9 = vand.u32 2147483647, %v10155_v43  ;;  %v1735_v37 = vsub.f32 1.5, %v1734_v3  ;;  %v3317_v58 = vmul.f32 %v7350_v29, %v3316_v34  ;;  %v10197_v25 = vpop.f32.mrf.mxu3 }
 0x37a   : > { %v7358_v40 = vpop.eup %7357  ;;  %v1980_v8 = vmul.f32 %v1916_v51, %v1916_v51  ;;  %v2873_v41 = vmul.f32 1.442695, %v2762_v13  ;;  %v2632_v7 = vmax.f32 %v10085_v5, 0.0  ;;  %vm10187_vm13 = vcmp.lt.f32.partialorder %v3318_v53, 0.0004427343  ;;  %v10199_v5 = vpop.f32.mrf.mxu2 }
 0x37b   : > { %v10184_v26 = vpop.eup %7359  ;;  %v3314_v63 = vmul.f32 0.6931472, %v7358_v40  ;;  %v1736_v47 = vmul.f32 %v7352_v38, %v1735_v37  ;;  %v5144_v38 = vld [vmem:[%s11846_s5 + $0x148] sm:$0xff]  ;;  %v4252_v1 = vmul.f32 1.442695, %v4165_v31  ;;  %v4166_v20 = vsub.f32 0.0, %v4102_v9  ;;  %v10213_v53 = vpop.xlane.xlu2 %1072 }
 0x37c   : > { %v7362_v17 = vpop.eup %7361  ;;  %v3321_v46 = vadd.f32 1.0, %v10184_v26  ;;  %v2044_v61 = vmul.f32 -10.0, %v1980_v8  ;;  %v3324_v29 = vmul.f32 -0.5, %v10184_v26  ;;  %7369 = vpow2.f32 %v2873_v41  ;;  %6815 = vmatmul.msk.f32.gmra.mxu3 %vm436_vm0, %v5144_v38 }
 0x37d   : > { %v7364_v35 = vpop.eup %7363  ;;  %v3320_v27 = vsel %vm10187_vm13, %v3317_v58, %v3314_v63  ;;  %6561 = vmatmul.msk.f32.gmra.mxu1 %vm2185_vm7, %v7362_v17  ;;  %v1737_v18 = vmul.f32 %v1736_v47, %v10118_v12  ;;  %vm1738_vm14 = vcmp.eq.f32.partialorder %v10118_v12, inf  ;;  %vm1740_vm15 = vcmp.eq.f32.partialorder %v10118_v12, 0.0 }
 0x37e   : > { %v10205_v62 = vpop.eup %7365  ;;  %v3528_v23 = vadd.f32 %v3320_v27, %v2632_v7  ;;  %7371 = vlog2.f32 %v3321_v46  ;;  %v2160_v34 = vmul.f32 1.442695, %v2044_v61  ;;  %v1744_v6 = vmul.f32 %v7364_v35, %v10158_v22 }
 0x37f   : > { %v10208_v36 = vpop.eup %7367  ;;  %v1741_v3 = vand.u32 2147483648, %v10118_v12  ;;  %7373 = vrsqrt.f32 %v10192_v28  ;;  %v3325_v51 = vadd.f32 1.0, %v3324_v29  ;;  %v1739_v13 = vsel %vm1738_vm14, %v10118_v12, %v1737_v18  ;;  %v5145_v12 = vld [vmem:[%s11846_s5 + $0x150] sm:$0xff] }
 0x380   : > { %v6619_v50 = vadd.f32 -0.6931472, %v3528_v23  ;;  %7375 = vpow2.f32 %v2160_v34  ;;  %v1745_v40 = vmul.f32 %v7364_v35, %v1744_v6  ;;  %v3327_v9 = vand.u32 2147483647, %v10184_v26 }
 0x381   : > { %v1742_v37 = vsel %vm1740_vm15, %v1741_v3, %v1739_v13  ;;  %7377 = vrsqrt.f32 %v10213_v53  ;;  %v10230_v7 = vmul.f32 1.442695, %v4166_v20  ;;  %v3326_v27 = vmul.f32 %v10184_v26, %v3325_v51  ;;  %v10235_v29 = vpop.f32.mrf.mxu3  ;;  %v10246_v3 = vpop.xlane.xlu0 %1075 }
 0x382   : > { %6683 = vmatmul.msk.f32.gmra.mxu2 %vm3612_vm2, %v6619_v50  ;;  %v10223_v63 = vpop.eup %7369  ;;  %7379 = vpow2.f32 %v4250_v56  ;;  %v1917_v8 = vsub.f32 %v1742_v37, %v9908_v33  ;;  %v1746_v41 = vmul.f32 0.5, %v1745_v40  ;;  %v10237_v38 = vpop.f32.mrf.mxu2  ;;  %v10241_v34 = vadd.f32 %v10014_v42, %v10099_v15 }
 0x383   : > { %7381 = vpow2.f32 %v4252_v1  ;;  %v3330_v14 = vadd.f32 1.0, %v10223_v63  ;;  %v3333_v46 = vmul.f32 -0.5, %v10223_v63  ;;  %v2633_v1 = vmax.f32 %v10130_v59, 0.0 }
 0x384   : > { %v7372_v17 = vpop.eup %7371  ;;  %v1981_v61 = vmul.f32 %v1917_v8, %v1917_v8  ;;  %v1747_v56 = vsub.f32 1.5, %v1746_v41  ;;  %vm3328_vm3 = vcmp.lt.f32.partialorder %v3327_v9, 0.0004427343  ;;  %6816 = vmatmul.msk.f32.gmra.mxu3 %vm436_vm0, %v5145_v12  ;;  %vm1750_vm4 = vcmp.eq.f32.partialorder %v10158_v22, inf }
 0x385   : > { %v3323_v47 = vmul.f32 0.6931472, %v7372_v17  ;;  %v7374_v23 = vpop.eup %7373  ;;  %7383 = vlog2.f32 %v3330_v14  ;;  %v3334_v40 = vadd.f32 1.0, %v3333_v46  ;;  %vm1752_vm5 = vcmp.eq.f32.partialorder %v10158_v22, 0.0 }
 0x386   : > { %v7376_v20 = vpop.eup %7375  ;;  %v2045_v26 = vmul.f32 -10.0, %v1981_v61  ;;  %v1748_v6 = vmul.f32 %v7364_v35, %v1747_v56  ;;  %v1756_v50 = vmul.f32 %v7374_v23, %v10192_v28  ;;  %v3336_v12 = vand.u32 2147483647, %v10223_v63 }
 0x387   : > { %v3329_v18 = vsel %vm3328_vm3, %v3326_v27, %v3323_v47  ;;  %v7378_v51 = vpop.eup %7377  ;;  %6562 = vmatmul.msk.f32.gmra.mxu1 %vm2185_vm7, %v7376_v20  ;;  %v1753_v17 = vand.u32 2147483648, %v10158_v22  ;;  %7385 = vrsqrt.f32 %v10246_v3  ;;  %v5146_v27 = vld [vmem:[%s11846_s5 + $0x158] sm:$0xff]  ;;  %v4103_v56 = vand.u32 2147483647, %v10241_v34 }
 0x388   : > { %v3529_v13 = vadd.f32 %v3329_v18, %v2633_v1  ;;  %v10251_v15 = vpop.eup %7379  ;;  %v2162_v59 = vmul.f32 1.442695, %v2045_v26  ;;  %v1749_v9 = vmul.f32 %v1748_v6, %v10158_v22  ;;  %v1757_v37 = vmul.f32 %v7374_v23, %v1756_v50 }
 0x389   : > { %v1768_v35 = vmul.f32 %v7378_v51, %v10213_v53  ;;  %v10255_v8 = vpop.eup %7381  ;;  %v10267_v1 = vadd.f32 %v10014_v42, %v10123_v4  ;;  %v3335_v20 = vmul.f32 %v10223_v63, %v3334_v40  ;;  %vm3337_vm1 = vcmp.lt.f32.partialorder %v3336_v12, 0.0004427343 }
 0x38a   : > { %v6620_v41 = vadd.f32 -0.6931472, %v3529_v13  ;;  %7387 = vpow2.f32 %v2162_v59  ;;  %v1751_v14 = vsel %vm1750_vm4, %v10158_v22, %v1749_v9  ;;  %v1758_v46 = vmul.f32 0.5, %v1757_v37  ;;  %v10274_v59 = vpop.f32.mrf.mxu3  ;;  %v3912_v9 = vpop.f32.mrf.mxu2 }
 0x38b   : > { %v1769_v47 = vmul.f32 %v7378_v51, %v1768_v35  ;;  %v7384_v61 = vpop.eup %7383  ;;  %v1754_v18 = vsel %vm1752_vm5, %v1753_v17, %v1751_v14  ;;  %v2634_v37 = vmax.f32 %v10149_v11, 0.0  ;;  %vm1762_vm6 = vcmp.eq.f32.partialorder %v10192_v28, inf }
 0x38c   : > { %6684 = vmatmul.msk.f32.gmra.mxu2 %vm3612_vm2, %v6620_v41  ;;  %v3332_v26 = vmul.f32 0.6931472, %v7384_v61  ;;  %v1918_v6 = vsub.f32 %v1754_v18, %v9908_v33  ;;  %v1759_v50 = vsub.f32 1.5, %v1758_v46  ;;  %v10280_v4 = vadd.f32 %v10014_v42, %v10199_v5  ;;  %6817 = vmatmul.msk.f32.gmra.mxu3 %vm436_vm0, %v5146_v27  ;;  %v10288_v27 = vpop.xlane.xlu1 %1078 }
 0x38d   : > { %v1770_v13 = vmul.f32 0.5, %v1769_v47  ;;  %v7386_v41 = vpop.eup %7385  ;;  %vm1764_vm8 = vcmp.eq.f32.partialorder %v10192_v28, 0.0  ;;  %v1765_v14 = vand.u32 2147483648, %v10192_v28  ;;  %vm1774_vm9 = vcmp.eq.f32.partialorder %v10213_v53, inf }
 0x38e   : > { %v3338_v22 = vsel %vm3337_vm1, %v3335_v20, %v3332_v26  ;;  %v1982_v63 = vmul.f32 %v1918_v6, %v1918_v6  ;;  %v1760_v40 = vmul.f32 %v7374_v23, %v1759_v50  ;;  %v1780_v47 = vmul.f32 %v7386_v41, %v10246_v3  ;;  %v5147_v50 = vld [vmem:[%s11846_s5 + $0x160] sm:$0xff] }
 0x38f   : > { %v1771_v35 = vsub.f32 1.5, %v1770_v13  ;;  %v3530_v17 = vadd.f32 %v3338_v22, %v2634_v37  ;;  %v4106_v23 = vand.u32 2147483647, %v10280_v4  ;;  %vm1776_vm10 = vcmp.eq.f32.partialorder %v10213_v53, 0.0  ;;  %v10312_v22 = vpop.xlane.xlu2 %1081 }
 0x390   : > { %v7388_v11 = vpop.eup %7387  ;;  %v2046_v12 = vmul.f32 -10.0, %v1982_v63  ;;  %v1761_v46 = vmul.f32 %v1760_v40, %v10192_v28  ;;  %v10294_v20 = vadd.f32 %v10014_v42, %v10237_v38  ;;  %v1781_v6 = vmul.f32 %v7386_v41, %v1780_v47 }
 0x391   : > { %v1772_v5 = vmul.f32 %v7378_v51, %v1771_v35  ;;  %v6621_v61 = vadd.f32 -0.6931472, %v3530_v17  ;;  %6563 = vmatmul.msk.f32.gmra.mxu1 %vm2185_vm7, %v7388_v11  ;;  %v1777_v38 = vand.u32 2147483648, %v10213_v53  ;;  %v10308_v37 = vadd.f32 %v10014_v42, %v3912_v9 }
 0x392   : > { %v2164_v18 = vmul.f32 1.442695, %v2046_v12  ;;  %v1763_v51 = vsel %vm1762_vm6, %v10192_v28, %v1761_v46  ;;  %7389 = vrsqrt.f32 %v10288_v27  ;;  %v1782_v28 = vmul.f32 0.5, %v1781_v6  ;;  %v10318_v35 = vpop.f32.mrf.mxu3  ;;  %v3915_v17 = vpop.f32.mrf.mxu2 }
 0x393   : > { %v1773_v26 = vmul.f32 %v1772_v5, %v10213_v53  ;;  %v1766_v13 = vsel %vm1764_vm8, %v1765_v14, %v1763_v51  ;;  %v10320_v14 = vsub.f32 0.0, %v4103_v56  ;;  %v4107_v11 = vand.u32 2147483647, %v10294_v20 }
 0x394   : > { %6685 = vmatmul.msk.f32.gmra.mxu2 %vm3612_vm2, %v6621_v61  ;;  %7391 = vpow2.f32 %v2164_v18  ;;  %v1919_v63 = vsub.f32 %v1766_v13, %v9908_v33  ;;  %v10326_v12 = vadd.f32 %v10014_v42, %v3915_v17  ;;  %6818 = vmatmul.msk.f32.gmra.mxu3 %vm436_vm0, %v5147_v50  ;;  %v1783_v47 = vsub.f32 1.5, %v1782_v28  ;;  %v10331_v61 = vpop.xlane.xlu0 %1084 }
 0x395   : > { %v1775_v40 = vsel %vm1774_vm9, %v10213_v53, %v1773_v26  ;;  %7393 = vrsqrt.f32 %v10312_v22  ;;  %v4104_v56 = vand.u32 2147483647, %v10267_v1  ;;  %v10336_v53 = vadd.f32 %v10014_v42, %v10166_v21 }
 0x396   : > { %v1778_v9 = vsel %vm1776_vm10, %v1777_v38, %v1775_v40  ;;  %v1983_v46 = vmul.f32 %v1919_v63, %v1919_v63  ;;  %v4108_v18 = vand.u32 2147483647, %v10308_v37  ;;  %v4109_v51 = vand.u32 2147483647, %v10326_v12 }
 0x397   : > { %v1920_v5 = vsub.f32 %v1778_v9, %v9908_v33  ;;  %v4170_v6 = vsub.f32 0.0, %v4106_v23  ;;  %v1784_v13 = vmul.f32 %v7386_v41, %v1783_v47  ;;  %v10340_v33 = vpop.xlane.xlu1 %1087  ;;  %v4171_v63 = vsub.f32 0.0, %v4107_v11  ;;  %v5148_v41 = vld [vmem:[%s11846_s5 + $0x168] sm:$0xff] }
 0x398   : > { %v2047_v26 = vmul.f32 -10.0, %v1983_v46  ;;  %v7390_v38 = vpop.eup %7389  ;;  %vm1786_vm11 = vcmp.eq.f32.partialorder %v10246_v3, inf  ;;  %v4173_v40 = vsub.f32 0.0, %v4109_v51  ;;  %7395 = vrsqrt.f32 %v10331_v61 }
 0x399   : > { %v1984_v50 = vmul.f32 %v1920_v5, %v1920_v5  ;;  %v1785_v17 = vmul.f32 %v1784_v13, %v10246_v3  ;;  %v1792_v9 = vmul.f32 %v7390_v38, %v10288_v27  ;;  %v1789_v23 = vand.u32 2147483648, %v10246_v3 }
 0x39a   : > { %v7392_v28 = vpop.eup %7391  ;;  %v2166_v42 = vmul.f32 1.442695, %v2047_v26  ;;  %v4172_v46 = vsub.f32 0.0, %v4108_v18  ;;  %v4268_v11 = vmul.f32 1.442695, %v4173_v40  ;;  %7397 = vrsqrt.f32 %v10340_v33  ;;  %v10356_v26 = vpop.f32.mrf.mxu3 }
 0x39b   : > { %v2048_v21 = vmul.f32 -10.0, %v1984_v50  ;;  %6564 = vmatmul.msk.f32.gmra.mxu1 %vm2185_vm7, %v7392_v28  ;;  %v7394_v5 = vpop.eup %7393  ;;  %v1787_v47 = vsel %vm1786_vm11, %v10246_v3, %v1785_v17  ;;  %vm1788_vm12 = vcmp.eq.f32.partialorder %v10246_v3, 0.0  ;;  %v1793_v51 = vmul.f32 %v7390_v38, %v1792_v9  ;;  %v10358_v50 = vpop.f32.mrf.mxu2  ;;  %v10370_v3 = vld [vmem:[%s11844_s3 + $0x5] ss:$0 sm:$0xff] }
 0x39c   : > { %7399 = vpow2.f32 %v2166_v42  ;;  %11973 = vst [vmem:[#allocation9_spill] sm:$0xff] %v10358_v50  ;;  %v1790_v18 = vsel %vm1788_vm12, %v1789_v23, %v1787_v47  ;;  %v1804_v40 = vmul.f32 %v7394_v5, %v10312_v22  ;;  %6819 = vmatmul.msk.f32.gmra.mxu3 %vm436_vm0, %v5148_v41  ;;  %v10362_v28 = vpop.xlane.xlu2 %1090  ;;  %v10364_v42 = vsub.f32 0.0, %v4104_v56 }
 0x39d   : > { %v2168_v13 = vmul.f32 1.442695, %v2048_v21  ;;  %7401 = vpow2.f32 %v4268_v11  ;;  %v1921_v9 = vsub.f32 %v1790_v18, %v10370_v3  ;;  %v1794_v21 = vmul.f32 0.5, %v1793_v51 }
 0x39e   : > { %v7396_v23 = vpop.eup %7395  ;;  %v10373_v11 = vmul.f32 1.442695, %v4170_v6  ;;  %v10375_v47 = vmul.f32 1.442695, %v4171_v63  ;;  %v4266_v41 = vmul.f32 1.442695, %v4172_v46  ;;  %v1805_v31 = vmul.f32 %v7394_v5, %v1804_v40 }
 0x39f   : > { %v1985_v58 = vmul.f32 %v1921_v9, %v1921_v9  ;;  %v1795_v56 = vsub.f32 1.5, %v1794_v21  ;;  %v1816_v50 = vmul.f32 %v7396_v23, %v10331_v61  ;;  %7403 = vrsqrt.f32 %v10362_v28  ;;  %v5149_v46 = vld [vmem:[%s11846_s5 + $0x170] sm:$0xff] }
 0x3a0   : > { %v7398_v17 = vpop.eup %7397  ;;  %7405 = vpow2.f32 %v2168_v13  ;;  %vm1798_vm13 = vcmp.eq.f32.partialorder %v10288_v27, inf  ;;  %vm1800_vm14 = vcmp.eq.f32.partialorder %v10288_v27, 0.0  ;;  %v1806_v51 = vmul.f32 0.5, %v1805_v31 }
 0x3a1   : > { %v2049_v6 = vmul.f32 -10.0, %v1985_v58  ;;  %v1796_v30 = vmul.f32 %v7390_v38, %v1795_v56  ;;  %v1817_v63 = vmul.f32 %v7396_v23, %v1816_v50  ;;  %v1828_v40 = vmul.f32 %v7398_v17, %v10340_v33 }
 0x3a2   : > { %v7400_v18 = vpop.eup %7399  ;;  %7407 = vpow2.f32 %v4266_v41  ;;  %v1801_v13 = vand.u32 2147483648, %v10288_v27  ;;  %v1807_v21 = vsub.f32 1.5, %v1806_v51  ;;  %vm1810_vm15 = vcmp.eq.f32.partialorder %v10312_v22, inf  ;;  %v10391_v50 = vpop.f32.mrf.mxu3 }
 0x3a3   : > { %v10385_v9 = vpop.eup %7401  ;;  %6565 = vmatmul.msk.f32.gmra.mxu1 %vm2185_vm7, %v7400_v18  ;;  %v2170_v31 = vmul.f32 1.442695, %v2049_v6  ;;  %v1797_v58 = vmul.f32 %v1796_v30, %v10288_v27  ;;  %v1818_v38 = vmul.f32 0.5, %v1817_v63  ;;  %v10393_v56 = vpop.f32.mrf.mxu2  ;;  %v1829_v39 = vmul.f32 %v7398_v17, %v1828_v40 }
 0x3a4   : > { %11974 = vst [vmem:[#allocation16_spill] sm:$0xff] %v10393_v56  ;;  %v1808_v57 = vmul.f32 %v7394_v5, %v1807_v21  ;;  %vm1812_vm3 = vcmp.eq.f32.partialorder %v10312_v22, 0.0  ;;  %v1813_v41 = vand.u32 2147483648, %v10312_v22  ;;  %6820 = vmatmul.msk.f32.gmra.mxu3 %vm436_vm0, %v5149_v46  ;;  %v4613_v51 = vadd.f32 1.0, %v10385_v9 }
 0x3a5   : > { %v7404_v19 = vpop.eup %7403  ;;  %v1799_v30 = vsel %vm1798_vm13, %v10288_v27, %v1797_v58  ;;  %v1819_v18 = vsub.f32 1.5, %v1818_v38  ;;  %vm1822_vm4 = vcmp.eq.f32.partialorder %v10331_v61, inf  ;;  %v1830_v6 = vmul.f32 0.5, %v1829_v39 }
 0x3a6   : > { %v7406_v63 = vpop.eup %7405  ;;  %7409 = vpow2.f32 %v2170_v31  ;;  %v1802_v5 = vsel %vm1800_vm14, %v1801_v13, %v1799_v30  ;;  %v1809_v40 = vmul.f32 %v1808_v57, %v10312_v22  ;;  %vm1824_vm5 = vcmp.eq.f32.partialorder %v10331_v61, 0.0  ;;  %v5150_v30 = vld [vmem:[%s11846_s5 + $0x178] sm:$0xff] }
 0x3a7   : > { %v1922_v46 = vsub.f32 %v1802_v5, %v10370_v3  ;;  %v1820_v21 = vmul.f32 %v7396_v23, %v1819_v18  ;;  %v1831_v56 = vsub.f32 1.5, %v1830_v6  ;;  %v1840_v49 = vmul.f32 %v7404_v19, %v10362_v28 }
 0x3a8   : > { %v10409_v58 = vpop.eup %7407  ;;  %v1811_v39 = vsel %vm1810_vm15, %v10312_v22, %v1809_v40  ;;  %v1825_v31 = vand.u32 2147483648, %v10331_v61  ;;  %7411 = vlog2.f32 %v4613_v51  ;;  %v4616_v27 = vmul.f32 -0.5, %v10385_v9 }
 0x3a9   : > { %v1986_v57 = vmul.f32 %v1922_v46, %v1922_v46  ;;  %v1814_v13 = vsel %vm1812_vm3, %v1813_v41, %v1811_v39  ;;  %v1821_v23 = vmul.f32 %v1820_v21, %v10331_v61  ;;  %v1832_v38 = vmul.f32 %v7398_v17, %v1831_v56 }
 0x3aa   : > { %v1923_v18 = vsub.f32 %v1814_v13, %v10370_v3  ;;  %vm1834_vm1 = vcmp.eq.f32.partialorder %v10340_v33, inf  ;;  %vm1836_vm6 = vcmp.eq.f32.partialorder %v10340_v33, 0.0  ;;  %v1841_v51 = vmul.f32 %v7404_v19, %v1840_v49  ;;  %v10431_v41 = vpop.f32.mrf.mxu3 }
 0x3ab   : > { %6566 = vmatmul.msk.f32.gmra.mxu1 %vm2185_vm7, %v7406_v63  ;;  %v2050_v6 = vmul.f32 -10.0, %v1986_v57  ;;  %v1823_v22 = vsel %vm1822_vm4, %v10331_v61, %v1821_v23  ;;  %v1833_v17 = vmul.f32 %v1832_v38, %v10340_v33  ;;  %v1837_v56 = vand.u32 2147483648, %v10340_v33  ;;  %v10433_v5 = vpop.f32.mrf.mxu2 }
 0x3ac   : > { %11975 = vst [vmem:[#allocation15_spill] sm:$0xff] %v10433_v5  ;;  %v7410_v40 = vpop.eup %7409  ;;  %v1987_v63 = vmul.f32 %v1923_v18, %v1923_v18  ;;  %v1826_v46 = vsel %vm1824_vm5, %v1825_v31, %v1823_v22  ;;  %6821 = vmatmul.msk.f32.gmra.mxu3 %vm436_vm0, %v5150_v30  ;;  %v4617_v49 = vadd.f32 1.0, %v4616_v27  ;;  %v4619_v21 = vand.u32 2147483647, %v10385_v9 }
 0x3ad   : > { %v2172_v39 = vmul.f32 1.442695, %v2050_v6  ;;  %v1924_v57 = vsub.f32 %v1826_v46, %v10370_v3  ;;  %v1835_v13 = vsel %vm1834_vm1, %v10340_v33, %v1833_v17  ;;  %v1842_v23 = vmul.f32 0.5, %v1841_v51 }
 0x3ae   : > { %v7412_v38 = vpop.eup %7411  ;;  %v4256_v5 = vmul.f32 1.442695, %v10320_v14  ;;  %v4258_v18 = vmul.f32 1.442695, %v10364_v42  ;;  %7413 = vpow2.f32 %v10373_v11  ;;  %v1838_v61 = vsel %vm1836_vm6, %v1837_v56, %v1835_v13 }
 0x3af   : > { %v11976_v31 = vand.u32 2147483647, %v10336_v53  ;;  %7415 = vpow2.f32 %v10375_v47  ;;  %v1925_v30 = vsub.f32 %v1838_v61, %v10370_v3  ;;  %v1843_v6 = vsub.f32 1.5, %v1842_v23 }
 0x3b0   : > { %v4045_v51 = vmax.f32 %v10326_v12, 0.0  ;;  %v1988_v22 = vmul.f32 %v1924_v57, %v1924_v57  ;;  %v4615_v17 = vmul.f32 0.6931472, %v7412_v38  ;;  %v4618_v14 = vmul.f32 %v10385_v9, %v4617_v49  ;;  %v10469_v38 = vpop.xlane.xlu0 %1093 }
 0x3b1   : > { %v4169_v27 = vsub.f32 0.0, %v11976_v31  ;;  %7417 = vpow2.f32 %v2172_v39  ;;  %v2051_v42 = vmul.f32 -10.0, %v1987_v63  ;;  %v1844_v11 = vmul.f32 %v7404_v19, %v1843_v6 }
 0x3b2   : > { %vm4620_vm8 = vcmp.lt.f32.partialorder %v4619_v21, 0.0004427343  ;;  %7419 = vpow2.f32 %v10230_v7  ;;  %v1989_v33 = vmul.f32 %v1925_v30, %v1925_v30  ;;  %v4604_v47 = vadd.f32 1.0, %v10409_v58  ;;  %v5469_v57 = vpop.f32.mrf.mxu3 }
 0x3b3   : > { %6567 = vmatmul.msk.f32.gmra.mxu1 %vm2185_vm7, %v7410_v40  ;;  %v4621_v56 = vsel %vm4620_vm8, %v4618_v14, %v4615_v17  ;;  %7421 = vpow2.f32 %v4256_v5  ;;  %v4260_v46 = vmul.f32 1.442695, %v4169_v27  ;;  %v1845_v12 = vmul.f32 %v1844_v11, %v10362_v28  ;;  %v10458_v13 = vpop.f32.mrf.mxu2 }
 0x3b4   : > { %11977 = vst [vmem:[#allocation7_spill] sm:$0xff] %v10458_v13  ;;  %v4941_v9 = vadd.f32 %v4621_v56, %v4045_v51  ;;  %v10460_v49 = vpop.eup %7413  ;;  %v11978_v19 = vand.u32 2147483647, %v10180_v44  ;;  %7423 = vpow2.f32 %v4258_v18  ;;  %v2052_v7 = vmul.f32 -10.0, %v1988_v22 }
 0x3b5   : > { %vm1846_vm9 = vcmp.eq.f32.partialorder %v10362_v28, inf  ;;  %v10465_v40 = vpop.eup %7415  ;;  %v2174_v21 = vmul.f32 1.442695, %v2051_v42  ;;  %v4607_v23 = vmul.f32 -0.5, %v10409_v58  ;;  %v2053_v61 = vmul.f32 -10.0, %v1989_v33 }
 0x3b6   : > { %v4160_v63 = vsub.f32 0.0, %v11978_v19  ;;  %v1847_v5 = vsel %vm1846_vm9, %v10362_v28, %v1845_v12  ;;  %v6733_v39 = vadd.f32 -0.6931472, %v4941_v9  ;;  %v1849_v31 = vand.u32 2147483648, %v10362_v28 }
 0x3b7   : > { %7425 = vlog2.f32 %v4604_v47  ;;  %v7418_v27 = vpop.eup %7417  ;;  %vm1848_vm10 = vcmp.eq.f32.partialorder %v10362_v28, 0.0  ;;  %v11979_v6 = vand.u32 2147483647, %v10067_v55  ;;  %v2176_v22 = vmul.f32 1.442695, %v2052_v7 }
 0x3b8   : > { %7427 = vpow2.f32 %v4260_v46  ;;  %v5631_v18 = vmul.f32 %v6733_v39, %v5469_v57  ;;  %v10473_v30 = vpop.eup %7419  ;;  %v1850_v17 = vsel %vm1848_vm10, %v1849_v31, %v1847_v5  ;;  %v10482_v42 = vmul.f32 1.442695, %v4160_v63 }
 0x3b9   : > { %v10477_v51 = vsub.f32 0.0, %v11979_v6  ;;  %7429 = vrsqrt.f32 %v10469_v38  ;;  %v10480_v14 = vpop.eup %7421  ;;  %v4608_v11 = vadd.f32 1.0, %v4607_v23  ;;  %v4595_v28 = vadd.f32 1.0, %v10465_v40 }
 0x3ba   : > { %7431 = vpow2.f32 %v2174_v21  ;;  %5705 = vmatpush.msrb.mxu2 %v5631_v18  ;;  %v10485_v33 = vpop.eup %7423  ;;  %v2178_v56 = vmul.f32 1.442695, %v2053_v61  ;;  %v4610_v47 = vand.u32 2147483647, %v10409_v58  ;;  %v4598_v46 = vmul.f32 -0.5, %v10465_v40  ;;  %v10493_v19 = vpop.f32.mrf.mxu3 }
 0x3bb   : > { %6568 = vmatmul.msk.f32.gmra.mxu1 %vm2185_vm7, %v7418_v27  ;;  %v4586_v12 = vadd.f32 1.0, %v10460_v49  ;;  %v1926_v9 = vsub.f32 %v1850_v17, %v10370_v3  ;;  %7433 = vlog2.f32 %v4595_v28  ;;  %11980 = vst [vmem:[#allocation6_spill] sm:$0xff] %v10493_v19  ;;  %v10495_v63 = vpop.f32.mrf.mxu2  ;;  %v4589_v7 = vmul.f32 -0.5, %v10460_v49 }
 0x3bc   : > { %11981 = vst [vmem:[#allocation5_spill] sm:$0xff] %v10495_v63  ;;  %v4042_v39 = vmax.f32 %v10280_v4, 0.0  ;;  %v4043_v23 = vmax.f32 %v10294_v20, 0.0  ;;  %7435 = vpow2.f32 %v2176_v22  ;;  %v4609_v27 = vmul.f32 %v10409_v58, %v4608_v11 }
 0x3bd   : > { %v7426_v21 = vpop.eup %7425  ;;  %v4601_v18 = vand.u32 2147483647, %v10465_v40  ;;  %7437 = vlog2.f32 %v4586_v12  ;;  %v4044_v17 = vmax.f32 %v10308_v37, 0.0  ;;  %vm4611_vm11 = vcmp.lt.f32.partialorder %v4610_v47, 0.0004427343 }
 0x3be   : > { %v7428_v61 = vpop.eup %7427  ;;  %v4606_v31 = vmul.f32 0.6931472, %v7426_v21  ;;  %7439 = vpow2.f32 %v2178_v56  ;;  %v4599_v28 = vadd.f32 1.0, %v4598_v46  ;;  %v1990_v5 = vmul.f32 %v1926_v9, %v1926_v9 }
 0x3bf   : > { %v7430_v6 = vpop.eup %7429  ;;  %v4590_v20 = vadd.f32 1.0, %v4589_v7  ;;  %v4592_v21 = vand.u32 2147483647, %v10460_v49  ;;  %v4577_v63 = vadd.f32 1.0, %v7428_v61  ;;  %v4580_v58 = vmul.f32 -0.5, %v7428_v61 }
 0x3c0   : > { %v7432_v57 = vpop.eup %7431  ;;  %v4612_v19 = vsel %vm4611_vm11, %v4609_v27, %v4606_v31  ;;  %v1852_v4 = vmul.f32 %v7430_v6, %v10469_v38  ;;  %vm10506_vm12 = vcmp.lt.f32.partialorder %v4601_v18, 0.0004427343  ;;  %v4568_v37 = vadd.f32 1.0, %v10485_v33 }
 0x3c1   : > { %v4940_v22 = vadd.f32 %v4612_v19, %v4044_v17  ;;  %v7434_v11 = vpop.eup %7433  ;;  %v4571_v56 = vmul.f32 -0.5, %v10485_v33  ;;  %vm1858_vm13 = vcmp.eq.f32.partialorder %v10469_v38, inf  ;;  %v4600_v19 = vmul.f32 %v10465_v40, %v4599_v28 }
 0x3c2   : > { %v1853_v13 = vmul.f32 %v7430_v6, %v1852_v4  ;;  %v7436_v47 = vpop.eup %7435  ;;  %v4597_v9 = vmul.f32 0.6931472, %v7434_v11  ;;  %7441 = vlog2.f32 %v4577_v63  ;;  %vm1860_vm14 = vcmp.eq.f32.partialorder %v10469_v38, 0.0  ;;  %v10517_v17 = vpop.f32.mrf.mxu3 }
 0x3c3   : > { %v6732_v46 = vadd.f32 -0.6931472, %v4940_v22  ;;  %6569 = vmatmul.msk.f32.gmra.mxu1 %vm2185_vm7, %v7432_v57  ;;  %v7438_v7 = vpop.eup %7437  ;;  %v4591_v27 = vmul.f32 %v10460_v49, %v4590_v20  ;;  %v4583_v18 = vand.u32 2147483647, %v7428_v61  ;;  %7443 = vlog2.f32 %v4568_v37  ;;  %11984 = vst [vmem:[#allocation14_spill] sm:$0xff] %v10517_v17  ;;  %v10519_v4 = vpop.f32.mrf.mxu2 }
 0x3c4   : > { %v1854_v31 = vmul.f32 0.5, %v1853_v13  ;;  %11985 = vst [vmem:[#allocation4_spill] sm:$0xff] %v10519_v4  ;;  %v10521_v22 = vpop.eup %7439  ;;  %v4603_v40 = vsel %vm10506_vm12, %v4600_v19, %v4597_v9  ;;  %v4588_v57 = vmul.f32 0.6931472, %v7438_v7  ;;  %v4581_v63 = vadd.f32 1.0, %v4580_v58 }
 0x3c5   : > { %v5630_v11 = vmul.f32 %v6732_v46, %v10431_v41  ;;  %v4939_v28 = vadd.f32 %v4603_v40, %v4043_v23  ;;  %vm4593_vm15 = vcmp.lt.f32.partialorder %v4592_v21, 0.0004427343  ;;  %v4572_v55 = vadd.f32 1.0, %v4571_v56 }
 0x3c6   : > { %v1855_v13 = vsub.f32 1.5, %v1854_v31  ;;  %v4594_v49 = vsel %vm4593_vm15, %v4591_v27, %v4588_v57  ;;  %v4574_v20 = vand.u32 2147483647, %v10485_v33  ;;  %v4559_v37 = vadd.f32 1.0, %v10480_v14 }
 0x3c7   : > { %5706 = vmatpush.msrb.mxu2 %v5630_v11  ;;  %v4562_v17 = vmul.f32 -0.5, %v10480_v14  ;;  %v1861_v41 = vand.u32 2147483648, %v10469_v38  ;;  %v6731_v46 = vadd.f32 -0.6931472, %v4939_v28  ;;  %v4938_v12 = vadd.f32 %v4594_v49, %v4042_v39 }
 0x3c8   : > { %v1856_v4 = vmul.f32 %v7430_v6, %v1855_v13  ;;  %v7442_v9 = vpop.eup %7441  ;;  %v2054_v19 = vmul.f32 -10.0, %v1990_v5  ;;  %v4582_v58 = vmul.f32 %v7428_v61, %v4581_v63  ;;  %vm10530_vm3 = vcmp.lt.f32.partialorder %v4583_v18, 0.0004427343 }
 0x3c9   : > { %7445 = vlog2.f32 %v4559_v37  ;;  %v7444_v21 = vpop.eup %7443  ;;  %v5629_v7 = vmul.f32 %v6731_v46, %v10391_v50  ;;  %v6730_v31 = vadd.f32 -0.6931472, %v4938_v12  ;;  %v4579_v27 = vmul.f32 0.6931472, %v7442_v9 }
 0x3ca   : > { %v1857_v56 = vmul.f32 %v1856_v4, %v10469_v38  ;;  %v4570_v6 = vmul.f32 0.6931472, %v7444_v21  ;;  %v4573_v11 = vmul.f32 %v10485_v33, %v4572_v55  ;;  %vm10537_vm4 = vcmp.lt.f32.partialorder %v4574_v20, 0.0004427343  ;;  %v10549_v55 = vpop.f32.mrf.mxu3 }
 0x3cb   : > { %v4563_v5 = vadd.f32 1.0, %v4562_v17  ;;  %6570 = vmatmul.msk.f32.gmra.mxu1 %vm2185_vm7, %v7436_v47  ;;  %5707 = vmatpush.msrb.mxu2 %v5629_v7  ;;  %v5628_v18 = vmul.f32 %v6730_v31, %v10356_v26  ;;  %v4585_v50 = vsel %vm10530_vm3, %v4582_v58, %v4579_v27  ;;  %v4550_v4 = vadd.f32 1.0, %v10473_v30  ;;  %11990 = vst [vmem:[#allocation13_spill] sm:$0xff] %v10549_v55  ;;  %v10551_v33 = vpop.f32.mrf.mxu2 }
 0x3cc   : > { %v1859_v61 = vsel %vm1858_vm13, %v10469_v38, %v1857_v56  ;;  %v11991_v47 = vmax.f32 %v10336_v53, 0.0  ;;  %v4576_v57 = vsel %vm10537_vm4, %v4573_v11, %v4570_v6  ;;  %v4565_v26 = vand.u32 2147483647, %v10480_v14 }
 0x3cd   : > { %v1862_v17 = vsel %vm1860_vm14, %v1861_v41, %v1859_v61  ;;  %v2180_v63 = vmul.f32 1.442695, %v2054_v19  ;;  %5708 = vmatpush.msrb.mxu2 %v5628_v18  ;;  %v11992_v28 = vmax.f32 %v10267_v1, 0.0  ;;  %7447 = vlog2.f32 %v4550_v4 }
 0x3ce   : > { %v4937_v40 = vadd.f32 %v4585_v50, %v11991_v47  ;;  %v1927_v13 = vsub.f32 %v1862_v17, %v10370_v3  ;;  %v4039_v38 = vmax.f32 %v10241_v34, 0.0  ;;  %v4553_v53 = vmul.f32 -0.5, %v10473_v30 }
 0x3cf   : > { %v4936_v49 = vadd.f32 %v4576_v57, %v11992_v28  ;;  %v7446_v20 = vpop.eup %7445  ;;  %v4541_v41 = vadd.f32 1.0, %v10255_v8  ;;  %v4564_v19 = vmul.f32 %v10480_v14, %v4563_v5  ;;  %vm4566_vm5 = vcmp.lt.f32.partialorder %v4565_v26, 0.0004427343 }
 0x3d0   : > { %v6729_v37 = vadd.f32 -0.6931472, %v4937_v40  ;;  %v1991_v46 = vmul.f32 %v1927_v13, %v1927_v13  ;;  %v4561_v9 = vmul.f32 0.6931472, %v7446_v20  ;;  %v4554_v58 = vadd.f32 1.0, %v4553_v53 }
 0x3d1   : > { %v6728_v12 = vadd.f32 -0.6931472, %v4936_v49  ;;  %7449 = vlog2.f32 %v4541_v41  ;;  %v4556_v34 = vand.u32 2147483647, %v10473_v30  ;;  %v4544_v31 = vmul.f32 -0.5, %v10255_v8 }
 0x3d2   : > { %v5627_v3 = vmul.f32 %v6729_v37, %v10318_v35  ;;  %7451 = vpow2.f32 %v2180_v63  ;;  %v2055_v1 = vmul.f32 -10.0, %v1991_v46  ;;  %v4567_v23 = vsel %vm4566_vm5, %v4564_v19, %v4561_v9  ;;  %v10581_v18 = vpop.f32.mrf.mxu3 }
 0x3d3   : > { %v5626_v21 = vmul.f32 %v6728_v12, %v10274_v59  ;;  %v4935_v56 = vadd.f32 %v4567_v23, %v4039_v38  ;;  %v4555_v7 = vmul.f32 %v10473_v30, %v4554_v58  ;;  %6571 = vmatmul.msk.f32.gmra.mxu1 %vm2185_vm7, %v10521_v22  ;;  %v7448_v35 = vpop.eup %7447  ;;  %v4547_v27 = vand.u32 2147483647, %v10255_v8  ;;  %11993 = vst [vmem:[#allocation8_spill] sm:$0xff] %v10581_v18  ;;  %v10583_v50 = vpop.f32.mrf.mxu2 }
 0x3d4   : > { %5709 = vmatpush.msrb.mxu2 %v5627_v3  ;;  %v2182_v14 = vmul.f32 1.442695, %v2055_v1  ;;  %v4532_v6 = vadd.f32 1.0, %v10251_v15  ;;  %v4535_v11 = vmul.f32 -0.5, %v10251_v15  ;;  %v4552_v5 = vmul.f32 0.6931472, %v7448_v35 }
 0x3d5   : > { %v6727_v39 = vadd.f32 -0.6931472, %v4935_v56  ;;  %v4545_v59 = vadd.f32 1.0, %v4544_v31  ;;  %v4523_v61 = vadd.f32 1.0, %v10208_v36  ;;  %v4240_v30 = vmul.f32 1.442695, %v10477_v51 }
 0x3d6   : > { %5710 = vmatpush.msrb.mxu2 %v5626_v21  ;;  %7453 = vpow2.f32 %v10482_v42  ;;  %v4038_v22 = vmax.f32 %v10155_v43, 0.0  ;;  %vm4557_vm1 = vcmp.lt.f32.partialorder %v4556_v34, 0.0004427343  ;;  %v4037_v17 = vmax.f32 %v10137_v2, 0.0 }
 0x3d7   : > { %v7450_v4 = vpop.eup %7449  ;;  %v5625_v47 = vmul.f32 %v6727_v39, %v10235_v29  ;;  %v4558_v40 = vsel %vm4557_vm1, %v4555_v7, %v4552_v5  ;;  %7455 = vlog2.f32 %v4532_v6  ;;  %v4546_v42 = vmul.f32 %v10255_v8, %v4545_v59 }
 0x3d8   : > { %v7452_v57 = vpop.eup %7451  ;;  %7457 = vpow2.f32 %v2182_v14  ;;  %v4934_v26 = vadd.f32 %v4558_v40, %v4038_v22  ;;  %v4543_v51 = vmul.f32 0.6931472, %v7450_v4  ;;  %vm4548_vm6 = vcmp.lt.f32.partialorder %v4547_v27, 0.0004427343 }
 0x3d9   : > { %5711 = vmatpush.msrb.mxu2 %v5625_v47  ;;  %v4536_v43 = vadd.f32 1.0, %v4535_v11  ;;  %7459 = vlog2.f32 %v4523_v61  ;;  %v4526_v63 = vmul.f32 -0.5, %v10208_v36  ;;  %v4514_v2 = vadd.f32 1.0, %v10205_v62 }
 0x3da   : > { %v6726_v13 = vadd.f32 -0.6931472, %v4934_v26  ;;  %v4549_v28 = vsel %vm4548_vm6, %v4546_v42, %v4543_v51  ;;  %v4517_v29 = vmul.f32 -0.5, %v10205_v62  ;;  %7461 = vpow2.f32 %v4240_v30  ;;  %v10601_v34 = vpop.f32.mrf.mxu3 }
 0x3db   : > { %v4933_v49 = vadd.f32 %v4549_v28, %v4037_v17  ;;  %v4538_v20 = vand.u32 2147483647, %v10251_v15  ;;  %v4527_v38 = vadd.f32 1.0, %v4526_v63  ;;  %6572 = vmatmul.msk.f32.gmra.mxu1 %vm2185_vm7, %v7452_v57  ;;  %7463 = vlog2.f32 %v4514_v2  ;;  %11994 = vst [vmem:[#allocation10_spill] sm:$0xff] %v10601_v34  ;;  %v10606_v14 = vpop.f32.mrf.mxu2 }
 0x3dc   : > { %v10593_v8 = vpop.eup %7453  ;;  %v5624_v37 = vmul.f32 %v6726_v13, %v10197_v25  ;;  %v4036_v41 = vmax.f32 %v10112_v48, 0.0  ;;  %v4529_v12 = vand.u32 2147483647, %v10208_v36  ;;  %v4505_v9 = vadd.f32 1.0, %v10160_v24 }
 0x3dd   : > { %v7456_v53 = vpop.eup %7455  ;;  %v6725_v46 = vadd.f32 -0.6931472, %v4933_v49  ;;  %v4537_v58 = vmul.f32 %v10251_v15, %v4536_v43  ;;  %v4518_v1 = vadd.f32 1.0, %v4517_v29  ;;  %v4508_v23 = vmul.f32 -0.5, %v10160_v24  ;;  %v2539_v15 = vpop.f32.mrf.mxu1 }
 0x3de   : > { %v7458_v19 = vpop.eup %7457  ;;  %5712 = vmatpush.msrb.mxu2 %v5624_v37  ;;  %v4534_v3 = vmul.f32 0.6931472, %v7456_v53  ;;  %vm4539_vm8 = vcmp.lt.f32.partialorder %v4538_v20, 0.0004427343  ;;  %v4528_v48 = vmul.f32 %v10208_v36, %v4527_v38  ;;  %7465 = vlog2.f32 %v4505_v9 }
 0x3df   : > { %v7460_v25 = vpop.eup %7459  ;;  %v5623_v21 = vmul.f32 %v6725_v46, %v10164_v10  ;;  %v4520_v31 = vand.u32 2147483647, %v10205_v62  ;;  %v4509_v35 = vadd.f32 1.0, %v4508_v23  ;;  %v4035_v6 = vmax.f32 %v10075_v32, 0.0  ;;  %v10637_v23 = vld [vmem:[%s11844_s3] ss:$0 sm:$0xff] }
 0x3e0   : > { %v4540_v56 = vsel %vm4539_vm8, %v4537_v58, %v4534_v3  ;;  %v4525_v7 = vmul.f32 0.6931472, %v7460_v25  ;;  %v10608_v27 = vpop.eup %7461  ;;  %vm4530_vm9 = vcmp.lt.f32.partialorder %v4529_v12, 0.0004427343  ;;  %v4496_v10 = vadd.f32 1.0, %v10593_v8 }
 0x3e1   : > { %5713 = vmatpush.msrb.mxu2 %v5623_v21  ;;  %v4932_v11 = vadd.f32 %v4540_v56, %v4036_v41  ;;  %v7464_v39 = vpop.eup %7463  ;;  %v4519_v5 = vmul.f32 %v10205_v62, %v4518_v1  ;;  %v4511_v59 = vand.u32 2147483647, %v10160_v24  ;;  %v4499_v61 = vmul.f32 -0.5, %v10593_v8  ;;  %v11997_v56 = vld [vmem:[#allocation12_spill] sm:$0xff] }
 0x3e2   : > { %v4531_v36 = vsel %vm4530_vm9, %v4528_v48, %v4525_v7  ;;  %v4516_v4 = vmul.f32 0.6931472, %v7464_v39  ;;  %7467 = vlog2.f32 %v4496_v10  ;;  %v4034_v32 = vmax.f32 %v10044_v52, 0.0  ;;  %v10621_v13 = vpop.f32.mrf.mxu3 }
 0x3e3   : > { %v6724_v30 = vadd.f32 -0.6931472, %v4932_v11  ;;  %v4931_v22 = vadd.f32 %v4531_v36, %v4035_v6  ;;  %6573 = vmatmul.msk.f32.gmra.mxu1 %vm2185_vm7, %v7458_v19  ;;  %vm4521_vm10 = vcmp.lt.f32.partialorder %v4520_v31, 0.0004427343  ;;  %v4510_v17 = vmul.f32 %v10160_v24, %v4509_v35  ;;  %11995 = vst [vmem:[#allocation3_spill] sm:$0xff] %v10621_v13  ;;  %v10631_v46 = vpop.f32.mrf.mxu2 }
 0x3e4   : > { %v4487_v47 = vadd.f32 1.0, %v10608_v27  ;;  %v7466_v40 = vpop.eup %7465  ;;  %v4522_v26 = vsel %vm4521_vm10, %v4519_v5, %v4516_v4  ;;  %v4490_v51 = vmul.f32 -0.5, %v10608_v27  ;;  %v4500_v63 = vadd.f32 1.0, %v4499_v61  ;;  %v11999_v5 = vld [vmem:[#allocation11_spill] sm:$0xff] }
 0x3e5   : > { %v5622_v62 = vmul.f32 %v6724_v30, %v10121_v16  ;;  %v6723_v57 = vadd.f32 -0.6931472, %v4931_v22  ;;  %v4930_v42 = vadd.f32 %v4522_v26, %v4034_v32  ;;  %v4507_v43 = vmul.f32 0.6931472, %v7466_v40  ;;  %v2542_v12 = vpop.f32.mrf.mxu1  ;;  %v12000_v22 = vld [vmem:[#allocation18_spill] sm:$0xff] }
 0x3e6   : > { %7469 = vlog2.f32 %v4487_v47  ;;  %v4033_v52 = vmax.f32 %v10018_v45, 0.0  ;;  %vm4512_vm11 = vcmp.lt.f32.partialorder %v4511_v59, 0.0004427343  ;;  %v4502_v28 = vand.u32 2147483647, %v10593_v8 }
 0x3e7   : > { %5714 = vmatpush.msrb.mxu2 %v5622_v62  ;;  %v5621_v24 = vmul.f32 %v6723_v57, %v10097_v0  ;;  %v6722_v2 = vadd.f32 -0.6931472, %v4930_v42  ;;  %v4513_v16 = vsel %vm4512_vm11, %v4510_v17, %v4507_v43  ;;  %v4478_v29 = vadd.f32 1.0, %v10151_v60 }
 0x3e8   : > { %v4481_v49 = vmul.f32 -0.5, %v10151_v60  ;;  %v7468_v20 = vpop.eup %7467  ;;  %v4929_v38 = vadd.f32 %v4513_v16, %v4033_v52  ;;  %v4491_v37 = vadd.f32 1.0, %v4490_v51  ;;  %v4493_v53 = vand.u32 2147483647, %v10608_v27 }
 0x3e9   : > { %5715 = vmatpush.msrb.mxu2 %v5621_v24  ;;  %v5620_v45 = vmul.f32 %v6722_v2, %v10056_v54  ;;  %v4498_v41 = vmul.f32 0.6931472, %v7468_v20  ;;  %v4501_v0 = vmul.f32 %v10593_v8, %v4500_v63  ;;  %7471 = vlog2.f32 %v4478_v29  ;;  %v11996_v8 = vld [vmem:[#allocation17_spill] sm:$0xff] }
 0x3ea   : > { %v4032_v9 = vmax.f32 %v10180_v44, 0.0  ;;  %v6721_v19 = vadd.f32 -0.6931472, %v4929_v38  ;;  %vm4503_vm12 = vcmp.lt.f32.partialorder %v4502_v28, 0.0004427343  ;;  %v4482_v1 = vadd.f32 1.0, %v4481_v49  ;;  %v10646_v35 = vpop.f32.mrf.mxu3 }
 0x3eb   : > { %5716 = vmatpush.msrb.mxu2 %v5620_v45  ;;  %v4504_v58 = vsel %vm4503_vm12, %v4501_v0, %v4498_v41  ;;  %v10640_v54 = vadd.f32 %v10637_v23, %v2539_v15  ;;  %v4492_v44 = vmul.f32 %v10608_v27, %v4491_v37  ;;  %v4031_v7 = vmax.f32 %v11997_v56, 0.0  ;;  %11998 = vst [vmem:[#allocation2_spill] sm:$0xff] %v10646_v35  ;;  %v10655_v17 = vpop.f32.mrf.mxu2  ;;  %v12002_v28 = vld [vmem:[#allocation19_spill] sm:$0xff]  ;;  %v10671_v37 = vld [vmem:[%s11844_s3 + $0x1] ss:$0 sm:$0xff] }
 0x3ec   : > { %v7470_v3 = vpop.eup %7469  ;;  %v5619_v25 = vmul.f32 %v6721_v19, %v11996_v8  ;;  %v4928_v21 = vadd.f32 %v4504_v58, %v4032_v9  ;;  %vm4494_vm13 = vcmp.lt.f32.partialorder %v4493_v53, 0.0004427343  ;;  %v4484_v31 = vand.u32 2147483647, %v10151_v60  ;;  %v12003_v53 = vld [vmem:[#allocation9_spill] sm:$0xff]  ;;  %v12005_v8 = vld [vmem:[#allocation16_spill] sm:$0xff] }
 0x3ed   : > { %v4489_v48 = vmul.f32 0.6931472, %v7470_v3  ;;  %v2699_v10 = vand.u32 2147483647, %v10640_v54  ;;  %v4483_v36 = vmul.f32 %v10151_v60, %v4482_v1  ;;  %v10652_v30 = vadd.f32 %v10637_v23, %v2542_v12  ;;  %v12001_v60 = vld [vmem:[#allocation20_spill] sm:$0xff] }
 0x3ee   : > { %5717 = vmatpush.msrb.mxu2 %v5619_v25  ;;  %v6720_v6 = vadd.f32 -0.6931472, %v4928_v21  ;;  %v4030_v4 = vmax.f32 %v12000_v22, 0.0  ;;  %vm4485_vm14 = vcmp.lt.f32.partialorder %v4484_v31, 0.0004427343  ;;  %v2545_v47 = vpop.f32.mrf.mxu1  ;;  %v10675_v45 = vadd.f32 %v10671_v37, %v12003_v53  ;;  %v12007_v21 = vld [vmem:[#allocation15_spill] sm:$0xff] }
 0x3ef   : > { %v4495_v11 = vsel %vm4494_vm13, %v4492_v44, %v4489_v48  ;;  %v7472_v15 = vpop.eup %7471  ;;  %v2763_v27 = vsub.f32 0.0, %v2699_v10  ;;  %v2700_v57 = vand.u32 2147483647, %v10652_v30  ;;  %v10660_v43 = vadd.f32 %v10637_v23, %v2545_v47 }
 0x3f0   : > { %v4927_v39 = vadd.f32 %v4495_v11, %v4031_v7  ;;  %v5618_v59 = vmul.f32 %v6720_v6, %v11999_v5  ;;  %v4480_v61 = vmul.f32 0.6931472, %v7472_v15  ;;  %12004 = vst [vmem:[#allocation17_spill] sm:$0xff] %v10675_v45  ;;  %v4110_v1 = vand.u32 2147483647, %v10675_v45 }
 0x3f1   : > { %v2875_v62 = vmul.f32 1.442695, %v2763_v27  ;;  %v2764_v42 = vsub.f32 0.0, %v2700_v57  ;;  %v2701_v16 = vand.u32 2147483647, %v10660_v43  ;;  %v10686_v25 = vadd.f32 %v10671_v37, %v12005_v8 }
 0x3f2   : > { %v6719_v32 = vadd.f32 -0.6931472, %v4927_v39  ;;  %5718 = vmatpush.msrb.mxu2 %v5618_v59  ;;  %v4486_v40 = vsel %vm4485_vm14, %v4483_v36, %v4480_v61  ;;  %v10662_v52 = vpop.f32.mrf.mxu3  ;;  %v10690_v48 = vadd.f32 %v10671_v37, %v12007_v21  ;;  %v4174_v10 = vsub.f32 0.0, %v4110_v1  ;;  %v12009_v59 = vld [vmem:[#allocation7_spill] sm:$0xff] }
 0x3f3   : > { %v4926_v51 = vadd.f32 %v4486_v40, %v4030_v4  ;;  %7473 = vpow2.f32 %v2875_v62  ;;  %v2877_v24 = vmul.f32 1.442695, %v2764_v42  ;;  %v2765_v29 = vsub.f32 0.0, %v2701_v16  ;;  %v10666_v49 = vpop.f32.mrf.mxu2  ;;  %12006 = vst [vmem:[#allocation12_spill] sm:$0xff] %v10686_v25 }
 0x3f4   : > { %v5617_v26 = vmul.f32 %v6719_v32, %v12001_v60  ;;  %12008 = vst [vmem:[#allocation11_spill] sm:$0xff] %v10690_v48  ;;  %v4111_v15 = vand.u32 2147483647, %v10686_v25  ;;  %v4112_v5 = vand.u32 2147483647, %v10690_v48  ;;  %v10698_v61 = vadd.f32 %v10671_v37, %v12009_v59 }
 0x3f5   : > { %v6718_v63 = vadd.f32 -0.6931472, %v4926_v51  ;;  %7475 = vpow2.f32 %v2877_v24  ;;  %v2879_v9 = vmul.f32 1.442695, %v2765_v29  ;;  %v2635_v27 = vmax.f32 %v10640_v54, 0.0 }
 0x3f6   : > { %5719 = vmatpush.msrb.mxu2 %v5617_v26  ;;  %12010 = vst [vmem:[#allocation18_spill] sm:$0xff] %v10698_v61  ;;  %v4270_v51 = vmul.f32 1.442695, %v4174_v10  ;;  %v4175_v42 = vsub.f32 0.0, %v4111_v15  ;;  %v4113_v54 = vand.u32 2147483647, %v10698_v61  ;;  %v10730_v59 = vadd.f32 %v10671_v37, %v10583_v50 }
 0x3f7   : > { %v5616_v2 = vmul.f32 %v6718_v63, %v12002_v28  ;;  %v4176_v16 = vsub.f32 0.0, %v4112_v5  ;;  %v2636_v53 = vmax.f32 %v10652_v30, 0.0  ;;  %v12013_v10 = vld [vmem:[#allocation4_spill] sm:$0xff]  ;;  %v10726_v5 = vadd.f32 %v10671_v37, %v10551_v33 }
 0x3f8   : > { %v4272_v8 = vmul.f32 1.442695, %v4175_v42  ;;  %v10722_v15 = vadd.f32 %v10671_v37, %v12013_v10 }
 0x3f9   : > { %5720 = vmatpush.msrb.mxu2 %v5616_v2  ;;  %v7474_v38 = vpop.eup %7473  ;;  %v4274_v30 = vmul.f32 1.442695, %v4176_v16 }
 0x3fa   : > { %v2548_v20 = vpop.f32.mrf.mxu1  ;;  %v3339_v0 = vadd.f32 1.0, %v7474_v38  ;;  %v3342_v12 = vmul.f32 -0.5, %v7474_v38  ;;  %v10680_v19 = vpop.f32.mrf.mxu3  ;;  %v3345_v6 = vand.u32 2147483647, %v7474_v38 }
 0x3fb   : > { %v10678_v41 = vadd.f32 %v10637_v23, %v2548_v20  ;;  %v7476_v58 = vpop.eup %7475  ;;  %v10692_v11 = vpop.f32.mrf.mxu2 }
 0x3fc   : > { %7477 = vlog2.f32 %v3339_v0  ;;  %v3343_v44 = vadd.f32 1.0, %v3342_v12  ;;  %v3348_v56 = vadd.f32 1.0, %v7476_v58  ;;  %v3351_v7 = vmul.f32 -0.5, %v7476_v58 }
 0x3fd   : > { %v2702_v3 = vand.u32 2147483647, %v10678_v41  ;;  %7479 = vpow2.f32 %v2879_v9  ;;  %v3354_v62 = vand.u32 2147483647, %v7476_v58  ;;  %vm3346_vm15 = vcmp.lt.f32.partialorder %v3345_v6, 0.0004427343 }
 0x3fe   : > { %7481 = vlog2.f32 %v3348_v56  ;;  %v3344_v22 = vmul.f32 %v7474_v38, %v3343_v44  ;;  %v3352_v40 = vadd.f32 1.0, %v3351_v7  ;;  %v4177_v44 = vsub.f32 0.0, %v4113_v54 }
 0x3ff   : > { %v2766_v31 = vsub.f32 0.0, %v2702_v3  ;;  %vm3355_vm3 = vcmp.lt.f32.partialorder %v3354_v62, 0.0004427343  ;;  %v10754_v54 = vadd.f32 %v10671_v37, %v10631_v46 }
 0x400   : > { %v3353_v20 = vmul.f32 %v7476_v58, %v3352_v40 }
 0x401   : > { %v2881_v39 = vmul.f32 1.442695, %v2766_v31  ;;  %v12011_v31 = vld [vmem:[#allocation5_spill] sm:$0xff] }
 0x402   : > { %v7478_v36 = vpop.eup %7477  ;;  %v10704_v24 = vpop.f32.mrf.mxu3  ;;  %v10718_v6 = vadd.f32 %v10671_v37, %v12011_v31  ;;  %v4119_v31 = vand.u32 2147483647, %v10754_v54 }
 0x403   : > { %v7480_v32 = vpop.eup %7479  ;;  %v3341_v47 = vmul.f32 0.6931472, %v7478_v36  ;;  %7483 = vpow2.f32 %v2881_v39 }
 0x404   : > { %v2551_v4 = vpop.f32.mrf.mxu1  ;;  %v3357_v57 = vadd.f32 1.0, %v7480_v32  ;;  %v3360_v60 = vmul.f32 -0.5, %v7480_v32  ;;  %v7482_v28 = vpop.eup %7481  ;;  %v3363_v7 = vand.u32 2147483647, %v7480_v32  ;;  %12012 = vst [vmem:[#allocation20_spill] sm:$0xff] %v10718_v6 }
 0x405   : > { %v10702_v26 = vadd.f32 %v10637_v23, %v2551_v4  ;;  %v3347_v63 = vsel %vm3346_vm15, %v3344_v22, %v3341_v47  ;;  %v3350_v29 = vmul.f32 0.6931472, %v7482_v28  ;;  %v10709_v9 = vpop.f32.mrf.mxu2  ;;  %v4114_v50 = vand.u32 2147483647, %v10718_v6 }
 0x406   : > { %v3531_v2 = vadd.f32 %v3347_v63, %v2635_v27  ;;  %7485 = vlog2.f32 %v3357_v57  ;;  %v3361_v0 = vadd.f32 1.0, %v3360_v60  ;;  %v4276_v57 = vmul.f32 1.442695, %v4177_v44 }
 0x407   : > { %v2703_v12 = vand.u32 2147483647, %v10702_v26  ;;  %7487 = vpow2.f32 %v4270_v51  ;;  %v3356_v21 = vsel %vm3355_vm3, %v3353_v20, %v3350_v29  ;;  %vm10736_vm4 = vcmp.lt.f32.partialorder %v3363_v7, 0.0004427343 }
 0x408   : > { %v6622_v38 = vadd.f32 -0.6931472, %v3531_v2  ;;  %v3532_v56 = vadd.f32 %v3356_v21, %v2636_v53  ;;  %v3362_v27 = vmul.f32 %v7480_v32, %v3361_v0  ;;  %v10745_v32 = vadd.f32 %v10671_v37, %v10606_v14 }
 0x409   : > { %v10711_v3 = vpop.eup %7483  ;;  %v2767_v39 = vsub.f32 0.0, %v2703_v12  ;;  %v4115_v28 = vand.u32 2147483647, %v10722_v15  ;;  %v2637_v2 = vmax.f32 %v10660_v43, 0.0  ;;  %v4116_v20 = vand.u32 2147483647, %v10726_v5 }
 0x40a   : > { %v3366_v58 = vadd.f32 1.0, %v10711_v3  ;;  %6686 = vmatmul.msk.f32.gmra.mxu2 %vm3612_vm2, %v6622_v38  ;;  %v3369_v47 = vmul.f32 -0.5, %v10711_v3  ;;  %v6623_v60 = vadd.f32 -0.6931472, %v3532_v56  ;;  %v10749_v63 = vpop.f32.mrf.mxu3  ;;  %v4117_v38 = vand.u32 2147483647, %v10730_v59 }
 0x40b   : > { %v2883_v40 = vmul.f32 1.442695, %v2767_v39  ;;  %v4118_v43 = vand.u32 2147483647, %v10745_v32  ;;  %v4178_v7 = vsub.f32 0.0, %v4114_v50  ;;  %v4180_v39 = vsub.f32 0.0, %v4116_v20 }
 0x40c   : > { %v7486_v36 = vpop.eup %7485  ;;  %7489 = vlog2.f32 %v3366_v58  ;;  %v3370_v53 = vadd.f32 1.0, %v3369_v47  ;;  %v4179_v58 = vsub.f32 0.0, %v4115_v28 }
 0x40d   : > { %v3359_v4 = vmul.f32 0.6931472, %v7486_v36  ;;  %7491 = vpow2.f32 %v4272_v8  ;;  %v10740_v51 = vpop.eup %7487  ;;  %v3372_v8 = vand.u32 2147483647, %v10711_v3  ;;  %v4181_v36 = vsub.f32 0.0, %v4117_v38 }
 0x40e   : > { %v2554_v22 = vpop.f32.mrf.mxu1  ;;  %12016 = vst [vmem:[#allocation19_spill] sm:$0xff] %v10740_v51  ;;  %7493 = vpow2.f32 %v2883_v40  ;;  %v4182_v33 = vsub.f32 0.0, %v4118_v43  ;;  %v4278_v28 = vmul.f32 1.442695, %v4178_v7  ;;  %v4280_v38 = vmul.f32 1.442695, %v4179_v58 }
 0x40f   : > { %v10734_v62 = vadd.f32 %v10637_v23, %v2554_v22  ;;  %v3365_v42 = vsel %vm10736_vm4, %v3362_v27, %v3359_v4  ;;  %v3960_v29 = vpop.f32.mrf.mxu2  ;;  %7495 = vpow2.f32 %v4274_v30  ;;  %v10770_v27 = vadd.f32 %v10671_v37, %v10655_v17 }
 0x410   : > { %v3533_v12 = vadd.f32 %v3365_v42, %v2637_v2  ;;  %7497 = vpow2.f32 %v4276_v57  ;;  %v3371_v22 = vmul.f32 %v10711_v3, %v3370_v53  ;;  %vm10773_vm5 = vcmp.lt.f32.partialorder %v3372_v8, 0.0004427343 }
 0x411   : > { %v2704_v16 = vand.u32 2147483647, %v10734_v62  ;;  %v4183_v3 = vsub.f32 0.0, %v4119_v31  ;;  %v2638_v2 = vmax.f32 %v10678_v41, 0.0  ;;  %v4120_v53 = vand.u32 2147483647, %v10770_v27 }
 0x412   : > { %v7490_v0 = vpop.eup %7489  ;;  %6687 = vmatmul.msk.f32.gmra.mxu2 %vm3612_vm2, %v6623_v60  ;;  %v6624_v4 = vadd.f32 -0.6931472, %v3533_v12  ;;  %v10792_v12 = vpop.f32.mrf.mxu3  ;;  %v4284_v58 = vmul.f32 1.442695, %v4181_v36  ;;  %v4286_v31 = vmul.f32 1.442695, %v4182_v33  ;;  %v10801_v47 = vadd.f32 %v10671_v37, %v3960_v29 }
 0x413   : > { %v2768_v21 = vsub.f32 0.0, %v2704_v16  ;;  %v3368_v44 = vmul.f32 0.6931472, %v7490_v0  ;;  %v10765_v56 = vpop.eup %7491  ;;  %v10790_v0 = vadd.f32 %v10671_v37, %v10666_v49  ;;  %v4288_v49 = vmul.f32 1.442695, %v4183_v3 }
 0x414   : > { %12017 = vst [vmem:[#allocation9_spill] sm:$0xff] %v10765_v56  ;;  %v7494_v30 = vpop.eup %7493  ;;  %v2640_v46 = vmax.f32 %v10734_v62, 0.0 }
 0x415   : > { %v2885_v10 = vmul.f32 1.442695, %v2768_v21  ;;  %v3375_v40 = vadd.f32 1.0, %v7494_v30  ;;  %v3378_v57 = vmul.f32 -0.5, %v7494_v30  ;;  %v3374_v50 = vsel %vm10773_vm5, %v3371_v22, %v3368_v44  ;;  %v10782_v17 = vpop.eup %7495 }
 0x416   : > { %v10785_v20 = vpop.eup %7497  ;;  %v4282_v21 = vmul.f32 1.442695, %v4180_v39  ;;  %v3534_v43 = vadd.f32 %v3374_v50, %v2638_v2  ;;  %v3381_v22 = vand.u32 2147483647, %v7494_v30  ;;  %v5151_v39 = vld [vmem:[%s11846_s5 + $0x180] sm:$0xff] }
 0x417   : > { %7499 = vpow2.f32 %v2885_v10  ;;  %v3963_v16 = vpop.f32.mrf.mxu2  ;;  %v3379_v44 = vadd.f32 1.0, %v3378_v57  ;;  %v4184_v57 = vsub.f32 0.0, %v4120_v53  ;;  %6822 = vmatmul.msk.f32.gmra.mxu3 %vm436_vm0, %v5151_v39  ;;  %v4124_v53 = vand.u32 2147483647, %v10801_v47 }
 0x418   : > { %v2557_v60 = vpop.f32.mrf.mxu1  ;;  %7501 = vlog2.f32 %v3375_v40  ;;  %v10796_v41 = vadd.f32 %v10671_v37, %v3963_v16  ;;  %v6625_v33 = vadd.f32 -0.6931472, %v3534_v43  ;;  %vm3382_vm1 = vcmp.lt.f32.partialorder %v3381_v22, 0.0004427343 }
 0x419   : > { %v10780_v42 = vadd.f32 %v10637_v23, %v2557_v60  ;;  %7503 = vpow2.f32 %v4278_v28  ;;  %v3380_v50 = vmul.f32 %v7494_v30, %v3379_v44  ;;  %v10816_v43 = vadd.f32 %v10671_v37, %v10692_v11 }
 0x41a   : > { %6688 = vmatmul.msk.f32.gmra.mxu2 %vm3612_vm2, %v6624_v4  ;;  %7505 = vpow2.f32 %v4280_v38  ;;  %v4121_v4 = vand.u32 2147483647, %v10790_v0  ;;  %v4125_v3 = vand.u32 2147483647, %v10796_v41  ;;  %v2639_v38 = vmax.f32 %v10702_v26, 0.0 }
 0x41b   : > { %v2705_v8 = vand.u32 2147483647, %v10780_v42  ;;  %v10820_v44 = vadd.f32 %v10671_v37, %v10709_v9  ;;  %v4290_v11 = vmul.f32 1.442695, %v4184_v57 }
 0x41c   : > { %v4189_v22 = vsub.f32 0.0, %v4125_v3  ;;  %v4185_v9 = vsub.f32 0.0, %v4121_v4 }
 0x41d   : > { %v2769_v10 = vsub.f32 0.0, %v2705_v8  ;;  %v7500_v40 = vpop.eup %7499  ;;  %v4123_v3 = vand.u32 2147483647, %v10820_v44 }
 0x41e   : > { %v7502_v36 = vpop.eup %7501  ;;  %v3384_v28 = vadd.f32 1.0, %v7500_v40  ;;  %v3387_v16 = vmul.f32 -0.5, %v7500_v40  ;;  %v4300_v4 = vmul.f32 1.442695, %v4189_v22 }
 0x41f   : > { %v2887_v60 = vmul.f32 1.442695, %v2769_v10  ;;  %v3377_v2 = vmul.f32 0.6931472, %v7502_v36  ;;  %v10823_v39 = vpop.eup %7503 }
 0x420   : > { %v2560_v29 = vpop.f32.mrf.mxu1  ;;  %v10827_v36 = vpop.eup %7505 }
 0x421   : > { %7507 = vpow2.f32 %v2887_v60  ;;  %v10810_v8 = vadd.f32 %v10637_v23, %v2560_v29  ;;  %v3383_v30 = vsel %vm3382_vm1, %v3380_v50, %v3377_v2  ;;  %v3388_v50 = vadd.f32 1.0, %v3387_v16 }
 0x422   : > { %7509 = vlog2.f32 %v3384_v28  ;;  %v3535_v26 = vadd.f32 %v3383_v30, %v2639_v38  ;;  %6689 = vmatmul.msk.f32.gmra.mxu2 %vm3612_vm2, %v6625_v33  ;;  %v10829_v28 = vpop.f32.mrf.mxu3  ;;  %v3390_v29 = vand.u32 2147483647, %v7500_v40  ;;  %v4188_v2 = vsub.f32 0.0, %v4124_v53 }
 0x423   : > { %v2706_v10 = vand.u32 2147483647, %v10810_v8  ;;  %7511 = vpow2.f32 %v4282_v21  ;;  %v5152_v21 = vld [vmem:[%s11846_s5 + $0x188] sm:$0xff]  ;;  %v4122_v33 = vand.u32 2147483647, %v10816_v43  ;;  %v3389_v1 = vmul.f32 %v7500_v40, %v3388_v50 }
 0x424   : > { %7513 = vpow2.f32 %v4284_v58  ;;  %6823 = vmatmul.msk.f32.gmra.mxu3 %vm436_vm0, %v5152_v21  ;;  %v6626_v16 = vadd.f32 -0.6931472, %v3535_v26  ;;  %vm3391_vm6 = vcmp.lt.f32.partialorder %v3390_v29, 0.0004427343  ;;  %v4292_v26 = vmul.f32 1.442695, %v4185_v9 }
 0x425   : > { %v2770_v37 = vsub.f32 0.0, %v2706_v10  ;;  %7515 = vpow2.f32 %v4286_v31  ;;  %v4186_v7 = vsub.f32 0.0, %v4122_v33  ;;  %v4187_v40 = vsub.f32 0.0, %v4123_v3 }
 0x426   : > { %7517 = vpow2.f32 %v4288_v49 }
 0x427   : > { %v7508_v38 = vpop.eup %7507  ;;  %v2889_v58 = vmul.f32 1.442695, %v2770_v37  ;;  %v4298_v37 = vmul.f32 1.442695, %v4188_v2  ;;  %v4294_v3 = vmul.f32 1.442695, %v4186_v7 }
 0x428   : > { %v7510_v57 = vpop.eup %7509  ;;  %v3393_v30 = vadd.f32 1.0, %v7508_v38  ;;  %v3396_v31 = vmul.f32 -0.5, %v7508_v38  ;;  %v2563_v10 = vpop.f32.mrf.mxu1  ;;  %v3399_v33 = vand.u32 2147483647, %v7508_v38  ;;  %v2641_v7 = vmax.f32 %v10780_v42, 0.0 }
 0x429   : > { %v3386_v53 = vmul.f32 0.6931472, %v7510_v57  ;;  %7519 = vpow2.f32 %v2889_v58  ;;  %v10838_v14 = vadd.f32 %v10637_v23, %v2563_v10  ;;  %v10840_v49 = vpop.eup %7511 }
 0x42a   : > { %7521 = vlog2.f32 %v3393_v30  ;;  %v10843_v21 = vpop.eup %7513  ;;  %v3397_v58 = vadd.f32 1.0, %v3396_v31  ;;  %6690 = vmatmul.msk.f32.gmra.mxu2 %vm3612_vm2, %v6626_v16  ;;  %v10859_v16 = vpop.f32.mrf.mxu3  ;;  %vm3400_vm8 = vcmp.lt.f32.partialorder %v3399_v33, 0.0004427343  ;;  %v2642_v33 = vmax.f32 %v10810_v8, 0.0 }
 0x42b   : > { %v3392_v60 = vsel %vm3391_vm6, %v3389_v1, %v3386_v53  ;;  %v2707_v22 = vand.u32 2147483647, %v10838_v14  ;;  %v10846_v57 = vpop.eup %7515  ;;  %7523 = vpow2.f32 %v4290_v11 }
 0x42c   : > { %v3536_v50 = vadd.f32 %v3392_v60, %v2640_v46  ;;  %v10849_v10 = vpop.eup %7517  ;;  %7525 = vpow2.f32 %v4300_v4  ;;  %v5153_v46 = vld [vmem:[%s11846_s5 + $0x190] sm:$0xff]  ;;  %v4296_v4 = vmul.f32 1.442695, %v4187_v40 }
 0x42d   : > { %v2771_v9 = vsub.f32 0.0, %v2707_v22  ;;  %7527 = vpow2.f32 %v4298_v37  ;;  %6824 = vmatmul.msk.f32.gmra.mxu3 %vm436_vm0, %v5153_v46  ;;  %v3398_v22 = vmul.f32 %v7508_v38, %v3397_v58 }
 0x42e   : > { %7529 = vpow2.f32 %v4292_v26  ;;  %v6627_v53 = vadd.f32 -0.6931472, %v3536_v50 }
 0x42f   : > { %v7520_v60 = vpop.eup %7519  ;;  %v2891_v30 = vmul.f32 1.442695, %v2771_v9 }
 0x430   : > { %v7522_v31 = vpop.eup %7521  ;;  %v3402_v37 = vadd.f32 1.0, %v7520_v60  ;;  %v2566_v62 = vpop.f32.mrf.mxu1  ;;  %v3405_v1 = vmul.f32 -0.5, %v7520_v60  ;;  %v3408_v9 = vand.u32 2147483647, %v7520_v60 }
 0x431   : > { %v3395_v29 = vmul.f32 0.6931472, %v7522_v31  ;;  %7531 = vpow2.f32 %v2891_v30  ;;  %v10863_v2 = vadd.f32 %v10637_v23, %v2566_v62  ;;  %v10865_v26 = vpop.eup %7523 }
 0x432   : > { %7533 = vlog2.f32 %v3402_v37  ;;  %v7526_v46 = vpop.eup %7525  ;;  %6691 = vmatmul.msk.f32.gmra.mxu2 %vm3612_vm2, %v6627_v53  ;;  %vm10879_vm9 = vcmp.lt.f32.partialorder %v3408_v9, 0.0004427343  ;;  %v5154_v9 = vld [vmem:[%s11846_s5 + $0x198] sm:$0xff] }
 0x433   : > { %7535 = vpow2.f32 %v4294_v3  ;;  %v3401_v38 = vsel %vm3400_vm8, %v3398_v22, %v3395_v29  ;;  %v2708_v50 = vand.u32 2147483647, %v10863_v2  ;;  %v10870_v58 = vpop.eup %7527  ;;  %v3406_v3 = vadd.f32 1.0, %v3405_v1 }
 0x434   : > { %7537 = vpow2.f32 %v4296_v4  ;;  %v3537_v30 = vadd.f32 %v3401_v38, %v2641_v7  ;;  %v10875_v42 = vpop.eup %7529  ;;  %v4757_v4 = vadd.f32 1.0, %v7526_v46  ;;  %v4760_v40 = vmul.f32 -0.5, %v7526_v46 }
 0x435   : > { %v2772_v29 = vsub.f32 0.0, %v2708_v50  ;;  %v4763_v62 = vand.u32 2147483647, %v7526_v46  ;;  %v4748_v53 = vadd.f32 1.0, %v10870_v58  ;;  %v4751_v31 = vmul.f32 -0.5, %v10870_v58  ;;  %6825 = vmatmul.msk.f32.gmra.mxu3 %vm436_vm0, %v5154_v9 }
 0x436   : > { %v6628_v22 = vadd.f32 -0.6931472, %v3537_v30  ;;  %7539 = vlog2.f32 %v4757_v4  ;;  %v3407_v25 = vmul.f32 %v7520_v60, %v3406_v3  ;;  %v4761_v4 = vadd.f32 1.0, %v4760_v40 }
 0x437   : > { %v7532_v7 = vpop.eup %7531  ;;  %v2893_v38 = vmul.f32 1.442695, %v2772_v29  ;;  %v10890_v29 = vpop.f32.mrf.mxu3  ;;  %v4754_v51 = vand.u32 2147483647, %v10870_v58  ;;  %vm10906_vm11 = vcmp.lt.f32.partialorder %v4763_v62, 0.0004427343 }
 0x438   : > { %v7534_v45 = vpop.eup %7533  ;;  %v3411_v8 = vadd.f32 1.0, %v7532_v7  ;;  %v3414_v1 = vmul.f32 -0.5, %v7532_v7  ;;  %v3417_v55 = vand.u32 2147483647, %v7532_v7  ;;  %v2569_v37 = vpop.f32.mrf.mxu1  ;;  %v4752_v40 = vadd.f32 1.0, %v4751_v31 }
 0x439   : > { %v10888_v50 = vpop.eup %7535  ;;  %v3404_v30 = vmul.f32 0.6931472, %v7534_v45  ;;  %7541 = vpow2.f32 %v2893_v38  ;;  %v10893_v18 = vadd.f32 %v10637_v23, %v2569_v37  ;;  %vm10911_vm12 = vcmp.lt.f32.partialorder %v4754_v51, 0.0004427343 }
 0x43a   : > { %v7538_v48 = vpop.eup %7537  ;;  %7543 = vlog2.f32 %v3411_v8  ;;  %v3415_v34 = vadd.f32 1.0, %v3414_v1  ;;  %vm10899_vm10 = vcmp.lt.f32.partialorder %v3417_v55, 0.0004427343  ;;  %6692 = vmatmul.msk.f32.gmra.mxu2 %vm3612_vm2, %v6628_v22 }
 0x43b   : > { %v3410_v61 = vsel %vm10879_vm9, %v3407_v25, %v3404_v30  ;;  %v2709_v3 = vand.u32 2147483647, %v10893_v18  ;;  %7545 = vlog2.f32 %v4748_v53  ;;  %v4739_v55 = vadd.f32 1.0, %v7538_v48 }
 0x43c   : > { %v3538_v37 = vadd.f32 %v3410_v61, %v2642_v33  ;;  %v4742_v8 = vmul.f32 -0.5, %v7538_v48  ;;  %v7540_v1 = vpop.eup %7539  ;;  %v3416_v9 = vmul.f32 %v7532_v7, %v3415_v34  ;;  %v4762_v30 = vmul.f32 %v7526_v46, %v4761_v4 }
 0x43d   : > { %v2773_v25 = vsub.f32 0.0, %v2709_v3  ;;  %v4745_v61 = vand.u32 2147483647, %v7538_v48  ;;  %v4759_v6 = vmul.f32 0.6931472, %v7540_v1  ;;  %7547 = vlog2.f32 %v4739_v55 }
 0x43e   : > { %v6629_v62 = vadd.f32 -0.6931472, %v3538_v37  ;;  %v4753_v3 = vmul.f32 %v10870_v58, %v4752_v40  ;;  %v4743_v11 = vadd.f32 1.0, %v4742_v8  ;;  %v12028_v4 = vmax.f32 %v10796_v41, 0.0 }
 0x43f   : > { %v7542_v33 = vpop.eup %7541  ;;  %v2895_v22 = vmul.f32 1.442695, %v2773_v25  ;;  %v4765_v51 = vsel %vm10906_vm11, %v4762_v30, %v4759_v6  ;;  %vm10920_vm13 = vcmp.lt.f32.partialorder %v4745_v61, 0.0004427343  ;;  %v5517_v40 = vpop.f32.mrf.mxu3  ;;  %v4730_v6 = vadd.f32 1.0, %v10888_v50 }
 0x440   : > { %v7544_v53 = vpop.eup %7543  ;;  %v3420_v31 = vadd.f32 1.0, %v7542_v33  ;;  %v3423_v13 = vmul.f32 -0.5, %v7542_v33  ;;  %v2572_v35 = vpop.f32.mrf.mxu1  ;;  %v3426_v34 = vand.u32 2147483647, %v7542_v33  ;;  %v4957_v37 = vadd.f32 %v4765_v51, %v12028_v4 }
 0x441   : > { %v3413_v56 = vmul.f32 0.6931472, %v7544_v53  ;;  %7549 = vpow2.f32 %v2895_v22  ;;  %v7546_v46 = vpop.eup %7545  ;;  %v10927_v8 = vadd.f32 %v10637_v23, %v2572_v35  ;;  %v12031_v41 = vmax.f32 %v10838_v14, 0.0 }
 0x442   : > { %7551 = vlog2.f32 %v3420_v31  ;;  %v3424_v7 = vadd.f32 1.0, %v3423_v13  ;;  %v4750_v55 = vmul.f32 0.6931472, %v7546_v46  ;;  %v5155_v13 = vld [vmem:[%s11846_s5 + $0x1a0] sm:$0xff]  ;;  %v6749_v1 = vadd.f32 -0.6931472, %v4957_v37  ;;  %6693 = vmatmul.msk.f32.gmra.mxu2 %vm3612_vm2, %v6629_v62 }
 0x443   : > { %v3419_v58 = vsel %vm10899_vm10, %v3416_v9, %v3413_v56  ;;  %v4744_v30 = vmul.f32 %v7538_v48, %v4743_v11  ;;  %v4733_v56 = vmul.f32 -0.5, %v10888_v50  ;;  %6826 = vmatmul.msk.f32.gmra.mxu3 %vm436_vm0, %v5155_v13  ;;  %v7548_v45 = vpop.eup %7547  ;;  %vm10938_vm14 = vcmp.lt.f32.partialorder %v3426_v34, 0.0004427343 }
 0x444   : > { %v3539_v38 = vadd.f32 %v3419_v58, %v12031_v41  ;;  %v4756_v9 = vsel %vm10911_vm12, %v4753_v3, %v4750_v55  ;;  %v2710_v61 = vand.u32 2147483647, %v10927_v8  ;;  %7553 = vlog2.f32 %v4730_v6 }
 0x445   : > { %v3425_v14 = vmul.f32 %v7542_v33, %v3424_v7  ;;  %v5647_v22 = vmul.f32 %v6749_v1, %v5517_v40  ;;  %v12034_v48 = vmax.f32 %v10801_v47, 0.0  ;;  %v4741_v62 = vmul.f32 0.6931472, %v7548_v45 }
 0x446   : > { %v6630_v31 = vadd.f32 -0.6931472, %v3539_v38  ;;  %v2774_v51 = vsub.f32 0.0, %v2710_v61  ;;  %v4734_v46 = vadd.f32 1.0, %v4733_v56  ;;  %v4736_v34 = vand.u32 2147483647, %v10888_v50 }
 0x447   : > { %v4956_v11 = vadd.f32 %v4756_v9, %v12034_v48  ;;  %v7550_v53 = vpop.eup %7549  ;;  %5746 = vmatpush.msrb.mxu0 %v5647_v22  ;;  %v4721_v3 = vadd.f32 1.0, %v10875_v42  ;;  %v4747_v33 = vsel %vm10920_vm13, %v4744_v30, %v4741_v62  ;;  %v2646_v47 = vmax.f32 %v10927_v8, 0.0  ;;  %v11040_v8 = vld [vmem:[%s11844_s3] ss:$0 sm:$0xff] }
 0x448   : > { %v7552_v4 = vpop.eup %7551  ;;  %v3429_v37 = vadd.f32 1.0, %v7550_v53  ;;  %v3432_v58 = vmul.f32 -0.5, %v7550_v53  ;;  %v2897_v7 = vmul.f32 1.442695, %v2774_v51  ;;  %v3435_v6 = vand.u32 2147483647, %v7550_v53 }
 0x449   : > { %v6748_v60 = vadd.f32 -0.6931472, %v4956_v11  ;;  %v3422_v55 = vmul.f32 0.6931472, %v7552_v4  ;;  %v12035_v1 = vmax.f32 %v10820_v44, 0.0  ;;  %v4735_v45 = vmul.f32 %v10888_v50, %v4734_v46 }
 0x44a   : > { %7555 = vlog2.f32 %v3429_v37  ;;  %v3433_v40 = vadd.f32 1.0, %v3432_v58  ;;  %v7554_v41 = vpop.eup %7553  ;;  %v12036_v25 = vmax.f32 %v10863_v2, 0.0  ;;  %vm4737_vm15 = vcmp.lt.f32.partialorder %v4736_v34, 0.0004427343  ;;  %6694 = vmatmul.msk.f32.gmra.mxu2 %vm3612_vm2, %v6630_v31 }
 0x44b   : > { %v5646_v13 = vmul.f32 %v6748_v60, %v10890_v29  ;;  %v3428_v38 = vsel %vm10938_vm14, %v3425_v14, %v3422_v55  ;;  %v4955_v56 = vadd.f32 %v4747_v33, %v12035_v1  ;;  %7557 = vpow2.f32 %v2897_v7 }
 0x44c   : > { %v3540_v30 = vadd.f32 %v3428_v38, %v12036_v25  ;;  %v4732_v9 = vmul.f32 0.6931472, %v7554_v41  ;;  %7559 = vlog2.f32 %v4721_v3  ;;  %v4724_v61 = vmul.f32 -0.5, %v10875_v42 }
 0x44d   : > { %5747 = vmatpush.msrb.mxu0 %v5646_v13  ;;  %v6747_v29 = vadd.f32 -0.6931472, %v4955_v56  ;;  %v4727_v35 = vand.u32 2147483647, %v10875_v42  ;;  %v4712_v44 = vadd.f32 1.0, %v10865_v26  ;;  %v3434_v14 = vmul.f32 %v7550_v53, %v3433_v40 }
 0x44e   : > { %vm10964_vm3 = vcmp.lt.f32.partialorder %v3435_v6, 0.0004427343  ;;  %v4738_v2 = vsel %vm4737_vm15, %v4735_v45, %v4732_v9  ;;  %v4715_v50 = vmul.f32 -0.5, %v10865_v26  ;;  %v6631_v48 = vadd.f32 -0.6931472, %v3540_v30  ;;  %v2575_v6 = vpop.f32.mrf.mxu1 }
 0x44f   : > { %v5645_v11 = vmul.f32 %v6747_v29, %v10859_v16  ;;  %v12039_v62 = vmax.f32 %v10816_v43, 0.0  ;;  %v4725_v51 = vadd.f32 1.0, %v4724_v61  ;;  %vm10972_vm4 = vcmp.lt.f32.partialorder %v4727_v35, 0.0004427343 }
 0x450   : > { %v7556_v46 = vpop.eup %7555  ;;  %7561 = vlog2.f32 %v4712_v44  ;;  %v4718_v53 = vand.u32 2147483647, %v10865_v26  ;;  %v4703_v4 = vadd.f32 1.0, %v10849_v10  ;;  %v4716_v3 = vadd.f32 1.0, %v4715_v50 }
 0x451   : > { %v4954_v31 = vadd.f32 %v4738_v2, %v12039_v62  ;;  %v7558_v37 = vpop.eup %7557  ;;  %v3431_v58 = vmul.f32 0.6931472, %v7556_v46  ;;  %5748 = vmatpush.msrb.mxu0 %v5645_v11  ;;  %v4706_v16 = vmul.f32 -0.5, %v10849_v10  ;;  %v4726_v40 = vmul.f32 %v10875_v42, %v4725_v51  ;;  %v5156_v42 = vld [vmem:[%s11846_s5 + $0x1a8] sm:$0xff] }
 0x452   : > { %v7560_v43 = vpop.eup %7559  ;;  %v3438_v55 = vadd.f32 1.0, %v7558_v37  ;;  %v3441_v33 = vmul.f32 -0.5, %v7558_v37  ;;  %v3444_v7 = vand.u32 2147483647, %v7558_v37  ;;  %7563 = vlog2.f32 %v4703_v4  ;;  %6695 = vmatmul.msk.f32.gmra.mxu2 %vm3612_vm2, %v6631_v48  ;;  %6827 = vmatmul.msk.f32.gmra.mxu3 %vm436_vm0, %v5156_v42 }
 0x453   : > { %v6746_v60 = vadd.f32 -0.6931472, %v4954_v31  ;;  %v3437_v13 = vsel %vm10964_vm3, %v3434_v14, %v3431_v58  ;;  %v4723_v38 = vmul.f32 0.6931472, %v7560_v43  ;;  %v12042_v1 = vmax.f32 %v10893_v18, 0.0 }
 0x454   : > { %7565 = vlog2.f32 %v3438_v55  ;;  %v3442_v45 = vadd.f32 1.0, %v3441_v33  ;;  %vm10985_vm5 = vcmp.lt.f32.partialorder %v4718_v53, 0.0004427343  ;;  %v4717_v30 = vmul.f32 %v10865_v26, %v4716_v3 }
 0x455   : > { %v5644_v41 = vmul.f32 %v6746_v60, %v10829_v28  ;;  %v3541_v56 = vadd.f32 %v3437_v13, %v12042_v1  ;;  %v4729_v28 = vsel %vm10972_vm4, %v4726_v40, %v4723_v38  ;;  %v4707_v18 = vadd.f32 1.0, %v4706_v16 }
 0x456   : > { %v10997_v9 = vadd.f32 %v10637_v23, %v2575_v6  ;;  %v7562_v29 = vpop.eup %7561  ;;  %vm11000_vm1 = vcmp.lt.f32.partialorder %v3444_v7, 0.0004427343  ;;  %v12047_v35 = vmax.f32 %v10790_v0, 0.0  ;;  %v4709_v14 = vand.u32 2147483647, %v10849_v10 }
 0x457   : > { %5749 = vmatpush.msrb.mxu0 %v5644_v41  ;;  %v4694_v22 = vadd.f32 1.0, %v10846_v57  ;;  %v6632_v2 = vadd.f32 -0.6931472, %v3541_v56  ;;  %v3443_v26 = vmul.f32 %v7558_v37, %v3442_v45  ;;  %v4714_v50 = vmul.f32 0.6931472, %v7562_v29  ;;  %v2578_v41 = vpop.f32.mrf.mxu1 }
 0x458   : > { %v4953_v44 = vadd.f32 %v4729_v28, %v12047_v35  ;;  %v4708_v23 = vmul.f32 %v10849_v10, %v4707_v18  ;;  %v2711_v11 = vand.u32 2147483647, %v10997_v9  ;;  %v4697_v62 = vmul.f32 -0.5, %v10846_v57  ;;  %v7564_v31 = vpop.eup %7563  ;;  %v5157_v35 = vld [vmem:[%s11846_s5 + $0x1b0] sm:$0xff] }
 0x459   : > { %7567 = vlog2.f32 %v4694_v22  ;;  %v4720_v0 = vsel %vm10985_vm5, %v4717_v30, %v4714_v50  ;;  %v4700_v51 = vand.u32 2147483647, %v10846_v57  ;;  %v4685_v46 = vadd.f32 1.0, %v10843_v21 }
 0x45a   : > { %v6745_v48 = vadd.f32 -0.6931472, %v4953_v44  ;;  %v4688_v34 = vmul.f32 -0.5, %v10843_v21  ;;  %v7566_v53 = vpop.eup %7565  ;;  %v12048_v10 = vmax.f32 %v10770_v27, 0.0  ;;  %v4705_v58 = vmul.f32 0.6931472, %v7564_v31  ;;  %6696 = vmatmul.msk.f32.gmra.mxu2 %vm3612_vm2, %v6632_v2  ;;  %6828 = vmatmul.msk.f32.gmra.mxu3 %vm436_vm0, %v5157_v35 }
 0x45b   : > { %v2775_v60 = vsub.f32 0.0, %v2711_v11  ;;  %v3440_v3 = vmul.f32 0.6931472, %v7566_v53  ;;  %vm4710_vm6 = vcmp.lt.f32.partialorder %v4709_v14, 0.0004427343  ;;  %v4698_v16 = vadd.f32 1.0, %v4697_v62 }
 0x45c   : > { %v5643_v4 = vmul.f32 %v6745_v48, %v10792_v12  ;;  %v4952_v37 = vadd.f32 %v4720_v0, %v12048_v10  ;;  %7569 = vlog2.f32 %v4685_v46  ;;  %v4711_v55 = vsel %vm4710_vm6, %v4708_v23, %v4705_v58  ;;  %v12063_v35 = vld [vmem:[#allocation2_spill] sm:$0xff] }
 0x45d   : > { %v2899_v33 = vmul.f32 1.442695, %v2775_v60  ;;  %v4689_v7 = vadd.f32 1.0, %v4688_v34  ;;  %v4054_v40 = vmax.f32 %v10745_v32, 0.0  ;;  %v3446_v12 = vsel %vm11000_vm1, %v3443_v26, %v3440_v3 }
 0x45e   : > { %5750 = vmatpush.msrb.mxu0 %v5643_v4  ;;  %v6744_v43 = vadd.f32 -0.6931472, %v4952_v37  ;;  %v12049_v27 = vmax.f32 %v10754_v54, 0.0  ;;  %vm11025_vm8 = vcmp.lt.f32.partialorder %v4700_v51, 0.0004427343  ;;  %v3542_v1 = vadd.f32 %v3446_v12, %v2646_v47 }
 0x45f   : > { %v7568_v38 = vpop.eup %7567  ;;  %7571 = vpow2.f32 %v2899_v33  ;;  %v4699_v32 = vmul.f32 %v10846_v57, %v4698_v16  ;;  %v4690_v42 = vmul.f32 %v10843_v21, %v4689_v7  ;;  %v4691_v54 = vand.u32 2147483647, %v10843_v21 }
 0x460   : > { %v4951_v6 = vadd.f32 %v4711_v55, %v12049_v27  ;;  %v5642_v56 = vmul.f32 %v6744_v43, %v10749_v63  ;;  %v4696_v25 = vmul.f32 0.6931472, %v7568_v38  ;;  %v6633_v28 = vadd.f32 -0.6931472, %v3542_v1 }
 0x461   : > { %v4676_v30 = vadd.f32 1.0, %v10840_v49  ;;  %v4679_v18 = vmul.f32 -0.5, %v10840_v49  ;;  %v11043_v63 = vadd.f32 %v11040_v8, %v2578_v41  ;;  %v4667_v29 = vadd.f32 1.0, %v10827_v36 }
 0x462   : > { %v6743_v45 = vadd.f32 -0.6931472, %v4951_v6  ;;  %5751 = vmatpush.msrb.mxu0 %v5642_v56  ;;  %v7570_v57 = vpop.eup %7569  ;;  %v4702_v21 = vsel %vm11025_vm8, %v4699_v32, %v4696_v25  ;;  %v4670_v61 = vmul.f32 -0.5, %v10827_v36  ;;  %v4682_v22 = vand.u32 2147483647, %v10840_v49  ;;  %6697 = vmatmul.msk.f32.gmra.mxu2 %vm3612_vm2, %v6633_v28 }
 0x463   : > { %v4950_v44 = vadd.f32 %v4702_v21, %v4054_v40  ;;  %v4687_v14 = vmul.f32 0.6931472, %v7570_v57  ;;  %7573 = vlog2.f32 %v4676_v30  ;;  %vm4692_vm9 = vcmp.lt.f32.partialorder %v4691_v54, 0.0004427343  ;;  %v12060_v30 = vld [vmem:[#allocation9_spill] sm:$0xff] }
 0x464   : > { %v5641_v47 = vmul.f32 %v6743_v45, %v10704_v24  ;;  %v4680_v24 = vadd.f32 1.0, %v4679_v18  ;;  %7575 = vlog2.f32 %v4667_v29  ;;  %v4671_v2 = vadd.f32 1.0, %v4670_v61  ;;  %v2581_v29 = vpop.f32.mrf.mxu1 }
 0x465   : > { %v7572_v26 = vpop.eup %7571  ;;  %v4052_v50 = vmax.f32 %v10726_v5, 0.0  ;;  %v6742_v23 = vadd.f32 -0.6931472, %v4950_v44  ;;  %v4693_v48 = vsel %vm4692_vm9, %v4690_v42, %v4687_v14  ;;  %v4673_v11 = vand.u32 2147483647, %v10827_v36 }
 0x466   : > { %5752 = vmatpush.msrb.mxu0 %v5641_v47  ;;  %v2647_v62 = vmax.f32 %v10997_v9, 0.0  ;;  %v3447_v31 = vadd.f32 1.0, %v7572_v26  ;;  %v3450_v0 = vmul.f32 -0.5, %v7572_v26  ;;  %v12052_v51 = vmax.f32 %v10730_v59, 0.0 }
 0x467   : > { %v3453_v34 = vand.u32 2147483647, %v7572_v26  ;;  %v5640_v53 = vmul.f32 %v6742_v23, %v10680_v19  ;;  %vm11062_vm10 = vcmp.lt.f32.partialorder %v4682_v22, 0.0004427343  ;;  %v2712_v5 = vand.u32 2147483647, %v11043_v63 }
 0x468   : > { %v4949_v46 = vadd.f32 %v4693_v48, %v12052_v51  ;;  %7577 = vlog2.f32 %v3447_v31  ;;  %v4681_v37 = vmul.f32 %v10840_v49, %v4680_v24  ;;  %v4672_v9 = vmul.f32 %v10827_v36, %v4671_v2  ;;  %v12064_v48 = vld [vmem:[#allocation3_spill] sm:$0xff] }
 0x469   : > { %v7574_v58 = vpop.eup %7573  ;;  %5753 = vmatpush.msrb.mxu0 %v5640_v53  ;;  %vm11069_vm11 = vcmp.lt.f32.partialorder %v4673_v11, 0.0004427343  ;;  %v2776_v60 = vsub.f32 0.0, %v2712_v5  ;;  %v4658_v19 = vadd.f32 1.0, %v10823_v39  ;;  %v4661_v3 = vmul.f32 -0.5, %v10823_v39 }
 0x46a   : > { %v6741_v10 = vadd.f32 -0.6931472, %v4949_v46  ;;  %v7576_v16 = vpop.eup %7575  ;;  %v3451_v43 = vadd.f32 1.0, %v3450_v0  ;;  %v4678_v33 = vmul.f32 0.6931472, %v7574_v58  ;;  %v4649_v49 = vadd.f32 1.0, %v10785_v20 }
 0x46b   : > { %vm11077_vm12 = vcmp.lt.f32.partialorder %v3453_v34, 0.0004427343  ;;  %v4669_v7 = vmul.f32 0.6931472, %v7576_v16  ;;  %v2901_v40 = vmul.f32 1.442695, %v2776_v60  ;;  %7579 = vlog2.f32 %v4658_v19 }
 0x46c   : > { %v5639_v55 = vmul.f32 %v6741_v10, %v10662_v52  ;;  %v4684_v12 = vsel %vm11062_vm10, %v4681_v37, %v4678_v33  ;;  %v4664_v27 = vand.u32 2147483647, %v10823_v39  ;;  %7581 = vlog2.f32 %v4649_v49  ;;  %v12083_v19 = vld [vmem:[#allocation6_spill] sm:$0xff] }
 0x46d   : > { %v4652_v6 = vmul.f32 -0.5, %v10785_v20  ;;  %v4948_v52 = vadd.f32 %v4684_v12, %v4052_v50  ;;  %v4675_v13 = vsel %vm11069_vm11, %v4672_v9, %v4669_v7  ;;  %7583 = vpow2.f32 %v2901_v40  ;;  %v12067_v9 = vld [vmem:[#allocation20_spill] sm:$0xff]  ;;  %v12073_v12 = vld [vmem:[#allocation19_spill] sm:$0xff] }
 0x46e   : > { %5754 = vmatpush.msrb.mxu0 %v5639_v55  ;;  %v4662_v41 = vadd.f32 1.0, %v4661_v3  ;;  %v7578_v38 = vpop.eup %7577  ;;  %v3452_v1 = vmul.f32 %v7572_v26, %v3451_v43  ;;  %v12059_v56 = vmax.f32 %v10722_v15, 0.0  ;;  %v4640_v25 = vadd.f32 1.0, %v10782_v17  ;;  %v12071_v43 = vld [vmem:[#allocation18_spill] sm:$0xff] }
 0x46f   : > { %v4653_v45 = vadd.f32 1.0, %v4652_v6  ;;  %v3449_v42 = vmul.f32 0.6931472, %v7578_v38  ;;  %v6740_v54 = vadd.f32 -0.6931472, %v4948_v52  ;;  %v4643_v28 = vmul.f32 -0.5, %v10782_v17 }
 0x470   : > { %v4947_v32 = vadd.f32 %v4675_v13, %v12059_v56  ;;  %v4631_v18 = vadd.f32 1.0, %v12060_v30  ;;  %vm11092_vm13 = vcmp.lt.f32.partialorder %v4664_v27, 0.0004427343  ;;  %v4655_v21 = vand.u32 2147483647, %v10785_v20 }
 0x471   : > { %7585 = vlog2.f32 %v4640_v25  ;;  %v7580_v15 = vpop.eup %7579  ;;  %v3455_v61 = vsel %vm11077_vm12, %v3452_v1, %v3449_v42  ;;  %v5638_v44 = vmul.f32 %v6740_v54, %v12063_v35  ;;  %v4663_v14 = vmul.f32 %v10823_v39, %v4662_v41  ;;  %v12074_v41 = vld [vmem:[#allocation10_spill] sm:$0xff]  ;;  %v12075_v1 = vld [vmem:[#allocation11_spill] sm:$0xff]  ;;  %v2584_v42 = vpop.f32.mrf.mxu1 }
 0x472   : > { %v6739_v57 = vadd.f32 -0.6931472, %v4947_v32  ;;  %v4644_v22 = vadd.f32 1.0, %v4643_v28  ;;  %v7582_v24 = vpop.eup %7581  ;;  %v3543_v2 = vadd.f32 %v3455_v61, %v2647_v62  ;;  %v4660_v26 = vmul.f32 0.6931472, %v7580_v15 }
 0x473   : > { %v4646_v50 = vand.u32 2147483647, %v10782_v17  ;;  %7587 = vlog2.f32 %v4631_v18  ;;  %v7584_v23 = vpop.eup %7583  ;;  %5755 = vmatpush.msrb.mxu0 %v5638_v44  ;;  %v4651_v31 = vmul.f32 0.6931472, %v7582_v24  ;;  %v4654_v0 = vmul.f32 %v10785_v20, %v4653_v45  ;;  %v5158_v20 = vld [vmem:[%s11846_s5 + $0x1b8] sm:$0xff] }
 0x474   : > { %v5637_v11 = vmul.f32 %v6739_v57, %v12064_v48  ;;  %v4634_v51 = vmul.f32 -0.5, %v12060_v30  ;;  %v6634_v46 = vadd.f32 -0.6931472, %v3543_v2  ;;  %v3456_v34 = vadd.f32 1.0, %v7584_v23  ;;  %6829 = vmatmul.msk.f32.gmra.mxu3 %vm436_vm0, %v5158_v20  ;;  %v12077_v57 = vld [vmem:[#allocation8_spill] sm:$0xff] }
 0x475   : > { %v3459_v53 = vmul.f32 -0.5, %v7584_v23  ;;  %vm11105_vm14 = vcmp.lt.f32.partialorder %v4655_v21, 0.0004427343  ;;  %v4666_v62 = vsel %vm11092_vm13, %v4663_v14, %v4660_v26  ;;  %v4637_v10 = vand.u32 2147483647, %v12060_v30 }
 0x476   : > { %5756 = vmatpush.msrb.mxu0 %v5637_v11  ;;  %v4657_v4 = vsel %vm11105_vm14, %v4654_v0, %v4651_v31  ;;  %v4635_v5 = vadd.f32 1.0, %v4634_v51  ;;  %7589 = vlog2.f32 %v3456_v34  ;;  %v12068_v58 = vmax.f32 %v12067_v9, 0.0  ;;  %6698 = vmatmul.msk.f32.gmra.mxu2 %vm3612_vm2, %v6634_v46 }
 0x477   : > { %v7586_v37 = vpop.eup %7585  ;;  %v4645_v60 = vmul.f32 %v10782_v17, %v4644_v22  ;;  %vm11120_vm15 = vcmp.lt.f32.partialorder %v4646_v50, 0.0004427343  ;;  %v3460_v3 = vadd.f32 1.0, %v3459_v53  ;;  %v3462_v16 = vand.u32 2147483647, %v7584_v23  ;;  %v12080_v22 = vld [vmem:[#allocation13_spill] sm:$0xff] }
 0x478   : > { %v4946_v59 = vadd.f32 %v4666_v62, %v12068_v58  ;;  %v12072_v55 = vmax.f32 %v12071_v43, 0.0  ;;  %v4642_v49 = vmul.f32 0.6931472, %v7586_v37  ;;  %v4636_v40 = vmul.f32 %v12060_v30, %v4635_v5  ;;  %v5159_v30 = vld [vmem:[%s11846_s5 + $0x1c0] sm:$0xff]  ;;  %v12082_v62 = vld [vmem:[#allocation17_spill] sm:$0xff]  ;;  %v5161_v43 = vld [vmem:[%s11846_s5 + $0x1d0] sm:$0xff] }
 0x479   : > { %v7588_v36 = vpop.eup %7587  ;;  %v11130_v17 = vadd.f32 %v11040_v8, %v2581_v29  ;;  %v4622_v27 = vadd.f32 1.0, %v12073_v12  ;;  %vm4638_vm3 = vcmp.lt.f32.partialorder %v4637_v10, 0.0004427343  ;;  %v12076_v56 = vmax.f32 %v12075_v1, 0.0  ;;  %v12078_v29 = vld [vmem:[#allocation12_spill] sm:$0xff]  ;;  %v5160_v10 = vld [vmem:[%s11846_s5 + $0x1c8] sm:$0xff] }
 0x47a   : > { %v4945_v33 = vadd.f32 %v4657_v4, %v12072_v55  ;;  %v6738_v7 = vadd.f32 -0.6931472, %v4946_v59  ;;  %v4648_v52 = vsel %vm11120_vm15, %v4645_v60, %v4642_v49  ;;  %v4633_v13 = vmul.f32 0.6931472, %v7588_v36  ;;  %v5162_v1 = vld [vmem:[%s11846_s5 + $0x1d8] sm:$0xff] }
 0x47b   : > { %v4944_v32 = vadd.f32 %v4648_v52, %v12076_v56  ;;  %v2713_v45 = vand.u32 2147483647, %v11130_v17  ;;  %v4625_v25 = vmul.f32 -0.5, %v12073_v12  ;;  %v2648_v54 = vmax.f32 %v11043_v63, 0.0 }
 0x47c   : > { %v6737_v6 = vadd.f32 -0.6931472, %v4945_v33  ;;  %v5636_v38 = vmul.f32 %v6738_v7, %v12074_v41  ;;  %v4639_v28 = vsel %vm4638_vm3, %v4636_v40, %v4633_v13  ;;  %7591 = vlog2.f32 %v4622_v27  ;;  %v7590_v18 = vpop.eup %7589  ;;  %6830 = vmatmul.msk.f32.gmra.mxu3 %vm436_vm0, %v5159_v30 }
 0x47d   : > { %v6736_v21 = vadd.f32 -0.6931472, %v4944_v32  ;;  %v12079_v15 = vmax.f32 %v12078_v29, 0.0  ;;  %v2777_v35 = vsub.f32 0.0, %v2713_v45  ;;  %v3458_v44 = vmul.f32 0.6931472, %v7590_v18 }
 0x47e   : > { %5757 = vmatpush.msrb.mxu0 %v5636_v38  ;;  %v5635_v47 = vmul.f32 %v6737_v6, %v12077_v57  ;;  %v3461_v14 = vmul.f32 %v7584_v23, %v3460_v3  ;;  %vm3463_vm4 = vcmp.lt.f32.partialorder %v3462_v16, 0.0004427343  ;;  %v11148_v63 = vadd.f32 %v11040_v8, %v2584_v42  ;;  %v12081_v23 = vld [vmem:[#allocation14_spill] sm:$0xff]  ;;  %v5165_v29 = vld [vmem:[%s11846_s5 + $0x1f0] sm:$0xff] }
 0x47f   : > { %v4943_v61 = vadd.f32 %v4639_v28, %v12079_v15  ;;  %v5634_v24 = vmul.f32 %v6736_v21, %v12080_v22  ;;  %v2903_v26 = vmul.f32 1.442695, %v2777_v35  ;;  %v4626_v50 = vadd.f32 1.0, %v4625_v25  ;;  %v5163_v18 = vld [vmem:[%s11846_s5 + $0x1e0] sm:$0xff] }
 0x480   : > { %5758 = vmatpush.msrb.mxu0 %v5635_v47  ;;  %v3464_v48 = vsel %vm3463_vm4, %v3461_v14, %v3458_v44  ;;  %v4628_v11 = vand.u32 2147483647, %v12073_v12  ;;  %v2714_v31 = vand.u32 2147483647, %v11148_v63  ;;  %v4046_v4 = vmax.f32 %v12082_v62, 0.0  ;;  %v5164_v47 = vld [vmem:[%s11846_s5 + $0x1e8] sm:$0xff] }
 0x481   : > { %v6735_v2 = vadd.f32 -0.6931472, %v4943_v61  ;;  %v3544_v0 = vadd.f32 %v3464_v48, %v2648_v54  ;;  %7593 = vpow2.f32 %v2903_v26  ;;  %v4627_v39 = vmul.f32 %v12073_v12, %v4626_v50  ;;  %v5166_v61 = vld [vmem:[%s11846_s5 + $0x1f8] sm:$0xff]  ;;  %v11206_v50 = vld [vmem:[%s11844_s3 + $0x1] ss:$0 sm:$0xff] }
 0x482   : > { %5759 = vmatpush.msrb.mxu0 %v5634_v24  ;;  %v7592_v8 = vpop.eup %7591  ;;  %v2778_v46 = vsub.f32 0.0, %v2714_v31  ;;  %vm4629_vm5 = vcmp.lt.f32.partialorder %v4628_v11, 0.0004427343  ;;  %v2649_v6 = vmax.f32 %v11130_v17, 0.0  ;;  %v2650_v42 = vmax.f32 %v11148_v63, 0.0 }
 0x483   : > { %v5633_v51 = vmul.f32 %v6735_v2, %v12081_v23  ;;  %v6635_v34 = vadd.f32 -0.6931472, %v3544_v0  ;;  %v4624_v53 = vmul.f32 0.6931472, %v7592_v8 }
 0x484   : > { %v2905_v5 = vmul.f32 1.442695, %v2778_v46  ;;  %6831 = vmatmul.msk.f32.gmra.mxu3 %vm436_vm0, %v5160_v10 }
 0x485   : > { %5760 = vmatpush.msrb.mxu0 %v5633_v51  ;;  %v4630_v20 = vsel %vm4629_vm5, %v4627_v39, %v4624_v53  ;;  %6699 = vmatmul.msk.f32.gmra.mxu2 %vm3612_vm2, %v6635_v34 }
 0x486   : > { %v4942_v37 = vadd.f32 %v4630_v20, %v4046_v4  ;;  %7595 = vpow2.f32 %v2905_v5 }
 0x487   : > { %v7594_v9 = vpop.eup %7593 }
 0x488   : > { %v3465_v58 = vadd.f32 1.0, %v7594_v9  ;;  %v6734_v59 = vadd.f32 -0.6931472, %v4942_v37  ;;  %v3468_v60 = vmul.f32 -0.5, %v7594_v9  ;;  %v3471_v49 = vand.u32 2147483647, %v7594_v9 }
 0x48a   : > { %7597 = vlog2.f32 %v3465_v58  ;;  %v5632_v3 = vmul.f32 %v6734_v59, %v12083_v19  ;;  %v3469_v55 = vadd.f32 1.0, %v3468_v60  ;;  %vm3472_vm1 = vcmp.lt.f32.partialorder %v3471_v49, 0.0004427343 }
 0x48c   : > { %v7596_v16 = vpop.eup %7595  ;;  %5761 = vmatpush.msrb.mxu0 %v5632_v3  ;;  %6832 = vmatmul.msk.f32.gmra.mxu3 %vm436_vm0, %v5161_v43  ;;  %v3470_v12 = vmul.f32 %v7594_v9, %v3469_v55 }
 0x48d   : > { %v3474_v33 = vadd.f32 1.0, %v7596_v16  ;;  %v3477_v36 = vmul.f32 -0.5, %v7596_v16  ;;  %v11167_v27 = vpop.f32.mrf.mxu2  ;;  %v3480_v41 = vand.u32 2147483647, %v7596_v16 }
 0x48e   : > { %v11219_v3 = vadd.f32 %v11206_v50, %v11167_v27 }
 0x48f   : > { %7599 = vlog2.f32 %v3474_v33  ;;  %v3478_v52 = vadd.f32 1.0, %v3477_v36  ;;  %vm3481_vm6 = vcmp.lt.f32.partialorder %v3480_v41, 0.0004427343 }
 0x490   : > { %v7598_v7 = vpop.eup %7597  ;;  %12092 = vst [vmem:[#allocation20_spill] sm:$0xff] %v11219_v3  ;;  %v4126_v33 = vand.u32 2147483647, %v11219_v3 }
 0x491   : > { %v3467_v40 = vmul.f32 0.6931472, %v7598_v7  ;;  %v3479_v25 = vmul.f32 %v7596_v16, %v3478_v52 }
 0x493   : > { %v3473_v13 = vsel %vm3472_vm1, %v3470_v12, %v3467_v40  ;;  %v4190_v40 = vsub.f32 0.0, %v4126_v33 }
 0x494   : > { %v3545_v38 = vadd.f32 %v3473_v13, %v2649_v6  ;;  %6833 = vmatmul.msk.f32.gmra.mxu3 %vm436_vm0, %v5162_v1 }
 0x495   : > { %v7600_v56 = vpop.eup %7599  ;;  %v3969_v28 = vpop.f32.mrf.mxu2  ;;  %v4302_v52 = vmul.f32 1.442695, %v4190_v40 }
 0x496   : > { %v6636_v32 = vadd.f32 -0.6931472, %v3545_v38  ;;  %v3476_v45 = vmul.f32 0.6931472, %v7600_v56  ;;  %v11222_v43 = vadd.f32 %v11206_v50, %v3969_v28 }
 0x498   : > { %v3482_v54 = vsel %vm3481_vm6, %v3479_v25, %v3476_v45  ;;  %6700 = vmatmul.msk.f32.gmra.mxu2 %vm3612_vm2, %v6636_v32  ;;  %12093 = vst [vmem:[#allocation18_spill] sm:$0xff] %v11222_v43  ;;  %v4127_v7 = vand.u32 2147483647, %v11222_v43 }
 0x499   : > { %v3546_v17 = vadd.f32 %v3482_v54, %v2650_v42 }
 0x49a   : > { %v11192_v35 = vpop.f32.mrf.mxu3  ;;  %v4191_v12 = vsub.f32 0.0, %v4127_v7 }
 0x49b   : > { %v6637_v30 = vadd.f32 -0.6931472, %v3546_v17  ;;  %12084 = vst [vmem:[#allocation16_spill] sm:$0xff] %v11192_v35 }
 0x49c   : > { %6834 = vmatmul.msk.f32.gmra.mxu3 %vm436_vm0, %v5163_v18  ;;  %v4304_v41 = vmul.f32 1.442695, %v4191_v12 }
 0x49d   : > { %v3972_v57 = vpop.f32.mrf.mxu2 }
 0x49e   : > { %v11231_v27 = vadd.f32 %v11206_v50, %v3972_v57 }
 0x4a0   : > { %6701 = vmatmul.msk.f32.gmra.mxu2 %vm3612_vm2, %v6637_v30  ;;  %12096 = vst [vmem:[#allocation11_spill] sm:$0xff] %v11231_v27  ;;  %v4128_v1 = vand.u32 2147483647, %v11231_v27 }
 0x4a2   : > { %v4192_v28 = vsub.f32 0.0, %v4128_v1 }
 0x4a4   : > { %6835 = vmatmul.msk.f32.gmra.mxu3 %vm436_vm0, %v5164_v47 }
 0x4a5   : > { %v3975_v21 = vpop.f32.mrf.mxu2 }
 0x4a6   : > { %v11234_v13 = vadd.f32 %v11206_v50, %v3975_v21 }
 0x4a7   : > { %v11195_v14 = vpop.f32.mrf.mxu3 }
 0x4a8   : > { %12085 = vst [vmem:[#allocation15_spill] sm:$0xff] %v11195_v14  ;;  %v4129_v45 = vand.u32 2147483647, %v11234_v13 }
 0x4a9   : > { %12097 = vst [vmem:[#allocation8_spill] sm:$0xff] %v11234_v13 }
 0x4aa   : > { %v4193_v47 = vsub.f32 0.0, %v4129_v45 }
 0x4ac   : > { %6836 = vmatmul.msk.f32.gmra.mxu3 %vm436_vm0, %v5165_v29 }
 0x4ad   : > { %v3978_v15 = vpop.f32.mrf.mxu2 }
 0x4ae   : > { %v11237_v38 = vadd.f32 %v11206_v50, %v3978_v15 }
 0x4b0   : > { %v11197_v22 = vpop.f32.mrf.mxu3  ;;  %v4130_v42 = vand.u32 2147483647, %v11237_v38 }
 0x4b1   : > { %12086 = vst [vmem:[#allocation7_spill] sm:$0xff] %v11197_v22 }
 0x4b2   : > { %v4194_v15 = vsub.f32 0.0, %v4130_v42 }
 0x4b4   : > { %6837 = vmatmul.msk.f32.gmra.mxu3 %vm436_vm0, %v5166_v61 }
 0x4b5   : > { %v3981_v44 = vpop.f32.mrf.mxu2 }
 0x4b6   : > { %v11241_v32 = vadd.f32 %v11206_v50, %v3981_v44 }
 0x4b8   : > { %v11201_v26 = vpop.f32.mrf.mxu3  ;;  %v4131_v18 = vand.u32 2147483647, %v11241_v32 }
 0x4b9   : > { %12087 = vst [vmem:[#allocation5_spill] sm:$0xff] %v11201_v26 }
 0x4bd   : > { %v3984_v63 = vpop.f32.mrf.mxu2 }
 0x4be   : > { %v11245_v25 = vadd.f32 %v11206_v50, %v3984_v63  ;;  %v4306_v63 = vmul.f32 1.442695, %v4192_v28 }
 0x4c0   : > { %v4132_v21 = vand.u32 2147483647, %v11245_v25 }
 0x4c5   : > { %v11199_v24 = vpop.f32.mrf.mxu2 }
 0x4c6   : > { %v11209_v23 = vpop.f32.mrf.mxu3 }
 0x4c7   : > { %12088 = vst [vmem:[#allocation4_spill] sm:$0xff] %v11209_v23 }
 0x4cd   : > { %v3990_v2 = vpop.f32.mrf.mxu2 }
 0x4ce   : > { %v3991_v48 = vadd.f32 %v11206_v50, %v3990_v2 }
 0x4d0   : > { %v4134_v11 = vand.u32 2147483647, %v3991_v48  ;;  %v4070_v58 = vmax.f32 %v3991_v48, 0.0 }
 0x4d2   : > { %v4198_v31 = vsub.f32 0.0, %v4134_v11 }
 0x4d4   : > { %v4318_v0 = vmul.f32 1.442695, %v4198_v31 }
 0x4d5   : > { %v11211_v8 = vpop.f32.mrf.mxu3  ;;  %v3993_v46 = vpop.f32.mrf.mxu2 }
 0x4d6   : > { %7601 = vpow2.f32 %v4318_v0  ;;  %12089 = vst [vmem:[#allocation9_spill] sm:$0xff] %v11211_v8  ;;  %v11264_v61 = vadd.f32 %v11206_v50, %v3993_v46  ;;  %v4195_v0 = vsub.f32 0.0, %v4131_v18 }
 0x4dc   : > { %v7602_v51 = vpop.eup %7601 }
 0x4dd   : > { %v4838_v34 = vadd.f32 1.0, %v7602_v51  ;;  %v4841_v53 = vmul.f32 -0.5, %v7602_v51  ;;  %v11213_v39 = vpop.f32.mrf.mxu3  ;;  %v3996_v4 = vpop.f32.mrf.mxu2  ;;  %v4844_v10 = vand.u32 2147483647, %v7602_v51 }
 0x4de   : > { %12090 = vst [vmem:[#allocation2_spill] sm:$0xff] %v11213_v39  ;;  %v11268_v2 = vadd.f32 %v11206_v50, %v3996_v4 }
 0x4df   : > { %7603 = vlog2.f32 %v4838_v34  ;;  %v4842_v5 = vadd.f32 1.0, %v4841_v53  ;;  %vm4845_vm0 = vcmp.lt.f32.partialorder %v4844_v10, 0.0004427343  ;;  %v4196_v34 = vsub.f32 0.0, %v4132_v21 }
 0x4e0   : > { %7605 = vpow2.f32 %v4302_v52  ;;  %v11276_v53 = vadd.f32 %v11206_v50, %v11199_v24 }
 0x4e1   : > { %v4843_v37 = vmul.f32 %v7602_v51, %v4842_v5  ;;  %7607 = vpow2.f32 %v4304_v41  ;;  %v4308_v51 = vmul.f32 1.442695, %v4193_v47  ;;  %v4135_v5 = vand.u32 2147483647, %v11264_v61 }
 0x4e2   : > { %7609 = vpow2.f32 %v4306_v63 }
 0x4e3   : > { %v4199_v33 = vsub.f32 0.0, %v4135_v5 }
 0x4e5   : > { %v7604_v62 = vpop.eup %7603  ;;  %v3999_v60 = vpop.f32.mrf.mxu2  ;;  %v4320_v42 = vmul.f32 1.442695, %v4199_v33 }
 0x4e6   : > { %v4840_v20 = vmul.f32 0.6931472, %v7604_v62  ;;  %v11257_v57 = vpop.eup %7605  ;;  %v11261_v29 = vadd.f32 %v11206_v50, %v3999_v60  ;;  %v4310_v62 = vmul.f32 1.442695, %v4194_v15  ;;  %v4312_v60 = vmul.f32 1.442695, %v4195_v0 }
 0x4e7   : > { %12098 = vst [vmem:[#allocation12_spill] sm:$0xff] %v11257_v57  ;;  %v11271_v11 = vpop.eup %7607  ;;  %v4766_v31 = vadd.f32 1.0, %v11257_v57 }
 0x4e8   : > { %v4846_v9 = vsel %vm4845_vm0, %v4843_v37, %v4840_v20  ;;  %12099 = vst [vmem:[#allocation13_spill] sm:$0xff] %v11271_v11  ;;  %v4137_v46 = vand.u32 2147483647, %v11261_v29  ;;  %v4775_v20 = vadd.f32 1.0, %v11271_v11  ;;  %v4136_v37 = vand.u32 2147483647, %v11268_v2  ;;  %v11289_v41 = vpop.eup %7609 }
 0x4e9   : > { %v4966_v19 = vadd.f32 %v4846_v9, %v4070_v58  ;;  %7611 = vlog2.f32 %v4766_v31  ;;  %12100 = vst [vmem:[#allocation14_spill] sm:$0xff] %v11289_v41  ;;  %v4784_v63 = vadd.f32 1.0, %v11289_v41 }
 0x4ea   : > { %7613 = vpow2.f32 %v4308_v51  ;;  %v4200_v40 = vsub.f32 0.0, %v4136_v37  ;;  %v4778_v37 = vmul.f32 -0.5, %v11271_v11 }
 0x4eb   : > { %v6758_v16 = vadd.f32 -0.6931472, %v4966_v19  ;;  %v4314_v19 = vmul.f32 1.442695, %v4196_v34  ;;  %7615 = vpow2.f32 %v4310_v62 }
 0x4ec   : > { %7617 = vlog2.f32 %v4775_v20  ;;  %v4322_v21 = vmul.f32 1.442695, %v4200_v40 }
 0x4ed   : > { %7619 = vpow2.f32 %v4312_v60 }
 0x4ee   : > { %7621 = vpow2.f32 %v4314_v19 }
 0x4ef   : > { %v11291_v45 = vpop.eup %7611 }
 0x4f0   : > { %12101 = vst [vmem:[#allocation17_spill] sm:$0xff] %v11291_v45  ;;  %v11295_v47 = vpop.eup %7613 }
 0x4f1   : > { %12102 = vst [vmem:[#allocation6_spill] sm:$0xff] %v11295_v47  ;;  %v4793_v34 = vadd.f32 1.0, %v11295_v47 }
 0x4f7   : > { %v11215_v59 = vpop.f32.mrf.mxu3 }
 0x4f8   : > { %12091 = vst [vmem:[#allocation3_spill] sm:$0xff] %v11215_v59 }
 0x4f9   : > { %v4002_v36 = vpop.f32.mrf.mxu2 }
 0x4fa   : > { %v11254_v30 = vadd.f32 %v11206_v50, %v4002_v36 }
 0x4fc   : > { %v4138_v48 = vand.u32 2147483647, %v11254_v30 }
 0x4fe   : > { %v4202_v9 = vsub.f32 0.0, %v4138_v48 }
 0x4ff   : > { %v5544_v55 = vpop.f32.mrf.mxu3 }
 0x500   : > { %v11225_v49 = vmul.f32 %v6758_v16, %v5544_v55  ;;  %v4133_v16 = vand.u32 2147483647, %v11276_v53  ;;  %v4201_v55 = vsub.f32 0.0, %v4137_v46  ;;  %v4326_v12 = vmul.f32 1.442695, %v4202_v9 }
 0x502   : > { %12094 = vst [vmem:[#allocation19_spill] sm:$0xff] %v11225_v49  ;;  %v4197_v1 = vsub.f32 0.0, %v4133_v16  ;;  %v4796_v16 = vmul.f32 -0.5, %v11295_v47 }
 0x504   : > { %v4316_v0 = vmul.f32 1.442695, %v4197_v1 }
 0x507   : > { %v11228_v6 = vpop.f32.mrf.mxu3 }
 0x508   : > { %12095 = vst [vmem:[#allocation10_spill] sm:$0xff] %v11228_v6  ;;  %v4005_v56 = vpop.f32.mrf.mxu2 }
 0x509   : > { %v11249_v54 = vadd.f32 %v11206_v50, %v4005_v56  ;;  %v4324_v56 = vmul.f32 1.442695, %v4201_v55 }
 0x50b   : > { %v4139_v44 = vand.u32 2147483647, %v11249_v54 }
 0x50d   : > { %v4203_v4 = vsub.f32 0.0, %v4139_v44  ;;  %v11297_v44 = vpop.eup %7615 }
 0x50e   : > { %v11303_v31 = vpop.eup %7617  ;;  %v4802_v5 = vadd.f32 1.0, %v11297_v44 }
 0x50f   : > { %v11251_v17 = vpop.f32.mrf.mxu3  ;;  %v4328_v36 = vmul.f32 1.442695, %v4203_v4  ;;  %12103 = vst [vmem:[#allocation21_spill] sm:$0xff] %v11303_v31  ;;  %v11305_v51 = vpop.eup %7619 }
 0x510   : > { %v11309_v62 = vpop.eup %7621 }
 0x511   : > { %7623 = vpow2.f32 %v4328_v36 }
 0x512   : > { %7625 = vpow2.f32 %v4326_v12  ;;  %v4820_v12 = vadd.f32 1.0, %v11309_v62 }
 0x517   : > { %v11280_v10 = vpop.f32.mrf.mxu3  ;;  %v11312_v4 = vpop.eup %7623 }
 0x518   : > { %v11314_v20 = vpop.eup %7625  ;;  %v4883_v55 = vadd.f32 1.0, %v11312_v4  ;;  %v4886_v35 = vmul.f32 -0.5, %v11312_v4 }
 0x51a   : > { %v4887_v11 = vadd.f32 1.0, %v4886_v35  ;;  %v4880_v35 = vand.u32 2147483647, %v11314_v20 }
 0x51b   : > { %v4008_v58 = vpop.f32.mrf.mxu2 }
 0x51c   : > { %v11285_v24 = vadd.f32 %v11206_v50, %v4008_v58  ;;  %v4811_v58 = vadd.f32 1.0, %v11305_v51  ;;  %vm11409_vm10 = vcmp.lt.f32.partialorder %v4880_v35, 0.0004427343 }
 0x51e   : > { %v4140_v7 = vand.u32 2147483647, %v11285_v24 }
 0x51f   : > { %v11293_v18 = vpop.f32.mrf.mxu3 }
 0x520   : > { %v4204_v52 = vsub.f32 0.0, %v4140_v7  ;;  %v11328_v7 = vmul.f32 -0.5, %v11257_v57 }
 0x522   : > { %v4330_v28 = vmul.f32 1.442695, %v4204_v52  ;;  %12104 = vst [vmem:[#allocation22_spill] sm:$0xff] %v11328_v7 }
 0x523   : > { %v4011_v15 = vpop.f32.mrf.mxu2 }
 0x524   : > { %7627 = vpow2.f32 %v4330_v28  ;;  %v11301_v48 = vadd.f32 %v11206_v50, %v4011_v15  ;;  %v4874_v28 = vadd.f32 1.0, %v11314_v20  ;;  %v11343_v15 = vmul.f32 -0.5, %v11289_v41 }
 0x525   : > { %7629 = vpow2.f32 %v4324_v56  ;;  %v11336_v56 = vadd.f32 1.0, %v4778_v37 }
 0x526   : > { %7631 = vpow2.f32 %v4320_v42  ;;  %v4141_v46 = vand.u32 2147483647, %v11301_v48  ;;  %v11364_v42 = vmul.f32 -0.5, %v11305_v51 }
 0x527   : > { %7633 = vpow2.f32 %v4322_v21  ;;  %v11332_v52 = vpop.f32.mrf.mxu3  ;;  %12105 = vst [vmem:[#allocation23_spill] sm:$0xff] %v11336_v56 }
 0x528   : > { %7635 = vlog2.f32 %v4784_v63  ;;  %v4205_v50 = vsub.f32 0.0, %v4141_v46  ;;  %v11349_v46 = vadd.f32 1.0, %v4796_v16  ;;  %v11367_v63 = vmul.f32 -0.5, %v11309_v62 }
 0x529   : > { %7637 = vpow2.f32 %v4316_v0 }
 0x52a   : > { %v11317_v9 = vpop.eup %7627  ;;  %7639 = vlog2.f32 %v4793_v34  ;;  %v4332_v60 = vmul.f32 1.442695, %v4205_v50  ;;  %12107 = vst [vmem:[#allocation25_spill] sm:$0xff] %v11349_v46 }
 0x52b   : > { %v11320_v19 = vpop.eup %7629  ;;  %7641 = vlog2.f32 %v4802_v5  ;;  %v4892_v33 = vadd.f32 1.0, %v11317_v9  ;;  %v4898_v43 = vand.u32 2147483647, %v11317_v9 }
 0x52c   : > { %v11325_v36 = vpop.eup %7631  ;;  %7643 = vpow2.f32 %v4332_v60  ;;  %v4865_v0 = vadd.f32 1.0, %v11320_v19  ;;  %v11356_v60 = vmul.f32 -0.5, %v11297_v44  ;;  %v4868_v59 = vmul.f32 -0.5, %v11320_v19 }
 0x52d   : > { %v11334_v1 = vpop.eup %7633  ;;  %7645 = vlog2.f32 %v4892_v33  ;;  %v4847_v50 = vadd.f32 1.0, %v11325_v36  ;;  %v4850_v16 = vmul.f32 -0.5, %v11325_v36  ;;  %v4871_v57 = vand.u32 2147483647, %v11320_v19 }
 0x52e   : > { %v11340_v21 = vpop.eup %7635  ;;  %7647 = vlog2.f32 %v4811_v58  ;;  %v4856_v33 = vadd.f32 1.0, %v11334_v1  ;;  %v4895_v58 = vmul.f32 -0.5, %v11317_v9  ;;  %v4859_v22 = vmul.f32 -0.5, %v11334_v1 }
 0x52f   : > { %12106 = vst [vmem:[#allocation24_spill] sm:$0xff] %v11340_v21  ;;  %v11347_v34 = vpop.eup %7637  ;;  %7649 = vlog2.f32 %v4883_v55  ;;  %v4862_v49 = vand.u32 2147483647, %v11334_v1  ;;  %v11386_v56 = vpop.f32.mrf.mxu3  ;;  %v4851_v45 = vadd.f32 1.0, %v4850_v16  ;;  %vm11392_vm8 = vcmp.lt.f32.partialorder %v4898_v43, 0.0004427343 }
 0x530   : > { %v11353_v37 = vpop.eup %7639  ;;  %7651 = vlog2.f32 %v4820_v12  ;;  %v4829_v5 = vadd.f32 1.0, %v11347_v34  ;;  %v11371_v12 = vmul.f32 -0.5, %v11347_v34  ;;  %v4896_v8 = vadd.f32 1.0, %v4895_v58 }
 0x531   : > { %v11360_v40 = vpop.eup %7641  ;;  %7653 = vlog2.f32 %v4874_v28  ;;  %v4877_v28 = vmul.f32 -0.5, %v11314_v20  ;;  %v4860_v27 = vadd.f32 1.0, %v4859_v22  ;;  %v4869_v47 = vadd.f32 1.0, %v4868_v59 }
 0x532   : > { %v7644_v55 = vpop.eup %7643  ;;  %7655 = vlog2.f32 %v4865_v0  ;;  %v4889_v0 = vand.u32 2147483647, %v11312_v4  ;;  %v4897_v31 = vmul.f32 %v11317_v9, %v4896_v8  ;;  %v4888_v21 = vmul.f32 %v11312_v4, %v4887_v11 }
 0x533   : > { %v7646_v14 = vpop.eup %7645  ;;  %7657 = vlog2.f32 %v4847_v50  ;;  %v4901_v26 = vadd.f32 1.0, %v7644_v55  ;;  %v4904_v3 = vmul.f32 -0.5, %v7644_v55  ;;  %v4878_v41 = vadd.f32 1.0, %v4877_v28 }
 0x534   : > { %v11376_v23 = vpop.eup %7647  ;;  %7659 = vlog2.f32 %v4856_v33  ;;  %v4894_v33 = vmul.f32 0.6931472, %v7646_v14  ;;  %v4907_v16 = vand.u32 2147483647, %v7644_v55  ;;  %v4075_v8 = vmax.f32 %v11249_v54, 0.0 }
 0x535   : > { %v7650_v39 = vpop.eup %7649  ;;  %7661 = vlog2.f32 %v4901_v26  ;;  %v4905_v7 = vadd.f32 1.0, %v4904_v3  ;;  %v4076_v3 = vmax.f32 %v11285_v24, 0.0  ;;  %vm11401_vm9 = vcmp.lt.f32.partialorder %v4889_v0, 0.0004427343 }
 0x536   : > { %v11382_v50 = vpop.eup %7651  ;;  %v4885_v26 = vmul.f32 0.6931472, %v7650_v39  ;;  %7663 = vlog2.f32 %v4829_v5  ;;  %v4900_v39 = vsel %vm11392_vm8, %v4897_v31, %v4894_v33  ;;  %v4879_v5 = vmul.f32 %v11314_v20, %v4878_v41  ;;  %v5569_v33 = vld [vmem:[%s11847_s6 + $0x8] sm:$0xff] }
 0x537   : > { %v7654_v58 = vpop.eup %7653  ;;  %v4906_v11 = vmul.f32 %v7644_v55, %v4905_v7  ;;  %v4077_v4 = vmax.f32 %v11301_v48, 0.0  ;;  %v4972_v54 = vadd.f32 %v4900_v39, %v4076_v3  ;;  %vm4908_vm11 = vcmp.lt.f32.partialorder %v4907_v16, 0.0004427343  ;;  %v5565_v35 = vpop.f32.mrf.mxu3  ;;  %5721 = vmatmul.f32.vlgmr.msrb.gmra.mxu2 %v5569_v33 }
 0x538   : > { %v7656_v13 = vpop.eup %7655  ;;  %v4876_v46 = vmul.f32 0.6931472, %v7654_v58  ;;  %v4891_v59 = vsel %vm11401_vm9, %v4888_v21, %v4885_v26  ;;  %v4870_v24 = vmul.f32 %v11320_v19, %v4869_v47  ;;  %v4074_v21 = vmax.f32 %v11254_v30, 0.0  ;;  %v5581_v30 = vld [vmem:[%s11847_s6 + $0x68] sm:$0xff] }
 0x539   : > { %v7658_v6 = vpop.eup %7657  ;;  %v4867_v9 = vmul.f32 0.6931472, %v7656_v13  ;;  %vm11417_vm12 = vcmp.lt.f32.partialorder %v4871_v57, 0.0004427343  ;;  %v4971_v48 = vadd.f32 %v4891_v59, %v4075_v8  ;;  %v4073_v26 = vmax.f32 %v11261_v29, 0.0 }
 0x53a   : > { %v7660_v22 = vpop.eup %7659  ;;  %v4882_v0 = vsel %vm11409_vm10, %v4879_v5, %v4876_v46  ;;  %v4849_v47 = vmul.f32 0.6931472, %v7658_v6  ;;  %v4861_v19 = vmul.f32 %v11334_v1, %v4860_v27  ;;  %vm11428_vm13 = vcmp.lt.f32.partialorder %v4862_v49, 0.0004427343 }
 0x53b   : > { %v7662_v28 = vpop.eup %7661  ;;  %v4858_v13 = vmul.f32 0.6931472, %v7660_v22  ;;  %v4873_v46 = vsel %vm11417_vm12, %v4870_v24, %v4867_v9  ;;  %v4970_v57 = vadd.f32 %v4882_v0, %v4074_v21  ;;  %v6764_v14 = vadd.f32 -0.6931472, %v4972_v54  ;;  %v12153_v21 = vld [vmem:[#allocation19_spill] sm:$0xff] }
 0x53c   : > { %v4903_v58 = vmul.f32 0.6931472, %v7662_v28  ;;  %v7664_v20 = vpop.eup %7663  ;;  %v4072_v22 = vmax.f32 %v11268_v2, 0.0  ;;  %v4833_v39 = vadd.f32 1.0, %v11371_v12  ;;  %v4852_v6 = vmul.f32 %v11325_v36, %v4851_v45  ;;  %v359_v2 = vld [vmem:[%s11843_s2 + $0x98] sm:$0xff]  ;;  %v5568_v45 = vld [vmem:[%s11847_s6] sm:$0xff] }
 0x53d   : > { %v4864_v27 = vsel %vm11428_vm13, %v4861_v19, %v4858_v13  ;;  %v12118_v29 = vand.u32 2147483647, %v11325_v36  ;;  %v4969_v49 = vadd.f32 %v4873_v46, %v4073_v26  ;;  %v6763_v28 = vadd.f32 -0.6931472, %v4971_v48  ;;  %6058 = vmatpush.msra.mxu3 %v359_v2  ;;  %5680 = vmatmul.f32.vlgmr.msrb.gmra.mxu1 %v5568_v45  ;;  %v12139_v2 = vld [vmem:[#allocation21_spill] sm:$0xff] }
 0x53e   : > { %v4909_v41 = vsel %vm4908_vm11, %v4906_v11, %v4903_v58  ;;  %v4824_v12 = vadd.f32 1.0, %v11367_v63  ;;  %v4826_v3 = vand.u32 2147483647, %v11309_v62  ;;  %v4831_v36 = vmul.f32 0.6931472, %v7664_v20 }
 0x53f   : > { %v4973_v55 = vadd.f32 %v4909_v41, %v4077_v4  ;;  %vm11439_vm14 = vcmp.lt.f32.partialorder %v12118_v29, 0.0004427343  ;;  %v4071_v43 = vmax.f32 %v11264_v61, 0.0  ;;  %v4968_v5 = vadd.f32 %v4864_v27, %v4072_v22  ;;  %v12133_v22 = vld [vmem:[#allocation6_spill] sm:$0xff] }
 0x540   : > { %v4855_v9 = vsel %vm11439_vm14, %v4852_v6, %v4849_v47  ;;  %v6762_v59 = vadd.f32 -0.6931472, %v4970_v57  ;;  %v5662_v58 = vmul.f32 %v6764_v14, %v11386_v56  ;;  %v4815_v11 = vadd.f32 1.0, %v11364_v42  ;;  %v5573_v56 = vld [vmem:[%s11847_s6 + $0x28] sm:$0xff]  ;;  %v5570_v42 = vld [vmem:[%s11847_s6 + $0x10] sm:$0xff] }
 0x541   : > { %v6765_v16 = vadd.f32 -0.6931472, %v4973_v55  ;;  %v4817_v4 = vand.u32 2147483647, %v11305_v51  ;;  %v4822_v63 = vmul.f32 0.6931472, %v11382_v50  ;;  %v4834_v31 = vmul.f32 %v11347_v34, %v4833_v39  ;;  %5724 = vmatmul.f32.gmra.mxu2 %v5573_v56  ;;  %5762 = vmatmul.f32.vlgmr.msrb.gmra.mxu0 %v5570_v42 }
 0x542   : > { %v12121_v54 = vand.u32 2147483647, %v11347_v34  ;;  %v4967_v61 = vadd.f32 %v4855_v9, %v4071_v43  ;;  %v6761_v24 = vadd.f32 -0.6931472, %v4969_v49  ;;  %v5661_v0 = vmul.f32 %v6763_v28, %v11332_v52  ;;  %v5574_v49 = vld [vmem:[%s11847_s6 + $0x30] sm:$0xff]  ;;  %v12138_v28 = vld [vmem:[#allocation22_spill] sm:$0xff] }
 0x543   : > { %v5663_v8 = vmul.f32 %v6765_v16, %v5565_v35  ;;  %v4806_v50 = vadd.f32 1.0, %v11356_v60  ;;  %v4813_v34 = vmul.f32 0.6931472, %v11376_v23  ;;  %v4825_v41 = vmul.f32 %v11309_v62, %v4824_v12  ;;  %v5572_v23 = vld [vmem:[%s11847_s6 + $0x20] sm:$0xff]  ;;  %v12132_v16 = vld [vmem:[#allocation25_spill] sm:$0xff]  ;;  %v12141_v9 = vld [vmem:[#allocation8_spill] sm:$0xff] }
 0x544   : > { %vm11461_vm15 = vcmp.lt.f32.partialorder %v12121_v54, 0.0004427343  ;;  %v4069_v52 = vmax.f32 %v11276_v53, 0.0  ;;  %vm11478_vm3 = vcmp.lt.f32.partialorder %v4826_v3, 0.0004427343  ;;  %v5660_v48 = vmul.f32 %v6762_v59, %v11293_v18  ;;  %v12140_v12 = vld [vmem:[#allocation14_spill] sm:$0xff] }
 0x545   : > { %5787 = vmatpush.msra.mxu1 %v5663_v8  ;;  %v4837_v20 = vsel %vm11461_vm15, %v4834_v31, %v4831_v36  ;;  %v6760_v7 = vadd.f32 -0.6931472, %v4968_v5  ;;  %v4068_v62 = vmax.f32 %v11245_v25, 0.0  ;;  %v4804_v60 = vmul.f32 0.6931472, %v11360_v40  ;;  %v12146_v54 = vld [vmem:[#allocation17_spill] sm:$0xff] }
 0x546   : > { %v4816_v55 = vmul.f32 %v11305_v51, %v4815_v11  ;;  %v4828_v53 = vsel %vm11478_vm3, %v4825_v41, %v4822_v63  ;;  %vm11491_vm4 = vcmp.lt.f32.partialorder %v4817_v4, 0.0004427343  ;;  %v4965_v26 = vadd.f32 %v4837_v20, %v4069_v52  ;;  %5683 = vmatmul.f32.gmra.mxu1 %v5572_v23  ;;  %v5576_v4 = vld [vmem:[%s11847_s6 + $0x40] sm:$0xff]  ;;  %v12145_v63 = vld [vmem:[#allocation11_spill] sm:$0xff]  ;;  %v12155_v23 = vld [vmem:[#allocation12_spill] sm:$0xff] }
 0x547   : > { %5788 = vmatpush.msra.mxu1 %v5662_v58  ;;  %v6759_v18 = vadd.f32 -0.6931472, %v4967_v61  ;;  %v5659_v47 = vmul.f32 %v6761_v24, %v11280_v10  ;;  %v4788_v19 = vadd.f32 1.0, %v11343_v15  ;;  %v4795_v25 = vmul.f32 0.6931472, %v11353_v37  ;;  %v12131_v37 = vld [vmem:[#allocation24_spill] sm:$0xff] }
 0x548   : > { %v4807_v40 = vmul.f32 %v11297_v44, %v4806_v50  ;;  %v4819_v51 = vsel %vm11491_vm4, %v4816_v55, %v4813_v34  ;;  %v4067_v46 = vmax.f32 %v11241_v32, 0.0  ;;  %v12128_v35 = vand.u32 2147483647, %v11297_v44  ;;  %v12147_v61 = vld [vmem:[#allocation23_spill] sm:$0xff]  ;;  %v12148_v24 = vld [vmem:[#allocation13_spill] sm:$0xff]  ;;  %v5596_v59 = vld [vmem:[%s11847_s6 + $0xe0] sm:$0xff] }
 0x549   : > { %5789 = vmatpush.msra.mxu1 %v5661_v0  ;;  %v4964_v10 = vadd.f32 %v4828_v53, %v4068_v62  ;;  %v5658_v57 = vmul.f32 %v6760_v7, %v11251_v17  ;;  %v4066_v15 = vmax.f32 %v11237_v38, 0.0  ;;  %v4786_v14 = vmul.f32 0.6931472, %v12131_v37  ;;  %v12137_v17 = vld [vmem:[#allocation10_spill] sm:$0xff]  ;;  %v5577_v38 = vld [vmem:[%s11847_s6 + $0x48] sm:$0xff]  ;;  %5765 = vmatmul.f32.gmra.mxu0 %v5574_v49  ;;  %v12160_v37 = vld [vmem:[#allocation4_spill] sm:$0xff] }
 0x54a   : > { %vm11504_vm5 = vcmp.lt.f32.partialorder %v12128_v35, 0.0004427343  ;;  %v4798_v39 = vmul.f32 %v12133_v22, %v12132_v16  ;;  %v12134_v44 = vand.u32 2147483647, %v12133_v22  ;;  %v4963_v27 = vadd.f32 %v4819_v51, %v4067_v46  ;;  %5727 = vmatmul.f32.gmra.mxu2 %v5577_v38  ;;  %v12152_v20 = vld [vmem:[#allocation3_spill] sm:$0xff]  ;;  %v12154_v7 = vld [vmem:[#allocation18_spill] sm:$0xff] }
 0x54b   : > { %5790 = vmatpush.msra.mxu1 %v5660_v48  ;;  %v4810_v32 = vsel %vm11504_vm5, %v4807_v40, %v4804_v60  ;;  %v6757_v29 = vadd.f32 -0.6931472, %v4965_v26  ;;  %v5657_v1 = vmul.f32 %v6759_v18, %v12137_v17  ;;  %v4770_v8 = vadd.f32 1.0, %v12138_v28  ;;  %v12157_v26 = vld [vmem:[#allocation2_spill] sm:$0xff]  ;;  %v12159_v46 = vld [vmem:[#allocation9_spill] sm:$0xff]  ;;  %v12162_v6 = vld [vmem:[#allocation7_spill] sm:$0xff] }
 0x54c   : > { %vm11517_vm1 = vcmp.lt.f32.partialorder %v12134_v44, 0.0004427343  ;;  %v4777_v45 = vmul.f32 0.6931472, %v12139_v2  ;;  %v4789_v3 = vmul.f32 %v12140_v12, %v4788_v19  ;;  %v4065_v43 = vmax.f32 %v12141_v9, 0.0  ;;  %v12158_v19 = vld [vmem:[#allocation20_spill] sm:$0xff] }
 0x54d   : > { %5791 = vmatpush.msra.mxu1 %v5659_v47  ;;  %v4801_v36 = vsel %vm11517_vm1, %v4798_v39, %v4795_v25  ;;  %v12142_v5 = vand.u32 2147483647, %v12140_v12  ;;  %v4962_v58 = vadd.f32 %v4810_v32, %v4066_v15  ;;  %v6756_v11 = vadd.f32 -0.6931472, %v4964_v10  ;;  %v5578_v10 = vld [vmem:[%s11847_s6 + $0x50] sm:$0xff]  ;;  %v5580_v16 = vld [vmem:[%s11847_s6 + $0x60] sm:$0xff] }
 0x54e   : > { %v4064_v31 = vmax.f32 %v12145_v63, 0.0  ;;  %v4768_v13 = vmul.f32 0.6931472, %v12146_v54  ;;  %v4780_v0 = vmul.f32 %v12148_v24, %v12147_v61  ;;  %v12149_v42 = vand.u32 2147483647, %v12148_v24  ;;  %5686 = vmatmul.f32.gmra.mxu1 %v5576_v4  ;;  %v12161_v39 = vld [vmem:[#allocation5_spill] sm:$0xff] }
 0x54f   : > { %5792 = vmatpush.msra.mxu1 %v5658_v57  ;;  %vm11536_vm6 = vcmp.lt.f32.partialorder %v12142_v5, 0.0004427343  ;;  %v4961_v34 = vadd.f32 %v4801_v36, %v4065_v43  ;;  %v6755_v41 = vadd.f32 -0.6931472, %v4963_v27  ;;  %v5655_v52 = vmul.f32 %v6757_v29, %v12152_v20  ;;  %v12163_v29 = vld [vmem:[#allocation15_spill] sm:$0xff]  ;;  %v5582_v38 = vld [vmem:[%s11847_s6 + $0x70] sm:$0xff] }
 0x550   : > { %v4792_v56 = vsel %vm11536_vm6, %v4789_v3, %v4786_v14  ;;  %vm11551_vm0 = vcmp.lt.f32.partialorder %v12149_v42, 0.0004427343  ;;  %v4063_v48 = vmax.f32 %v12154_v7, 0.0  ;;  %v4771_v62 = vmul.f32 %v12155_v23, %v4770_v8  ;;  %v12164_v49 = vld [vmem:[#allocation16_spill] sm:$0xff]  ;;  %v5584_v8 = vld [vmem:[%s11847_s6 + $0x80] sm:$0xff]  ;;  %v5589_v2 = vld [vmem:[%s11847_s6 + $0xa8] sm:$0xff] }
 0x551   : > { %5793 = vmatpush.msra.mxu1 %v5657_v1  ;;  %v4783_v60 = vsel %vm11551_vm0, %v4780_v0, %v4777_v45  ;;  %v12156_v55 = vand.u32 2147483647, %v12155_v23  ;;  %v4960_v53 = vadd.f32 %v4792_v56, %v4064_v31  ;;  %v6754_v33 = vadd.f32 -0.6931472, %v4962_v58  ;;  %5768 = vmatmul.f32.gmra.mxu0 %v5578_v10  ;;  %v5585_v1 = vld [vmem:[%s11847_s6 + $0x88] sm:$0xff]  ;;  %v5586_v45 = vld [vmem:[%s11847_s6 + $0x90] sm:$0xff] }
 0x552   : > { %v5654_v18 = vmul.f32 %v6756_v11, %v12157_v26  ;;  %v4062_v25 = vmax.f32 %v12158_v19, 0.0  ;;  %v4959_v40 = vadd.f32 %v4783_v60, %v4063_v48  ;;  %v6753_v51 = vadd.f32 -0.6931472, %v4961_v34  ;;  %5730 = vmatmul.f32.gmra.mxu2 %v5581_v30  ;;  %v5588_v12 = vld [vmem:[%s11847_s6 + $0xa0] sm:$0xff]  ;;  %v5593_v3 = vld [vmem:[%s11847_s6 + $0xc8] sm:$0xff]  ;;  %v5590_v36 = vld [vmem:[%s11847_s6 + $0xb0] sm:$0xff] }
 0x553   : > { %5794 = vmatpush.msra.mxu1 %v12153_v21  ;;  %vm4773_vm8 = vcmp.lt.f32.partialorder %v12156_v55, 0.0004427343  ;;  %v5653_v35 = vmul.f32 %v6755_v41, %v12159_v46  ;;  %v6752_v15 = vadd.f32 -0.6931472, %v4960_v53  ;;  %v5652_v14 = vmul.f32 %v6754_v33, %v12160_v37  ;;  %v5592_v9 = vld [vmem:[%s11847_s6 + $0xc0] sm:$0xff]  ;;  %v5597_v43 = vld [vmem:[%s11847_s6 + $0xe8] sm:$0xff] }
 0x554   : > { %v4774_v47 = vsel %vm4773_vm8, %v4771_v62, %v4768_v13  ;;  %v6751_v22 = vadd.f32 -0.6931472, %v4959_v40  ;;  %v5651_v32 = vmul.f32 %v6753_v51, %v12161_v39  ;;  %v5594_v5 = vld [vmem:[%s11847_s6 + $0xd0] sm:$0xff]  ;;  %v5571_v11 = vld [vmem:[%s11847_s6 + $0x18] sm:$0xff]  ;;  %v353_v21 = vld [vmem:[%s11843_s2 + $0x68] sm:$0xff] }
 0x555   : > { %5795 = vmatpush.msra.mxu1 %v5655_v52  ;;  %v4958_v57 = vadd.f32 %v4774_v47, %v4062_v25  ;;  %v5650_v27 = vmul.f32 %v6752_v15, %v12162_v6  ;;  %v5598_v58 = vld [vmem:[%s11847_s6 + $0xf0] sm:$0xff]  ;;  %v5575_v4 = vld [vmem:[%s11847_s6 + $0x38] sm:$0xff]  ;;  %v352_v7 = vld [vmem:[%s11843_s2 + $0x60] sm:$0xff] }
 0x556   : > { %5689 = vmatmul.f32.gmra.mxu1 %v5580_v16  ;;  %v5649_v17 = vmul.f32 %v6751_v22, %v12163_v29  ;;  %v5579_v63 = vld [vmem:[%s11847_s6 + $0x58] sm:$0xff]  ;;  %v358_v13 = vld [vmem:[%s11843_s2 + $0x90] sm:$0xff] }
 0x557   : > { %5796 = vmatpush.msra.mxu1 %v5654_v18  ;;  %v6750_v44 = vadd.f32 -0.6931472, %v4958_v57  ;;  %v5583_v31 = vld [vmem:[%s11847_s6 + $0x78] sm:$0xff]  ;;  %6059 = vmatpush.msra.mxu3 %v358_v13  ;;  %v354_v20 = vld [vmem:[%s11843_s2 + $0x70] sm:$0xff] }
 0x558   : > { %v5587_v54 = vld [vmem:[%s11847_s6 + $0x98] sm:$0xff] }
 0x559   : > { %5797 = vmatpush.msra.mxu1 %v5653_v35  ;;  %5771 = vmatmul.f32.gmra.mxu0 %v5582_v38  ;;  %v5648_v28 = vmul.f32 %v6750_v44, %v12164_v49  ;;  %v5591_v61 = vld [vmem:[%s11847_s6 + $0xb8] sm:$0xff] }
 0x55a   : > { %5733 = vmatmul.f32.gmra.mxu2 %v5585_v1  ;;  %v5595_v24 = vld [vmem:[%s11847_s6 + $0xd8] sm:$0xff] }
 0x55b   : > { %5798 = vmatpush.msra.mxu1 %v5652_v14  ;;  %v5599_v0 = vld [vmem:[%s11847_s6 + $0xf8] sm:$0xff] }
 0x55c   : > { %v355_v41 = vld [vmem:[%s11843_s2 + $0x78] sm:$0xff] }
 0x55d   : > { %5799 = vmatpush.msra.mxu1 %v5651_v32  ;;  %5865 = vmatpush.msra.mxu2 %v355_v41 }
 0x55e   : > { %5692 = vmatmul.f32.gmra.mxu1 %v5584_v8 }
 0x55f   : > { %5800 = vmatpush.msra.mxu1 %v5650_v27  ;;  %5866 = vmatpush.msra.mxu2 %v354_v20 }
 0x561   : > { %5801 = vmatpush.msra.mxu1 %v5649_v17  ;;  %5774 = vmatmul.f32.gmra.mxu0 %v5586_v45  ;;  %v357_v17 = vld [vmem:[%s11843_s2 + $0x88] sm:$0xff] }
 0x562   : > { %5736 = vmatmul.f32.gmra.mxu2 %v5589_v2  ;;  %6060 = vmatpush.msra.mxu3 %v357_v17 }
 0x563   : > { %5802 = vmatpush.msra.mxu1 %v5648_v28  ;;  %5867 = vmatpush.msra.mxu2 %v353_v21 }
 0x565   : > { %5868 = vmatpush.msra.mxu2 %v352_v7 }
 0x566   : > { %5695 = vmatmul.f32.gmra.mxu1 %v5588_v12 }
 0x569   : > { %5777 = vmatmul.f32.gmra.mxu0 %v5590_v36 }
 0x56a   : > { %5739 = vmatmul.f32.gmra.mxu2 %v5593_v3 }
 0x56e   : > { %5698 = vmatmul.f32.gmra.mxu1 %v5592_v9 }
 0x571   : > { %5780 = vmatmul.f32.gmra.mxu0 %v5594_v5 }
 0x572   : > { %5742 = vmatmul.f32.gmra.mxu2 %v5597_v43 }
 0x576   : > { %5701 = vmatmul.f32.gmra.mxu1 %v5596_v59 }
 0x579   : > { %5783 = vmatmul.f32.gmra.mxu0 %v5598_v58 }
 0x57e   : > { %5803 = vmatmul.f32.vlgmr.msra.gmra.mxu1 %v5571_v11 }
 0x586   : > { %5806 = vmatmul.f32.gmra.mxu1 %v5575_v4 }
 0x58e   : > { %5809 = vmatmul.f32.gmra.mxu1 %v5579_v63 }
 0x596   : > { %5812 = vmatmul.f32.gmra.mxu1 %v5583_v31 }
 0x59e   : > { %5815 = vmatmul.f32.gmra.mxu1 %v5587_v54 }
 0x5a6   : > { %5818 = vmatmul.f32.gmra.mxu1 %v5591_v61  ;;  %v11672_v61 = vld [vmem:[%s11844_s3 + $0x2] ss:$0 sm:$0xff] }
 0x5ae   : > { %5821 = vmatmul.f32.gmra.mxu1 %v5595_v24 }
 0x5b6   : > { %5824 = vmatmul.f32.gmra.mxu1 %v5599_v0 }
 0x5ba   : > { %v5681_v56 = vpop.f32.mrf.mxu1  ;;  %v5722_v23 = vpop.f32.mrf.mxu2 }
 0x5bb   : > { %v5723_v26 = vadd.f32 %v5722_v23, %v5681_v56 }
 0x5be   : > { %v5763_v62 = vpop.f32.mrf.mxu0 }
 0x5bf   : > { %v5764_v47 = vadd.f32 %v5763_v62, %v5723_v26 }
 0x5c3   : > { %v5684_v42 = vpop.f32.mrf.mxu1 }
 0x5c4   : > { %v5725_v55 = vpop.f32.mrf.mxu2 }
 0x5c5   : > { %v5726_v51 = vadd.f32 %v5725_v55, %v5684_v42 }
 0x5c6   : > { %v5766_v33 = vpop.f32.mrf.mxu0 }
 0x5c7   : > { %v5767_v46 = vadd.f32 %v5766_v33, %v5726_v51 }
 0x5cb   : > { %v5687_v50 = vpop.f32.mrf.mxu1 }
 0x5cd   : > { %v5728_v18 = vpop.f32.mrf.mxu2 }
 0x5ce   : > { %v5769_v40 = vpop.f32.mrf.mxu0  ;;  %v5729_v57 = vadd.f32 %v5728_v18, %v5687_v50  ;;  %v356_v18 = vld [vmem:[%s11843_s2 + $0x80] sm:$0xff] }
 0x5cf   : > { %6061 = vmatpush.msra.mxu3 %v356_v18 }
 0x5d0   : > { %v5770_v37 = vadd.f32 %v5769_v40, %v5729_v57 }
 0x5d3   : > { %v5690_v34 = vpop.f32.mrf.mxu1 }
 0x5d5   : > { %v5731_v30 = vpop.f32.mrf.mxu2 }
 0x5d6   : > { %v5772_v15 = vpop.f32.mrf.mxu0  ;;  %v5732_v39 = vadd.f32 %v5731_v30, %v5690_v34 }
 0x5d8   : > { %v5773_v44 = vadd.f32 %v5772_v15, %v5732_v39 }
 0x5db   : > { %v5693_v52 = vpop.f32.mrf.mxu1 }
 0x5dd   : > { %v5734_v22 = vpop.f32.mrf.mxu2 }
 0x5de   : > { %v5775_v32 = vpop.f32.mrf.mxu0  ;;  %v5735_v29 = vadd.f32 %v5734_v22, %v5693_v52 }
 0x5e0   : > { %v5776_v38 = vadd.f32 %v5775_v32, %v5735_v29 }
 0x5e3   : > { %v5696_v48 = vpop.f32.mrf.mxu1 }
 0x5e5   : > { %v5737_v1 = vpop.f32.mrf.mxu2 }
 0x5e6   : > { %v5778_v28 = vpop.f32.mrf.mxu0  ;;  %v5738_v2 = vadd.f32 %v5737_v1, %v5696_v48 }
 0x5e8   : > { %v5779_v12 = vadd.f32 %v5778_v28, %v5738_v2 }
 0x5eb   : > { %v5699_v60 = vpop.f32.mrf.mxu1 }
 0x5ed   : > { %v5740_v45 = vpop.f32.mrf.mxu2 }
 0x5ee   : > { %v5781_v9 = vpop.f32.mrf.mxu0  ;;  %v5741_v43 = vadd.f32 %v5740_v45, %v5699_v60 }
 0x5f0   : > { %v5782_v5 = vadd.f32 %v5781_v9, %v5741_v43 }
 0x5f3   : > { %v5702_v53 = vpop.f32.mrf.mxu1 }
 0x5f5   : > { %v5743_v58 = vpop.f32.mrf.mxu2 }
 0x5f6   : > { %v5744_v4 = vadd.f32 %v5743_v58, %v5702_v53  ;;  %v5784_v63 = vpop.f32.mrf.mxu0 }
 0x5f8   : > { %v5785_v31 = vadd.f32 %v5784_v63, %v5744_v4 }
 0x5fb   : > { %v5804_v19 = vpop.f32.mrf.mxu1 }
 0x5fc   : > { %v5805_v25 = vadd.f32 %v5804_v19, %v5764_v47 }
 0x5fe   : > { %6838 = vmatmul.msk.f32.vlgmr.msra.gmra.mxu2 %vm3612_vm2, %v5805_v25 }
 0x603   : > { %v5807_v35 = vpop.f32.mrf.mxu1 }
 0x604   : > { %v5808_v10 = vadd.f32 %v5807_v35, %v5767_v46 }
 0x606   : > { %6839 = vmatmul.msk.f32.gmra.mxu2 %vm3612_vm2, %v5808_v10 }
 0x60b   : > { %v5810_v14 = vpop.f32.mrf.mxu1 }
 0x60c   : > { %v5811_v16 = vadd.f32 %v5810_v14, %v5770_v37 }
 0x60e   : > { %6840 = vmatmul.msk.f32.gmra.mxu2 %vm3612_vm2, %v5811_v16 }
 0x613   : > { %v5813_v6 = vpop.f32.mrf.mxu1 }
 0x614   : > { %v5814_v27 = vadd.f32 %v5813_v6, %v5773_v44 }
 0x616   : > { %6841 = vmatmul.msk.f32.gmra.mxu2 %vm3612_vm2, %v5814_v27 }
 0x61b   : > { %v5816_v49 = vpop.f32.mrf.mxu1 }
 0x61c   : > { %v5817_v8 = vadd.f32 %v5816_v49, %v5776_v38 }
 0x61e   : > { %6842 = vmatmul.msk.f32.gmra.mxu2 %vm3612_vm2, %v5817_v8 }
 0x623   : > { %v5819_v3 = vpop.f32.mrf.mxu1 }
 0x624   : > { %v5820_v36 = vadd.f32 %v5819_v3, %v5779_v12 }
 0x626   : > { %6843 = vmatmul.msk.f32.gmra.mxu2 %vm3612_vm2, %v5820_v36 }
 0x62b   : > { %v5822_v59 = vpop.f32.mrf.mxu1 }
 0x62c   : > { %v5823_v11 = vadd.f32 %v5822_v59, %v5782_v5 }
 0x62e   : > { %6844 = vmatmul.msk.f32.gmra.mxu2 %vm3612_vm2, %v5823_v11 }
 0x633   : > { %v5825_v54 = vpop.f32.mrf.mxu1 }
 0x634   : > { %v5826_v13 = vadd.f32 %v5825_v54, %v5785_v31 }
 0x636   : > { %6845 = vmatmul.msk.f32.gmra.mxu2 %vm3612_vm2, %v5826_v13 }
 0x681   : > { %v5870_v24 = vpop.f32.mrf.mxu2 }
 0x682   : > { %v5871_v0 = vadd.f32 %v11672_v61, %v5870_v24 }
 0x684   : > { %v5902_v56 = vand.u32 2147483647, %v5871_v0  ;;  %v5894_v57 = vmax.f32 %v5871_v0, 0.0 }
 0x686   : > { %v5910_v42 = vsub.f32 0.0, %v5902_v56 }
 0x688   : > { %v5918_v50 = vmul.f32 1.442695, %v5910_v42 }
 0x689   : > { %v5873_v34 = vpop.f32.mrf.mxu2 }
 0x68a   : > { %7665 = vpow2.f32 %v5918_v50  ;;  %v5874_v41 = vadd.f32 %v11672_v61, %v5873_v34 }
 0x68c   : > { %v5903_v20 = vand.u32 2147483647, %v5874_v41  ;;  %v5895_v8 = vmax.f32 %v5874_v41, 0.0 }
 0x68e   : > { %v5911_v52 = vsub.f32 0.0, %v5903_v20 }
 0x690   : > { %v7666_v21 = vpop.eup %7665  ;;  %v5920_v7 = vmul.f32 1.442695, %v5911_v52 }
 0x691   : > { %v5934_v48 = vadd.f32 1.0, %v7666_v21  ;;  %v5937_v23 = vmul.f32 -0.5, %v7666_v21  ;;  %v5876_v62 = vpop.f32.mrf.mxu2  ;;  %v5940_v26 = vand.u32 2147483647, %v7666_v21 }
 0x692   : > { %7667 = vpow2.f32 %v5920_v7  ;;  %v11677_v60 = vadd.f32 %v11672_v61, %v5876_v62 }
 0x693   : > { %7669 = vlog2.f32 %v5934_v48  ;;  %v5938_v53 = vadd.f32 1.0, %v5937_v23  ;;  %vm5941_vm9 = vcmp.lt.f32.partialorder %v5940_v26, 0.0004427343 }
 0x694   : > { %v5904_v55 = vand.u32 2147483647, %v11677_v60  ;;  %v5896_v24 = vmax.f32 %v11677_v60, 0.0 }
 0x695   : > { %v5939_v40 = vmul.f32 %v7666_v21, %v5938_v53 }
 0x696   : > { %v5912_v33 = vsub.f32 0.0, %v5904_v55 }
 0x698   : > { %v7668_v47 = vpop.eup %7667  ;;  %v5922_v19 = vmul.f32 1.442695, %v5912_v33 }
 0x699   : > { %v7670_v25 = vpop.eup %7669  ;;  %v5943_v51 = vadd.f32 1.0, %v7668_v47  ;;  %v5879_v46 = vpop.f32.mrf.mxu2  ;;  %v5946_v30 = vmul.f32 -0.5, %v7668_v47  ;;  %v5949_v32 = vand.u32 2147483647, %v7668_v47 }
 0x69a   : > { %v5936_v35 = vmul.f32 0.6931472, %v7670_v25  ;;  %7671 = vpow2.f32 %v5922_v19  ;;  %v11684_v10 = vadd.f32 %v11672_v61, %v5879_v46 }
 0x69b   : > { %7673 = vlog2.f32 %v5943_v51  ;;  %v5947_v16 = vadd.f32 1.0, %v5946_v30  ;;  %vm5950_vm10 = vcmp.lt.f32.partialorder %v5949_v32, 0.0004427343 }
 0x69c   : > { %v5942_v15 = vsel %vm5941_vm9, %v5939_v40, %v5936_v35  ;;  %v5905_v37 = vand.u32 2147483647, %v11684_v10  ;;  %v5897_v33 = vmax.f32 %v11684_v10, 0.0  ;;  %v363_v10 = vld [vmem:[%s11843_s2 + $0xb8] sm:$0xff] }
 0x69d   : > { %v6006_v14 = vadd.f32 %v5942_v15, %v5894_v57  ;;  %v5948_v49 = vmul.f32 %v7668_v47, %v5947_v16  ;;  %6141 = vmatpush.msra.mxu0 %v363_v10 }
 0x69e   : > { %v5913_v22 = vsub.f32 0.0, %v5905_v37 }
 0x69f   : > { %v6846_v39 = vadd.f32 -0.6931472, %v6006_v14 }
 0x6a0   : > { %v7672_v44 = vpop.eup %7671  ;;  %v5924_v6 = vmul.f32 1.442695, %v5913_v22 }
 0x6a1   : > { %v7674_v27 = vpop.eup %7673  ;;  %v5952_v29 = vadd.f32 1.0, %v7672_v44  ;;  %v5955_v17 = vmul.f32 -0.5, %v7672_v44  ;;  %v5882_v1 = vpop.f32.mrf.mxu2  ;;  %6854 = vmatmul.msk.f32.vlgmr.msra.gmra.mxu3 %vm3612_vm2, %v6846_v39  ;;  %v5958_v43 = vand.u32 2147483647, %v7672_v44 }
 0x6a2   : > { %v5945_v38 = vmul.f32 0.6931472, %v7674_v27  ;;  %7675 = vpow2.f32 %v5924_v6  ;;  %v11689_v28 = vadd.f32 %v11672_v61, %v5882_v1 }
 0x6a3   : > { %7677 = vlog2.f32 %v5952_v29  ;;  %v5956_v3 = vadd.f32 1.0, %v5955_v17  ;;  %vm5959_vm11 = vcmp.lt.f32.partialorder %v5958_v43, 0.0004427343 }
 0x6a4   : > { %v5951_v2 = vsel %vm5950_vm10, %v5948_v49, %v5945_v38  ;;  %v5906_v45 = vand.u32 2147483647, %v11689_v28  ;;  %v5898_v39 = vmax.f32 %v11689_v28, 0.0  ;;  %vm6376_vm10 = vcmask 57344  }
 0x6a5   : > { %v6007_v12 = vadd.f32 %v5951_v2, %v5895_v8  ;;  %v5957_v11 = vmul.f32 %v7672_v44, %v5956_v3 }
 0x6a6   : > { %v5914_v36 = vsub.f32 0.0, %v5906_v45 }
 0x6a7   : > { %v6847_v9 = vadd.f32 -0.6931472, %v6007_v12 }
 0x6a8   : > { %v7676_v5 = vpop.eup %7675  ;;  %v5926_v59 = vmul.f32 1.442695, %v5914_v36 }
 0x6a9   : > { %v7678_v58 = vpop.eup %7677  ;;  %v5961_v4 = vadd.f32 1.0, %v7676_v5  ;;  %v5885_v63 = vpop.f32.mrf.mxu2  ;;  %6855 = vmatmul.msk.f32.gmra.mxu3 %vm3612_vm2, %v6847_v9  ;;  %v5964_v54 = vmul.f32 -0.5, %v7676_v5  ;;  %v5967_v20 = vand.u32 2147483647, %v7676_v5 }
 0x6aa   : > { %v5954_v31 = vmul.f32 0.6931472, %v7678_v58  ;;  %7679 = vpow2.f32 %v5926_v59  ;;  %v11694_v13 = vadd.f32 %v11672_v61, %v5885_v63 }
 0x6ab   : > { %7681 = vlog2.f32 %v5961_v4  ;;  %v5965_v50 = vadd.f32 1.0, %v5964_v54  ;;  %vm5968_vm12 = vcmp.lt.f32.partialorder %v5967_v20, 0.0004427343 }
 0x6ac   : > { %v5960_v0 = vsel %vm5959_vm11, %v5957_v11, %v5954_v31  ;;  %v5907_v56 = vand.u32 2147483647, %v11694_v13  ;;  %v5899_v28 = vmax.f32 %v11694_v13, 0.0 }
 0x6ad   : > { %v6008_v42 = vadd.f32 %v5960_v0, %v5896_v24  ;;  %v5966_v60 = vmul.f32 %v7676_v5, %v5965_v50 }
 0x6ae   : > { %v5915_v34 = vsub.f32 0.0, %v5907_v56 }
 0x6af   : > { %v6848_v41 = vadd.f32 -0.6931472, %v6008_v42 }
 0x6b0   : > { %v7680_v52 = vpop.eup %7679  ;;  %v5928_v21 = vmul.f32 1.442695, %v5915_v34 }
 0x6b1   : > { %v7682_v7 = vpop.eup %7681  ;;  %v5970_v48 = vadd.f32 1.0, %v7680_v52  ;;  %v5973_v23 = vmul.f32 -0.5, %v7680_v52  ;;  %v5888_v62 = vpop.f32.mrf.mxu2  ;;  %6856 = vmatmul.msk.f32.gmra.mxu3 %vm3612_vm2, %v6848_v41  ;;  %v5976_v51 = vand.u32 2147483647, %v7680_v52 }
 0x6b2   : > { %v5963_v55 = vmul.f32 0.6931472, %v7682_v7  ;;  %7683 = vpow2.f32 %v5928_v21  ;;  %v11700_v53 = vadd.f32 %v11672_v61, %v5888_v62  ;;  %v360_v62 = vld [vmem:[%s11843_s2 + $0xa0] sm:$0xff] }
 0x6b3   : > { %7685 = vlog2.f32 %v5970_v48  ;;  %v5974_v19 = vadd.f32 1.0, %v5973_v23  ;;  %vm5977_vm13 = vcmp.lt.f32.partialorder %v5976_v51, 0.0004427343  ;;  %v362_v48 = vld [vmem:[%s11843_s2 + $0xb0] sm:$0xff]  ;;  %v361_v23 = vld [vmem:[%s11843_s2 + $0xa8] sm:$0xff] }
 0x6b4   : > { %v5969_v26 = vsel %vm5968_vm12, %v5966_v60, %v5963_v55  ;;  %v5908_v18 = vand.u32 2147483647, %v11700_v53  ;;  %v5900_v54 = vmax.f32 %v11700_v53, 0.0  ;;  %6142 = vmatpush.msra.mxu0 %v362_v48  ;;  %v6894_v55 = vld [vmem:[%s11844_s3 + $0x3] ss:$0 sm:$0xff]  ;;  %v7745_v51 = vld [vmem:[%s7922_s24 + $0x10] sm:$0xff] }
 0x6b5   : > { %v6009_v47 = vadd.f32 %v5969_v26, %v5897_v33  ;;  %v5975_v57 = vmul.f32 %v7680_v52, %v5974_v19  ;;  %v7743_v53 = vld [vmem:[%s7922_s24] sm:$0xff] }
 0x6b6   : > { %v5916_v25 = vsub.f32 0.0, %v5908_v18  ;;  %6143 = vmatpush.msra.mxu0 %v361_v23 }
 0x6b7   : > { %v6849_v40 = vadd.f32 -0.6931472, %v6009_v47  ;;  %v7744_v47 = vld [vmem:[%s7922_s24 + $0x8] sm:$0xff] }
 0x6b8   : > { %v7684_v46 = vpop.eup %7683  ;;  %v5930_v35 = vmul.f32 1.442695, %v5916_v25  ;;  %6144 = vmatpush.msra.mxu0 %v360_v62 }
 0x6b9   : > { %v7686_v30 = vpop.eup %7685  ;;  %v5979_v15 = vadd.f32 1.0, %v7684_v46  ;;  %v5891_v37 = vpop.f32.mrf.mxu2  ;;  %6857 = vmatmul.msk.f32.gmra.mxu3 %vm3612_vm2, %v6849_v40  ;;  %v5982_v16 = vmul.f32 -0.5, %v7684_v46  ;;  %v5985_v1 = vand.u32 2147483647, %v7684_v46 }
 0x6ba   : > { %v5972_v14 = vmul.f32 0.6931472, %v7686_v30  ;;  %7687 = vpow2.f32 %v5930_v35  ;;  %v5892_v22 = vadd.f32 %v11672_v61, %v5891_v37 }
 0x6bb   : > { %7689 = vlog2.f32 %v5979_v15  ;;  %v5983_v27 = vadd.f32 1.0, %v5982_v16  ;;  %vm5986_vm14 = vcmp.lt.f32.partialorder %v5985_v1, 0.0004427343 }
 0x6bc   : > { %v5978_v32 = vsel %vm5977_vm13, %v5975_v57, %v5972_v14  ;;  %v5909_v44 = vand.u32 2147483647, %v5892_v22  ;;  %v5901_v20 = vmax.f32 %v5892_v22, 0.0  ;;  %v7746_v57 = vld [vmem:[%s7922_s24 + $0x18] sm:$0xff]  ;;  %v7747_v14 = vld [vmem:[%s7922_s24 + $0x20] sm:$0xff] }
 0x6bd   : > { %v6010_v6 = vadd.f32 %v5978_v32, %v5898_v39  ;;  %v5984_v61 = vmul.f32 %v7684_v46, %v5983_v27  ;;  %v7748_v32 = vld [vmem:[%s7922_s24 + $0x28] sm:$0xff] }
 0x6be   : > { %v5917_v29 = vsub.f32 0.0, %v5909_v44 }
 0x6bf   : > { %v6850_v17 = vadd.f32 -0.6931472, %v6010_v6 }
 0x6c0   : > { %v7688_v38 = vpop.eup %7687  ;;  %v5932_v49 = vmul.f32 1.442695, %v5917_v29  ;;  %v7749_v29 = vld [vmem:[%s7922_s24 + $0x30] sm:$0xff] }
 0x6c1   : > { %v7690_v8 = vpop.eup %7689  ;;  %v5988_v2 = vadd.f32 1.0, %v7688_v38  ;;  %6858 = vmatmul.msk.f32.gmra.mxu3 %vm3612_vm2, %v6850_v17  ;;  %v5991_v12 = vmul.f32 -0.5, %v7688_v38  ;;  %v5994_v5 = vand.u32 2147483647, %v7688_v38 }
 0x6c2   : > { %v5981_v45 = vmul.f32 0.6931472, %v7690_v8  ;;  %7691 = vpow2.f32 %v5932_v49  ;;  %v7750_v49 = vld [vmem:[%s7922_s24 + $0x38] sm:$0xff] }
 0x6c3   : > { %7693 = vlog2.f32 %v5988_v2  ;;  %v5992_v9 = vadd.f32 1.0, %v5991_v12  ;;  %vm5995_vm15 = vcmp.lt.f32.partialorder %v5994_v5, 0.0004427343 }
 0x6c4   : > { %v5987_v3 = vsel %vm5986_vm14, %v5984_v61, %v5981_v45  ;;  %v11747_v45 = vld [vmem:[%s11844_s3 + $0x4] ss:$0 sm:$0xff] }
 0x6c5   : > { %v6011_v36 = vadd.f32 %v5987_v3, %v5899_v28  ;;  %v5993_v63 = vmul.f32 %v7688_v38, %v5992_v9 }
 0x6c7   : > { %v6851_v43 = vadd.f32 -0.6931472, %v6011_v36 }
 0x6c8   : > { %v7692_v59 = vpop.eup %7691 }
 0x6c9   : > { %v7694_v58 = vpop.eup %7693  ;;  %v5997_v11 = vadd.f32 1.0, %v7692_v59  ;;  %6859 = vmatmul.msk.f32.gmra.mxu3 %vm3612_vm2, %v6851_v43  ;;  %v6000_v31 = vmul.f32 -0.5, %v7692_v59  ;;  %v6003_v42 = vand.u32 2147483647, %v7692_v59 }
 0x6ca   : > { %v5990_v4 = vmul.f32 0.6931472, %v7694_v58 }
 0x6cb   : > { %7695 = vlog2.f32 %v5997_v11  ;;  %v6001_v0 = vadd.f32 1.0, %v6000_v31  ;;  %vm6004_vm3 = vcmp.lt.f32.partialorder %v6003_v42, 0.0004427343 }
 0x6cc   : > { %v5996_v13 = vsel %vm5995_vm15, %v5993_v63, %v5990_v4 }
 0x6cd   : > { %v6012_v24 = vadd.f32 %v5996_v13, %v5900_v54  ;;  %v6002_v41 = vmul.f32 %v7692_v59, %v6001_v0 }
 0x6cf   : > { %v6852_v56 = vadd.f32 -0.6931472, %v6012_v24 }
 0x6d1   : > { %v7696_v50 = vpop.eup %7695  ;;  %6860 = vmatmul.msk.f32.gmra.mxu3 %vm3612_vm2, %v6852_v56 }
 0x6d2   : > { %v5999_v34 = vmul.f32 0.6931472, %v7696_v50 }
 0x6d4   : > { %v6005_v52 = vsel %vm6004_vm3, %v6002_v41, %v5999_v34 }
 0x6d5   : > { %v6013_v21 = vadd.f32 %v6005_v52, %v5901_v20 }
 0x6d7   : > { %v6853_v7 = vadd.f32 -0.6931472, %v6013_v21 }
 0x6d9   : > { %6861 = vmatmul.msk.f32.gmra.mxu3 %vm3612_vm2, %v6853_v7 }
 0x724   : > { %v6063_v60 = vpop.f32.mrf.mxu3 }
 0x725   : > { %v6087_v33 = vadd.f32 %v7743_v53, %v6063_v60 }
 0x727   : > { %v6096_v26 = vadd.f32 %v6894_v55, %v6087_v33 }
 0x729   : > { %6862 = vmatmul.msk.f32.vlgmr.msra.gmra.mxu0 %vm3612_vm2, %v6096_v26 }
 0x72c   : > { %v6066_v18 = vpop.f32.mrf.mxu3 }
 0x72d   : > { %v6088_v19 = vadd.f32 %v7744_v47, %v6066_v18 }
 0x72f   : > { %v6097_v25 = vadd.f32 %v6894_v55, %v6088_v19 }
 0x731   : > { %6863 = vmatmul.msk.f32.gmra.mxu0 %vm3612_vm2, %v6097_v25 }
 0x734   : > { %v6069_v40 = vpop.f32.mrf.mxu3 }
 0x735   : > { %v6089_v46 = vadd.f32 %v7745_v51, %v6069_v40 }
 0x737   : > { %v6098_v35 = vadd.f32 %v6894_v55, %v6089_v46 }
 0x739   : > { %6864 = vmatmul.msk.f32.gmra.mxu0 %vm3612_vm2, %v6098_v35 }
 0x73c   : > { %v6072_v30 = vpop.f32.mrf.mxu3 }
 0x73d   : > { %v6090_v15 = vadd.f32 %v7746_v57, %v6072_v30 }
 0x73f   : > { %v6099_v37 = vadd.f32 %v6894_v55, %v6090_v15  ;;  %v11765_v15 = vld [vmem:[%s11844_s3 + $0x6] ss:$0 sm:$0xff] }
 0x741   : > { %6865 = vmatmul.msk.f32.gmra.mxu0 %vm3612_vm2, %v6099_v37 }
 0x744   : > { %v6075_v10 = vpop.f32.mrf.mxu3 }
 0x745   : > { %v6091_v16 = vadd.f32 %v7747_v14, %v6075_v10 }
 0x747   : > { %v6100_v22 = vadd.f32 %v6894_v55, %v6091_v16 }
 0x749   : > { %6866 = vmatmul.msk.f32.gmra.mxu0 %vm3612_vm2, %v6100_v22 }
 0x74c   : > { %v6078_v39 = vpop.f32.mrf.mxu3 }
 0x74d   : > { %v6092_v44 = vadd.f32 %v7748_v32, %v6078_v39 }
 0x74f   : > { %v6101_v6 = vadd.f32 %v6894_v55, %v6092_v44 }
 0x751   : > { %6867 = vmatmul.msk.f32.gmra.mxu0 %vm3612_vm2, %v6101_v6 }
 0x754   : > { %v6081_v27 = vpop.f32.mrf.mxu3 }
 0x755   : > { %v6093_v17 = vadd.f32 %v7749_v29, %v6081_v27 }
 0x757   : > { %v6102_v1 = vadd.f32 %v6894_v55, %v6093_v17 }
 0x759   : > { %6868 = vmatmul.msk.f32.gmra.mxu0 %vm3612_vm2, %v6102_v1 }
 0x75c   : > { %v6084_v38 = vpop.f32.mrf.mxu3 }
 0x75d   : > { %v6094_v8 = vadd.f32 %v7750_v49, %v6084_v38 }
 0x75f   : > { %v6103_v2 = vadd.f32 %v6894_v55, %v6094_v8 }
 0x761   : > { %6869 = vmatmul.msk.f32.gmra.mxu0 %vm3612_vm2, %v6103_v2 }
 0x7a6   : > { %v6146_v61 = vpop.f32.mrf.mxu0 }
 0x7a7   : > { %v6147_v12 = vadd.f32 %v11747_v45, %v6146_v61 }
 0x7a9   : > { %v6178_v28 = vand.u32 2147483647, %v6147_v12  ;;  %v6170_v23 = vmax.f32 %v6147_v12, 0.0 }
 0x7ab   : > { %v6186_v3 = vsub.f32 0.0, %v6178_v28 }
 0x7ad   : > { %v6194_v36 = vmul.f32 1.442695, %v6186_v3 }
 0x7ae   : > { %v6149_v9 = vpop.f32.mrf.mxu0 }
 0x7af   : > { %7697 = vpow2.f32 %v6194_v36  ;;  %v6150_v43 = vadd.f32 %v11747_v45, %v6149_v9 }
 0x7b1   : > { %v6179_v5 = vand.u32 2147483647, %v6150_v43  ;;  %v6171_v37 = vmax.f32 %v6150_v43, 0.0 }
 0x7b3   : > { %v6187_v59 = vsub.f32 0.0, %v6179_v5 }
 0x7b5   : > { %v7698_v58 = vpop.eup %7697  ;;  %v6196_v11 = vmul.f32 1.442695, %v6187_v59 }
 0x7b6   : > { %v6210_v4 = vadd.f32 1.0, %v7698_v58  ;;  %v6213_v63 = vmul.f32 -0.5, %v7698_v58  ;;  %v6152_v31 = vpop.f32.mrf.mxu0  ;;  %v6216_v56 = vand.u32 2147483647, %v7698_v58 }
 0x7b7   : > { %7699 = vpow2.f32 %v6196_v11  ;;  %v11752_v54 = vadd.f32 %v11747_v45, %v6152_v31 }
 0x7b8   : > { %7701 = vlog2.f32 %v6210_v4  ;;  %v6214_v24 = vadd.f32 1.0, %v6213_v63  ;;  %vm6217_vm2 = vcmp.lt.f32.partialorder %v6216_v56, 0.0004427343 }
 0x7b9   : > { %v6180_v13 = vand.u32 2147483647, %v11752_v54  ;;  %v6172_v28 = vmax.f32 %v11752_v54, 0.0 }
 0x7ba   : > { %v6215_v41 = vmul.f32 %v7698_v58, %v6214_v24 }
 0x7bb   : > { %v6188_v0 = vsub.f32 0.0, %v6180_v13 }
 0x7bd   : > { %v7700_v42 = vpop.eup %7699  ;;  %v6198_v50 = vmul.f32 1.442695, %v6188_v0 }
 0x7be   : > { %v7702_v34 = vpop.eup %7701  ;;  %v6219_v20 = vadd.f32 1.0, %v7700_v42  ;;  %v6155_v52 = vpop.f32.mrf.mxu0  ;;  %v6222_v7 = vmul.f32 -0.5, %v7700_v42  ;;  %v6225_v26 = vand.u32 2147483647, %v7700_v42 }
 0x7bf   : > { %v6212_v21 = vmul.f32 0.6931472, %v7702_v34  ;;  %7703 = vpow2.f32 %v6198_v50  ;;  %v11756_v48 = vadd.f32 %v11747_v45, %v6155_v52 }
 0x7c0   : > { %7705 = vlog2.f32 %v6219_v20  ;;  %v6223_v53 = vadd.f32 1.0, %v6222_v7  ;;  %vm6226_vm4 = vcmp.lt.f32.partialorder %v6225_v26, 0.0004427343 }
 0x7c1   : > { %v6218_v62 = vsel %vm6217_vm2, %v6215_v41, %v6212_v21  ;;  %v6181_v55 = vand.u32 2147483647, %v11756_v48  ;;  %v6173_v34 = vmax.f32 %v11756_v48, 0.0 }
 0x7c2   : > { %v6282_v60 = vadd.f32 %v6218_v62, %v6170_v23  ;;  %v6224_v30 = vmul.f32 %v7700_v42, %v6223_v53 }
 0x7c3   : > { %v6189_v33 = vsub.f32 0.0, %v6181_v55 }
 0x7c4   : > { %v6870_v46 = vadd.f32 -0.6931472, %v6282_v60 }
 0x7c5   : > { %v7704_v18 = vpop.eup %7703  ;;  %v6200_v47 = vmul.f32 1.442695, %v6189_v33 }
 0x7c6   : > { %v7706_v19 = vpop.eup %7705  ;;  %v6228_v25 = vadd.f32 1.0, %v7704_v18  ;;  %v6231_v40 = vmul.f32 -0.5, %v7704_v18  ;;  %v6158_v51 = vpop.f32.mrf.mxu0  ;;  %v6299_v16 = vmul.f32 %v11765_v15, %v6870_v46  ;;  %v6234_v6 = vand.u32 2147483647, %v7704_v18 }
 0x7c7   : > { %v6221_v35 = vmul.f32 0.6931472, %v7706_v19  ;;  %7707 = vpow2.f32 %v6200_v47  ;;  %v11760_v57 = vadd.f32 %v11747_v45, %v6158_v51 }
 0x7c8   : > { %7709 = vlog2.f32 %v6228_v25  ;;  %v6232_v39 = vadd.f32 1.0, %v6231_v40  ;;  %v6307_v44 = vsel %vm2185_vm7, %v6299_v16, 0.0  ;;  %vm6235_vm5 = vcmp.lt.f32.partialorder %v6234_v6, 0.0004427343 }
 0x7c9   : > { %v6227_v10 = vsel %vm6226_vm4, %v6224_v30, %v6221_v35  ;;  %v6182_v14 = vand.u32 2147483647, %v11760_v57  ;;  %6308 = vadd.xlane.f32.xlu1 %v6307_v44  ;;  %v6174_v46 = vmax.f32 %v11760_v57, 0.0 }
 0x7ca   : > { %v6283_v22 = vadd.f32 %v6227_v10, %v6171_v37  ;;  %v6233_v1 = vmul.f32 %v7704_v18, %v6232_v39 }
 0x7cb   : > { %v6190_v32 = vsub.f32 0.0, %v6182_v14  ;;  %v7759_v14 = vmov 0  }
 0x7cc   : > { %v6871_v8 = vadd.f32 -0.6931472, %v6283_v22  ;;  %6889 = vset.pattern.permute.xlu0 %v7759_v14 }
 0x7cd   : > { %v7708_v27 = vpop.eup %7707  ;;  %v6202_v29 = vmul.f32 1.442695, %v6190_v32 }
 0x7ce   : > { %v7710_v17 = vpop.eup %7709  ;;  %v6237_v38 = vadd.f32 1.0, %v7708_v27  ;;  %v6161_v49 = vpop.f32.mrf.mxu0  ;;  %v6240_v61 = vmul.f32 -0.5, %v7708_v27  ;;  %v6300_v3 = vmul.f32 %v11765_v15, %v6871_v8  ;;  %v6243_v11 = vand.u32 2147483647, %v7708_v27 }
 0x7cf   : > { %v6230_v2 = vmul.f32 0.6931472, %v7710_v17  ;;  %7711 = vpow2.f32 %v6202_v29  ;;  %v11771_v12 = vadd.f32 %v11747_v45, %v6161_v49 }
 0x7d0   : > { %7713 = vlog2.f32 %v6237_v38  ;;  %v6310_v5 = vsel %vm2185_vm7, %v6300_v3, 0.0  ;;  %v6241_v59 = vadd.f32 1.0, %v6240_v61  ;;  %vm6244_vm1 = vcmp.lt.f32.partialorder %v6243_v11, 0.0004427343 }
 0x7d1   : > { %v6236_v36 = vsel %vm6235_vm5, %v6233_v1, %v6230_v2  ;;  %v6183_v9 = vand.u32 2147483647, %v11771_v12  ;;  %6311 = vadd.xlane.f32.xlu2 %v6310_v5  ;;  %v6175_v38 = vmax.f32 %v11771_v12, 0.0 }
 0x7d2   : > { %v6284_v43 = vadd.f32 %v6236_v36, %v6172_v28  ;;  %v6242_v42 = vmul.f32 %v7708_v27, %v6241_v59 }
 0x7d3   : > { %v6191_v58 = vsub.f32 0.0, %v6183_v9 }
 0x7d4   : > { %v6872_v0 = vadd.f32 -0.6931472, %v6284_v43 }
 0x7d5   : > { %v7712_v4 = vpop.eup %7711  ;;  %v6204_v63 = vmul.f32 1.442695, %v6191_v58 }
 0x7d6   : > { %v7714_v31 = vpop.eup %7713  ;;  %v6246_v13 = vadd.f32 1.0, %v7712_v4  ;;  %v6249_v24 = vmul.f32 -0.5, %v7712_v4  ;;  %v6164_v54 = vpop.f32.mrf.mxu0  ;;  %v6301_v41 = vmul.f32 %v11765_v15, %v6872_v0  ;;  %v6252_v55 = vand.u32 2147483647, %v7712_v4 }
 0x7d7   : > { %v6239_v56 = vmul.f32 0.6931472, %v7714_v31  ;;  %7715 = vpow2.f32 %v6204_v63  ;;  %v11778_v50 = vadd.f32 %v11747_v45, %v6164_v54 }
 0x7d8   : > { %7717 = vlog2.f32 %v6246_v13  ;;  %v6250_v7 = vadd.f32 1.0, %v6249_v24  ;;  %v6313_v23 = vsel %vm2185_vm7, %v6301_v41, 0.0  ;;  %vm6253_vm6 = vcmp.lt.f32.partialorder %v6252_v55, 0.0004427343 }
 0x7d9   : > { %v6245_v20 = vsel %vm6244_vm1, %v6242_v42, %v6239_v56  ;;  %v6184_v52 = vand.u32 2147483647, %v11778_v50  ;;  %6314 = vadd.xlane.f32.xlu0 %v6313_v23  ;;  %v6176_v12 = vmax.f32 %v11778_v50, 0.0  ;;  %v371_v23 = vld [vmem:[%s11844_s3 + $0x7] sm:$0x1] }
 0x7da   : > { %v6285_v21 = vadd.f32 %v6245_v20, %v6173_v34  ;;  %v6251_v18 = vmul.f32 %v7712_v4, %v6250_v7  ;;  %v6369_v55 = vmul.f32 8.0, %v371_v23 }
 0x7db   : > { %v6192_v62 = vsub.f32 0.0, %v6184_v52 }
 0x7dc   : > { %v6873_v60 = vadd.f32 -0.6931472, %v6285_v21 }
 0x7dd   : > { %v7716_v53 = vpop.eup %7715  ;;  %v6206_v33 = vmul.f32 1.442695, %v6192_v62 }
 0x7de   : > { %v7718_v26 = vpop.eup %7717  ;;  %v6255_v48 = vadd.f32 1.0, %v7716_v53  ;;  %v6167_v47 = vpop.f32.mrf.mxu0  ;;  %v6302_v19 = vmul.f32 %v11765_v15, %v6873_v60  ;;  %v6258_v40 = vmul.f32 -0.5, %v7716_v53  ;;  %v6261_v39 = vand.u32 2147483647, %v7716_v53 }
 0x7df   : > { %v6248_v25 = vmul.f32 0.6931472, %v7718_v26  ;;  %7719 = vpow2.f32 %v6206_v33  ;;  %v6168_v51 = vadd.f32 %v11747_v45, %v6167_v47  ;;  %v6332_v33 = vld [vmem:[%s11848_s7 + $0x8] sm:$0xff] }
 0x7e0   : > { %7721 = vlog2.f32 %v6255_v48  ;;  %v6316_v35 = vsel %vm2185_vm7, %v6302_v19, 0.0  ;;  %v6259_v16 = vadd.f32 1.0, %v6258_v40  ;;  %vm6262_vm0 = vcmp.lt.f32.partialorder %v6261_v39, 0.0004427343  ;;  %v6334_v19 = vld [vmem:[%s11848_s7 + $0x18] sm:$0xff] }
 0x7e1   : > { %v6254_v30 = vsel %vm6253_vm6, %v6251_v18, %v6248_v25  ;;  %v6185_v37 = vand.u32 2147483647, %v6168_v51  ;;  %6317 = vadd.xlane.f32.xlu1 %v6316_v35  ;;  %v6177_v41 = vmax.f32 %v6168_v51, 0.0  ;;  %v6333_v18 = vld [vmem:[%s11848_s7 + $0x10] sm:$0xff]  ;;  %v6335_v51 = vld [vmem:[%s11848_s7 + $0x20] sm:$0xff] }
 0x7e2   : > { %v6286_v10 = vadd.f32 %v6254_v30, %v6174_v46  ;;  %v6260_v17 = vmul.f32 %v7716_v53, %v6259_v16 }
 0x7e3   : > { %v6193_v22 = vsub.f32 0.0, %v6185_v37  ;;  %v6336_v37 = vld [vmem:[%s11848_s7 + $0x28] sm:$0xff] }
 0x7e4   : > { %v6874_v32 = vadd.f32 -0.6931472, %v6286_v10 }
 0x7e5   : > { %v7720_v44 = vpop.eup %7719  ;;  %v6208_v6 = vmul.f32 1.442695, %v6193_v22 }
 0x7e6   : > { %v7722_v27 = vpop.eup %7721  ;;  %v6264_v45 = vadd.f32 1.0, %v7720_v44  ;;  %v6303_v57 = vmul.f32 %v11765_v15, %v6874_v32  ;;  %v6267_v1 = vmul.f32 -0.5, %v7720_v44  ;;  %v6270_v28 = vand.u32 2147483647, %v7720_v44  ;;  %v6337_v32 = vld [vmem:[%s11848_s7 + $0x30] sm:$0xff] }
 0x7e7   : > { %v6257_v29 = vmul.f32 0.6931472, %v7722_v27  ;;  %7723 = vpow2.f32 %v6208_v6 }
 0x7e8   : > { %7725 = vlog2.f32 %v6264_v45  ;;  %v6319_v49 = vsel %vm2185_vm7, %v6303_v57, 0.0  ;;  %v6268_v61 = vadd.f32 1.0, %v6267_v1  ;;  %vm6271_vm8 = vcmp.lt.f32.partialorder %v6270_v28, 0.0004427343 }
 0x7e9   : > { %v6263_v8 = vsel %vm6262_vm0, %v6260_v17, %v6257_v29  ;;  %6320 = vadd.xlane.f32.xlu2 %v6319_v49  ;;  %v6338_v49 = vld [vmem:[%s11848_s7 + $0x38] sm:$0xff] }
 0x7ea   : > { %v6287_v2 = vadd.f32 %v6263_v8, %v6175_v38  ;;  %v6269_v58 = vmul.f32 %v7720_v44, %v6268_v61 }
 0x7ec   : > { %v6875_v3 = vadd.f32 -0.6931472, %v6287_v2 }
 0x7ed   : > { %v7724_v36 = vpop.eup %7723 }
 0x7ee   : > { %v7726_v9 = vpop.eup %7725  ;;  %v6273_v43 = vadd.f32 1.0, %v7724_v36  ;;  %v6304_v5 = vmul.f32 %v11765_v15, %v6875_v3  ;;  %v6276_v11 = vmul.f32 -0.5, %v7724_v36  ;;  %v6279_v24 = vand.u32 2147483647, %v7724_v36 }
 0x7ef   : > { %v6266_v59 = vmul.f32 0.6931472, %v7726_v9 }
 0x7f0   : > { %7727 = vlog2.f32 %v6273_v43  ;;  %v6322_v4 = vsel %vm2185_vm7, %v6304_v5, 0.0  ;;  %v6277_v13 = vadd.f32 1.0, %v6276_v11  ;;  %vm6280_vm9 = vcmp.lt.f32.partialorder %v6279_v24, 0.0004427343 }
 0x7f1   : > { %v6272_v63 = vsel %vm6271_vm8, %v6269_v58, %v6266_v59  ;;  %6323 = vadd.xlane.f32.xlu0 %v6322_v4 }
 0x7f2   : > { %v6288_v31 = vadd.f32 %v6272_v63, %v6176_v12  ;;  %v6278_v34 = vmul.f32 %v7724_v36, %v6277_v13 }
 0x7f4   : > { %v6876_v54 = vadd.f32 -0.6931472, %v6288_v31 }
 0x7f6   : > { %v7728_v0 = vpop.eup %7727  ;;  %v6305_v56 = vmul.f32 %v11765_v15, %v6876_v54 }
 0x7f7   : > { %v6275_v42 = vmul.f32 0.6931472, %v7728_v0 }
 0x7f8   : > { %v6325_v20 = vsel %vm2185_vm7, %v6305_v56, 0.0 }
 0x7f9   : > { %v6281_v50 = vsel %vm6280_vm9, %v6278_v34, %v6275_v42  ;;  %6326 = vadd.xlane.f32.xlu1 %v6325_v20 }
 0x7fa   : > { %v6289_v52 = vadd.f32 %v6281_v50, %v6177_v41 }
 0x7fc   : > { %v6877_v21 = vadd.f32 -0.6931472, %v6289_v52 }
 0x7fe   : > { %v6306_v7 = vmul.f32 %v11765_v15, %v6877_v21  ;;  %v6331_v15 = vld [vmem:[%s11848_s7] sm:$0xff] }
 0x800   : > { %v6328_v62 = vsel %vm2185_vm7, %v6306_v7, 0.0  ;;  %vm6347_vm7 = vcmask 64512  }
 0x801   : > { %6329 = vadd.xlane.f32.xlu2 %v6328_v62 }
 0x805   : > { %6372 = vperm.xlu0 %6889, %v6369_v55  }
 0x83c   : > { %v6309_v60 = vpop.xlane.xlu1 %6308 }
 0x83d   : > { %v6339_v25 = vmul.f32 %v6331_v15, %v6309_v60 }
 0x83f   : > { %v6348_v14 = vsel %vm6347_vm7, %v6339_v25, 0.0 }
 0x844   : > { %v6312_v53 = vpop.xlane.xlu2 %6311 }
 0x845   : > { %v6340_v47 = vmul.f32 %v6332_v33, %v6312_v53 }
 0x847   : > { %v6349_v35 = vsel %vm6347_vm7, %v6340_v47, 0.0 }
 0x848   : > { %v6350_v39 = vadd.f32 %v6349_v35, %v6348_v14 }
 0x84c   : > { %v6315_v26 = vpop.xlane.xlu0 %6314 }
 0x84d   : > { %v6341_v40 = vmul.f32 %v6333_v18, %v6315_v26 }
 0x84f   : > { %v6351_v16 = vsel %vm6347_vm7, %v6341_v40, 0.0 }
 0x850   : > { %v6352_v45 = vadd.f32 %v6351_v16, %v6350_v39 }
 0x854   : > { %v6318_v48 = vpop.xlane.xlu1 %6317 }
 0x855   : > { %v6342_v30 = vmul.f32 %v6334_v19, %v6318_v48 }
 0x857   : > { %v6353_v6 = vsel %vm6347_vm7, %v6342_v30, 0.0 }
 0x858   : > { %v6354_v17 = vadd.f32 %v6353_v6, %v6352_v45 }
 0x85c   : > { %v6321_v46 = vpop.xlane.xlu2 %6320 }
 0x85d   : > { %v6343_v22 = vmul.f32 %v6335_v51, %v6321_v46 }
 0x85f   : > { %v6355_v57 = vsel %vm6347_vm7, %v6343_v22, 0.0 }
 0x860   : > { %v6356_v38 = vadd.f32 %v6355_v57, %v6354_v17 }
 0x864   : > { %v6324_v10 = vpop.xlane.xlu0 %6323 }
 0x865   : > { %v6344_v27 = vmul.f32 %v6336_v37, %v6324_v10 }
 0x867   : > { %v6357_v1 = vsel %vm6347_vm7, %v6344_v27, 0.0 }
 0x868   : > { %v6358_v2 = vadd.f32 %v6357_v1, %v6356_v38 }
 0x86c   : > { %v6327_v44 = vpop.xlane.xlu1 %6326 }
 0x86d   : > { %v6345_v29 = vmul.f32 %v6337_v32, %v6327_v44 }
 0x86f   : > { %v6359_v8 = vsel %vm6347_vm7, %v6345_v29, 0.0 }
 0x870   : > { %v6360_v3 = vadd.f32 %v6359_v8, %v6358_v2 }
 0x874   : > { %v6330_v61 = vpop.xlane.xlu2 %6329 }
 0x875   : > { %v6346_v28 = vmul.f32 %v6338_v49, %v6330_v61 }
 0x877   : > { %v6361_v36 = vsel %vm6347_vm7, %v6346_v28, 0.0  ;;  %v6373_v12 = vpop.permute.xlu0 %6372 }
 0x878   : > { %v6362_v9 = vadd.f32 %v6361_v36, %v6360_v3 }
 0x87a   : > { %v6363_v43 = vrot.slane %v6362_v9, 4 }
 0x87c   : > { %v6364_v5 = vadd.f32 %v6363_v43, %v6362_v9 }
 0x87e   : > { %v6365_v59 = vrot.slane %v6364_v5, 2 }
 0x880   : > { %v6366_v58 = vadd.f32 %v6365_v59, %v6364_v5 }
 0x882   : > { %v6367_v11 = vrot.slane %v6366_v58, 1 }
 0x884   : > { %v6368_v4 = vadd.f32 %v6367_v11, %v6366_v58 }
 0x886   : > { %v6375_v63 = vadd.f32 %v6373_v12, %v6368_v4 }
 0x888   : > { %6377 = vst.msk [vmem:[%s325_s22] sm:$0x1] %vm6376_vm10, %v6375_v63 }
 0x889 PF: > { %s18_s27 = sadd.s32 1, %s7757_s27  }
 0x88a   : > { %p15_p5 = scmp.ge.s32.totalorder %s18_s27, 4  }
 0x88c   :  { %17 = sbr.rel (!%p15_p5) target bundleno = 1 (0x1), region = 85 }

</bundles_post_ra>
